<compile_context>
chip_gen: v6e
topology: v6e:2x2x1
jax: 0.10.0
libtpu: 0.0.40
codegen_flags: <defaults>
</compile_context>

<pallas_src>
import functools

import jax
import jax.numpy as jnp
from jax.experimental import pallas as pl
from jax.experimental.pallas import tpu as pltpu


# ----------------------------- helpers ---------------------------------------

def _round_up(x, m):
    return (x + m - 1) // m * m


# ----------------------------- Pallas kernel ---------------------------------

def _gemm_bias_act_kernel(x_ref, w_ref, b_ref, o_ref, *, act):
    """Single-K-step GEMM tile with fused bias + activation.

    x_ref: [tm, Kp] bf16, w_ref: [Kp, tn] bf16, b_ref: [1, tn] f32,
    o_ref: [tm, tn] (bf16 for hidden layers, f32 for the final sigmoid layer).
    """
    acc = jnp.dot(x_ref[...], w_ref[...], preferred_element_type=jnp.float32)
    acc = acc + b_ref[...]
    if act == "relu":
        acc = jnp.maximum(acc, 0.0)
    elif act == "sigmoid":
        # exp on the EUP + approx reciprocal (rides the otherwise-idle EUP slot).
        # Clamps keep the math finite and the result exactly inside [0, 1].
        acc = jnp.clip(acc, -30.0, 30.0)
        acc = pl.reciprocal(1.0 + jnp.exp(-acc), approx=True)
        acc = jnp.clip(acc, 0.0, 1.0)
    o_ref[...] = acc.astype(o_ref.dtype)


def gemm_bias_act(x, wp, bp, act, out_dtype, *, tm_max=512):
    """x [M, K] @ wp [K_pad, N_pad] + bp [1, N_pad] with fused activation.

    wp / bp are pre-packed (zero-padded, bf16 / f32) at init time.  x is zero-padded to
    [m_pad, K_pad] and fed to the MXU in bf16; accumulation is f32 inside the dot.
    Returns [M, N_pad] in `out_dtype` (padded N columns are sliced off by the caller).
    """
    M, K = x.shape
    Kp, Np = wp.shape
    assert K <= Kp

    tm = min(tm_max, _round_up(M, 16))              # 16: full bf16 sublane packing
    m_pad = _round_up(M, tm)
    tn = 256 if (Np % 256 == 0 and Np >= 512) else 128

    # v7x has two TensorCores: guarantee at least one "parallel" axis has >= 2 blocks.
    if m_pad // tm == 1 and Np // tn == 1 and tm >= 32:
        tm //= 2

    xq = jnp.pad(x, ((0, m_pad - M), (0, Kp - K))).astype(jnp.bfloat16)

    grid = (m_pad // tm, Np // tn)
    out_bytes = int(jnp.dtype(out_dtype).itemsize)
    cost = pl.CostEstimate(
        flops=2 * m_pad * Kp * Np,
        transcendentals=(m_pad * Np if act == "sigmoid" else 0),
        bytes_accessed=2 * (m_pad * Kp + Kp * Np) + 4 * Np + out_bytes * m_pad * Np,
    )

    out = pl.pallas_call(
        functools.partial(_gemm_bias_act_kernel, act=act),
        out_shape=jax.ShapeDtypeStruct((m_pad, Np), out_dtype),
        grid=grid,
        in_specs=[
            pl.BlockSpec((tm, Kp), lambda i, j: (i, 0)),
            pl.BlockSpec((Kp, tn), lambda i, j: (0, j)),
            pl.BlockSpec((1, tn), lambda i, j: (0, j)),
        ],
        out_specs=pl.BlockSpec((tm, tn), lambda i, j: (i, j)),
        compiler_params=pltpu.CompilerParams(
            dimension_semantics=("parallel", "parallel"),
            vmem_limit_bytes=32 * 1024 * 1024),
        cost_estimate=cost,
    )(xq, wp, bp)

    return out[:M]


# ------------------------------ conv plumbing (NHWC) --------------------------

def _im2col_nhwc(x, kh, kw, stride, pad):
    """x: [B, H, W, C] -> (patches [B*Hout*Wout, kh*kw*C], Hout, Wout).

    K order = (ky, kx, C) -- matches the packed conv weight.
    """
    B, H, W, C = x.shape
    Hout = (H + 2 * pad - kh) // stride + 1
    Wout = (W + 2 * pad - kw) // stride + 1
    xp = jnp.pad(x, ((0, 0), (pad, pad), (pad, pad), (0, 0)))
    cols = []
    for ky in range(kh):
        for kx in range(kw):
            cols.append(xp[:, ky:ky + stride * Hout:stride,
                           kx:kx + stride * Wout:stride, :])
    patches = jnp.stack(cols, axis=3)                 # [B, Hout, Wout, kh*kw, C]
    return patches.reshape(B * Hout * Wout, kh * kw * C), Hout, Wout


def conv2d_packed(x, wp, bp, cout, act, out_dtype):
    """Conv2d(kernel=4, stride=2, padding=1) in NHWC with pre-packed GEMM weights."""
    B = x.shape[0]
    patches, Hout, Wout = _im2col_nhwc(x, 4, 4, 2, 1)
    out = gemm_bias_act(patches, wp, bp, act, out_dtype)[:, :cout]
    return out.reshape(B, Hout, Wout, cout)


def conv_transpose2d_packed(x, wp, bp, cout, act, out_dtype):
    """ConvTranspose2d(kernel=4, stride=2, padding=1) in NHWC as ONE GEMM.

    LHS: stride-1 3x3 im2col of the (spatially 1-padded) input, K = 9*Cin.
    RHS: zero-embedded weight [9*Cin, 4*cout] with the 4 output phases along N; the
    phase interleave is then a reshape/transpose of the N axis of the GEMM output.
    """
    B, H, W, Cin = x.shape
    xp = jnp.pad(x, ((0, 0), (1, 1), (1, 1), (0, 0)))
    cols = [xp[:, ty:ty + H, tx:tx + W, :] for ty in range(3) for tx in range(3)]
    patches = jnp.stack(cols, axis=3).reshape(B * H * W, 9 * Cin)
    y = gemm_bias_act(patches, wp, bp, act, out_dtype)[:, :4 * cout]
    # [B*H*W, (r, c, cout)] -> [B, 2H, 2W, cout]
    y = y.reshape(B, H, W, 2, 2, cout).transpose(0, 1, 3, 2, 4, 5)
    return y.reshape(B, 2 * H, 2 * W, cout)


# ------------------------------- Autoencoder ---------------------------------

_LAYER_SPECS = [
    # (name, kind, Cin, Cout)
    ("enc1", "conv",   3,   64),
    ("enc2", "conv",   64,  128),
    ("enc3", "conv",   128, 256),
    ("dec1", "deconv", 256, 128),
    ("dec2", "deconv", 128, 64),
    ("dec3", "deconv", 64,  3),
]


def init_params(key):
    """PyTorch-layout float32 parameters (the reference spec)."""
    params = {}
    for name, kind, cin, cout in _LAYER_SPECS:
        key, kw_ = jax.random.split(key)
        wshape = (cout, cin, 4, 4) if kind == "conv" else (cin, cout, 4, 4)
        scale = 1.0 / jnp.sqrt(jnp.float32(cin * 4 * 4))
        params[name] = {
            "w": scale * jax.random.normal(kw_, wshape, dtype=jnp.float32),
            "b": jnp.zeros((cout,), jnp.float32),
        }
    return params


def _pack_gemm(w2, b2):
    K, N = w2.shape
    kp, npad = _round_up(K, 128), _round_up(N, 128)
    return {
        "w": jnp.pad(w2, ((0, kp - K), (0, npad - N))).astype(jnp.bfloat16),
        "b": jnp.pad(b2, (0, npad - N)).astype(jnp.float32).reshape(1, npad),
    }


def pack_params(params):
    """One-time conversion of PyTorch-layout params into padded bf16 GEMM operands."""
    packed = {}
    for name, kind, cin, cout in _LAYER_SPECS:
        w, b = params[name]["w"], params[name]["b"]
        if kind == "conv":
            # [Cout, Cin, kh, kw] -> [kh*kw*Cin, Cout], K order (ky, kx, Cin).
            w2 = w.transpose(2, 3, 1, 0).reshape(4 * 4 * cin, cout)
            b2 = b
        else:
            # ConvTranspose(4,2,1) -> stride-1 3x3 conv with the 4 phases stacked along N.
            # Output phase (r, c) at 3x3 tap (ty, tx) uses PyTorch tap
            # (3 + r - 2*ty, 3 + c - 2*tx) when r <= ty <= r+1 and c <= tx <= c+1, else 0.
            we = jnp.zeros((3, 3, cin, 2, 2, cout), jnp.float32)
            for r in range(2):
                for c in range(2):
                    for ty in range(r, r + 2):
                        for tx in range(c, c + 2):
                            we = we.at[ty, tx, :, r, c, :].set(
                                w[:, :, 3 + r - 2 * ty, 3 + c - 2 * tx])
            w2 = we.reshape(9 * cin, 4 * cout)
            b2 = jnp.tile(b, 4)
        packed[name] = _pack_gemm(w2, b2)
    return packed


def autoencoder_forward(packed, x_nchw):
    # NCHW -> NHWC once at the boundary; activations stay NHWC + bf16 between layers.
    h = x_nchw.transpose(0, 2, 3, 1).astype(jnp.bfloat16)
    # encoder: Conv(3->64) ReLU, Conv(64->128) ReLU, Conv(128->256) ReLU
    h = conv2d_packed(h, packed["enc1"]["w"], packed["enc1"]["b"], 64, "relu", jnp.bfloat16)
    h = conv2d_packed(h, packed["enc2"]["w"], packed["enc2"]["b"], 128, "relu", jnp.bfloat16)
    h = conv2d_packed(h, packed["enc3"]["w"], packed["enc3"]["b"], 256, "relu", jnp.bfloat16)
    # decoder: ConvT(256->128) ReLU, ConvT(128->64) ReLU, ConvT(64->3) Sigmoid
    h = conv_transpose2d_packed(h, packed["dec1"]["w"], packed["dec1"]["b"], 128, "relu", jnp.bfloat16)
    h = conv_transpose2d_packed(h, packed["dec2"]["w"], packed["dec2"]["b"], 64, "relu", jnp.bfloat16)
    h = conv_transpose2d_packed(h, packed["dec3"]["w"], packed["dec3"]["b"], 3, "sigmoid", jnp.float32)
    return h.transpose(0, 3, 1, 2)        # back to NCHW (PyTorch convention)


if __name__ == "__main__":
    key = jax.random.PRNGKey(0)
    kparams, kx = jax.random.split(key)
    params = init_params(kparams)
    packed = pack_params(params)          # one-time weight packing (outside jit)

    # NCHW input, small spatial size (16 -> 8 -> 4 -> 2 -> 4 -> 8 -> 16)
    x = jax.random.normal(kx, (2, 3, 16, 16), dtype=jnp.float32)

    fwd = jax.jit(autoencoder_forward)
    out = jax.block_until_ready(fwd(packed, x))

    assert out.shape == (2, 3, 16, 16), out.shape
    assert bool(jnp.all(jnp.isfinite(out)))
    assert bool(jnp.all((out >= 0.0) & (out <= 1.0)))  # sigmoid output range
    print("KERNEL_OK")
</pallas_src>

<mosaic_0001>
module attributes {stable_mosaic.version = 11 : i64} {
  func.func @_gemm_bias_act_kernel(%arg0: i32, %arg1: i32, %arg2: memref<64x128xbf16, #tpu.memory_space<vmem>>, %arg3: memref<128x128xbf16, #tpu.memory_space<vmem>>, %arg4: memref<1x128xf32, #tpu.memory_space<vmem>>, %arg5: memref<64x128xbf16, #tpu.memory_space<vmem>>) attributes {dimension_semantics = [#tpu.dimension_semantics<parallel>, #tpu.dimension_semantics<parallel>], iteration_bounds = array<i64: 2, 1>, scalar_prefetch = 0 : i64, scratch_operands = 0 : i64, tpu.core_type = #tpu.core_type<tc>, window_params = [{transform_indices = @transform_0, window_bounds = array<i64: 64, 128>}, {transform_indices = @transform_1, window_bounds = array<i64: 128, 128>}, {transform_indices = @transform_2, window_bounds = array<i64: 1, 128>}, {transform_indices = @transform_3, window_bounds = array<i64: 64, 128>}]} {
    %c0 = arith.constant 0 : index
    %c0_0 = arith.constant 0 : index
    %0 = vector.load %arg2[%c0, %c0_0] : memref<64x128xbf16, #tpu.memory_space<vmem>>, vector<64x128xbf16>
    %c0_1 = arith.constant 0 : index
    %c0_2 = arith.constant 0 : index
    %1 = vector.load %arg3[%c0_1, %c0_2] : memref<128x128xbf16, #tpu.memory_space<vmem>>, vector<128x128xbf16>
    %cst = arith.constant dense<0.000000e+00> : vector<64x128xf32>
    %2 = tpu.matmul %0, %1, %cst {dimension_numbers = #tpu.dot_dimension_numbers<[1], [0], [0], [1], [0, 0, 1, 1], [], []>} : vector<64x128xbf16>, vector<128x128xbf16>, vector<64x128xf32> -> vector<64x128xf32>
    %c0_3 = arith.constant 0 : index
    %c0_4 = arith.constant 0 : index
    %3 = vector.load %arg4[%c0_3, %c0_4] : memref<1x128xf32, #tpu.memory_space<vmem>>, vector<1x128xf32>
    %4 = vector.broadcast %3 : vector<1x128xf32> to vector<64x128xf32>
    %5 = arith.addf %2, %4 : vector<64x128xf32>
    %cst_5 = arith.constant 0.000000e+00 : f32
    %6 = vector.broadcast %cst_5 : f32 to vector<64x128xf32>
    %7 = arith.maximumf %5, %6 : vector<64x128xf32>
    %8 = arith.truncf %7 : vector<64x128xf32> to vector<64x128xbf16>
    %c0_6 = arith.constant 0 : index
    %c0_7 = arith.constant 0 : index
    %9 = vector.load %arg5[%c0_6, %c0_7] : memref<64x128xbf16, #tpu.memory_space<vmem>>, vector<64x128xbf16>
    tpu.vector_store %arg5[%c0_6, %c0_7], %8 {strides = array<i32>} : memref<64x128xbf16, #tpu.memory_space<vmem>>, vector<64x128xbf16>,
    return
  }
  func.func @transform_0(%arg0: i32, %arg1: i32) -> (i32, i32) {
    %c0_i32 = arith.constant 0 : i32
    %c0_i32_0 = arith.constant 0 : i32
    return %arg0, %c0_i32 : i32, i32
  }
  func.func @transform_1(%arg0: i32, %arg1: i32) -> (i32, i32) {
    %c0_i32 = arith.constant 0 : i32
    %c0_i32_0 = arith.constant 0 : i32
    return %c0_i32, %arg1 : i32, i32
  }
  func.func @transform_2(%arg0: i32, %arg1: i32) -> (i32, i32) {
    %c0_i32 = arith.constant 0 : i32
    %c0_i32_0 = arith.constant 0 : i32
    return %c0_i32, %arg1 : i32, i32
  }
  func.func @transform_3(%arg0: i32, %arg1: i32) -> (i32, i32) {
    %c0_i32 = arith.constant 0 : i32
    return %arg0, %arg1 : i32, i32
  }
}

module attributes {stable_mosaic.version = 11 : i64} {
  func.func @_gemm_bias_act_kernel(%arg0: i32, %arg1: i32, %arg2: memref<16x1024xbf16, #tpu.memory_space<vmem>>, %arg3: memref<1024x128xbf16, #tpu.memory_space<vmem>>, %arg4: memref<1x128xf32, #tpu.memory_space<vmem>>, %arg5: memref<16x128xbf16, #tpu.memory_space<vmem>>) attributes {dimension_semantics = [#tpu.dimension_semantics<parallel>, #tpu.dimension_semantics<parallel>], iteration_bounds = array<i64: 2, 1>, scalar_prefetch = 0 : i64, scratch_operands = 0 : i64, tpu.core_type = #tpu.core_type<tc>, window_params = [{transform_indices = @transform_0, window_bounds = array<i64: 16, 1024>}, {transform_indices = @transform_1, window_bounds = array<i64: 1024, 128>}, {transform_indices = @transform_2, window_bounds = array<i64: 1, 128>}, {transform_indices = @transform_3, window_bounds = array<i64: 16, 128>}]} {
    %c0 = arith.constant 0 : index
    %c0_0 = arith.constant 0 : index
    %0 = vector.load %arg2[%c0, %c0_0] : memref<16x1024xbf16, #tpu.memory_space<vmem>>, vector<16x1024xbf16>
    %c0_1 = arith.constant 0 : index
    %c0_2 = arith.constant 0 : index
    %1 = vector.load %arg3[%c0_1, %c0_2] : memref<1024x128xbf16, #tpu.memory_space<vmem>>, vector<1024x128xbf16>
    %cst = arith.constant dense<0.000000e+00> : vector<16x128xf32>
    %2 = tpu.matmul %0, %1, %cst {dimension_numbers = #tpu.dot_dimension_numbers<[1], [0], [0], [1], [0, 0, 1, 1], [], []>} : vector<16x1024xbf16>, vector<1024x128xbf16>, vector<16x128xf32> -> vector<16x128xf32>
    %c0_3 = arith.constant 0 : index
    %c0_4 = arith.constant 0 : index
    %3 = vector.load %arg4[%c0_3, %c0_4] : memref<1x128xf32, #tpu.memory_space<vmem>>, vector<1x128xf32>
    %4 = vector.broadcast %3 : vector<1x128xf32> to vector<16x128xf32>
    %5 = arith.addf %2, %4 : vector<16x128xf32>
    %cst_5 = arith.constant 0.000000e+00 : f32
    %6 = vector.broadcast %cst_5 : f32 to vector<16x128xf32>
    %7 = arith.maximumf %5, %6 : vector<16x128xf32>
    %8 = arith.truncf %7 : vector<16x128xf32> to vector<16x128xbf16>
    %c0_6 = arith.constant 0 : index
    %c0_7 = arith.constant 0 : index
    %9 = vector.load %arg5[%c0_6, %c0_7] : memref<16x128xbf16, #tpu.memory_space<vmem>>, vector<16x128xbf16>
    tpu.vector_store %arg5[%c0_6, %c0_7], %8 {strides = array<i32>} : memref<16x128xbf16, #tpu.memory_space<vmem>>, vector<16x128xbf16>,
    return
  }
  func.func @transform_0(%arg0: i32, %arg1: i32) -> (i32, i32) {
    %c0_i32 = arith.constant 0 : i32
    %c0_i32_0 = arith.constant 0 : i32
    return %arg0, %c0_i32 : i32, i32
  }
  func.func @transform_1(%arg0: i32, %arg1: i32) -> (i32, i32) {
    %c0_i32 = arith.constant 0 : i32
    %c0_i32_0 = arith.constant 0 : i32
    return %c0_i32, %arg1 : i32, i32
  }
  func.func @transform_2(%arg0: i32, %arg1: i32) -> (i32, i32) {
    %c0_i32 = arith.constant 0 : i32
    %c0_i32_0 = arith.constant 0 : i32
    return %c0_i32, %arg1 : i32, i32
  }
  func.func @transform_3(%arg0: i32, %arg1: i32) -> (i32, i32) {
    %c0_i32 = arith.constant 0 : i32
    return %arg0, %arg1 : i32, i32
  }
}

module attributes {stable_mosaic.version = 11 : i64} {
  func.func @_gemm_bias_act_kernel(%arg0: i32, %arg1: i32, %arg2: memref<16x2048xbf16, #tpu.memory_space<vmem>>, %arg3: memref<2048x128xbf16, #tpu.memory_space<vmem>>, %arg4: memref<1x128xf32, #tpu.memory_space<vmem>>, %arg5: memref<16x128xbf16, #tpu.memory_space<vmem>>) attributes {dimension_semantics = [#tpu.dimension_semantics<parallel>, #tpu.dimension_semantics<parallel>], iteration_bounds = array<i64: 1, 2>, scalar_prefetch = 0 : i64, scratch_operands = 0 : i64, tpu.core_type = #tpu.core_type<tc>, window_params = [{transform_indices = @transform_0, window_bounds = array<i64: 16, 2048>}, {transform_indices = @transform_1, window_bounds = array<i64: 2048, 128>}, {transform_indices = @transform_2, window_bounds = array<i64: 1, 128>}, {transform_indices = @transform_3, window_bounds = array<i64: 16, 128>}]} {
    %c0 = arith.constant 0 : index
    %c0_0 = arith.constant 0 : index
    %0 = vector.load %arg2[%c0, %c0_0] : memref<16x2048xbf16, #tpu.memory_space<vmem>>, vector<16x2048xbf16>
    %c0_1 = arith.constant 0 : index
    %c0_2 = arith.constant 0 : index
    %1 = vector.load %arg3[%c0_1, %c0_2] : memref<2048x128xbf16, #tpu.memory_space<vmem>>, vector<2048x128xbf16>
    %cst = arith.constant dense<0.000000e+00> : vector<16x128xf32>
    %2 = tpu.matmul %0, %1, %cst {dimension_numbers = #tpu.dot_dimension_numbers<[1], [0], [0], [1], [0, 0, 1, 1], [], []>} : vector<16x2048xbf16>, vector<2048x128xbf16>, vector<16x128xf32> -> vector<16x128xf32>
    %c0_3 = arith.constant 0 : index
    %c0_4 = arith.constant 0 : index
    %3 = vector.load %arg4[%c0_3, %c0_4] : memref<1x128xf32, #tpu.memory_space<vmem>>, vector<1x128xf32>
    %4 = vector.broadcast %3 : vector<1x128xf32> to vector<16x128xf32>
    %5 = arith.addf %2, %4 : vector<16x128xf32>
    %cst_5 = arith.constant 0.000000e+00 : f32
    %6 = vector.broadcast %cst_5 : f32 to vector<16x128xf32>
    %7 = arith.maximumf %5, %6 : vector<16x128xf32>
    %8 = arith.truncf %7 : vector<16x128xf32> to vector<16x128xbf16>
    %c0_6 = arith.constant 0 : index
    %c0_7 = arith.constant 0 : index
    %9 = vector.load %arg5[%c0_6, %c0_7] : memref<16x128xbf16, #tpu.memory_space<vmem>>, vector<16x128xbf16>
    tpu.vector_store %arg5[%c0_6, %c0_7], %8 {strides = array<i32>} : memref<16x128xbf16, #tpu.memory_space<vmem>>, vector<16x128xbf16>,
    return
  }
  func.func @transform_0(%arg0: i32, %arg1: i32) -> (i32, i32) {
    %c0_i32 = arith.constant 0 : i32
    %c0_i32_0 = arith.constant 0 : i32
    return %arg0, %c0_i32 : i32, i32
  }
  func.func @transform_1(%arg0: i32, %arg1: i32) -> (i32, i32) {
    %c0_i32 = arith.constant 0 : i32
    %c0_i32_0 = arith.constant 0 : i32
    return %c0_i32, %arg1 : i32, i32
  }
  func.func @transform_2(%arg0: i32, %arg1: i32) -> (i32, i32) {
    %c0_i32 = arith.constant 0 : i32
    %c0_i32_0 = arith.constant 0 : i32
    return %c0_i32, %arg1 : i32, i32
  }
  func.func @transform_3(%arg0: i32, %arg1: i32) -> (i32, i32) {
    %c0_i32 = arith.constant 0 : i32
    return %arg0, %arg1 : i32, i32
  }
}

module attributes {stable_mosaic.version = 11 : i64} {
  func.func @_gemm_bias_act_kernel(%arg0: i32, %arg1: i32, %arg2: memref<16x2304xbf16, #tpu.memory_space<vmem>>, %arg3: memref<2304x256xbf16, #tpu.memory_space<vmem>>, %arg4: memref<1x256xf32, #tpu.memory_space<vmem>>, %arg5: memref<16x256xbf16, #tpu.memory_space<vmem>>) attributes {dimension_semantics = [#tpu.dimension_semantics<parallel>, #tpu.dimension_semantics<parallel>], iteration_bounds = array<i64: 1, 2>, scalar_prefetch = 0 : i64, scratch_operands = 0 : i64, tpu.core_type = #tpu.core_type<tc>, window_params = [{transform_indices = @transform_0, window_bounds = array<i64: 16, 2304>}, {transform_indices = @transform_1, window_bounds = array<i64: 2304, 256>}, {transform_indices = @transform_2, window_bounds = array<i64: 1, 256>}, {transform_indices = @transform_3, window_bounds = array<i64: 16, 256>}]} {
    %c0 = arith.constant 0 : index
    %c0_0 = arith.constant 0 : index
    %0 = vector.load %arg2[%c0, %c0_0] : memref<16x2304xbf16, #tpu.memory_space<vmem>>, vector<16x2304xbf16>
    %c0_1 = arith.constant 0 : index
    %c0_2 = arith.constant 0 : index
    %1 = vector.load %arg3[%c0_1, %c0_2] : memref<2304x256xbf16, #tpu.memory_space<vmem>>, vector<2304x256xbf16>
    %cst = arith.constant dense<0.000000e+00> : vector<16x256xf32>
    %2 = tpu.matmul %0, %1, %cst {dimension_numbers = #tpu.dot_dimension_numbers<[1], [0], [0], [1], [0, 0, 1, 1], [], []>} : vector<16x2304xbf16>, vector<2304x256xbf16>, vector<16x256xf32> -> vector<16x256xf32>
    %c0_3 = arith.constant 0 : index
    %c0_4 = arith.constant 0 : index
    %3 = vector.load %arg4[%c0_3, %c0_4] : memref<1x256xf32, #tpu.memory_space<vmem>>, vector<1x256xf32>
    %4 = vector.broadcast %3 : vector<1x256xf32> to vector<16x256xf32>
    %5 = arith.addf %2, %4 : vector<16x256xf32>
    %cst_5 = arith.constant 0.000000e+00 : f32
    %6 = vector.broadcast %cst_5 : f32 to vector<16x256xf32>
    %7 = arith.maximumf %5, %6 : vector<16x256xf32>
    %8 = arith.truncf %7 : vector<16x256xf32> to vector<16x256xbf16>
    %c0_6 = arith.constant 0 : index
    %c0_7 = arith.constant 0 : index
    %9 = vector.load %arg5[%c0_6, %c0_7] : memref<16x256xbf16, #tpu.memory_space<vmem>>, vector<16x256xbf16>
    tpu.vector_store %arg5[%c0_6, %c0_7], %8 {strides = array<i32>} : memref<16x256xbf16, #tpu.memory_space<vmem>>, vector<16x256xbf16>,
    return
  }
  func.func @transform_0(%arg0: i32, %arg1: i32) -> (i32, i32) {
    %c0_i32 = arith.constant 0 : i32
    %c0_i32_0 = arith.constant 0 : i32
    return %arg0, %c0_i32 : i32, i32
  }
  func.func @transform_1(%arg0: i32, %arg1: i32) -> (i32, i32) {
    %c0_i32 = arith.constant 0 : i32
    %c0_i32_0 = arith.constant 0 : i32
    return %c0_i32, %arg1 : i32, i32
  }
  func.func @transform_2(%arg0: i32, %arg1: i32) -> (i32, i32) {
    %c0_i32 = arith.constant 0 : i32
    %c0_i32_0 = arith.constant 0 : i32
    return %c0_i32, %arg1 : i32, i32
  }
  func.func @transform_3(%arg0: i32, %arg1: i32) -> (i32, i32) {
    %c0_i32 = arith.constant 0 : i32
    return %arg0, %arg1 : i32, i32
  }
}

module attributes {stable_mosaic.version = 11 : i64} {
  func.func @_gemm_bias_act_kernel(%arg0: i32, %arg1: i32, %arg2: memref<32x1152xbf16, #tpu.memory_space<vmem>>, %arg3: memref<1152x128xbf16, #tpu.memory_space<vmem>>, %arg4: memref<1x128xf32, #tpu.memory_space<vmem>>, %arg5: memref<32x128xbf16, #tpu.memory_space<vmem>>) attributes {dimension_semantics = [#tpu.dimension_semantics<parallel>, #tpu.dimension_semantics<parallel>], iteration_bounds = array<i64: 1, 2>, scalar_prefetch = 0 : i64, scratch_operands = 0 : i64, tpu.core_type = #tpu.core_type<tc>, window_params = [{transform_indices = @transform_0, window_bounds = array<i64: 32, 1152>}, {transform_indices = @transform_1, window_bounds = array<i64: 1152, 128>}, {transform_indices = @transform_2, window_bounds = array<i64: 1, 128>}, {transform_indices = @transform_3, window_bounds = array<i64: 32, 128>}]} {
    %c0 = arith.constant 0 : index
    %c0_0 = arith.constant 0 : index
    %0 = vector.load %arg2[%c0, %c0_0] : memref<32x1152xbf16, #tpu.memory_space<vmem>>, vector<32x1152xbf16>
    %c0_1 = arith.constant 0 : index
    %c0_2 = arith.constant 0 : index
    %1 = vector.load %arg3[%c0_1, %c0_2] : memref<1152x128xbf16, #tpu.memory_space<vmem>>, vector<1152x128xbf16>
    %cst = arith.constant dense<0.000000e+00> : vector<32x128xf32>
    %2 = tpu.matmul %0, %1, %cst {dimension_numbers = #tpu.dot_dimension_numbers<[1], [0], [0], [1], [0, 0, 1, 1], [], []>} : vector<32x1152xbf16>, vector<1152x128xbf16>, vector<32x128xf32> -> vector<32x128xf32>
    %c0_3 = arith.constant 0 : index
    %c0_4 = arith.constant 0 : index
    %3 = vector.load %arg4[%c0_3, %c0_4] : memref<1x128xf32, #tpu.memory_space<vmem>>, vector<1x128xf32>
    %4 = vector.broadcast %3 : vector<1x128xf32> to vector<32x128xf32>
    %5 = arith.addf %2, %4 : vector<32x128xf32>
    %cst_5 = arith.constant 0.000000e+00 : f32
    %6 = vector.broadcast %cst_5 : f32 to vector<32x128xf32>
    %7 = arith.maximumf %5, %6 : vector<32x128xf32>
    %8 = arith.truncf %7 : vector<32x128xf32> to vector<32x128xbf16>
    %c0_6 = arith.constant 0 : index
    %c0_7 = arith.constant 0 : index
    %9 = vector.load %arg5[%c0_6, %c0_7] : memref<32x128xbf16, #tpu.memory_space<vmem>>, vector<32x128xbf16>
    tpu.vector_store %arg5[%c0_6, %c0_7], %8 {strides = array<i32>} : memref<32x128xbf16, #tpu.memory_space<vmem>>, vector<32x128xbf16>,
    return
  }
  func.func @transform_0(%arg0: i32, %arg1: i32) -> (i32, i32) {
    %c0_i32 = arith.constant 0 : i32
    %c0_i32_0 = arith.constant 0 : i32
    return %arg0, %c0_i32 : i32, i32
  }
  func.func @transform_1(%arg0: i32, %arg1: i32) -> (i32, i32) {
    %c0_i32 = arith.constant 0 : i32
    %c0_i32_0 = arith.constant 0 : i32
    return %c0_i32, %arg1 : i32, i32
  }
  func.func @transform_2(%arg0: i32, %arg1: i32) -> (i32, i32) {
    %c0_i32 = arith.constant 0 : i32
    %c0_i32_0 = arith.constant 0 : i32
    return %c0_i32, %arg1 : i32, i32
  }
  func.func @transform_3(%arg0: i32, %arg1: i32) -> (i32, i32) {
    %c0_i32 = arith.constant 0 : i32
    return %arg0, %arg1 : i32, i32
  }
}

module attributes {stable_mosaic.version = 11 : i64} {
  func.func @_gemm_bias_act_kernel(%arg0: i32, %arg1: i32, %arg2: memref<64x640xbf16, #tpu.memory_space<vmem>>, %arg3: memref<640x128xbf16, #tpu.memory_space<vmem>>, %arg4: memref<1x128xf32, #tpu.memory_space<vmem>>, %arg5: memref<64x128xf32, #tpu.memory_space<vmem>>) attributes {dimension_semantics = [#tpu.dimension_semantics<parallel>, #tpu.dimension_semantics<parallel>], iteration_bounds = array<i64: 2, 1>, scalar_prefetch = 0 : i64, scratch_operands = 0 : i64, tpu.core_type = #tpu.core_type<tc>, window_params = [{transform_indices = @transform_0, window_bounds = array<i64: 64, 640>}, {transform_indices = @transform_1, window_bounds = array<i64: 640, 128>}, {transform_indices = @transform_2, window_bounds = array<i64: 1, 128>}, {transform_indices = @transform_3, window_bounds = array<i64: 64, 128>}]} {
    %c0 = arith.constant 0 : index
    %c0_0 = arith.constant 0 : index
    %0 = vector.load %arg2[%c0, %c0_0] : memref<64x640xbf16, #tpu.memory_space<vmem>>, vector<64x640xbf16>
    %c0_1 = arith.constant 0 : index
    %c0_2 = arith.constant 0 : index
    %1 = vector.load %arg3[%c0_1, %c0_2] : memref<640x128xbf16, #tpu.memory_space<vmem>>, vector<640x128xbf16>
    %cst = arith.constant dense<0.000000e+00> : vector<64x128xf32>
    %2 = tpu.matmul %0, %1, %cst {dimension_numbers = #tpu.dot_dimension_numbers<[1], [0], [0], [1], [0, 0, 1, 1], [], []>} : vector<64x640xbf16>, vector<640x128xbf16>, vector<64x128xf32> -> vector<64x128xf32>
    %c0_3 = arith.constant 0 : index
    %c0_4 = arith.constant 0 : index
    %3 = vector.load %arg4[%c0_3, %c0_4] : memref<1x128xf32, #tpu.memory_space<vmem>>, vector<1x128xf32>
    %4 = vector.broadcast %3 : vector<1x128xf32> to vector<64x128xf32>
    %5 = arith.addf %2, %4 : vector<64x128xf32>
    %cst_5 = arith.constant -3.000000e+01 : f32
    %cst_6 = arith.constant 3.000000e+01 : f32
    %6 = vector.broadcast %cst_5 : f32 to vector<64x128xf32>
    %7 = arith.maximumf %6, %5 : vector<64x128xf32>
    %8 = vector.broadcast %cst_6 : f32 to vector<64x128xf32>
    %9 = arith.minimumf %8, %7 : vector<64x128xf32>
    %cst_7 = arith.constant 0.000000e+00 : f32
    %10 = vector.broadcast %cst_7 : f32 to vector<64x128xf32>
    %11 = arith.subf %10, %9 : vector<64x128xf32>
    %12 = math.exp %11 : vector<64x128xf32>
    %cst_8 = arith.constant 1.000000e+00 : f32
    %13 = vector.broadcast %cst_8 : f32 to vector<64x128xf32>
    %14 = arith.addf %13, %12 : vector<64x128xf32>
    %15 = tpu.reciprocal %14 {approx = true} : vector<64x128xf32> -> vector<64x128xf32>
    %cst_9 = arith.constant 0.000000e+00 : f32
    %cst_10 = arith.constant 1.000000e+00 : f32
    %16 = vector.broadcast %cst_9 : f32 to vector<64x128xf32>
    %17 = arith.maximumf %16, %15 : vector<64x128xf32>
    %18 = vector.broadcast %cst_10 : f32 to vector<64x128xf32>
    %19 = arith.minimumf %18, %17 : vector<64x128xf32>
    %c0_11 = arith.constant 0 : index
    %c0_12 = arith.constant 0 : index
    %20 = vector.load %arg5[%c0_11, %c0_12] : memref<64x128xf32, #tpu.memory_space<vmem>>, vector<64x128xf32>
    tpu.vector_store %arg5[%c0_11, %c0_12], %19 {strides = array<i32>} : memref<64x128xf32, #tpu.memory_space<vmem>>, vector<64x128xf32>,
    return
  }
  func.func @transform_0(%arg0: i32, %arg1: i32) -> (i32, i32) {
    %c0_i32 = arith.constant 0 : i32
    %c0_i32_0 = arith.constant 0 : i32
    return %arg0, %c0_i32 : i32, i32
  }
  func.func @transform_1(%arg0: i32, %arg1: i32) -> (i32, i32) {
    %c0_i32 = arith.constant 0 : i32
    %c0_i32_0 = arith.constant 0 : i32
    return %c0_i32, %arg1 : i32, i32
  }
  func.func @transform_2(%arg0: i32, %arg1: i32) -> (i32, i32) {
    %c0_i32 = arith.constant 0 : i32
    %c0_i32_0 = arith.constant 0 : i32
    return %c0_i32, %arg1 : i32, i32
  }
  func.func @transform_3(%arg0: i32, %arg1: i32) -> (i32, i32) {
    %c0_i32 = arith.constant 0 : i32
    return %arg0, %arg1 : i32, i32
  }
}

</mosaic_0001>

<bundles_post_ra>
// kernel: autoencoder_forward.6
= control target key start
LH: loop header
LB: loop body
LE: loop exit
PB: predicated region body
PF: predicated region fallthrough
CT: control target
= control target key end

     0   :  { %8 = vsyncpa [#allocation3], 0  ;;  %s934_s0 = inlined_call_operand.vmem [shape: bf16[128,128], index: 0, kind: input, shape index: {}]   ;;  %s935_s1 = inlined_call_operand.hbm [shape: bf16[128,128], index: 1, kind: input, shape index: {}]   ;;  %s936_s2 = inlined_call_operand.hbm [shape: f32[1,128], index: 2, kind: input, shape index: {}]   ;;  %s937_s3 = inlined_call_operand.vmem [shape: bf16[128,128], index: 3, kind: output, shape index: {}]  }
   0x1   :  { %9 = vsyncpa [#allocation5], 0  ;;  %s840_s12 = smov 0   ;;  %s842_s13 = smov 0  }
   0x2   :  { %s844_s14 = smov 0  }
   0x3 LB: > { %s554_s15 = sadd.s32 4294967295, %s814_s14   ;;  %s27_s16 = sadd.s32 1, %s810_s13  ;;  %s814_s14 = sphi %s844_s14, %s15_s14   ;;  %s810_s13 = sphi %s842_s13, %s942_s13   ;;  %s806_s12 = sphi %s840_s12, %s941_s12  }
   0x4   : > { %p29_p0 = scmp.ge.s32.totalorder %s27_s16, 2  ;;  %p556_p1 = scmp.ge.s32.totalorder %s814_s14, 1 }
   0x5   : > { %p138_p2 = scmp.lt.s32.totalorder %s814_s14, 3  ;;  %p865_p4 = scmp.eq.s32.totalorder %s554_s15, 0 }
   0x6   : > { %s944_s16 = smov (%p29_p0, %s27_s16), 0  ;;  %s816_s19 = smov [#allocation2]  }
   0x7   : > { %p861_p3 = pnand %p556_p1, %p138_p2  ;;  %s152_s20 = sshll.u32 %s816_s19, 4  ;;  %s153_s20 = int_to_ptr.vmem [resolvable:$true] %s152_s20 }
   0x8   : > { %s817_s22 = smov [#allocation4]   ;;  %s743_s24 = scalar_lea.vmem %s153_s20, 1024 }
   0x9   : > { %p681_p5 = pneg %p861_p3  ;;  %s168_s23 = sshll.u32 %s817_s22, 4  ;;  %s169_s23 = int_to_ptr.vmem [resolvable:$true] %s168_s23 }
   0xa   : > { %p744_p8 = scmp.ne.s32.totalorder %s153_s20, %s743_s24  ;;  %p751_p11 = scmp.lt.s32.totalorder %s153_s20, %s153_s20 }
   0xb   : > { %p873_p6 = pnand %p865_p4, %p681_p5  ;;  %p752_p12 = scmp.lt.s32.totalorder %s743_s24, %s743_s24 }
   0xd   : > { %p734_p7 = pneg %p873_p6  ;;  %p753_p13 = por %p752_p12, %p751_p11 }
   0xf   : > { %p746_p9 = pnand %p744_p8, %p734_p7 }
  0x11   : > { %p747_p10 = pneg %p746_p9 }
  0x13   : > { %p754_p0 = pnand %p753_p13, %p747_p10 }
  0x15   : > { %757 = shalt.err (!%p754_p0)
}
  0x16   : > { %s818_s25 = smov 64   ;;  %s819_s26 = smov 4  }
  0x17   : > { %684 = dma.hbm_to_vmem [thread:$0]  (!%p873_p6), %s935_s1, 1024, %s153_s20, [#allocation3], %s818_s25, %s818_s25, %s819_s26  }
  0x18   : > { %s769_s29 = scalar_lea.vmem %s169_s23, 16  ;;  %s776_s30 = scalar_lea.vmem %s169_s23, 32 }
  0x19   : > { %p770_p1 = scmp.ne.s32.totalorder %s169_s23, %s769_s29  ;;  %p777_p8 = scmp.lt.s32.totalorder %s169_s23, %s169_s23 }
  0x1a   : > { %p778_p9 = scmp.lt.s32.totalorder %s776_s30, %s769_s29 }
  0x1b   : > { %p772_p2 = pnand %p770_p1, %p734_p7 }
  0x1c   : > { %p779_p10 = por %p778_p9, %p777_p8 }
  0x1d   : > { %p773_p5 = pneg %p772_p2 }
  0x1f   : > { %p780_p11 = pnand %p779_p10, %p773_p5 }
  0x21   : > { %783 = shalt.err (!%p780_p11)
}
  0x22   : > { %687 = dma.hbm_to_vmem [thread:$0]  (!%p873_p6), %s936_s2, 16, %s169_s23, [#allocation5]  }
  0x23   : > { %190 = sbr.rel (%p861_p3) target bundleno = 282 (0x11a), region = 32 }
  0x28   : > { %797 = dma.done.wait (%p865_p4), [#allocation3], 1024  }
  0x29   : > { %799 = vsyncadd (%p865_p4), [#allocation3], 4294966272 }
  0x2a   : > { %801 = dma.done.wait (%p865_p4), [#allocation5], 16  }
  0x2b   : > { %803 = vsyncadd (%p865_p4), [#allocation5], 4294967280  ;;  %s563_s6 = sshll.u32 %s806_s12, 3  ;;  %v720_v0 = vld [vmem:[#allocation2 + $0x38] sm:$0xff]   ;;  %v721_v1 = vld [vmem:[#allocation2 + $0x30] sm:$0xff]  }
  0x2c   : > { %p222_p7 = scmp.lt.s32.totalorder %s563_s6, 15  ;;  %633 = vmatprep.subr.bf16.mxu0 %v720_v0  ;;  %657 = vmatprep.subr.bf16.mxu1 %v720_v0  ;;  %v722_v2 = vld [vmem:[#allocation2 + $0x28] sm:$0xff]   ;;  %v723_v3 = vld [vmem:[#allocation2 + $0x20] sm:$0xff]   ;;  %v724_v6 = vld [vmem:[#allocation2 + $0x18] sm:$0xff]  }
  0x2d   : > { %634 = vmatpush3.bf16.msra.mxu0 %v720_v0  ;;  %665 = vmatpush3.bf16.msra.mxu1 %v720_v0  ;;  %v725_v7 = vld [vmem:[#allocation2 + $0x10] sm:$0xff]   ;;  %v726_v8 = vld [vmem:[#allocation2 + $0x8] sm:$0xff]   ;;  %v727_v9 = vld [vmem:[#allocation2] sm:$0xff]  }
  0x2e   : > { %s946_s6 = smov (!%p222_p7, %s563_s6), 15  ;;  %635 = vmatprep.subr.bf16.mxu0 %v721_v1  ;;  %658 = vmatprep.subr.bf16.mxu1 %v721_v1  ;;  %v567_v12 = vld [vmem:[#allocation4] ss:$0 sm:$0xff] }
  0x2f   : > { %s564_s7 = sshll.u32 %s946_s6, 2 }
  0x30   : > { %s914_s10 = scalar_lea.vmem %s934_s0, %s564_s7  ;;  %s234_s15 = scalar_lea.vmem %s937_s3, %s564_s7 }
  0x31   : > { %636 = vmatpush3.bf16.msra.mxu0 %v721_v1  ;;  %666 = vmatpush3.bf16.msra.mxu1 %v721_v1  ;;  %v728_v4 = vld [vmem:[%s914_s10] sm:$0xff]   ;;  %v729_v5 = vld [vmem:[%s914_s10 + $0x10] sm:$0xff]   ;;  %v730_v10 = vld [vmem:[%s914_s10 + $0x8] sm:$0xff]  }
  0x32   : > { %637 = vmatprep.subr.bf16.mxu0 %v722_v2  ;;  %659 = vmatprep.subr.bf16.mxu1 %v722_v2  ;;  %v731_v11 = vld [vmem:[%s914_s10 + $0x18] sm:$0xff]  }
  0x33   : > { %649 = vmatprep.mubr.bf16.mxu0 %v728_v4  ;;  %653 = vmatprep.mubr.bf16.mxu1 %v729_v5 }
  0x35   : > { %638 = vmatpush3.bf16.msra.mxu0 %v722_v2  ;;  %667 = vmatpush3.bf16.msra.mxu1 %v722_v2 }
  0x36   : > { %639 = vmatprep.subr.bf16.mxu0 %v723_v3  ;;  %660 = vmatprep.subr.bf16.mxu1 %v723_v3 }
  0x39   : > { %640 = vmatpush3.bf16.msra.mxu0 %v723_v3  ;;  %668 = vmatpush3.bf16.msra.mxu1 %v723_v3 }
  0x3a   : > { %641 = vmatprep.subr.bf16.mxu0 %v724_v6  ;;  %661 = vmatprep.subr.bf16.mxu1 %v724_v6 }
  0x3d   : > { %642 = vmatpush3.bf16.msra.mxu0 %v724_v6  ;;  %669 = vmatpush3.bf16.msra.mxu1 %v724_v6 }
  0x3e   : > { %643 = vmatprep.subr.bf16.mxu0 %v725_v7  ;;  %662 = vmatprep.subr.bf16.mxu1 %v725_v7 }
  0x41   : > { %644 = vmatpush3.bf16.msra.mxu0 %v725_v7  ;;  %670 = vmatpush3.bf16.msra.mxu1 %v725_v7 }
  0x42   : > { %645 = vmatprep.subr.bf16.mxu0 %v726_v8  ;;  %663 = vmatprep.subr.bf16.mxu1 %v726_v8 }
  0x45   : > { %646 = vmatpush3.bf16.msra.mxu0 %v726_v8  ;;  %671 = vmatpush3.bf16.msra.mxu1 %v726_v8 }
  0x46   : > { %647 = vmatprep.subr.bf16.mxu0 %v727_v9  ;;  %664 = vmatprep.subr.bf16.mxu1 %v727_v9 }
  0x49   : > { %648 = vmatpush3.bf16.msra.mxu0 %v727_v9  ;;  %672 = vmatpush3.bf16.msra.mxu1 %v727_v9 }
  0x4c   : > { %650 = vmatmul.mubr.bf16.vlgmr.msra.gmra.mxu0 %v730_v10  ;;  %654 = vmatmul.mubr.bf16.vlgmr.msra.gmra.mxu1 %v731_v11 }
 0x10c   : > { %v651_v13 = vpop.f32.mrf.mxu0  ;;  %v655_v14 = vpop.f32.mrf.mxu1 }
 0x10d   : > { %v383_v15 = vadd.f32 %v651_v13, %v567_v12  ;;  %v399_v16 = vadd.f32 %v655_v14, %v567_v12 }
 0x10e   : > { %v374_v17 = vpop.f32.mrf.mxu0  ;;  %v390_v18 = vpop.f32.mrf.mxu1 }
 0x10f   : > { %v375_v19 = vadd.f32 %v567_v12, %v374_v17  ;;  %v391_v20 = vadd.f32 %v567_v12, %v390_v18  ;;  %v407_v25 = vmax.f32 %v383_v15, 0.0  ;;  %v411_v26 = vmax.f32 %v399_v16, 0.0 }
 0x110   : > { %v652_v21 = vpop.f32.mrf.mxu0  ;;  %v656_v22 = vpop.f32.mrf.mxu1 }
 0x111   : > { %v386_v23 = vadd.f32 %v652_v21, %v567_v12  ;;  %v402_v24 = vadd.f32 %v656_v22, %v567_v12  ;;  %v405_v33 = vmax.f32 %v375_v19, 0.0  ;;  %v409_v34 = vmax.f32 %v391_v20, 0.0 }
 0x112   : > { %v377_v27 = vpop.f32.mrf.mxu0  ;;  %v393_v28 = vpop.f32.mrf.mxu1 }
 0x113   : > { %v408_v29 = vmax.f32 %v386_v23, 0.0  ;;  %v412_v30 = vmax.f32 %v402_v24, 0.0  ;;  %v378_v31 = vadd.f32 %v567_v12, %v377_v27  ;;  %v394_v32 = vadd.f32 %v567_v12, %v393_v28 }
 0x115   : > { %v606_v35 = vpack.c.bf16 %v408_v29, %v407_v25  ;;  %v616_v36 = vpack.c.bf16 %v412_v30, %v411_v26  ;;  %v406_v37 = vmax.f32 %v378_v31, 0.0  ;;  %v410_v38 = vmax.f32 %v394_v32, 0.0 }
 0x117   : > { %618 = vst [vmem:[%s234_s15 + $0x8] sm:$0xff] %v606_v35   ;;  %620 = vst [vmem:[%s234_s15 + $0x18] sm:$0xff] %v616_v36   ;;  %v601_v39 = vpack.c.bf16 %v406_v37, %v405_v33  ;;  %v611_v40 = vpack.c.bf16 %v410_v38, %v409_v34 }
 0x119   : > { %602 = vst [vmem:[%s234_s15] sm:$0xff] %v601_v39   ;;  %619 = vst [vmem:[%s234_s15 + $0x10] sm:$0xff] %v611_v40  }
 0x11a PF: > { %s15_s14 = sadd.s32 1, %s814_s14   ;;  %s941_s12 = smov %s810_s13 }
 0x11b   : > { %p12_p3 = scmp.ge.s32.totalorder %s15_s14, 4   ;;  %s942_s13 = smov %s944_s16 }
 0x11d   :  { %14 = sbr.rel (!%p12_p3) target bundleno = 3 (0x3), region = 73 }
 0x122   :  { %481 = vsyncpa [#allocation3], 1 }
 0x123   :  { %483 = vsyncpa [#allocation3 + $0x1], 1 }
 0x124   :  { %484 = vsyncpa [#allocation5], 1 }

// kernel: autoencoder_forward.7
= control target key start
LH: loop header
LB: loop body
LE: loop exit
PB: predicated region body
PF: predicated region fallthrough
CT: control target
= control target key end

     0   :  { %s1391_s12 = smov 0   ;;  %s1393_s13 = smov 0   ;;  %s1636_s0 = inlined_call_operand.vmem [shape: bf16[32,1024], index: 0, kind: input, shape index: {}]   ;;  %s1637_s1 = inlined_call_operand.vmem [shape: bf16[1024,128], index: 1, kind: input, shape index: {}]   ;;  %s1638_s2 = inlined_call_operand.vmem [shape: f32[1,128], index: 2, kind: input, shape index: {}]   ;;  %s1639_s3 = inlined_call_operand.vmem [shape: bf16[32,128], index: 3, kind: output, shape index: {}]  }
   0x1   :  { %s1395_s14 = smov 0  }
   0x2 LB: > { %s25_s15 = sadd.s32 1, %s1365_s13  ;;  %p1080_p0 = scmp.ge.s32.totalorder %s1369_s14, 1  ;;  %s1369_s14 = sphi %s1395_s14, %s13_s14   ;;  %s1365_s13 = sphi %s1393_s13, %s1641_s13   ;;  %s1361_s12 = sphi %s1391_s12, %s1640_s12  }
   0x3   : > { %p27_p1 = scmp.ge.s32.totalorder %s25_s15, 2  ;;  %p170_p2 = scmp.lt.s32.totalorder %s1369_s14, 3 }
   0x5   : > { %s1643_s15 = smov (%p27_p1, %s25_s15), 0  ;;  %p171_p3 = pnand %p1080_p0, %p170_p2 }
   0x6   : > { %s1081_s25 = sshll.u32 (!%p171_p3), %s1361_s12, 1 }
   0x7   : > { %174 = sbr.rel (%p171_p3) target bundleno = 288 (0x120), region = 32  ;;  %p206_p4 = scmp.lt.s32.totalorder (!%p171_p3), %s1081_s25, 3 }
   0xc   : > { %v1283_v0 = vld [vmem:[%s1637_s1 + $0x78] sm:$0xff]   ;;  %v1287_v4 = vld [vmem:[%s1637_s1 + $0x70] sm:$0xff]   ;;  %v1291_v8 = vld [vmem:[%s1637_s1 + $0x68] sm:$0xff]   ;;  %s1645_s25 = smov (!%p206_p4, %s1081_s25), 3 }
   0xd   : > { %v1284_v1 = vld [vmem:[%s1637_s1 + $0xf8] sm:$0xff]   ;;  %1171 = vmatprep.subr.bf16.mxu0 %v1283_v0  ;;  %v1288_v5 = vld [vmem:[%s1637_s1 + $0xf0] sm:$0xff]   ;;  %v1292_v9 = vld [vmem:[%s1637_s1 + $0xe8] sm:$0xff]   ;;  %s1163_s24 = sshll.u32 %s1645_s25, 5 }
   0xe   : > { %v1285_v2 = vld [vmem:[%s1637_s1 + $0x38] sm:$0xff]   ;;  %1193 = vmatprep.subr.bf16.mxu1 %v1284_v1  ;;  %v1289_v6 = vld [vmem:[%s1637_s1 + $0x30] sm:$0xff]   ;;  %v1293_v10 = vld [vmem:[%s1637_s1 + $0x28] sm:$0xff]   ;;  %s1508_s12 = scalar_lea.vmem %s1636_s0, %s1163_s24 }
   0xf   : > { %v1286_v3 = vld [vmem:[%s1637_s1 + $0xb8] sm:$0xff]   ;;  %1172 = vmatpush3.bf16.msra.mxu0 %v1285_v2  ;;  %v1290_v7 = vld [vmem:[%s1637_s1 + $0xb0] sm:$0xff]   ;;  %v1294_v11 = vld [vmem:[%s1637_s1 + $0xa8] sm:$0xff]  }
  0x10   : > { %1194 = vmatpush3.bf16.msra.mxu1 %v1286_v3  ;;  %1173 = vmatprep.subr.bf16.mxu0 %v1287_v4  ;;  %v1295_v12 = vld [vmem:[%s1637_s1 + $0x60] sm:$0xff]   ;;  %v1299_v16 = vld [vmem:[%s1637_s1 + $0x58] sm:$0xff]   ;;  %v1303_v20 = vld [vmem:[%s1637_s1 + $0x50] sm:$0xff]  }
  0x11   : > { %1195 = vmatprep.subr.bf16.mxu1 %v1288_v5  ;;  %v1296_v13 = vld [vmem:[%s1637_s1 + $0xe0] sm:$0xff]   ;;  %v1300_v17 = vld [vmem:[%s1637_s1 + $0xd8] sm:$0xff]   ;;  %v1304_v21 = vld [vmem:[%s1637_s1 + $0xd0] sm:$0xff]  }
  0x12   : > { %v1297_v14 = vld [vmem:[%s1637_s1 + $0x20] sm:$0xff]   ;;  %v1301_v18 = vld [vmem:[%s1637_s1 + $0x18] sm:$0xff]   ;;  %v1305_v22 = vld [vmem:[%s1637_s1 + $0x10] sm:$0xff]  }
  0x13   : > { %1174 = vmatpush3.bf16.msra.mxu0 %v1289_v6  ;;  %v1298_v15 = vld [vmem:[%s1637_s1 + $0xa0] sm:$0xff]   ;;  %v1302_v19 = vld [vmem:[%s1637_s1 + $0x98] sm:$0xff]   ;;  %v1306_v23 = vld [vmem:[%s1637_s1 + $0x90] sm:$0xff]  }
  0x14   : > { %1196 = vmatpush3.bf16.msra.mxu1 %v1290_v7  ;;  %1175 = vmatprep.subr.bf16.mxu0 %v1291_v8  ;;  %v1307_v24 = vld [vmem:[%s1637_s1 + $0x48] sm:$0xff]   ;;  %v1311_v28 = vld [vmem:[%s1637_s1 + $0x40] sm:$0xff]   ;;  %v1315_v40 = vld [vmem:[%s1637_s1 + $0x178] sm:$0xff]  }
  0x15   : > { %1197 = vmatprep.subr.bf16.mxu1 %v1292_v9  ;;  %v1308_v25 = vld [vmem:[%s1637_s1 + $0xc8] sm:$0xff]   ;;  %v1312_v29 = vld [vmem:[%s1637_s1 + $0xc0] sm:$0xff]   ;;  %v1316_v41 = vld [vmem:[%s1637_s1 + $0x1f8] sm:$0xff]  }
  0x16   : > { %v1309_v26 = vld [vmem:[%s1637_s1 + $0x8] sm:$0xff]   ;;  %v1313_v30 = vld [vmem:[%s1637_s1] sm:$0xff]   ;;  %v1317_v42 = vld [vmem:[%s1637_s1 + $0x138] sm:$0xff]  }
  0x17   : > { %1176 = vmatpush3.bf16.msra.mxu0 %v1293_v10  ;;  %v1310_v27 = vld [vmem:[%s1637_s1 + $0x88] sm:$0xff]   ;;  %v1314_v31 = vld [vmem:[%s1637_s1 + $0x80] sm:$0xff]   ;;  %v1318_v43 = vld [vmem:[%s1637_s1 + $0x1b8] sm:$0xff]  }
  0x18   : > { %1198 = vmatpush3.bf16.msra.mxu1 %v1294_v11  ;;  %1177 = vmatprep.subr.bf16.mxu0 %v1295_v12  ;;  %v229_v32 = vld [vmem:[%s1508_s12] sm:$0xff]  ;;  %v230_v34 = vld [vmem:[%s1508_s12 + $0x8] sm:$0xff]  ;;  %v1319_v44 = vld [vmem:[%s1637_s1 + $0x170] sm:$0xff]  }
  0x19   : > { %1199 = vmatprep.subr.bf16.mxu1 %v1296_v13  ;;  %v233_v33 = vld [vmem:[%s1508_s12 + $0x20] sm:$0xff]  ;;  %v234_v37 = vld [vmem:[%s1508_s12 + $0x28] sm:$0xff]  ;;  %v1320_v45 = vld [vmem:[%s1637_s1 + $0x1f0] sm:$0xff]  }
  0x1a   : > { %v1087_v35 = vcombine.low %v229_v32, %v233_v33  ;;  %v1088_v36 = vcombine.high %v229_v32, %v233_v33  ;;  %v1089_v38 = vcombine.low %v230_v34, %v234_v37  ;;  %v1090_v39 = vcombine.high %v230_v34, %v234_v37  ;;  %v1321_v46 = vld [vmem:[%s1637_s1 + $0x130] sm:$0xff]   ;;  %v1323_v48 = vld [vmem:[%s1637_s1 + $0x168] sm:$0xff]   ;;  %v1327_v52 = vld [vmem:[%s1637_s1 + $0x160] sm:$0xff]  }
  0x1b   : > { %1178 = vmatpush3.bf16.msra.mxu0 %v1297_v14  ;;  %v1322_v47 = vld [vmem:[%s1637_s1 + $0x1b0] sm:$0xff]   ;;  %v1324_v49 = vld [vmem:[%s1637_s1 + $0x1e8] sm:$0xff]   ;;  %v1328_v53 = vld [vmem:[%s1637_s1 + $0x1e0] sm:$0xff]  }
  0x1c   : > { %1200 = vmatpush3.bf16.msra.mxu1 %v1298_v15  ;;  %1179 = vmatprep.subr.bf16.mxu0 %v1299_v16  ;;  %v1325_v50 = vld [vmem:[%s1637_s1 + $0x128] sm:$0xff]   ;;  %v1329_v54 = vld [vmem:[%s1637_s1 + $0x120] sm:$0xff]   ;;  %v1331_v56 = vld [vmem:[%s1637_s1 + $0x158] sm:$0xff]  }
  0x1d   : > { %1201 = vmatprep.subr.bf16.mxu1 %v1300_v17  ;;  %828 = vmatprep.mubr.bf16.mxu0 %v1088_v36  ;;  %v1326_v51 = vld [vmem:[%s1637_s1 + $0x1a8] sm:$0xff]   ;;  %v1330_v55 = vld [vmem:[%s1637_s1 + $0x1a0] sm:$0xff]   ;;  %v1332_v57 = vld [vmem:[%s1637_s1 + $0x1d8] sm:$0xff]  }
  0x1e   : > { %869 = vmatprep.mubr.bf16.mxu1 %v1090_v39  ;;  %v1333_v58 = vld [vmem:[%s1637_s1 + $0x118] sm:$0xff]   ;;  %v1335_v60 = vld [vmem:[%s1637_s1 + $0x150] sm:$0xff]   ;;  %v1339_v0 = vld [vmem:[%s1637_s1 + $0x148] sm:$0xff]  }
  0x1f   : > { %1180 = vmatpush3.bf16.msra.mxu0 %v1301_v18  ;;  %v1334_v59 = vld [vmem:[%s1637_s1 + $0x198] sm:$0xff]   ;;  %v1336_v61 = vld [vmem:[%s1637_s1 + $0x1d0] sm:$0xff]   ;;  %v1340_v1 = vld [vmem:[%s1637_s1 + $0x1c8] sm:$0xff]  }
  0x20   : > { %1202 = vmatpush3.bf16.msra.mxu1 %v1302_v19  ;;  %1181 = vmatprep.subr.bf16.mxu0 %v1303_v20  ;;  %v1337_v62 = vld [vmem:[%s1637_s1 + $0x110] sm:$0xff]   ;;  %v1341_v2 = vld [vmem:[%s1637_s1 + $0x108] sm:$0xff]   ;;  %v1343_v4 = vld [vmem:[%s1637_s1 + $0x140] sm:$0xff]  }
  0x21   : > { %1203 = vmatprep.subr.bf16.mxu1 %v1304_v21  ;;  %v1338_v63 = vld [vmem:[%s1637_s1 + $0x190] sm:$0xff]   ;;  %v1342_v3 = vld [vmem:[%s1637_s1 + $0x188] sm:$0xff]   ;;  %v1344_v5 = vld [vmem:[%s1637_s1 + $0x1c0] sm:$0xff]  }
  0x22   : > { %v1345_v6 = vld [vmem:[%s1637_s1 + $0x100] sm:$0xff]   ;;  %v231_v8 = vld [vmem:[%s1508_s12 + $0x10] sm:$0xff]  ;;  %v232_v12 = vld [vmem:[%s1508_s12 + $0x18] sm:$0xff] }
  0x23   : > { %1182 = vmatpush3.bf16.msra.mxu0 %v1305_v22  ;;  %v1346_v7 = vld [vmem:[%s1637_s1 + $0x180] sm:$0xff]   ;;  %v235_v9 = vld [vmem:[%s1508_s12 + $0x30] sm:$0xff]  ;;  %v236_v13 = vld [vmem:[%s1508_s12 + $0x38] sm:$0xff]  ;;  %s1085_s12 = sshll.u32 %s1645_s25, 2 }
  0x24   : > { %1204 = vmatpush3.bf16.msra.mxu1 %v1306_v23  ;;  %1183 = vmatprep.subr.bf16.mxu0 %v1307_v24  ;;  %v1091_v10 = vcombine.low %v231_v8, %v235_v9  ;;  %v1092_v11 = vcombine.high %v231_v8, %v235_v9  ;;  %v1093_v14 = vcombine.low %v232_v12, %v236_v13  ;;  %v1086_v23 = vld [vmem:[%s1638_s2] ss:$0 sm:$0xff]  ;;  %s226_s17 = scalar_lea.vmem %s1639_s3, %s1085_s12 }
  0x25   : > { %1205 = vmatprep.subr.bf16.mxu1 %v1308_v25  ;;  %v1094_v15 = vcombine.high %v232_v12, %v236_v13 }
  0x27   : > { %1184 = vmatpush3.bf16.msra.mxu0 %v1309_v26 }
  0x28   : > { %1206 = vmatpush3.bf16.msra.mxu1 %v1310_v27  ;;  %1185 = vmatprep.subr.bf16.mxu0 %v1311_v28 }
  0x29   : > { %1207 = vmatprep.subr.bf16.mxu1 %v1312_v29 }
  0x2b   : > { %1186 = vmatpush3.bf16.msra.mxu0 %v1313_v30 }
  0x2c   : > { %1208 = vmatpush3.bf16.msra.mxu1 %v1314_v31  ;;  %1215 = vmatprep.subr.bf16.mxu0 %v1315_v40 }
  0x2d   : > { %1237 = vmatprep.subr.bf16.mxu1 %v1316_v41 }
  0x2e   : > { %829 = vmatmul.mubr.bf16.vlgmr.msra.gmra.mxu0 %v1087_v35 }
  0x2f   : > { %870 = vmatmul.mubr.bf16.vlgmr.msra.gmra.mxu1 %v1089_v38  ;;  %1216 = vmatpush3.bf16.msra.mxu0 %v1317_v42 }
  0x30   : > { %1238 = vmatpush3.bf16.msra.mxu1 %v1318_v43  ;;  %1217 = vmatprep.subr.bf16.mxu0 %v1319_v44 }
  0x31   : > { %1239 = vmatprep.subr.bf16.mxu1 %v1320_v45  ;;  %910 = vmatprep.mubr.bf16.mxu0 %v1092_v11 }
  0x32   : > { %951 = vmatprep.mubr.bf16.mxu1 %v1094_v15 }
  0x33   : > { %1218 = vmatpush3.bf16.msra.mxu0 %v1321_v46 }
  0x34   : > { %1240 = vmatpush3.bf16.msra.mxu1 %v1322_v47  ;;  %1219 = vmatprep.subr.bf16.mxu0 %v1323_v48 }
  0x35   : > { %1241 = vmatprep.subr.bf16.mxu1 %v1324_v49 }
  0x37   : > { %1220 = vmatpush3.bf16.msra.mxu0 %v1325_v50 }
  0x38   : > { %1242 = vmatpush3.bf16.msra.mxu1 %v1326_v51  ;;  %1221 = vmatprep.subr.bf16.mxu0 %v1327_v52 }
  0x39   : > { %1243 = vmatprep.subr.bf16.mxu1 %v1328_v53 }
  0x3b   : > { %1222 = vmatpush3.bf16.msra.mxu0 %v1329_v54 }
  0x3c   : > { %1244 = vmatpush3.bf16.msra.mxu1 %v1330_v55  ;;  %1223 = vmatprep.subr.bf16.mxu0 %v1331_v56 }
  0x3d   : > { %1245 = vmatprep.subr.bf16.mxu1 %v1332_v57 }
  0x3f   : > { %1224 = vmatpush3.bf16.msra.mxu0 %v1333_v58 }
  0x40   : > { %1246 = vmatpush3.bf16.msra.mxu1 %v1334_v59  ;;  %1225 = vmatprep.subr.bf16.mxu0 %v1335_v60 }
  0x41   : > { %1247 = vmatprep.subr.bf16.mxu1 %v1336_v61 }
  0x43   : > { %1226 = vmatpush3.bf16.msra.mxu0 %v1337_v62 }
  0x44   : > { %1248 = vmatpush3.bf16.msra.mxu1 %v1338_v63  ;;  %1227 = vmatprep.subr.bf16.mxu0 %v1339_v0 }
  0x45   : > { %1249 = vmatprep.subr.bf16.mxu1 %v1340_v1 }
  0x47   : > { %1228 = vmatpush3.bf16.msra.mxu0 %v1341_v2 }
  0x48   : > { %1250 = vmatpush3.bf16.msra.mxu1 %v1342_v3  ;;  %1229 = vmatprep.subr.bf16.mxu0 %v1343_v4 }
  0x49   : > { %1251 = vmatprep.subr.bf16.mxu1 %v1344_v5 }
  0x4b   : > { %1230 = vmatpush3.bf16.msra.mxu0 %v1345_v6 }
  0x4c   : > { %1252 = vmatpush3.bf16.msra.mxu1 %v1346_v7 }
  0x4e   : > { %911 = vmatmul.mubr.bf16.vlgmr.msra.gmra.mxu0 %v1091_v10 }
  0x4f   : > { %952 = vmatmul.mubr.bf16.vlgmr.msra.gmra.mxu1 %v1093_v14 }
  0xee   : > { %v1187_v16 = vpop.f32.mrf.mxu0 }
  0xef   : > { %v1209_v17 = vpop.f32.mrf.mxu1 }
  0xf0   : > { %v1188_v18 = vpop.f32.mrf.mxu0 }
  0xf1   : > { %v1210_v19 = vpop.f32.mrf.mxu1  ;;  %v1189_v21 = vadd.f32 %v1188_v18, %v1187_v16 }
  0xf2   : > { %v1190_v20 = vpop.f32.mrf.mxu0  ;;  %v1211_v26 = vadd.f32 %v1210_v19, %v1209_v17 }
  0xf3   : > { %v1212_v22 = vpop.f32.mrf.mxu1  ;;  %v831_v25 = vadd.f32 %v1189_v21, %v1086_v23 }
  0xf4   : > { %v1191_v24 = vpop.f32.mrf.mxu0 }
  0xf5   : > { %v1192_v27 = vadd.f32 %v1191_v24, %v1190_v20  ;;  %v1213_v28 = vpop.f32.mrf.mxu1  ;;  %v872_v32 = vadd.f32 %v1211_v26, %v831_v25 }
  0xf6   : > { %v1214_v37 = vadd.f32 %v1213_v28, %v1212_v22 }
  0xf7   : > { %v834_v33 = vadd.f32 %v1192_v27, %v1086_v23 }
  0xf9   : > { %v875_v41 = vadd.f32 %v1214_v37, %v834_v33 }
 0x10e   : > { %v1231_v29 = vpop.f32.mrf.mxu0 }
 0x10f   : > { %v1253_v30 = vpop.f32.mrf.mxu1 }
 0x110   : > { %v1232_v31 = vpop.f32.mrf.mxu0 }
 0x111   : > { %v1233_v34 = vadd.f32 %v1232_v31, %v1231_v29  ;;  %v1254_v35 = vpop.f32.mrf.mxu1 }
 0x112   : > { %v1234_v36 = vpop.f32.mrf.mxu0  ;;  %v1255_v42 = vadd.f32 %v1254_v35, %v1253_v30 }
 0x113   : > { %v913_v38 = vadd.f32 %v1233_v34, %v872_v32  ;;  %v1256_v39 = vpop.f32.mrf.mxu1 }
 0x114   : > { %v1235_v40 = vpop.f32.mrf.mxu0 }
 0x115   : > { %v1236_v43 = vadd.f32 %v1235_v40, %v1234_v36  ;;  %v1257_v44 = vpop.f32.mrf.mxu1  ;;  %v954_v45 = vadd.f32 %v1255_v42, %v913_v38 }
 0x116   : > { %v1258_v47 = vadd.f32 %v1257_v44, %v1256_v39 }
 0x117   : > { %v916_v46 = vadd.f32 %v1236_v43, %v875_v41  ;;  %v960_v49 = vmax.f32 %v954_v45, 0.0 }
 0x119   : > { %v957_v48 = vadd.f32 %v1258_v47, %v916_v46 }
 0x11b   : > { %v961_v50 = vmax.f32 %v957_v48, 0.0 }
 0x11d   : > { %v1169_v51 = vpack.c.bf16 %v961_v50, %v960_v49 }
 0x11f   : > { %1170 = vst [vmem:[%s226_s17] sm:$0xff] %v1169_v51  }
 0x120 PF: > { %s13_s14 = sadd.s32 1, %s1369_s14   ;;  %s1640_s12 = smov %s1365_s13 }
 0x121   : > { %p10_p5 = scmp.ge.s32.totalorder %s13_s14, 4   ;;  %s1641_s13 = smov %s1643_s15 }
 0x123   :  { %12 = sbr.rel (!%p10_p5) target bundleno = 2 (0x2), region = 68 }

// kernel: autoencoder_forward.8
= control target key start
LH: loop header
LB: loop body
LE: loop exit
PB: predicated region body
PF: predicated region fallthrough
CT: control target
= control target key end

     0   :  { %s3470_s12 = smov 0   ;;  %s3472_s13 = smov 0   ;;  %s4277_s0 = inlined_call_operand.vmem [shape: bf16[16,2048], index: 0, kind: input, shape index: {}]   ;;  %s4278_s1 = inlined_call_operand.vmem [shape: bf16[2048,256], index: 1, kind: input, shape index: {}]   ;;  %s4279_s2 = inlined_call_operand.vmem [shape: f32[1,256], index: 2, kind: input, shape index: {}]   ;;  %s4280_s3 = inlined_call_operand.vmem [shape: bf16[16,256], index: 3, kind: output, shape index: {}]  }
   0x1   :  { %s3474_s14 = smov 0   ;;  %s3476_s15 = smov 0  }
   0x2   :  { %s3478_s16 = smov 0  }
   0x3 LB: > { %s22_s17 = sadd.s32 1, %s3444_s15  ;;  %s2898_s18 = sadd.s32 4294967295, %s3448_s16   ;;  %s3448_s16 = sphi %s3478_s16, %s13_s16   ;;  %s3444_s15 = sphi %s3476_s15, %s4285_s15   ;;  %s3440_s14 = sphi %s3474_s14, %s4284_s14   ;;  %s3436_s13 = sphi %s3472_s13, %s4283_s13   ;;  %s3432_s12 = sphi %s3470_s12, %s4282_s12  }
   0x4   : > { %p23_p0 = scmp.ge.s32.totalorder %s22_s17, 2  ;;  %p65_p1 = scmp.ne.s32.totalorder %s3436_s13, %s3432_s12 }
   0x5   : > { %p66_p2 = scmp.eq.s32.totalorder %s3448_s16, 0  ;;  %p123_p4 = scmp.eq.s32.totalorder %s2898_s18, 1 }
   0x6   : > { %s4287_s17 = smov (%p23_p0, %s22_s17), 0  ;;  %s58_s20 = sadd.s32 1, %s3436_s13 }
   0x7   : > { %p67_p3 = por %p66_p2, %p65_p1  ;;  %s55_s19 = ssub.s32 %s3444_s15, %s4287_s17 }
   0x8   : > { %p56_p5 = scmp.eq.s32.totalorder %s55_s19, 0  ;;  %p3505_p6 = por %p123_p4, %p65_p1 }
   0x9   : > { %p2902_p7 = scmp.ge.s32.totalorder %s3448_s16, 2 }
   0xa   : > { %s3510_s22 = scalar_select %p56_p5, %s3436_s13, %s58_s20  }
   0xb   : > { %155 = sbr.rel (%p2902_p7) target bundleno = 190 (0xbe), region = 20 }
  0x10   : > { %158 = sbr.rel (!%p67_p3) target bundleno = 190 (0xbe), region = 24  ;;  %s160_s23 = sand.u32 (%p67_p3), 1, %s3436_s13  }
  0x11   : > { %s2904_s24 = sshll.u32 (%p67_p3), %s3444_s15, 2  ;;  %s2903_s25 = sshll.u32 (%p67_p3), %s160_s23, 10 }
  0x12   : > { %s3518_s28 = scalar_lea.vmem (%p67_p3), %s4278_s1, %s2904_s24  ;;  %s3522_s29 = scalar_lea.vmem (%p67_p3), [#allocation2], %s2903_s25 }
  0x13   : > { %v181_v0 = vld [vmem:[%s3518_s28] sm:$0xf] (%p67_p3)  ;;  %v183_v1 = vld [vmem:[%s3518_s28 + $0x8] sm:$0xf] (%p67_p3)  ;;  %v185_v2 = vld [vmem:[%s3518_s28 + $0x10] sm:$0xf] (%p67_p3) }
  0x14   : > { %182 = vst [vmem:[%s3522_s29] sm:$0xf] (%p67_p3), %v181_v0  ;;  %184 = vst [vmem:[%s3522_s29 + $0x4] sm:$0xf] (%p67_p3), %v183_v1  ;;  %v187_v3 = vld [vmem:[%s3518_s28 + $0x18] sm:$0xf] (%p67_p3) }
  0x15   : > { %v189_v4 = vld [vmem:[%s3518_s28 + $0x20] sm:$0xf]  ;;  %186 = vst [vmem:[%s3522_s29 + $0x8] sm:$0xf] %v185_v2  ;;  %188 = vst [vmem:[%s3522_s29 + $0xc] sm:$0xf] %v187_v3 }
  0x16   : > { %190 = vst [vmem:[%s3522_s29 + $0x10] sm:$0xf] %v189_v4  ;;  %v191_v5 = vld [vmem:[%s3518_s28 + $0x28] sm:$0xf]  ;;  %v193_v6 = vld [vmem:[%s3518_s28 + $0x30] sm:$0xf] }
  0x17   : > { %v195_v7 = vld [vmem:[%s3518_s28 + $0x38] sm:$0xf]  ;;  %192 = vst [vmem:[%s3522_s29 + $0x14] sm:$0xf] %v191_v5  ;;  %194 = vst [vmem:[%s3522_s29 + $0x18] sm:$0xf] %v193_v6 }
  0x18   : > { %196 = vst [vmem:[%s3522_s29 + $0x1c] sm:$0xf] %v195_v7  ;;  %v197_v8 = vld [vmem:[%s3518_s28 + $0x40] sm:$0xf]  ;;  %v199_v9 = vld [vmem:[%s3518_s28 + $0x48] sm:$0xf] }
  0x19   : > { %v201_v10 = vld [vmem:[%s3518_s28 + $0x50] sm:$0xf]  ;;  %198 = vst [vmem:[%s3522_s29 + $0x20] sm:$0xf] %v197_v8  ;;  %200 = vst [vmem:[%s3522_s29 + $0x24] sm:$0xf] %v199_v9 }
  0x1a   : > { %202 = vst [vmem:[%s3522_s29 + $0x28] sm:$0xf] %v201_v10  ;;  %v203_v11 = vld [vmem:[%s3518_s28 + $0x58] sm:$0xf]  ;;  %v205_v12 = vld [vmem:[%s3518_s28 + $0x60] sm:$0xf] }
  0x1b   : > { %v207_v13 = vld [vmem:[%s3518_s28 + $0x68] sm:$0xf]  ;;  %204 = vst [vmem:[%s3522_s29 + $0x2c] sm:$0xf] %v203_v11  ;;  %206 = vst [vmem:[%s3522_s29 + $0x30] sm:$0xf] %v205_v12 }
  0x1c   : > { %208 = vst [vmem:[%s3522_s29 + $0x34] sm:$0xf] %v207_v13  ;;  %v209_v14 = vld [vmem:[%s3518_s28 + $0x70] sm:$0xf]  ;;  %v211_v15 = vld [vmem:[%s3518_s28 + $0x78] sm:$0xf] }
  0x1d   : > { %v213_v16 = vld [vmem:[%s3518_s28 + $0x80] sm:$0xf]  ;;  %210 = vst [vmem:[%s3522_s29 + $0x38] sm:$0xf] %v209_v14  ;;  %212 = vst [vmem:[%s3522_s29 + $0x3c] sm:$0xf] %v211_v15 }
  0x1e   : > { %214 = vst [vmem:[%s3522_s29 + $0x40] sm:$0xf] %v213_v16  ;;  %v215_v17 = vld [vmem:[%s3518_s28 + $0x88] sm:$0xf]  ;;  %v217_v18 = vld [vmem:[%s3518_s28 + $0x90] sm:$0xf] }
  0x1f   : > { %v219_v19 = vld [vmem:[%s3518_s28 + $0x98] sm:$0xf]  ;;  %216 = vst [vmem:[%s3522_s29 + $0x44] sm:$0xf] %v215_v17  ;;  %218 = vst [vmem:[%s3522_s29 + $0x48] sm:$0xf] %v217_v18 }
  0x20   : > { %220 = vst [vmem:[%s3522_s29 + $0x4c] sm:$0xf] %v219_v19  ;;  %v221_v20 = vld [vmem:[%s3518_s28 + $0xa0] sm:$0xf]  ;;  %v223_v21 = vld [vmem:[%s3518_s28 + $0xa8] sm:$0xf] }
  0x21   : > { %v225_v22 = vld [vmem:[%s3518_s28 + $0xb0] sm:$0xf]  ;;  %222 = vst [vmem:[%s3522_s29 + $0x50] sm:$0xf] %v221_v20  ;;  %224 = vst [vmem:[%s3522_s29 + $0x54] sm:$0xf] %v223_v21 }
  0x22   : > { %226 = vst [vmem:[%s3522_s29 + $0x58] sm:$0xf] %v225_v22  ;;  %v227_v23 = vld [vmem:[%s3518_s28 + $0xb8] sm:$0xf]  ;;  %v229_v24 = vld [vmem:[%s3518_s28 + $0xc0] sm:$0xf] }
  0x23   : > { %v231_v25 = vld [vmem:[%s3518_s28 + $0xc8] sm:$0xf]  ;;  %228 = vst [vmem:[%s3522_s29 + $0x5c] sm:$0xf] %v227_v23  ;;  %230 = vst [vmem:[%s3522_s29 + $0x60] sm:$0xf] %v229_v24 }
  0x24   : > { %232 = vst [vmem:[%s3522_s29 + $0x64] sm:$0xf] %v231_v25  ;;  %v233_v26 = vld [vmem:[%s3518_s28 + $0xd0] sm:$0xf]  ;;  %v235_v27 = vld [vmem:[%s3518_s28 + $0xd8] sm:$0xf] }
  0x25   : > { %v237_v28 = vld [vmem:[%s3518_s28 + $0xe0] sm:$0xf]  ;;  %234 = vst [vmem:[%s3522_s29 + $0x68] sm:$0xf] %v233_v26  ;;  %236 = vst [vmem:[%s3522_s29 + $0x6c] sm:$0xf] %v235_v27 }
  0x26   : > { %238 = vst [vmem:[%s3522_s29 + $0x70] sm:$0xf] %v237_v28  ;;  %v239_v29 = vld [vmem:[%s3518_s28 + $0xe8] sm:$0xf]  ;;  %v241_v30 = vld [vmem:[%s3518_s28 + $0xf0] sm:$0xf] }
  0x27   : > { %v243_v31 = vld [vmem:[%s3518_s28 + $0xf8] sm:$0xf]  ;;  %240 = vst [vmem:[%s3522_s29 + $0x74] sm:$0xf] %v239_v29  ;;  %242 = vst [vmem:[%s3522_s29 + $0x78] sm:$0xf] %v241_v30 }
  0x28   : > { %244 = vst [vmem:[%s3522_s29 + $0x7c] sm:$0xf] %v243_v31  ;;  %v245_v32 = vld [vmem:[%s3518_s28 + $0x100] sm:$0xf]  ;;  %v247_v33 = vld [vmem:[%s3518_s28 + $0x108] sm:$0xf] }
  0x29   : > { %v249_v34 = vld [vmem:[%s3518_s28 + $0x110] sm:$0xf]  ;;  %246 = vst [vmem:[%s3522_s29 + $0x80] sm:$0xf] %v245_v32  ;;  %248 = vst [vmem:[%s3522_s29 + $0x84] sm:$0xf] %v247_v33 }
  0x2a   : > { %250 = vst [vmem:[%s3522_s29 + $0x88] sm:$0xf] %v249_v34  ;;  %v251_v35 = vld [vmem:[%s3518_s28 + $0x118] sm:$0xf]  ;;  %v253_v36 = vld [vmem:[%s3518_s28 + $0x120] sm:$0xf] }
  0x2b   : > { %v255_v37 = vld [vmem:[%s3518_s28 + $0x128] sm:$0xf]  ;;  %252 = vst [vmem:[%s3522_s29 + $0x8c] sm:$0xf] %v251_v35  ;;  %254 = vst [vmem:[%s3522_s29 + $0x90] sm:$0xf] %v253_v36 }
  0x2c   : > { %256 = vst [vmem:[%s3522_s29 + $0x94] sm:$0xf] %v255_v37  ;;  %v257_v38 = vld [vmem:[%s3518_s28 + $0x130] sm:$0xf]  ;;  %v259_v39 = vld [vmem:[%s3518_s28 + $0x138] sm:$0xf] }
  0x2d   : > { %v261_v40 = vld [vmem:[%s3518_s28 + $0x140] sm:$0xf]  ;;  %258 = vst [vmem:[%s3522_s29 + $0x98] sm:$0xf] %v257_v38  ;;  %260 = vst [vmem:[%s3522_s29 + $0x9c] sm:$0xf] %v259_v39 }
  0x2e   : > { %262 = vst [vmem:[%s3522_s29 + $0xa0] sm:$0xf] %v261_v40  ;;  %v263_v41 = vld [vmem:[%s3518_s28 + $0x148] sm:$0xf]  ;;  %v265_v42 = vld [vmem:[%s3518_s28 + $0x150] sm:$0xf] }
  0x2f   : > { %v267_v43 = vld [vmem:[%s3518_s28 + $0x158] sm:$0xf]  ;;  %264 = vst [vmem:[%s3522_s29 + $0xa4] sm:$0xf] %v263_v41  ;;  %266 = vst [vmem:[%s3522_s29 + $0xa8] sm:$0xf] %v265_v42 }
  0x30   : > { %268 = vst [vmem:[%s3522_s29 + $0xac] sm:$0xf] %v267_v43  ;;  %v269_v44 = vld [vmem:[%s3518_s28 + $0x160] sm:$0xf]  ;;  %v271_v45 = vld [vmem:[%s3518_s28 + $0x168] sm:$0xf] }
  0x31   : > { %v273_v46 = vld [vmem:[%s3518_s28 + $0x170] sm:$0xf]  ;;  %270 = vst [vmem:[%s3522_s29 + $0xb0] sm:$0xf] %v269_v44  ;;  %272 = vst [vmem:[%s3522_s29 + $0xb4] sm:$0xf] %v271_v45 }
  0x32   : > { %274 = vst [vmem:[%s3522_s29 + $0xb8] sm:$0xf] %v273_v46  ;;  %v275_v47 = vld [vmem:[%s3518_s28 + $0x178] sm:$0xf]  ;;  %v277_v48 = vld [vmem:[%s3518_s28 + $0x180] sm:$0xf] }
  0x33   : > { %v279_v49 = vld [vmem:[%s3518_s28 + $0x188] sm:$0xf]  ;;  %276 = vst [vmem:[%s3522_s29 + $0xbc] sm:$0xf] %v275_v47  ;;  %278 = vst [vmem:[%s3522_s29 + $0xc0] sm:$0xf] %v277_v48 }
  0x34   : > { %280 = vst [vmem:[%s3522_s29 + $0xc4] sm:$0xf] %v279_v49  ;;  %v281_v50 = vld [vmem:[%s3518_s28 + $0x190] sm:$0xf]  ;;  %v283_v51 = vld [vmem:[%s3518_s28 + $0x198] sm:$0xf] }
  0x35   : > { %v285_v52 = vld [vmem:[%s3518_s28 + $0x1a0] sm:$0xf]  ;;  %282 = vst [vmem:[%s3522_s29 + $0xc8] sm:$0xf] %v281_v50  ;;  %284 = vst [vmem:[%s3522_s29 + $0xcc] sm:$0xf] %v283_v51 }
  0x36   : > { %286 = vst [vmem:[%s3522_s29 + $0xd0] sm:$0xf] %v285_v52  ;;  %v287_v53 = vld [vmem:[%s3518_s28 + $0x1a8] sm:$0xf]  ;;  %v289_v54 = vld [vmem:[%s3518_s28 + $0x1b0] sm:$0xf] }
  0x37   : > { %v291_v55 = vld [vmem:[%s3518_s28 + $0x1b8] sm:$0xf]  ;;  %288 = vst [vmem:[%s3522_s29 + $0xd4] sm:$0xf] %v287_v53  ;;  %290 = vst [vmem:[%s3522_s29 + $0xd8] sm:$0xf] %v289_v54 }
  0x38   : > { %292 = vst [vmem:[%s3522_s29 + $0xdc] sm:$0xf] %v291_v55  ;;  %v293_v56 = vld [vmem:[%s3518_s28 + $0x1c0] sm:$0xf]  ;;  %v295_v57 = vld [vmem:[%s3518_s28 + $0x1c8] sm:$0xf] }
  0x39   : > { %v297_v58 = vld [vmem:[%s3518_s28 + $0x1d0] sm:$0xf]  ;;  %294 = vst [vmem:[%s3522_s29 + $0xe0] sm:$0xf] %v293_v56  ;;  %296 = vst [vmem:[%s3522_s29 + $0xe4] sm:$0xf] %v295_v57 }
  0x3a   : > { %298 = vst [vmem:[%s3522_s29 + $0xe8] sm:$0xf] %v297_v58  ;;  %v299_v59 = vld [vmem:[%s3518_s28 + $0x1d8] sm:$0xf]  ;;  %v301_v60 = vld [vmem:[%s3518_s28 + $0x1e0] sm:$0xf] }
  0x3b   : > { %v303_v61 = vld [vmem:[%s3518_s28 + $0x1e8] sm:$0xf]  ;;  %300 = vst [vmem:[%s3522_s29 + $0xec] sm:$0xf] %v299_v59  ;;  %302 = vst [vmem:[%s3522_s29 + $0xf0] sm:$0xf] %v301_v60 }
  0x3c   : > { %304 = vst [vmem:[%s3522_s29 + $0xf4] sm:$0xf] %v303_v61  ;;  %v305_v62 = vld [vmem:[%s3518_s28 + $0x1f0] sm:$0xf]  ;;  %v307_v63 = vld [vmem:[%s3518_s28 + $0x1f8] sm:$0xf] }
  0x3d   : > { %v309_v0 = vld [vmem:[%s3518_s28 + $0x200] sm:$0xf]  ;;  %306 = vst [vmem:[%s3522_s29 + $0xf8] sm:$0xf] %v305_v62  ;;  %308 = vst [vmem:[%s3522_s29 + $0xfc] sm:$0xf] %v307_v63 }
  0x3e   : > { %310 = vst [vmem:[%s3522_s29 + $0x100] sm:$0xf] %v309_v0  ;;  %v311_v1 = vld [vmem:[%s3518_s28 + $0x208] sm:$0xf]  ;;  %v313_v2 = vld [vmem:[%s3518_s28 + $0x210] sm:$0xf] }
  0x3f   : > { %v315_v3 = vld [vmem:[%s3518_s28 + $0x218] sm:$0xf]  ;;  %312 = vst [vmem:[%s3522_s29 + $0x104] sm:$0xf] %v311_v1  ;;  %314 = vst [vmem:[%s3522_s29 + $0x108] sm:$0xf] %v313_v2 }
  0x40   : > { %316 = vst [vmem:[%s3522_s29 + $0x10c] sm:$0xf] %v315_v3  ;;  %v317_v4 = vld [vmem:[%s3518_s28 + $0x220] sm:$0xf]  ;;  %v319_v5 = vld [vmem:[%s3518_s28 + $0x228] sm:$0xf] }
  0x41   : > { %v321_v6 = vld [vmem:[%s3518_s28 + $0x230] sm:$0xf]  ;;  %318 = vst [vmem:[%s3522_s29 + $0x110] sm:$0xf] %v317_v4  ;;  %320 = vst [vmem:[%s3522_s29 + $0x114] sm:$0xf] %v319_v5 }
  0x42   : > { %322 = vst [vmem:[%s3522_s29 + $0x118] sm:$0xf] %v321_v6  ;;  %v323_v7 = vld [vmem:[%s3518_s28 + $0x238] sm:$0xf]  ;;  %v325_v8 = vld [vmem:[%s3518_s28 + $0x240] sm:$0xf] }
  0x43   : > { %v327_v9 = vld [vmem:[%s3518_s28 + $0x248] sm:$0xf]  ;;  %324 = vst [vmem:[%s3522_s29 + $0x11c] sm:$0xf] %v323_v7  ;;  %326 = vst [vmem:[%s3522_s29 + $0x120] sm:$0xf] %v325_v8 }
  0x44   : > { %328 = vst [vmem:[%s3522_s29 + $0x124] sm:$0xf] %v327_v9  ;;  %v329_v10 = vld [vmem:[%s3518_s28 + $0x250] sm:$0xf]  ;;  %v331_v11 = vld [vmem:[%s3518_s28 + $0x258] sm:$0xf] }
  0x45   : > { %v333_v12 = vld [vmem:[%s3518_s28 + $0x260] sm:$0xf]  ;;  %330 = vst [vmem:[%s3522_s29 + $0x128] sm:$0xf] %v329_v10  ;;  %332 = vst [vmem:[%s3522_s29 + $0x12c] sm:$0xf] %v331_v11 }
  0x46   : > { %334 = vst [vmem:[%s3522_s29 + $0x130] sm:$0xf] %v333_v12  ;;  %v335_v13 = vld [vmem:[%s3518_s28 + $0x268] sm:$0xf]  ;;  %v337_v14 = vld [vmem:[%s3518_s28 + $0x270] sm:$0xf] }
  0x47   : > { %v339_v15 = vld [vmem:[%s3518_s28 + $0x278] sm:$0xf]  ;;  %336 = vst [vmem:[%s3522_s29 + $0x134] sm:$0xf] %v335_v13  ;;  %338 = vst [vmem:[%s3522_s29 + $0x138] sm:$0xf] %v337_v14 }
  0x48   : > { %340 = vst [vmem:[%s3522_s29 + $0x13c] sm:$0xf] %v339_v15  ;;  %v341_v16 = vld [vmem:[%s3518_s28 + $0x280] sm:$0xf]  ;;  %v343_v17 = vld [vmem:[%s3518_s28 + $0x288] sm:$0xf] }
  0x49   : > { %v345_v18 = vld [vmem:[%s3518_s28 + $0x290] sm:$0xf]  ;;  %342 = vst [vmem:[%s3522_s29 + $0x140] sm:$0xf] %v341_v16  ;;  %344 = vst [vmem:[%s3522_s29 + $0x144] sm:$0xf] %v343_v17 }
  0x4a   : > { %346 = vst [vmem:[%s3522_s29 + $0x148] sm:$0xf] %v345_v18  ;;  %v347_v19 = vld [vmem:[%s3518_s28 + $0x298] sm:$0xf]  ;;  %v349_v20 = vld [vmem:[%s3518_s28 + $0x2a0] sm:$0xf] }
  0x4b   : > { %v351_v21 = vld [vmem:[%s3518_s28 + $0x2a8] sm:$0xf]  ;;  %348 = vst [vmem:[%s3522_s29 + $0x14c] sm:$0xf] %v347_v19  ;;  %350 = vst [vmem:[%s3522_s29 + $0x150] sm:$0xf] %v349_v20 }
  0x4c   : > { %352 = vst [vmem:[%s3522_s29 + $0x154] sm:$0xf] %v351_v21  ;;  %v353_v22 = vld [vmem:[%s3518_s28 + $0x2b0] sm:$0xf]  ;;  %v355_v23 = vld [vmem:[%s3518_s28 + $0x2b8] sm:$0xf] }
  0x4d   : > { %v357_v24 = vld [vmem:[%s3518_s28 + $0x2c0] sm:$0xf]  ;;  %354 = vst [vmem:[%s3522_s29 + $0x158] sm:$0xf] %v353_v22  ;;  %356 = vst [vmem:[%s3522_s29 + $0x15c] sm:$0xf] %v355_v23 }
  0x4e   : > { %358 = vst [vmem:[%s3522_s29 + $0x160] sm:$0xf] %v357_v24  ;;  %v359_v25 = vld [vmem:[%s3518_s28 + $0x2c8] sm:$0xf]  ;;  %v361_v26 = vld [vmem:[%s3518_s28 + $0x2d0] sm:$0xf] }
  0x4f   : > { %v363_v27 = vld [vmem:[%s3518_s28 + $0x2d8] sm:$0xf]  ;;  %360 = vst [vmem:[%s3522_s29 + $0x164] sm:$0xf] %v359_v25  ;;  %362 = vst [vmem:[%s3522_s29 + $0x168] sm:$0xf] %v361_v26 }
  0x50   : > { %364 = vst [vmem:[%s3522_s29 + $0x16c] sm:$0xf] %v363_v27  ;;  %v365_v28 = vld [vmem:[%s3518_s28 + $0x2e0] sm:$0xf]  ;;  %v367_v29 = vld [vmem:[%s3518_s28 + $0x2e8] sm:$0xf] }
  0x51   : > { %v369_v30 = vld [vmem:[%s3518_s28 + $0x2f0] sm:$0xf]  ;;  %366 = vst [vmem:[%s3522_s29 + $0x170] sm:$0xf] %v365_v28  ;;  %368 = vst [vmem:[%s3522_s29 + $0x174] sm:$0xf] %v367_v29 }
  0x52   : > { %370 = vst [vmem:[%s3522_s29 + $0x178] sm:$0xf] %v369_v30  ;;  %v371_v31 = vld [vmem:[%s3518_s28 + $0x2f8] sm:$0xf]  ;;  %v373_v32 = vld [vmem:[%s3518_s28 + $0x300] sm:$0xf] }
  0x53   : > { %v375_v33 = vld [vmem:[%s3518_s28 + $0x308] sm:$0xf]  ;;  %372 = vst [vmem:[%s3522_s29 + $0x17c] sm:$0xf] %v371_v31  ;;  %374 = vst [vmem:[%s3522_s29 + $0x180] sm:$0xf] %v373_v32 }
  0x54   : > { %376 = vst [vmem:[%s3522_s29 + $0x184] sm:$0xf] %v375_v33  ;;  %v377_v34 = vld [vmem:[%s3518_s28 + $0x310] sm:$0xf]  ;;  %v379_v35 = vld [vmem:[%s3518_s28 + $0x318] sm:$0xf] }
  0x55   : > { %v381_v36 = vld [vmem:[%s3518_s28 + $0x320] sm:$0xf]  ;;  %378 = vst [vmem:[%s3522_s29 + $0x188] sm:$0xf] %v377_v34  ;;  %380 = vst [vmem:[%s3522_s29 + $0x18c] sm:$0xf] %v379_v35 }
  0x56   : > { %382 = vst [vmem:[%s3522_s29 + $0x190] sm:$0xf] %v381_v36  ;;  %v383_v37 = vld [vmem:[%s3518_s28 + $0x328] sm:$0xf]  ;;  %v385_v38 = vld [vmem:[%s3518_s28 + $0x330] sm:$0xf] }
  0x57   : > { %v387_v39 = vld [vmem:[%s3518_s28 + $0x338] sm:$0xf]  ;;  %384 = vst [vmem:[%s3522_s29 + $0x194] sm:$0xf] %v383_v37  ;;  %386 = vst [vmem:[%s3522_s29 + $0x198] sm:$0xf] %v385_v38 }
  0x58   : > { %388 = vst [vmem:[%s3522_s29 + $0x19c] sm:$0xf] %v387_v39  ;;  %v389_v40 = vld [vmem:[%s3518_s28 + $0x340] sm:$0xf]  ;;  %v391_v41 = vld [vmem:[%s3518_s28 + $0x348] sm:$0xf] }
  0x59   : > { %v393_v42 = vld [vmem:[%s3518_s28 + $0x350] sm:$0xf]  ;;  %390 = vst [vmem:[%s3522_s29 + $0x1a0] sm:$0xf] %v389_v40  ;;  %392 = vst [vmem:[%s3522_s29 + $0x1a4] sm:$0xf] %v391_v41 }
  0x5a   : > { %394 = vst [vmem:[%s3522_s29 + $0x1a8] sm:$0xf] %v393_v42  ;;  %v395_v43 = vld [vmem:[%s3518_s28 + $0x358] sm:$0xf]  ;;  %v397_v44 = vld [vmem:[%s3518_s28 + $0x360] sm:$0xf] }
  0x5b   : > { %v399_v45 = vld [vmem:[%s3518_s28 + $0x368] sm:$0xf]  ;;  %396 = vst [vmem:[%s3522_s29 + $0x1ac] sm:$0xf] %v395_v43  ;;  %398 = vst [vmem:[%s3522_s29 + $0x1b0] sm:$0xf] %v397_v44 }
  0x5c   : > { %400 = vst [vmem:[%s3522_s29 + $0x1b4] sm:$0xf] %v399_v45  ;;  %v401_v46 = vld [vmem:[%s3518_s28 + $0x370] sm:$0xf]  ;;  %v403_v47 = vld [vmem:[%s3518_s28 + $0x378] sm:$0xf] }
  0x5d   : > { %v405_v48 = vld [vmem:[%s3518_s28 + $0x380] sm:$0xf]  ;;  %402 = vst [vmem:[%s3522_s29 + $0x1b8] sm:$0xf] %v401_v46  ;;  %404 = vst [vmem:[%s3522_s29 + $0x1bc] sm:$0xf] %v403_v47 }
  0x5e   : > { %406 = vst [vmem:[%s3522_s29 + $0x1c0] sm:$0xf] %v405_v48  ;;  %v407_v49 = vld [vmem:[%s3518_s28 + $0x388] sm:$0xf]  ;;  %v409_v50 = vld [vmem:[%s3518_s28 + $0x390] sm:$0xf] }
  0x5f   : > { %v411_v51 = vld [vmem:[%s3518_s28 + $0x398] sm:$0xf]  ;;  %408 = vst [vmem:[%s3522_s29 + $0x1c4] sm:$0xf] %v407_v49  ;;  %410 = vst [vmem:[%s3522_s29 + $0x1c8] sm:$0xf] %v409_v50 }
  0x60   : > { %412 = vst [vmem:[%s3522_s29 + $0x1cc] sm:$0xf] %v411_v51  ;;  %v413_v52 = vld [vmem:[%s3518_s28 + $0x3a0] sm:$0xf]  ;;  %v415_v53 = vld [vmem:[%s3518_s28 + $0x3a8] sm:$0xf] }
  0x61   : > { %v417_v54 = vld [vmem:[%s3518_s28 + $0x3b0] sm:$0xf]  ;;  %414 = vst [vmem:[%s3522_s29 + $0x1d0] sm:$0xf] %v413_v52  ;;  %416 = vst [vmem:[%s3522_s29 + $0x1d4] sm:$0xf] %v415_v53 }
  0x62   : > { %418 = vst [vmem:[%s3522_s29 + $0x1d8] sm:$0xf] %v417_v54  ;;  %v419_v55 = vld [vmem:[%s3518_s28 + $0x3b8] sm:$0xf]  ;;  %v421_v56 = vld [vmem:[%s3518_s28 + $0x3c0] sm:$0xf] }
  0x63   : > { %v423_v57 = vld [vmem:[%s3518_s28 + $0x3c8] sm:$0xf]  ;;  %420 = vst [vmem:[%s3522_s29 + $0x1dc] sm:$0xf] %v419_v55  ;;  %422 = vst [vmem:[%s3522_s29 + $0x1e0] sm:$0xf] %v421_v56 }
  0x64   : > { %424 = vst [vmem:[%s3522_s29 + $0x1e4] sm:$0xf] %v423_v57  ;;  %v425_v58 = vld [vmem:[%s3518_s28 + $0x3d0] sm:$0xf]  ;;  %v427_v59 = vld [vmem:[%s3518_s28 + $0x3d8] sm:$0xf] }
  0x65   : > { %v429_v60 = vld [vmem:[%s3518_s28 + $0x3e0] sm:$0xf]  ;;  %426 = vst [vmem:[%s3522_s29 + $0x1e8] sm:$0xf] %v425_v58  ;;  %428 = vst [vmem:[%s3522_s29 + $0x1ec] sm:$0xf] %v427_v59 }
  0x66   : > { %430 = vst [vmem:[%s3522_s29 + $0x1f0] sm:$0xf] %v429_v60  ;;  %v431_v61 = vld [vmem:[%s3518_s28 + $0x3e8] sm:$0xf]  ;;  %v433_v62 = vld [vmem:[%s3518_s28 + $0x3f0] sm:$0xf] }
  0x67   : > { %v435_v63 = vld [vmem:[%s3518_s28 + $0x3f8] sm:$0xf]  ;;  %432 = vst [vmem:[%s3522_s29 + $0x1f4] sm:$0xf] %v431_v61  ;;  %434 = vst [vmem:[%s3522_s29 + $0x1f8] sm:$0xf] %v433_v62 }
  0x68   : > { %436 = vst [vmem:[%s3522_s29 + $0x1fc] sm:$0xf] %v435_v63  ;;  %v437_v0 = vld [vmem:[%s3518_s28 + $0x400] sm:$0xf]  ;;  %v439_v1 = vld [vmem:[%s3518_s28 + $0x408] sm:$0xf] }
  0x69   : > { %v441_v2 = vld [vmem:[%s3518_s28 + $0x410] sm:$0xf]  ;;  %438 = vst [vmem:[%s3522_s29 + $0x200] sm:$0xf] %v437_v0  ;;  %440 = vst [vmem:[%s3522_s29 + $0x204] sm:$0xf] %v439_v1 }
  0x6a   : > { %442 = vst [vmem:[%s3522_s29 + $0x208] sm:$0xf] %v441_v2  ;;  %v443_v3 = vld [vmem:[%s3518_s28 + $0x418] sm:$0xf]  ;;  %v445_v4 = vld [vmem:[%s3518_s28 + $0x420] sm:$0xf] }
  0x6b   : > { %v447_v5 = vld [vmem:[%s3518_s28 + $0x428] sm:$0xf]  ;;  %444 = vst [vmem:[%s3522_s29 + $0x20c] sm:$0xf] %v443_v3  ;;  %446 = vst [vmem:[%s3522_s29 + $0x210] sm:$0xf] %v445_v4 }
  0x6c   : > { %448 = vst [vmem:[%s3522_s29 + $0x214] sm:$0xf] %v447_v5  ;;  %v449_v6 = vld [vmem:[%s3518_s28 + $0x430] sm:$0xf]  ;;  %v451_v7 = vld [vmem:[%s3518_s28 + $0x438] sm:$0xf] }
  0x6d   : > { %v453_v8 = vld [vmem:[%s3518_s28 + $0x440] sm:$0xf]  ;;  %450 = vst [vmem:[%s3522_s29 + $0x218] sm:$0xf] %v449_v6  ;;  %452 = vst [vmem:[%s3522_s29 + $0x21c] sm:$0xf] %v451_v7 }
  0x6e   : > { %454 = vst [vmem:[%s3522_s29 + $0x220] sm:$0xf] %v453_v8  ;;  %v455_v9 = vld [vmem:[%s3518_s28 + $0x448] sm:$0xf]  ;;  %v457_v10 = vld [vmem:[%s3518_s28 + $0x450] sm:$0xf] }
  0x6f   : > { %v459_v11 = vld [vmem:[%s3518_s28 + $0x458] sm:$0xf]  ;;  %456 = vst [vmem:[%s3522_s29 + $0x224] sm:$0xf] %v455_v9  ;;  %458 = vst [vmem:[%s3522_s29 + $0x228] sm:$0xf] %v457_v10 }
  0x70   : > { %460 = vst [vmem:[%s3522_s29 + $0x22c] sm:$0xf] %v459_v11  ;;  %v461_v12 = vld [vmem:[%s3518_s28 + $0x460] sm:$0xf]  ;;  %v463_v13 = vld [vmem:[%s3518_s28 + $0x468] sm:$0xf] }
  0x71   : > { %v465_v14 = vld [vmem:[%s3518_s28 + $0x470] sm:$0xf]  ;;  %462 = vst [vmem:[%s3522_s29 + $0x230] sm:$0xf] %v461_v12  ;;  %464 = vst [vmem:[%s3522_s29 + $0x234] sm:$0xf] %v463_v13 }
  0x72   : > { %466 = vst [vmem:[%s3522_s29 + $0x238] sm:$0xf] %v465_v14  ;;  %v467_v15 = vld [vmem:[%s3518_s28 + $0x478] sm:$0xf]  ;;  %v469_v16 = vld [vmem:[%s3518_s28 + $0x480] sm:$0xf] }
  0x73   : > { %v471_v17 = vld [vmem:[%s3518_s28 + $0x488] sm:$0xf]  ;;  %468 = vst [vmem:[%s3522_s29 + $0x23c] sm:$0xf] %v467_v15  ;;  %470 = vst [vmem:[%s3522_s29 + $0x240] sm:$0xf] %v469_v16 }
  0x74   : > { %472 = vst [vmem:[%s3522_s29 + $0x244] sm:$0xf] %v471_v17  ;;  %v473_v18 = vld [vmem:[%s3518_s28 + $0x490] sm:$0xf]  ;;  %v475_v19 = vld [vmem:[%s3518_s28 + $0x498] sm:$0xf] }
  0x75   : > { %v477_v20 = vld [vmem:[%s3518_s28 + $0x4a0] sm:$0xf]  ;;  %474 = vst [vmem:[%s3522_s29 + $0x248] sm:$0xf] %v473_v18  ;;  %476 = vst [vmem:[%s3522_s29 + $0x24c] sm:$0xf] %v475_v19 }
  0x76   : > { %478 = vst [vmem:[%s3522_s29 + $0x250] sm:$0xf] %v477_v20  ;;  %v479_v21 = vld [vmem:[%s3518_s28 + $0x4a8] sm:$0xf]  ;;  %v481_v22 = vld [vmem:[%s3518_s28 + $0x4b0] sm:$0xf] }
  0x77   : > { %v483_v23 = vld [vmem:[%s3518_s28 + $0x4b8] sm:$0xf]  ;;  %480 = vst [vmem:[%s3522_s29 + $0x254] sm:$0xf] %v479_v21  ;;  %482 = vst [vmem:[%s3522_s29 + $0x258] sm:$0xf] %v481_v22 }
  0x78   : > { %484 = vst [vmem:[%s3522_s29 + $0x25c] sm:$0xf] %v483_v23  ;;  %v485_v24 = vld [vmem:[%s3518_s28 + $0x4c0] sm:$0xf]  ;;  %v487_v25 = vld [vmem:[%s3518_s28 + $0x4c8] sm:$0xf] }
  0x79   : > { %v489_v26 = vld [vmem:[%s3518_s28 + $0x4d0] sm:$0xf]  ;;  %486 = vst [vmem:[%s3522_s29 + $0x260] sm:$0xf] %v485_v24  ;;  %488 = vst [vmem:[%s3522_s29 + $0x264] sm:$0xf] %v487_v25 }
  0x7a   : > { %490 = vst [vmem:[%s3522_s29 + $0x268] sm:$0xf] %v489_v26  ;;  %v491_v27 = vld [vmem:[%s3518_s28 + $0x4d8] sm:$0xf]  ;;  %v493_v28 = vld [vmem:[%s3518_s28 + $0x4e0] sm:$0xf] }
  0x7b   : > { %v495_v29 = vld [vmem:[%s3518_s28 + $0x4e8] sm:$0xf]  ;;  %492 = vst [vmem:[%s3522_s29 + $0x26c] sm:$0xf] %v491_v27  ;;  %494 = vst [vmem:[%s3522_s29 + $0x270] sm:$0xf] %v493_v28 }
  0x7c   : > { %496 = vst [vmem:[%s3522_s29 + $0x274] sm:$0xf] %v495_v29  ;;  %v497_v30 = vld [vmem:[%s3518_s28 + $0x4f0] sm:$0xf]  ;;  %v499_v31 = vld [vmem:[%s3518_s28 + $0x4f8] sm:$0xf] }
  0x7d   : > { %v501_v32 = vld [vmem:[%s3518_s28 + $0x500] sm:$0xf]  ;;  %498 = vst [vmem:[%s3522_s29 + $0x278] sm:$0xf] %v497_v30  ;;  %500 = vst [vmem:[%s3522_s29 + $0x27c] sm:$0xf] %v499_v31 }
  0x7e   : > { %502 = vst [vmem:[%s3522_s29 + $0x280] sm:$0xf] %v501_v32  ;;  %v503_v33 = vld [vmem:[%s3518_s28 + $0x508] sm:$0xf]  ;;  %v505_v34 = vld [vmem:[%s3518_s28 + $0x510] sm:$0xf] }
  0x7f   : > { %v507_v35 = vld [vmem:[%s3518_s28 + $0x518] sm:$0xf]  ;;  %504 = vst [vmem:[%s3522_s29 + $0x284] sm:$0xf] %v503_v33  ;;  %506 = vst [vmem:[%s3522_s29 + $0x288] sm:$0xf] %v505_v34 }
  0x80   : > { %508 = vst [vmem:[%s3522_s29 + $0x28c] sm:$0xf] %v507_v35  ;;  %v509_v36 = vld [vmem:[%s3518_s28 + $0x520] sm:$0xf]  ;;  %v511_v37 = vld [vmem:[%s3518_s28 + $0x528] sm:$0xf] }
  0x81   : > { %v513_v38 = vld [vmem:[%s3518_s28 + $0x530] sm:$0xf]  ;;  %510 = vst [vmem:[%s3522_s29 + $0x290] sm:$0xf] %v509_v36  ;;  %512 = vst [vmem:[%s3522_s29 + $0x294] sm:$0xf] %v511_v37 }
  0x82   : > { %514 = vst [vmem:[%s3522_s29 + $0x298] sm:$0xf] %v513_v38  ;;  %v515_v39 = vld [vmem:[%s3518_s28 + $0x538] sm:$0xf]  ;;  %v517_v40 = vld [vmem:[%s3518_s28 + $0x540] sm:$0xf] }
  0x83   : > { %v519_v41 = vld [vmem:[%s3518_s28 + $0x548] sm:$0xf]  ;;  %516 = vst [vmem:[%s3522_s29 + $0x29c] sm:$0xf] %v515_v39  ;;  %518 = vst [vmem:[%s3522_s29 + $0x2a0] sm:$0xf] %v517_v40 }
  0x84   : > { %520 = vst [vmem:[%s3522_s29 + $0x2a4] sm:$0xf] %v519_v41  ;;  %v521_v42 = vld [vmem:[%s3518_s28 + $0x550] sm:$0xf]  ;;  %v523_v43 = vld [vmem:[%s3518_s28 + $0x558] sm:$0xf] }
  0x85   : > { %v525_v44 = vld [vmem:[%s3518_s28 + $0x560] sm:$0xf]  ;;  %522 = vst [vmem:[%s3522_s29 + $0x2a8] sm:$0xf] %v521_v42  ;;  %524 = vst [vmem:[%s3522_s29 + $0x2ac] sm:$0xf] %v523_v43 }
  0x86   : > { %526 = vst [vmem:[%s3522_s29 + $0x2b0] sm:$0xf] %v525_v44  ;;  %v527_v45 = vld [vmem:[%s3518_s28 + $0x568] sm:$0xf]  ;;  %v529_v46 = vld [vmem:[%s3518_s28 + $0x570] sm:$0xf] }
  0x87   : > { %v531_v47 = vld [vmem:[%s3518_s28 + $0x578] sm:$0xf]  ;;  %528 = vst [vmem:[%s3522_s29 + $0x2b4] sm:$0xf] %v527_v45  ;;  %530 = vst [vmem:[%s3522_s29 + $0x2b8] sm:$0xf] %v529_v46 }
  0x88   : > { %532 = vst [vmem:[%s3522_s29 + $0x2bc] sm:$0xf] %v531_v47  ;;  %v533_v48 = vld [vmem:[%s3518_s28 + $0x580] sm:$0xf]  ;;  %v535_v49 = vld [vmem:[%s3518_s28 + $0x588] sm:$0xf] }
  0x89   : > { %v537_v50 = vld [vmem:[%s3518_s28 + $0x590] sm:$0xf]  ;;  %534 = vst [vmem:[%s3522_s29 + $0x2c0] sm:$0xf] %v533_v48  ;;  %536 = vst [vmem:[%s3522_s29 + $0x2c4] sm:$0xf] %v535_v49 }
  0x8a   : > { %538 = vst [vmem:[%s3522_s29 + $0x2c8] sm:$0xf] %v537_v50  ;;  %v539_v51 = vld [vmem:[%s3518_s28 + $0x598] sm:$0xf]  ;;  %v541_v52 = vld [vmem:[%s3518_s28 + $0x5a0] sm:$0xf] }
  0x8b   : > { %v543_v53 = vld [vmem:[%s3518_s28 + $0x5a8] sm:$0xf]  ;;  %540 = vst [vmem:[%s3522_s29 + $0x2cc] sm:$0xf] %v539_v51  ;;  %542 = vst [vmem:[%s3522_s29 + $0x2d0] sm:$0xf] %v541_v52 }
  0x8c   : > { %544 = vst [vmem:[%s3522_s29 + $0x2d4] sm:$0xf] %v543_v53  ;;  %v545_v54 = vld [vmem:[%s3518_s28 + $0x5b0] sm:$0xf]  ;;  %v547_v55 = vld [vmem:[%s3518_s28 + $0x5b8] sm:$0xf] }
  0x8d   : > { %v549_v56 = vld [vmem:[%s3518_s28 + $0x5c0] sm:$0xf]  ;;  %546 = vst [vmem:[%s3522_s29 + $0x2d8] sm:$0xf] %v545_v54  ;;  %548 = vst [vmem:[%s3522_s29 + $0x2dc] sm:$0xf] %v547_v55 }
  0x8e   : > { %550 = vst [vmem:[%s3522_s29 + $0x2e0] sm:$0xf] %v549_v56  ;;  %v551_v57 = vld [vmem:[%s3518_s28 + $0x5c8] sm:$0xf]  ;;  %v553_v58 = vld [vmem:[%s3518_s28 + $0x5d0] sm:$0xf] }
  0x8f   : > { %v555_v59 = vld [vmem:[%s3518_s28 + $0x5d8] sm:$0xf]  ;;  %552 = vst [vmem:[%s3522_s29 + $0x2e4] sm:$0xf] %v551_v57  ;;  %554 = vst [vmem:[%s3522_s29 + $0x2e8] sm:$0xf] %v553_v58 }
  0x90   : > { %556 = vst [vmem:[%s3522_s29 + $0x2ec] sm:$0xf] %v555_v59  ;;  %v557_v60 = vld [vmem:[%s3518_s28 + $0x5e0] sm:$0xf]  ;;  %v559_v61 = vld [vmem:[%s3518_s28 + $0x5e8] sm:$0xf] }
  0x91   : > { %v561_v62 = vld [vmem:[%s3518_s28 + $0x5f0] sm:$0xf]  ;;  %558 = vst [vmem:[%s3522_s29 + $0x2f0] sm:$0xf] %v557_v60  ;;  %560 = vst [vmem:[%s3522_s29 + $0x2f4] sm:$0xf] %v559_v61 }
  0x92   : > { %562 = vst [vmem:[%s3522_s29 + $0x2f8] sm:$0xf] %v561_v62  ;;  %v563_v63 = vld [vmem:[%s3518_s28 + $0x5f8] sm:$0xf]  ;;  %v565_v0 = vld [vmem:[%s3518_s28 + $0x600] sm:$0xf] }
  0x93   : > { %v567_v1 = vld [vmem:[%s3518_s28 + $0x608] sm:$0xf]  ;;  %564 = vst [vmem:[%s3522_s29 + $0x2fc] sm:$0xf] %v563_v63  ;;  %566 = vst [vmem:[%s3522_s29 + $0x300] sm:$0xf] %v565_v0 }
  0x94   : > { %568 = vst [vmem:[%s3522_s29 + $0x304] sm:$0xf] %v567_v1  ;;  %v569_v2 = vld [vmem:[%s3518_s28 + $0x610] sm:$0xf]  ;;  %v571_v3 = vld [vmem:[%s3518_s28 + $0x618] sm:$0xf] }
  0x95   : > { %v573_v4 = vld [vmem:[%s3518_s28 + $0x620] sm:$0xf]  ;;  %570 = vst [vmem:[%s3522_s29 + $0x308] sm:$0xf] %v569_v2  ;;  %572 = vst [vmem:[%s3522_s29 + $0x30c] sm:$0xf] %v571_v3 }
  0x96   : > { %574 = vst [vmem:[%s3522_s29 + $0x310] sm:$0xf] %v573_v4  ;;  %v575_v5 = vld [vmem:[%s3518_s28 + $0x628] sm:$0xf]  ;;  %v577_v6 = vld [vmem:[%s3518_s28 + $0x630] sm:$0xf] }
  0x97   : > { %v579_v7 = vld [vmem:[%s3518_s28 + $0x638] sm:$0xf]  ;;  %576 = vst [vmem:[%s3522_s29 + $0x314] sm:$0xf] %v575_v5  ;;  %578 = vst [vmem:[%s3522_s29 + $0x318] sm:$0xf] %v577_v6 }
  0x98   : > { %580 = vst [vmem:[%s3522_s29 + $0x31c] sm:$0xf] %v579_v7  ;;  %v581_v8 = vld [vmem:[%s3518_s28 + $0x640] sm:$0xf]  ;;  %v583_v9 = vld [vmem:[%s3518_s28 + $0x648] sm:$0xf] }
  0x99   : > { %v585_v10 = vld [vmem:[%s3518_s28 + $0x650] sm:$0xf]  ;;  %582 = vst [vmem:[%s3522_s29 + $0x320] sm:$0xf] %v581_v8  ;;  %584 = vst [vmem:[%s3522_s29 + $0x324] sm:$0xf] %v583_v9 }
  0x9a   : > { %586 = vst [vmem:[%s3522_s29 + $0x328] sm:$0xf] %v585_v10  ;;  %v587_v11 = vld [vmem:[%s3518_s28 + $0x658] sm:$0xf]  ;;  %v589_v12 = vld [vmem:[%s3518_s28 + $0x660] sm:$0xf] }
  0x9b   : > { %v591_v13 = vld [vmem:[%s3518_s28 + $0x668] sm:$0xf]  ;;  %588 = vst [vmem:[%s3522_s29 + $0x32c] sm:$0xf] %v587_v11  ;;  %590 = vst [vmem:[%s3522_s29 + $0x330] sm:$0xf] %v589_v12 }
  0x9c   : > { %592 = vst [vmem:[%s3522_s29 + $0x334] sm:$0xf] %v591_v13  ;;  %v593_v14 = vld [vmem:[%s3518_s28 + $0x670] sm:$0xf]  ;;  %v595_v15 = vld [vmem:[%s3518_s28 + $0x678] sm:$0xf] }
  0x9d   : > { %v597_v16 = vld [vmem:[%s3518_s28 + $0x680] sm:$0xf]  ;;  %594 = vst [vmem:[%s3522_s29 + $0x338] sm:$0xf] %v593_v14  ;;  %596 = vst [vmem:[%s3522_s29 + $0x33c] sm:$0xf] %v595_v15 }
  0x9e   : > { %598 = vst [vmem:[%s3522_s29 + $0x340] sm:$0xf] %v597_v16  ;;  %v599_v17 = vld [vmem:[%s3518_s28 + $0x688] sm:$0xf]  ;;  %v601_v18 = vld [vmem:[%s3518_s28 + $0x690] sm:$0xf] }
  0x9f   : > { %v603_v19 = vld [vmem:[%s3518_s28 + $0x698] sm:$0xf]  ;;  %600 = vst [vmem:[%s3522_s29 + $0x344] sm:$0xf] %v599_v17  ;;  %602 = vst [vmem:[%s3522_s29 + $0x348] sm:$0xf] %v601_v18 }
  0xa0   : > { %604 = vst [vmem:[%s3522_s29 + $0x34c] sm:$0xf] %v603_v19  ;;  %v605_v20 = vld [vmem:[%s3518_s28 + $0x6a0] sm:$0xf]  ;;  %v607_v21 = vld [vmem:[%s3518_s28 + $0x6a8] sm:$0xf] }
  0xa1   : > { %v609_v22 = vld [vmem:[%s3518_s28 + $0x6b0] sm:$0xf]  ;;  %606 = vst [vmem:[%s3522_s29 + $0x350] sm:$0xf] %v605_v20  ;;  %608 = vst [vmem:[%s3522_s29 + $0x354] sm:$0xf] %v607_v21 }
  0xa2   : > { %610 = vst [vmem:[%s3522_s29 + $0x358] sm:$0xf] %v609_v22  ;;  %v611_v23 = vld [vmem:[%s3518_s28 + $0x6b8] sm:$0xf]  ;;  %v613_v24 = vld [vmem:[%s3518_s28 + $0x6c0] sm:$0xf] }
  0xa3   : > { %v615_v25 = vld [vmem:[%s3518_s28 + $0x6c8] sm:$0xf]  ;;  %612 = vst [vmem:[%s3522_s29 + $0x35c] sm:$0xf] %v611_v23  ;;  %614 = vst [vmem:[%s3522_s29 + $0x360] sm:$0xf] %v613_v24 }
  0xa4   : > { %616 = vst [vmem:[%s3522_s29 + $0x364] sm:$0xf] %v615_v25  ;;  %v617_v26 = vld [vmem:[%s3518_s28 + $0x6d0] sm:$0xf]  ;;  %v619_v27 = vld [vmem:[%s3518_s28 + $0x6d8] sm:$0xf] }
  0xa5   : > { %v621_v28 = vld [vmem:[%s3518_s28 + $0x6e0] sm:$0xf]  ;;  %618 = vst [vmem:[%s3522_s29 + $0x368] sm:$0xf] %v617_v26  ;;  %620 = vst [vmem:[%s3522_s29 + $0x36c] sm:$0xf] %v619_v27 }
  0xa6   : > { %622 = vst [vmem:[%s3522_s29 + $0x370] sm:$0xf] %v621_v28  ;;  %v623_v29 = vld [vmem:[%s3518_s28 + $0x6e8] sm:$0xf]  ;;  %v625_v30 = vld [vmem:[%s3518_s28 + $0x6f0] sm:$0xf] }
  0xa7   : > { %v627_v31 = vld [vmem:[%s3518_s28 + $0x6f8] sm:$0xf]  ;;  %624 = vst [vmem:[%s3522_s29 + $0x374] sm:$0xf] %v623_v29  ;;  %626 = vst [vmem:[%s3522_s29 + $0x378] sm:$0xf] %v625_v30 }
  0xa8   : > { %628 = vst [vmem:[%s3522_s29 + $0x37c] sm:$0xf] %v627_v31  ;;  %v629_v32 = vld [vmem:[%s3518_s28 + $0x700] sm:$0xf]  ;;  %v631_v33 = vld [vmem:[%s3518_s28 + $0x708] sm:$0xf] }
  0xa9   : > { %v633_v34 = vld [vmem:[%s3518_s28 + $0x710] sm:$0xf]  ;;  %630 = vst [vmem:[%s3522_s29 + $0x380] sm:$0xf] %v629_v32  ;;  %632 = vst [vmem:[%s3522_s29 + $0x384] sm:$0xf] %v631_v33 }
  0xaa   : > { %634 = vst [vmem:[%s3522_s29 + $0x388] sm:$0xf] %v633_v34  ;;  %v635_v35 = vld [vmem:[%s3518_s28 + $0x718] sm:$0xf]  ;;  %v637_v36 = vld [vmem:[%s3518_s28 + $0x720] sm:$0xf] }
  0xab   : > { %v639_v37 = vld [vmem:[%s3518_s28 + $0x728] sm:$0xf]  ;;  %636 = vst [vmem:[%s3522_s29 + $0x38c] sm:$0xf] %v635_v35  ;;  %638 = vst [vmem:[%s3522_s29 + $0x390] sm:$0xf] %v637_v36 }
  0xac   : > { %640 = vst [vmem:[%s3522_s29 + $0x394] sm:$0xf] %v639_v37  ;;  %v641_v38 = vld [vmem:[%s3518_s28 + $0x730] sm:$0xf]  ;;  %v643_v39 = vld [vmem:[%s3518_s28 + $0x738] sm:$0xf] }
  0xad   : > { %v645_v40 = vld [vmem:[%s3518_s28 + $0x740] sm:$0xf]  ;;  %642 = vst [vmem:[%s3522_s29 + $0x398] sm:$0xf] %v641_v38  ;;  %644 = vst [vmem:[%s3522_s29 + $0x39c] sm:$0xf] %v643_v39 }
  0xae   : > { %646 = vst [vmem:[%s3522_s29 + $0x3a0] sm:$0xf] %v645_v40  ;;  %v647_v41 = vld [vmem:[%s3518_s28 + $0x748] sm:$0xf]  ;;  %v649_v42 = vld [vmem:[%s3518_s28 + $0x750] sm:$0xf] }
  0xaf   : > { %v651_v43 = vld [vmem:[%s3518_s28 + $0x758] sm:$0xf]  ;;  %648 = vst [vmem:[%s3522_s29 + $0x3a4] sm:$0xf] %v647_v41  ;;  %650 = vst [vmem:[%s3522_s29 + $0x3a8] sm:$0xf] %v649_v42 }
  0xb0   : > { %652 = vst [vmem:[%s3522_s29 + $0x3ac] sm:$0xf] %v651_v43  ;;  %v653_v44 = vld [vmem:[%s3518_s28 + $0x760] sm:$0xf]  ;;  %v655_v45 = vld [vmem:[%s3518_s28 + $0x768] sm:$0xf] }
  0xb1   : > { %v657_v46 = vld [vmem:[%s3518_s28 + $0x770] sm:$0xf]  ;;  %654 = vst [vmem:[%s3522_s29 + $0x3b0] sm:$0xf] %v653_v44  ;;  %656 = vst [vmem:[%s3522_s29 + $0x3b4] sm:$0xf] %v655_v45 }
  0xb2   : > { %658 = vst [vmem:[%s3522_s29 + $0x3b8] sm:$0xf] %v657_v46  ;;  %v659_v47 = vld [vmem:[%s3518_s28 + $0x778] sm:$0xf]  ;;  %v661_v48 = vld [vmem:[%s3518_s28 + $0x780] sm:$0xf] }
  0xb3   : > { %v663_v49 = vld [vmem:[%s3518_s28 + $0x788] sm:$0xf]  ;;  %660 = vst [vmem:[%s3522_s29 + $0x3bc] sm:$0xf] %v659_v47  ;;  %662 = vst [vmem:[%s3522_s29 + $0x3c0] sm:$0xf] %v661_v48 }
  0xb4   : > { %664 = vst [vmem:[%s3522_s29 + $0x3c4] sm:$0xf] %v663_v49  ;;  %v665_v50 = vld [vmem:[%s3518_s28 + $0x790] sm:$0xf]  ;;  %v667_v51 = vld [vmem:[%s3518_s28 + $0x798] sm:$0xf] }
  0xb5   : > { %v669_v52 = vld [vmem:[%s3518_s28 + $0x7a0] sm:$0xf]  ;;  %666 = vst [vmem:[%s3522_s29 + $0x3c8] sm:$0xf] %v665_v50  ;;  %668 = vst [vmem:[%s3522_s29 + $0x3cc] sm:$0xf] %v667_v51 }
  0xb6   : > { %670 = vst [vmem:[%s3522_s29 + $0x3d0] sm:$0xf] %v669_v52  ;;  %v671_v53 = vld [vmem:[%s3518_s28 + $0x7a8] sm:$0xf]  ;;  %v673_v54 = vld [vmem:[%s3518_s28 + $0x7b0] sm:$0xf] }
  0xb7   : > { %v675_v55 = vld [vmem:[%s3518_s28 + $0x7b8] sm:$0xf]  ;;  %672 = vst [vmem:[%s3522_s29 + $0x3d4] sm:$0xf] %v671_v53  ;;  %674 = vst [vmem:[%s3522_s29 + $0x3d8] sm:$0xf] %v673_v54 }
  0xb8   : > { %676 = vst [vmem:[%s3522_s29 + $0x3dc] sm:$0xf] %v675_v55  ;;  %v677_v56 = vld [vmem:[%s3518_s28 + $0x7c0] sm:$0xf]  ;;  %v679_v57 = vld [vmem:[%s3518_s28 + $0x7c8] sm:$0xf] }
  0xb9   : > { %v681_v58 = vld [vmem:[%s3518_s28 + $0x7d0] sm:$0xf]  ;;  %678 = vst [vmem:[%s3522_s29 + $0x3e0] sm:$0xf] %v677_v56  ;;  %680 = vst [vmem:[%s3522_s29 + $0x3e4] sm:$0xf] %v679_v57 }
  0xba   : > { %682 = vst [vmem:[%s3522_s29 + $0x3e8] sm:$0xf] %v681_v58  ;;  %v683_v59 = vld [vmem:[%s3518_s28 + $0x7d8] sm:$0xf]  ;;  %v685_v60 = vld [vmem:[%s3518_s28 + $0x7e0] sm:$0xf] }
  0xbb   : > { %v687_v61 = vld [vmem:[%s3518_s28 + $0x7e8] sm:$0xf]  ;;  %684 = vst [vmem:[%s3522_s29 + $0x3ec] sm:$0xf] %v683_v59  ;;  %686 = vst [vmem:[%s3522_s29 + $0x3f0] sm:$0xf] %v685_v60 }
  0xbc   : > { %688 = vst [vmem:[%s3522_s29 + $0x3f4] sm:$0xf] %v687_v61  ;;  %v689_v62 = vld [vmem:[%s3518_s28 + $0x7f0] sm:$0xf]  ;;  %v691_v63 = vld [vmem:[%s3518_s28 + $0x7f8] sm:$0xf] }
  0xbd   : > { %690 = vst [vmem:[%s3522_s29 + $0x3f8] sm:$0xf] %v689_v62  ;;  %692 = vst [vmem:[%s3522_s29 + $0x3fc] sm:$0xf] %v691_v63 }
  0xbe PF: > { %p2905_p8 = scmp.ge.s32.totalorder %s3448_s16, 1  ;;  %p1233_p9 = scmp.lt.s32.totalorder %s3448_s16, 3 }
  0xc0   : > { %p1234_p10 = pnand %p2905_p8, %p1233_p9 }
  0xc1   : > { %s1240_s30 = sand.u32 (!%p1234_p10), 1, %s3432_s12   ;;  %p1278_p11 = scmp.lt.s32.totalorder (!%p1234_p10), %s3440_s14, 1 }
  0xc2   : > { %1237 = sbr.rel (%p1234_p10) target bundleno = 547 (0x223), region = 69  ;;  %s2906_s10 = sshll.u32 (!%p1234_p10), %s1240_s30, 10 }
  0xc3   : > { %s4063_s19 = scalar_lea.vmem (!%p1234_p10), [#allocation2], %s2906_s10  ;;  %s2907_s6 = sshll.u32 (!%p1234_p10), %s1240_s30, 3 }
  0xc4   : > { %s1270_s7 = scalar_lea.vmem (!%p1234_p10), [#allocation3], %s2907_s6 }
  0xc7   : > { %v4040_v0 = vld [vmem:[%s4277_s0] sm:$0xff]  ;;  %v4050_v2 = vld [vmem:[%s4277_s0 + $0x8] sm:$0xff]  ;;  %v3282_v6 = vld [vmem:[%s4063_s19 + $0x78] sm:$0xff]   ;;  %s3056_s8 = sshll.u32 (%p3505_p6), %s3440_s14, 2 }
  0xc8   : > { %v4045_v1 = vld [vmem:[%s4277_s0 + $0x40] sm:$0xff]  ;;  %v4059_v4 = vld [vmem:[%s4277_s0 + $0x48] sm:$0xff]  ;;  %v3283_v7 = vld [vmem:[%s4063_s19 + $0xf8] sm:$0xff]   ;;  %3066 = vmatprep.subr.bf16.mxu0 %v3282_v6  ;;  %s2761_s11 = scalar_lea.vmem (%p3505_p6), %s4280_s3, %s3056_s8 }
  0xc9   : > { %v2910_v3 = vcombine.high %v4040_v0, %v4045_v1  ;;  %v2912_v5 = vcombine.high %v4050_v2, %v4059_v4  ;;  %v3284_v8 = vld [vmem:[%s4063_s19 + $0x38] sm:$0xff]   ;;  %3088 = vmatprep.subr.bf16.mxu1 %v3283_v7  ;;  %v3286_v10 = vld [vmem:[%s4063_s19 + $0x70] sm:$0xff]   ;;  %v3290_v14 = vld [vmem:[%s4063_s19 + $0x68] sm:$0xff]   ;;  %v2909_v42 = vcombine.low %v4040_v0, %v4045_v1  ;;  %v2911_v43 = vcombine.low %v4050_v2, %v4059_v4 }
  0xca   : > { %v3285_v9 = vld [vmem:[%s4063_s19 + $0xb8] sm:$0xff]   ;;  %3067 = vmatpush3.bf16.msra.mxu0 %v3284_v8  ;;  %v3287_v11 = vld [vmem:[%s4063_s19 + $0xf0] sm:$0xff]   ;;  %v3291_v15 = vld [vmem:[%s4063_s19 + $0xe8] sm:$0xff]  }
  0xcb   : > { %2442 = vmatprep.mubr.bf16.mxu0 %v2910_v3  ;;  %2483 = vmatprep.mubr.bf16.mxu1 %v2912_v5  ;;  %v3288_v12 = vld [vmem:[%s4063_s19 + $0x30] sm:$0xff]   ;;  %v3292_v16 = vld [vmem:[%s4063_s19 + $0x28] sm:$0xff]   ;;  %v3294_v18 = vld [vmem:[%s4063_s19 + $0x60] sm:$0xff]  }
  0xcc   : > { %3089 = vmatpush3.bf16.msra.mxu1 %v3285_v9  ;;  %3068 = vmatprep.subr.bf16.mxu0 %v3286_v10  ;;  %v3289_v13 = vld [vmem:[%s4063_s19 + $0xb0] sm:$0xff]   ;;  %v3293_v17 = vld [vmem:[%s4063_s19 + $0xa8] sm:$0xff]   ;;  %v3295_v19 = vld [vmem:[%s4063_s19 + $0xe0] sm:$0xff]  }
  0xcd   : > { %3090 = vmatprep.subr.bf16.mxu1 %v3287_v11  ;;  %v3296_v20 = vld [vmem:[%s4063_s19 + $0x20] sm:$0xff]   ;;  %v3298_v22 = vld [vmem:[%s4063_s19 + $0x58] sm:$0xff]   ;;  %v3302_v26 = vld [vmem:[%s4063_s19 + $0x50] sm:$0xff]  }
  0xce   : > { %3069 = vmatpush3.bf16.msra.mxu0 %v3288_v12  ;;  %v3297_v21 = vld [vmem:[%s4063_s19 + $0xa0] sm:$0xff]   ;;  %v3299_v23 = vld [vmem:[%s4063_s19 + $0xd8] sm:$0xff]   ;;  %v3303_v27 = vld [vmem:[%s4063_s19 + $0xd0] sm:$0xff]  }
  0xcf   : > { %3070 = vmatprep.subr.bf16.mxu0 %v3290_v14  ;;  %v3300_v24 = vld [vmem:[%s4063_s19 + $0x18] sm:$0xff]   ;;  %v3304_v28 = vld [vmem:[%s4063_s19 + $0x10] sm:$0xff]   ;;  %v3306_v30 = vld [vmem:[%s4063_s19 + $0x48] sm:$0xff]  }
  0xd0   : > { %3091 = vmatpush3.bf16.msra.mxu1 %v3289_v13  ;;  %v3301_v25 = vld [vmem:[%s4063_s19 + $0x98] sm:$0xff]   ;;  %v3305_v29 = vld [vmem:[%s4063_s19 + $0x90] sm:$0xff]   ;;  %v3307_v31 = vld [vmem:[%s4063_s19 + $0xc8] sm:$0xff]  }
  0xd1   : > { %3092 = vmatprep.subr.bf16.mxu1 %v3291_v15  ;;  %v3308_v32 = vld [vmem:[%s4063_s19 + $0x8] sm:$0xff]   ;;  %v3310_v34 = vld [vmem:[%s4063_s19 + $0x40] sm:$0xff]   ;;  %v4097_v35 = vld [vmem:[%s4277_s0 + $0x10] sm:$0xff] }
  0xd2   : > { %3071 = vmatpush3.bf16.msra.mxu0 %v3292_v16  ;;  %v3309_v33 = vld [vmem:[%s4063_s19 + $0x88] sm:$0xff]   ;;  %v4102_v36 = vld [vmem:[%s4277_s0 + $0x50] sm:$0xff]  ;;  %v3311_v37 = vld [vmem:[%s4063_s19 + $0xc0] sm:$0xff]  }
  0xd3   : > { %3072 = vmatprep.subr.bf16.mxu0 %v3294_v18  ;;  %v4108_v38 = vld [vmem:[%s4277_s0 + $0x18] sm:$0xff]  ;;  %v3312_v40 = vld [vmem:[%s4063_s19] sm:$0xff]   ;;  %v2914_v46 = vcombine.high %v4097_v35, %v4102_v36  ;;  %v3318_v50 = vld [vmem:[%s4063_s19 + $0x170] sm:$0xff]   ;;  %v2913_v14 = vcombine.low %v4097_v35, %v4102_v36 }
  0xd4   : > { %3093 = vmatpush3.bf16.msra.mxu1 %v3293_v17  ;;  %v4113_v39 = vld [vmem:[%s4277_s0 + $0x58] sm:$0xff]  ;;  %v3313_v41 = vld [vmem:[%s4063_s19 + $0x80] sm:$0xff]   ;;  %v3319_v51 = vld [vmem:[%s4063_s19 + $0x1f0] sm:$0xff]  }
  0xd5   : > { %3094 = vmatprep.subr.bf16.mxu1 %v3295_v19  ;;  %v3314_v44 = vld [vmem:[%s4063_s19 + $0x178] sm:$0xff]   ;;  %v2916_v48 = vcombine.high %v4108_v38, %v4113_v39  ;;  %v3320_v52 = vld [vmem:[%s4063_s19 + $0x130] sm:$0xff]   ;;  %v3322_v54 = vld [vmem:[%s4063_s19 + $0x168] sm:$0xff]   ;;  %v2915_v15 = vcombine.low %v4108_v38, %v4113_v39 }
  0xd6   : > { %3073 = vmatpush3.bf16.msra.mxu0 %v3296_v20  ;;  %v3315_v45 = vld [vmem:[%s4063_s19 + $0x1f8] sm:$0xff]   ;;  %v3321_v53 = vld [vmem:[%s4063_s19 + $0x1b0] sm:$0xff]   ;;  %v3323_v55 = vld [vmem:[%s4063_s19 + $0x1e8] sm:$0xff]  }
  0xd7   : > { %3074 = vmatprep.subr.bf16.mxu0 %v3298_v22  ;;  %v3316_v47 = vld [vmem:[%s4063_s19 + $0x138] sm:$0xff]   ;;  %v3324_v56 = vld [vmem:[%s4063_s19 + $0x128] sm:$0xff]   ;;  %v3326_v58 = vld [vmem:[%s4063_s19 + $0x160] sm:$0xff]  }
  0xd8   : > { %3095 = vmatpush3.bf16.msra.mxu1 %v3297_v21  ;;  %v3317_v49 = vld [vmem:[%s4063_s19 + $0x1b8] sm:$0xff]   ;;  %v3325_v57 = vld [vmem:[%s4063_s19 + $0x1a8] sm:$0xff]   ;;  %v3327_v59 = vld [vmem:[%s4063_s19 + $0x1e0] sm:$0xff]  }
  0xd9   : > { %3096 = vmatprep.subr.bf16.mxu1 %v3299_v23  ;;  %v3328_v60 = vld [vmem:[%s4063_s19 + $0x120] sm:$0xff]   ;;  %v3330_v62 = vld [vmem:[%s4063_s19 + $0x158] sm:$0xff]   ;;  %v3334_v2 = vld [vmem:[%s4063_s19 + $0x150] sm:$0xff]  }
  0xda   : > { %3075 = vmatpush3.bf16.msra.mxu0 %v3300_v24  ;;  %v3329_v61 = vld [vmem:[%s4063_s19 + $0x1a0] sm:$0xff]   ;;  %v3331_v63 = vld [vmem:[%s4063_s19 + $0x1d8] sm:$0xff]   ;;  %v3335_v3 = vld [vmem:[%s4063_s19 + $0x1d0] sm:$0xff]  }
  0xdb   : > { %3076 = vmatprep.subr.bf16.mxu0 %v3302_v26  ;;  %v3332_v0 = vld [vmem:[%s4063_s19 + $0x118] sm:$0xff]   ;;  %v3336_v4 = vld [vmem:[%s4063_s19 + $0x110] sm:$0xff]   ;;  %v3338_v6 = vld [vmem:[%s4063_s19 + $0x148] sm:$0xff]  }
  0xdc   : > { %3097 = vmatpush3.bf16.msra.mxu1 %v3301_v25  ;;  %v3333_v1 = vld [vmem:[%s4063_s19 + $0x198] sm:$0xff]   ;;  %v3337_v5 = vld [vmem:[%s4063_s19 + $0x190] sm:$0xff]   ;;  %v3339_v7 = vld [vmem:[%s4063_s19 + $0x1c8] sm:$0xff]  }
  0xdd   : > { %3098 = vmatprep.subr.bf16.mxu1 %v3303_v27  ;;  %v3340_v8 = vld [vmem:[%s4063_s19 + $0x108] sm:$0xff]   ;;  %v3342_v10 = vld [vmem:[%s4063_s19 + $0x140] sm:$0xff]   ;;  %v3346_v16 = vld [vmem:[%s4063_s19 + $0x278] sm:$0xff]  }
  0xde   : > { %3077 = vmatpush3.bf16.msra.mxu0 %v3304_v28  ;;  %v3341_v9 = vld [vmem:[%s4063_s19 + $0x188] sm:$0xff]   ;;  %v3343_v11 = vld [vmem:[%s4063_s19 + $0x1c0] sm:$0xff]   ;;  %v3347_v17 = vld [vmem:[%s4063_s19 + $0x2f8] sm:$0xff]  }
  0xdf   : > { %3078 = vmatprep.subr.bf16.mxu0 %v3306_v30  ;;  %v3344_v12 = vld [vmem:[%s4063_s19 + $0x100] sm:$0xff]   ;;  %v3348_v18 = vld [vmem:[%s4063_s19 + $0x238] sm:$0xff]   ;;  %v3350_v20 = vld [vmem:[%s4063_s19 + $0x270] sm:$0xff]  }
  0xe0   : > { %3099 = vmatpush3.bf16.msra.mxu1 %v3305_v29  ;;  %v3345_v13 = vld [vmem:[%s4063_s19 + $0x180] sm:$0xff]   ;;  %v3349_v19 = vld [vmem:[%s4063_s19 + $0x2b8] sm:$0xff]   ;;  %v3351_v21 = vld [vmem:[%s4063_s19 + $0x2f0] sm:$0xff]  }
  0xe1   : > { %3100 = vmatprep.subr.bf16.mxu1 %v3307_v31  ;;  %v3352_v22 = vld [vmem:[%s4063_s19 + $0x230] sm:$0xff]   ;;  %v3354_v24 = vld [vmem:[%s4063_s19 + $0x268] sm:$0xff]   ;;  %v3358_v28 = vld [vmem:[%s4063_s19 + $0x260] sm:$0xff]  }
  0xe2   : > { %3079 = vmatpush3.bf16.msra.mxu0 %v3308_v32  ;;  %v3353_v23 = vld [vmem:[%s4063_s19 + $0x2b0] sm:$0xff]   ;;  %v3355_v25 = vld [vmem:[%s4063_s19 + $0x2e8] sm:$0xff]   ;;  %v3359_v29 = vld [vmem:[%s4063_s19 + $0x2e0] sm:$0xff]  }
  0xe3   : > { %3080 = vmatprep.subr.bf16.mxu0 %v3310_v34  ;;  %v3356_v26 = vld [vmem:[%s4063_s19 + $0x228] sm:$0xff]   ;;  %v3360_v30 = vld [vmem:[%s4063_s19 + $0x220] sm:$0xff]   ;;  %v3362_v32 = vld [vmem:[%s4063_s19 + $0x258] sm:$0xff]  }
  0xe4   : > { %3101 = vmatpush3.bf16.msra.mxu1 %v3309_v33  ;;  %v3357_v27 = vld [vmem:[%s4063_s19 + $0x2a8] sm:$0xff]   ;;  %v3361_v31 = vld [vmem:[%s4063_s19 + $0x2a0] sm:$0xff]   ;;  %v3363_v33 = vld [vmem:[%s4063_s19 + $0x2d8] sm:$0xff]  }
  0xe5   : > { %3102 = vmatprep.subr.bf16.mxu1 %v3311_v37  ;;  %v3364_v34 = vld [vmem:[%s4063_s19 + $0x218] sm:$0xff]   ;;  %v3366_v36 = vld [vmem:[%s4063_s19 + $0x250] sm:$0xff]  }
  0xe6   : > { %3081 = vmatpush3.bf16.msra.mxu0 %v3312_v40  ;;  %v3365_v35 = vld [vmem:[%s4063_s19 + $0x298] sm:$0xff]   ;;  %v3367_v37 = vld [vmem:[%s4063_s19 + $0x2d0] sm:$0xff]   ;;  %v3370_v40 = vld [vmem:[%s4063_s19 + $0x248] sm:$0xff]  }
  0xe7   : > { %3110 = vmatprep.subr.bf16.mxu0 %v3314_v44  ;;  %v3368_v38 = vld [vmem:[%s4063_s19 + $0x210] sm:$0xff]   ;;  %v3374_v44 = vld [vmem:[%s4063_s19 + $0x240] sm:$0xff]  }
  0xe8   : > { %3103 = vmatpush3.bf16.msra.mxu1 %v3313_v41  ;;  %v3369_v39 = vld [vmem:[%s4063_s19 + $0x290] sm:$0xff]   ;;  %v3371_v41 = vld [vmem:[%s4063_s19 + $0x2c8] sm:$0xff]  }
  0xe9   : > { %2443 = vmatmul.mubr.bf16.vlgmr.msra.gmra.mxu0 %v2909_v42  ;;  %3132 = vmatprep.subr.bf16.mxu1 %v3315_v45  ;;  %v3372_v42 = vld [vmem:[%s4063_s19 + $0x208] sm:$0xff]   ;;  %v1287_v45 = vld [vmem:[%s4277_s0 + $0x20] sm:$0xff] }
  0xea   : > { %3111 = vmatpush3.bf16.msra.mxu0 %v3316_v47  ;;  %2524 = vmatprep.mubr.bf16.mxu0 %v2914_v46  ;;  %v3375_v46 = vld [vmem:[%s4063_s19 + $0x2c0] sm:$0xff]  }
  0xeb   : > { %2484 = vmatmul.mubr.bf16.vlgmr.msra.gmra.mxu1 %v2911_v43  ;;  %3112 = vmatprep.subr.bf16.mxu0 %v3318_v50  ;;  %v3373_v43 = vld [vmem:[%s4063_s19 + $0x288] sm:$0xff]   ;;  %v3376_v47 = vld [vmem:[%s4063_s19 + $0x200] sm:$0xff]  }
  0xec   : > { %3133 = vmatpush3.bf16.msra.mxu1 %v3317_v49  ;;  %2565 = vmatprep.mubr.bf16.mxu1 %v2916_v48  ;;  %v3377_v48 = vld [vmem:[%s4063_s19 + $0x280] sm:$0xff]   ;;  %v1288_v50 = vld [vmem:[%s4277_s0 + $0x28] sm:$0xff] }
  0xed   : > { %3134 = vmatprep.subr.bf16.mxu1 %v3319_v51  ;;  %v1295_v49 = vld [vmem:[%s4277_s0 + $0x60] sm:$0xff]  ;;  %v1296_v51 = vld [vmem:[%s4277_s0 + $0x68] sm:$0xff] }
  0xee   : > { %3113 = vmatpush3.bf16.msra.mxu0 %v3320_v52  ;;  %v2917_v52 = vcombine.low %v1287_v45, %v1295_v49 }
  0xef   : > { %3114 = vmatprep.subr.bf16.mxu0 %v3322_v54  ;;  %v2919_v54 = vcombine.low %v1288_v50, %v1296_v51 }
  0xf0   : > { %3135 = vmatpush3.bf16.msra.mxu1 %v3321_v53  ;;  %v2918_v53 = vcombine.high %v1287_v45, %v1295_v49 }
  0xf1   : > { %3136 = vmatprep.subr.bf16.mxu1 %v3323_v55  ;;  %v2920_v55 = vcombine.high %v1288_v50, %v1296_v51 }
  0xf2   : > { %3115 = vmatpush3.bf16.msra.mxu0 %v3324_v56  ;;  %v3378_v56 = vld [vmem:[%s4063_s19 + $0x378] sm:$0xff]  }
  0xf3   : > { %3116 = vmatprep.subr.bf16.mxu0 %v3326_v58  ;;  %v3380_v58 = vld [vmem:[%s4063_s19 + $0x338] sm:$0xff]  }
  0xf4   : > { %3137 = vmatpush3.bf16.msra.mxu1 %v3325_v57  ;;  %v3379_v57 = vld [vmem:[%s4063_s19 + $0x3f8] sm:$0xff]  }
  0xf5   : > { %3138 = vmatprep.subr.bf16.mxu1 %v3327_v59  ;;  %v3381_v59 = vld [vmem:[%s4063_s19 + $0x3b8] sm:$0xff]  }
  0xf6   : > { %3117 = vmatpush3.bf16.msra.mxu0 %v3328_v60  ;;  %v3382_v60 = vld [vmem:[%s4063_s19 + $0x370] sm:$0xff]  }
  0xf7   : > { %3118 = vmatprep.subr.bf16.mxu0 %v3330_v62  ;;  %v3384_v62 = vld [vmem:[%s4063_s19 + $0x330] sm:$0xff]  }
  0xf8   : > { %3139 = vmatpush3.bf16.msra.mxu1 %v3329_v61  ;;  %v3383_v61 = vld [vmem:[%s4063_s19 + $0x3f0] sm:$0xff]  }
  0xf9   : > { %3140 = vmatprep.subr.bf16.mxu1 %v3331_v63  ;;  %v3385_v63 = vld [vmem:[%s4063_s19 + $0x3b0] sm:$0xff]  }
  0xfa   : > { %3119 = vmatpush3.bf16.msra.mxu0 %v3332_v0  ;;  %v3386_v0 = vld [vmem:[%s4063_s19 + $0x368] sm:$0xff]  }
  0xfb   : > { %3120 = vmatprep.subr.bf16.mxu0 %v3334_v2  ;;  %v3388_v2 = vld [vmem:[%s4063_s19 + $0x328] sm:$0xff]  }
  0xfc   : > { %3141 = vmatpush3.bf16.msra.mxu1 %v3333_v1  ;;  %v3387_v1 = vld [vmem:[%s4063_s19 + $0x3e8] sm:$0xff]  }
  0xfd   : > { %3142 = vmatprep.subr.bf16.mxu1 %v3335_v3  ;;  %v3389_v3 = vld [vmem:[%s4063_s19 + $0x3a8] sm:$0xff]  }
  0xfe   : > { %3121 = vmatpush3.bf16.msra.mxu0 %v3336_v4  ;;  %v3390_v4 = vld [vmem:[%s4063_s19 + $0x360] sm:$0xff]  }
  0xff   : > { %3122 = vmatprep.subr.bf16.mxu0 %v3338_v6  ;;  %v3392_v6 = vld [vmem:[%s4063_s19 + $0x320] sm:$0xff]  }
 0x100   : > { %3143 = vmatpush3.bf16.msra.mxu1 %v3337_v5  ;;  %v3391_v5 = vld [vmem:[%s4063_s19 + $0x3e0] sm:$0xff]  }
 0x101   : > { %3144 = vmatprep.subr.bf16.mxu1 %v3339_v7  ;;  %v3393_v7 = vld [vmem:[%s4063_s19 + $0x3a0] sm:$0xff]  }
 0x102   : > { %3123 = vmatpush3.bf16.msra.mxu0 %v3340_v8  ;;  %v3394_v8 = vld [vmem:[%s4063_s19 + $0x358] sm:$0xff]  }
 0x103   : > { %3124 = vmatprep.subr.bf16.mxu0 %v3342_v10  ;;  %v3396_v10 = vld [vmem:[%s4063_s19 + $0x318] sm:$0xff]  }
 0x104   : > { %3145 = vmatpush3.bf16.msra.mxu1 %v3341_v9  ;;  %v3395_v9 = vld [vmem:[%s4063_s19 + $0x3d8] sm:$0xff]  }
 0x105   : > { %3146 = vmatprep.subr.bf16.mxu1 %v3343_v11  ;;  %v3397_v11 = vld [vmem:[%s4063_s19 + $0x398] sm:$0xff]  }
 0x106   : > { %3125 = vmatpush3.bf16.msra.mxu0 %v3344_v12  ;;  %v3398_v12 = vld [vmem:[%s4063_s19 + $0x350] sm:$0xff]  }
 0x107   : > { %3154 = vmatprep.subr.bf16.mxu0 %v3346_v16  ;;  %v3402_v16 = vld [vmem:[%s4063_s19 + $0x348] sm:$0xff]  }
 0x108   : > { %3147 = vmatpush3.bf16.msra.mxu1 %v3345_v13  ;;  %v3399_v13 = vld [vmem:[%s4063_s19 + $0x3d0] sm:$0xff]  }
 0x109   : > { %2525 = vmatmul.mubr.bf16.vlgmr.msra.gmra.mxu0 %v2913_v14  ;;  %3176 = vmatprep.subr.bf16.mxu1 %v3347_v17  ;;  %v3400_v14 = vld [vmem:[%s4063_s19 + $0x310] sm:$0xff]   ;;  %v3403_v17 = vld [vmem:[%s4063_s19 + $0x3c8] sm:$0xff]  }
 0x10a   : > { %3155 = vmatpush3.bf16.msra.mxu0 %v3348_v18  ;;  %2606 = vmatprep.mubr.bf16.mxu0 %v2918_v53  ;;  %v3404_v18 = vld [vmem:[%s4063_s19 + $0x308] sm:$0xff]  }
 0x10b   : > { %2566 = vmatmul.mubr.bf16.vlgmr.msra.gmra.mxu1 %v2915_v15  ;;  %3156 = vmatprep.subr.bf16.mxu0 %v3350_v20  ;;  %v3401_v15 = vld [vmem:[%s4063_s19 + $0x390] sm:$0xff]   ;;  %v3406_v20 = vld [vmem:[%s4063_s19 + $0x340] sm:$0xff]  }
 0x10c   : > { %3177 = vmatpush3.bf16.msra.mxu1 %v3349_v19  ;;  %2647 = vmatprep.mubr.bf16.mxu1 %v2920_v55  ;;  %v3405_v19 = vld [vmem:[%s4063_s19 + $0x388] sm:$0xff]  }
 0x10d   : > { %3178 = vmatprep.subr.bf16.mxu1 %v3351_v21  ;;  %v3407_v21 = vld [vmem:[%s4063_s19 + $0x3c0] sm:$0xff]  }
 0x10e   : > { %3157 = vmatpush3.bf16.msra.mxu0 %v3352_v22  ;;  %v3408_v22 = vld [vmem:[%s4063_s19 + $0x300] sm:$0xff]  }
 0x10f   : > { %3158 = vmatprep.subr.bf16.mxu0 %v3354_v24  ;;  %v1289_v24 = vld [vmem:[%s4277_s0 + $0x30] sm:$0xff] }
 0x110   : > { %3179 = vmatpush3.bf16.msra.mxu1 %v3353_v23  ;;  %v3409_v23 = vld [vmem:[%s4063_s19 + $0x380] sm:$0xff]   ;;  %s1279_s19 = scalar_select %p1278_p11, %s3440_s14, 1 }
 0x111   : > { %3180 = vmatprep.subr.bf16.mxu1 %v3355_v25  ;;  %v1297_v25 = vld [vmem:[%s4277_s0 + $0x70] sm:$0xff] }
 0x112   : > { %3159 = vmatpush3.bf16.msra.mxu0 %v3356_v26  ;;  %v1290_v26 = vld [vmem:[%s4277_s0 + $0x38] sm:$0xff]  ;;  %s1280_s5 = scalar_lea.vmem %s4279_s2, %s1279_s19 }
 0x113   : > { %3160 = vmatprep.subr.bf16.mxu0 %v3358_v28  ;;  %v2922_v28 = vcombine.high %v1289_v24, %v1297_v25 }
 0x114   : > { %3181 = vmatpush3.bf16.msra.mxu1 %v3357_v27  ;;  %v2921_v27 = vcombine.low %v1289_v24, %v1297_v25 }
 0x115   : > { %3182 = vmatprep.subr.bf16.mxu1 %v3359_v29  ;;  %v1298_v29 = vld [vmem:[%s4277_s0 + $0x78] sm:$0xff] }
 0x116   : > { %3161 = vmatpush3.bf16.msra.mxu0 %v3360_v30  ;;  %v2923_v30 = vcombine.low %v1290_v26, %v1298_v29 }
 0x117   : > { %3162 = vmatprep.subr.bf16.mxu0 %v3362_v32 }
 0x118   : > { %3183 = vmatpush3.bf16.msra.mxu1 %v3361_v31  ;;  %v2924_v31 = vcombine.high %v1290_v26, %v1298_v29 }
 0x119   : > { %3184 = vmatprep.subr.bf16.mxu1 %v3363_v33 }
 0x11a   : > { %3163 = vmatpush3.bf16.msra.mxu0 %v3364_v34 }
 0x11b   : > { %3164 = vmatprep.subr.bf16.mxu0 %v3366_v36 }
 0x11c   : > { %3185 = vmatpush3.bf16.msra.mxu1 %v3365_v35 }
 0x11d   : > { %3186 = vmatprep.subr.bf16.mxu1 %v3367_v37 }
 0x11e   : > { %3165 = vmatpush3.bf16.msra.mxu0 %v3368_v38 }
 0x11f   : > { %3166 = vmatprep.subr.bf16.mxu0 %v3370_v40 }
 0x120   : > { %3187 = vmatpush3.bf16.msra.mxu1 %v3369_v39 }
 0x121   : > { %3188 = vmatprep.subr.bf16.mxu1 %v3371_v41 }
 0x122   : > { %3167 = vmatpush3.bf16.msra.mxu0 %v3372_v42 }
 0x123   : > { %3168 = vmatprep.subr.bf16.mxu0 %v3374_v44 }
 0x124   : > { %3189 = vmatpush3.bf16.msra.mxu1 %v3373_v43 }
 0x125   : > { %3190 = vmatprep.subr.bf16.mxu1 %v3375_v46 }
 0x126   : > { %3169 = vmatpush3.bf16.msra.mxu0 %v3376_v47 }
 0x127   : > { %3198 = vmatprep.subr.bf16.mxu0 %v3378_v56 }
 0x128   : > { %3191 = vmatpush3.bf16.msra.mxu1 %v3377_v48  ;;  %v2908_v48 = vld [vmem:[%s1280_s5] ss:$0 sm:$0xff] }
 0x129   : > { %2607 = vmatmul.mubr.bf16.vlgmr.msra.gmra.mxu0 %v2917_v52  ;;  %3220 = vmatprep.subr.bf16.mxu1 %v3379_v57 }
 0x12a   : > { %3199 = vmatpush3.bf16.msra.mxu0 %v3380_v58  ;;  %2688 = vmatprep.mubr.bf16.mxu0 %v2922_v28 }
 0x12b   : > { %2648 = vmatmul.mubr.bf16.vlgmr.msra.gmra.mxu1 %v2919_v54  ;;  %3200 = vmatprep.subr.bf16.mxu0 %v3382_v60 }
 0x12c   : > { %3221 = vmatpush3.bf16.msra.mxu1 %v3381_v59  ;;  %2729 = vmatprep.mubr.bf16.mxu1 %v2924_v31 }
 0x12d   : > { %3222 = vmatprep.subr.bf16.mxu1 %v3383_v61 }
 0x12e   : > { %3201 = vmatpush3.bf16.msra.mxu0 %v3384_v62 }
 0x12f   : > { %3202 = vmatprep.subr.bf16.mxu0 %v3386_v0 }
 0x130   : > { %3223 = vmatpush3.bf16.msra.mxu1 %v3385_v63 }
 0x131   : > { %3224 = vmatprep.subr.bf16.mxu1 %v3387_v1 }
 0x132   : > { %3203 = vmatpush3.bf16.msra.mxu0 %v3388_v2 }
 0x133   : > { %3204 = vmatprep.subr.bf16.mxu0 %v3390_v4 }
 0x134   : > { %3225 = vmatpush3.bf16.msra.mxu1 %v3389_v3 }
 0x135   : > { %3226 = vmatprep.subr.bf16.mxu1 %v3391_v5 }
 0x136   : > { %3205 = vmatpush3.bf16.msra.mxu0 %v3392_v6 }
 0x137   : > { %3206 = vmatprep.subr.bf16.mxu0 %v3394_v8 }
 0x138   : > { %3227 = vmatpush3.bf16.msra.mxu1 %v3393_v7 }
 0x139   : > { %3228 = vmatprep.subr.bf16.mxu1 %v3395_v9 }
 0x13a   : > { %3207 = vmatpush3.bf16.msra.mxu0 %v3396_v10 }
 0x13b   : > { %3208 = vmatprep.subr.bf16.mxu0 %v3398_v12 }
 0x13c   : > { %3229 = vmatpush3.bf16.msra.mxu1 %v3397_v11 }
 0x13d   : > { %3230 = vmatprep.subr.bf16.mxu1 %v3399_v13 }
 0x13e   : > { %3209 = vmatpush3.bf16.msra.mxu0 %v3400_v14 }
 0x13f   : > { %3210 = vmatprep.subr.bf16.mxu0 %v3402_v16 }
 0x140   : > { %3231 = vmatpush3.bf16.msra.mxu1 %v3401_v15 }
 0x141   : > { %3232 = vmatprep.subr.bf16.mxu1 %v3403_v17 }
 0x142   : > { %3211 = vmatpush3.bf16.msra.mxu0 %v3404_v18 }
 0x143   : > { %3212 = vmatprep.subr.bf16.mxu0 %v3406_v20 }
 0x144   : > { %3233 = vmatpush3.bf16.msra.mxu1 %v3405_v19 }
 0x145   : > { %3234 = vmatprep.subr.bf16.mxu1 %v3407_v21 }
 0x146   : > { %3213 = vmatpush3.bf16.msra.mxu0 %v3408_v22 }
 0x148   : > { %3235 = vmatpush3.bf16.msra.mxu1 %v3409_v23 }
 0x149   : > { %2689 = vmatmul.mubr.bf16.vlgmr.msra.gmra.mxu0 %v2921_v27 }
 0x14b   : > { %2730 = vmatmul.mubr.bf16.vlgmr.msra.gmra.mxu1 %v2923_v30 }
 0x1a9   : > { %v3082_v32 = vpop.f32.mrf.mxu0 }
 0x1ab   : > { %v3104_v33 = vpop.f32.mrf.mxu1  ;;  %v3083_v34 = vpop.f32.mrf.mxu0 }
 0x1ac   : > { %v3084_v47 = vadd.f32 %v3083_v34, %v3082_v32 }
 0x1ad   : > { %v3105_v35 = vpop.f32.mrf.mxu1  ;;  %v3085_v36 = vpop.f32.mrf.mxu0 }
 0x1ae   : > { %v2445_v51 = vadd.f32 %v3084_v47, %v2908_v48  ;;  %v3106_v52 = vadd.f32 %v3105_v35, %v3104_v33 }
 0x1af   : > { %v3107_v37 = vpop.f32.mrf.mxu1  ;;  %v3086_v38 = vpop.f32.mrf.mxu0 }
 0x1b0   : > { %v3087_v53 = vadd.f32 %v3086_v38, %v3085_v36  ;;  %v2486_v57 = vadd.f32 %v3106_v52, %v2445_v51 }
 0x1b1   : > { %v3108_v40 = vpop.f32.mrf.mxu1 }
 0x1b2   : > { %v2448_v58 = vadd.f32 %v3087_v53, %v2908_v48  ;;  %v3109_v61 = vadd.f32 %v3108_v40, %v3107_v37 }
 0x1b4   : > { %v2489_v1 = vadd.f32 %v3109_v61, %v2448_v58 }
 0x1c9   : > { %v3126_v39 = vpop.f32.mrf.mxu0 }
 0x1cb   : > { %v3148_v41 = vpop.f32.mrf.mxu1  ;;  %v3127_v42 = vpop.f32.mrf.mxu0 }
 0x1cc   : > { %v3128_v56 = vadd.f32 %v3127_v42, %v3126_v39 }
 0x1cd   : > { %v3149_v43 = vpop.f32.mrf.mxu1  ;;  %v3129_v44 = vpop.f32.mrf.mxu0 }
 0x1ce   : > { %v2527_v62 = vadd.f32 %v3128_v56, %v2486_v57  ;;  %v3150_v63 = vadd.f32 %v3149_v43, %v3148_v41 }
 0x1cf   : > { %v3151_v45 = vpop.f32.mrf.mxu1  ;;  %v3130_v46 = vpop.f32.mrf.mxu0 }
 0x1d0   : > { %v3131_v0 = vadd.f32 %v3130_v46, %v3129_v44  ;;  %v2568_v5 = vadd.f32 %v3150_v63, %v2527_v62 }
 0x1d1   : > { %v3152_v50 = vpop.f32.mrf.mxu1 }
 0x1d2   : > { %v2530_v6 = vadd.f32 %v3131_v0, %v2489_v1  ;;  %v3153_v7 = vadd.f32 %v3152_v50, %v3151_v45 }
 0x1d4   : > { %v2571_v13 = vadd.f32 %v3153_v7, %v2530_v6 }
 0x1e9   : > { %v3170_v49 = vpop.f32.mrf.mxu0 }
 0x1eb   : > { %v3192_v54 = vpop.f32.mrf.mxu1  ;;  %v3171_v55 = vpop.f32.mrf.mxu0 }
 0x1ec   : > { %v3172_v2 = vadd.f32 %v3171_v55, %v3170_v49 }
 0x1ed   : > { %v3193_v59 = vpop.f32.mrf.mxu1  ;;  %v3173_v60 = vpop.f32.mrf.mxu0 }
 0x1ee   : > { %v2609_v8 = vadd.f32 %v3172_v2, %v2568_v5  ;;  %v3194_v9 = vadd.f32 %v3193_v59, %v3192_v54 }
 0x1ef   : > { %v3195_v3 = vpop.f32.mrf.mxu1  ;;  %v3174_v4 = vpop.f32.mrf.mxu0 }
 0x1f0   : > { %v3175_v10 = vadd.f32 %v3174_v4, %v3173_v60  ;;  %v2650_v16 = vadd.f32 %v3194_v9, %v2609_v8 }
 0x1f1   : > { %v3196_v11 = vpop.f32.mrf.mxu1 }
 0x1f2   : > { %v2612_v17 = vadd.f32 %v3175_v10, %v2571_v13  ;;  %v3197_v21 = vadd.f32 %v3196_v11, %v3195_v3 }
 0x1f4   : > { %v2653_v25 = vadd.f32 %v3197_v21, %v2612_v17 }
 0x209   : > { %v3214_v12 = vpop.f32.mrf.mxu0 }
 0x20b   : > { %v3236_v14 = vpop.f32.mrf.mxu1  ;;  %v3215_v15 = vpop.f32.mrf.mxu0 }
 0x20c   : > { %v3216_v18 = vadd.f32 %v3215_v15, %v3214_v12 }
 0x20d   : > { %v3237_v19 = vpop.f32.mrf.mxu1  ;;  %v3217_v20 = vpop.f32.mrf.mxu0 }
 0x20e   : > { %v2691_v22 = vadd.f32 %v3216_v18, %v2650_v16  ;;  %v3238_v26 = vadd.f32 %v3237_v19, %v3236_v14 }
 0x20f   : > { %v3239_v23 = vpop.f32.mrf.mxu1  ;;  %v3218_v24 = vpop.f32.mrf.mxu0 }
 0x210   : > { %v3219_v27 = vadd.f32 %v3218_v24, %v3217_v20  ;;  %v2732_v29 = vadd.f32 %v3238_v26, %v2691_v22 }
 0x211   : > { %v3240_v28 = vpop.f32.mrf.mxu1 }
 0x212   : > { %v2694_v30 = vadd.f32 %v3219_v27, %v2653_v25  ;;  %v3241_v31 = vadd.f32 %v3240_v28, %v3239_v23  ;;  %v2738_v33 = vmax.f32 %v2732_v29, 0.0 }
 0x214   : > { %v2735_v32 = vadd.f32 %v3241_v31, %v2694_v30 }
 0x216   : > { %v2739_v34 = vmax.f32 %v2735_v32, 0.0  ;;  %2756 = sbr.rel (!%p3505_p6) target bundleno = 547 (0x223), region = 77 }
 0x218   : > { %v3064_v35 = vpack.c.bf16 %v2739_v34, %v2738_v33 }
 0x21a   : > { %3065 = vst [vmem:[%s1270_s7] sm:$0xff] %v3064_v35  }
 0x221   : > { %v2778_v36 = vld [vmem:[%s1270_s7] sm:$0xf]  ;;  %v2780_v37 = vld [vmem:[%s1270_s7 + $0x4] sm:$0xf] }
 0x222   : > { %2779 = vst [vmem:[%s2761_s11] sm:$0xf] %v2778_v36  ;;  %2781 = vst [vmem:[%s2761_s11 + $0x8] sm:$0xf] %v2780_v37 }
 0x223 PF: > { %s13_s16 = sadd.s32 1, %s3448_s16   ;;  %s4282_s12 = smov %s3436_s13 }
 0x224   : > { %p10_p12 = scmp.ge.s32.totalorder %s13_s16, 4   ;;  %s4283_s13 = smov %s3510_s22 }
 0x225   : > { %s4284_s14 = smov %s3444_s15  ;;  %s4285_s15 = smov %s4287_s17 }
 0x226   :  { %12 = sbr.rel (!%p10_p12) target bundleno = 3 (0x3), region = 155 }

// kernel: autoencoder_forward.9
= control target key start
LH: loop header
LB: loop body
LE: loop exit
PB: predicated region body
PF: predicated region fallthrough
CT: control target
= control target key end

     0   :  { %s4693_s12 = smov 0   ;;  %s4695_s13 = smov 0   ;;  %s5697_s0 = inlined_call_operand.vmem [shape: bf16[16,2304], index: 0, kind: input, shape index: {}]   ;;  %s5698_s1 = inlined_call_operand.vmem [shape: bf16[2304,512], index: 1, kind: input, shape index: {}]   ;;  %s5699_s2 = inlined_call_operand.vmem [shape: f32[1,512], index: 2, kind: input, shape index: {}]   ;;  %s5700_s3 = inlined_call_operand.vmem [shape: bf16[16,512], index: 3, kind: output, shape index: {}]  }
   0x1   :  { %s4697_s14 = smov 0   ;;  %s4699_s15 = smov 0  }
   0x2   :  { %s4701_s16 = smov 0  }
   0x3 LB: > { %s22_s17 = sadd.s32 1, %s4667_s15  ;;  %s3805_s18 = sadd.s32 4294967295, %s4671_s16   ;;  %s4671_s16 = sphi %s4701_s16, %s13_s16   ;;  %s4667_s15 = sphi %s4699_s15, %s5705_s15   ;;  %s4663_s14 = sphi %s4697_s14, %s5704_s14   ;;  %s4659_s13 = sphi %s4695_s13, %s5703_s13   ;;  %s4655_s12 = sphi %s4693_s12, %s5702_s12  }
   0x4   : > { %p23_p0 = scmp.ge.s32.totalorder %s22_s17, 2  ;;  %p65_p1 = scmp.ne.s32.totalorder %s4659_s13, %s4655_s12 }
   0x5   : > { %p66_p2 = scmp.eq.s32.totalorder %s4671_s16, 0  ;;  %p123_p4 = scmp.eq.s32.totalorder %s3805_s18, 1 }
   0x6   : > { %s5707_s17 = smov (%p23_p0, %s22_s17), 0  ;;  %s58_s20 = sadd.s32 1, %s4659_s13 }
   0x7   : > { %p67_p3 = por %p66_p2, %p65_p1  ;;  %s55_s19 = ssub.s32 %s4667_s15, %s5707_s17 }
   0x8   : > { %p56_p5 = scmp.eq.s32.totalorder %s55_s19, 0  ;;  %p4728_p6 = por %p123_p4, %p65_p1 }
   0x9   : > { %p3809_p7 = scmp.ge.s32.totalorder %s4671_s16, 2 }
   0xa   : > { %s4733_s22 = scalar_select %p56_p5, %s4659_s13, %s58_s20  }
   0xb   : > { %155 = sbr.rel (%p3809_p7) target bundleno = 164 (0xa4), region = 20 }
  0x10   : > { %158 = sbr.rel (!%p67_p3) target bundleno = 164 (0xa4), region = 24  ;;  %s160_s23 = sand.u32 (%p67_p3), 1, %s4659_s13  }
  0x11   : > { %s4128_s24 = sshll.u32 (%p67_p3), %s4667_s15, 3  ;;  %s4132_s25 = smul.u32 (%p67_p3), 2304, %s160_s23 }
  0x12   : > { %s4741_s28 = scalar_lea.vmem (%p67_p3), %s5698_s1, %s4128_s24 }
  0x13   : > { %v768_v0 = vld [vmem:[%s4741_s28] sm:$0xff] (%p67_p3)  ;;  %v770_v1 = vld [vmem:[%s4741_s28 + $0x10] sm:$0xff] (%p67_p3)  ;;  %s4749_s29 = scalar_lea.vmem (%p67_p3), [#allocation2], %s4132_s25 }
  0x14   : > { %v772_v2 = vld [vmem:[%s4741_s28 + $0x20] sm:$0xff] (%p67_p3)  ;;  %v774_v3 = vld [vmem:[%s4741_s28 + $0x30] sm:$0xff] (%p67_p3)  ;;  %769 = vst [vmem:[%s4749_s29] sm:$0xff] (%p67_p3), %v768_v0  ;;  %771 = vst [vmem:[%s4749_s29 + $0x8] sm:$0xff] (%p67_p3), %v770_v1 }
  0x15   : > { %v776_v4 = vld [vmem:[%s4741_s28 + $0x40] sm:$0xff]  ;;  %v778_v5 = vld [vmem:[%s4741_s28 + $0x50] sm:$0xff]  ;;  %773 = vst [vmem:[%s4749_s29 + $0x10] sm:$0xff] %v772_v2  ;;  %775 = vst [vmem:[%s4749_s29 + $0x18] sm:$0xff] %v774_v3 }
  0x16   : > { %777 = vst [vmem:[%s4749_s29 + $0x20] sm:$0xff] %v776_v4  ;;  %779 = vst [vmem:[%s4749_s29 + $0x28] sm:$0xff] %v778_v5  ;;  %v780_v6 = vld [vmem:[%s4741_s28 + $0x60] sm:$0xff]  ;;  %v782_v7 = vld [vmem:[%s4741_s28 + $0x70] sm:$0xff] }
  0x17   : > { %v784_v8 = vld [vmem:[%s4741_s28 + $0x80] sm:$0xff]  ;;  %781 = vst [vmem:[%s4749_s29 + $0x30] sm:$0xff] %v780_v6  ;;  %783 = vst [vmem:[%s4749_s29 + $0x38] sm:$0xff] %v782_v7  ;;  %v786_v9 = vld [vmem:[%s4741_s28 + $0x90] sm:$0xff] }
  0x18   : > { %785 = vst [vmem:[%s4749_s29 + $0x40] sm:$0xff] %v784_v8  ;;  %v788_v10 = vld [vmem:[%s4741_s28 + $0xa0] sm:$0xff]  ;;  %v790_v11 = vld [vmem:[%s4741_s28 + $0xb0] sm:$0xff]  ;;  %787 = vst [vmem:[%s4749_s29 + $0x48] sm:$0xff] %v786_v9 }
  0x19   : > { %789 = vst [vmem:[%s4749_s29 + $0x50] sm:$0xff] %v788_v10  ;;  %791 = vst [vmem:[%s4749_s29 + $0x58] sm:$0xff] %v790_v11  ;;  %v792_v12 = vld [vmem:[%s4741_s28 + $0xc0] sm:$0xff]  ;;  %v794_v13 = vld [vmem:[%s4741_s28 + $0xd0] sm:$0xff] }
  0x1a   : > { %v796_v14 = vld [vmem:[%s4741_s28 + $0xe0] sm:$0xff]  ;;  %793 = vst [vmem:[%s4749_s29 + $0x60] sm:$0xff] %v792_v12  ;;  %795 = vst [vmem:[%s4749_s29 + $0x68] sm:$0xff] %v794_v13  ;;  %v798_v15 = vld [vmem:[%s4741_s28 + $0xf0] sm:$0xff] }
  0x1b   : > { %797 = vst [vmem:[%s4749_s29 + $0x70] sm:$0xff] %v796_v14  ;;  %v800_v16 = vld [vmem:[%s4741_s28 + $0x100] sm:$0xff]  ;;  %v802_v17 = vld [vmem:[%s4741_s28 + $0x110] sm:$0xff]  ;;  %799 = vst [vmem:[%s4749_s29 + $0x78] sm:$0xff] %v798_v15 }
  0x1c   : > { %801 = vst [vmem:[%s4749_s29 + $0x80] sm:$0xff] %v800_v16  ;;  %803 = vst [vmem:[%s4749_s29 + $0x88] sm:$0xff] %v802_v17  ;;  %v804_v18 = vld [vmem:[%s4741_s28 + $0x120] sm:$0xff]  ;;  %v806_v19 = vld [vmem:[%s4741_s28 + $0x130] sm:$0xff] }
  0x1d   : > { %v808_v20 = vld [vmem:[%s4741_s28 + $0x140] sm:$0xff]  ;;  %805 = vst [vmem:[%s4749_s29 + $0x90] sm:$0xff] %v804_v18  ;;  %807 = vst [vmem:[%s4749_s29 + $0x98] sm:$0xff] %v806_v19  ;;  %v810_v21 = vld [vmem:[%s4741_s28 + $0x150] sm:$0xff] }
  0x1e   : > { %809 = vst [vmem:[%s4749_s29 + $0xa0] sm:$0xff] %v808_v20  ;;  %v812_v22 = vld [vmem:[%s4741_s28 + $0x160] sm:$0xff]  ;;  %v814_v23 = vld [vmem:[%s4741_s28 + $0x170] sm:$0xff]  ;;  %811 = vst [vmem:[%s4749_s29 + $0xa8] sm:$0xff] %v810_v21 }
  0x1f   : > { %813 = vst [vmem:[%s4749_s29 + $0xb0] sm:$0xff] %v812_v22  ;;  %815 = vst [vmem:[%s4749_s29 + $0xb8] sm:$0xff] %v814_v23  ;;  %v816_v24 = vld [vmem:[%s4741_s28 + $0x180] sm:$0xff]  ;;  %v818_v25 = vld [vmem:[%s4741_s28 + $0x190] sm:$0xff] }
  0x20   : > { %v820_v26 = vld [vmem:[%s4741_s28 + $0x1a0] sm:$0xff]  ;;  %817 = vst [vmem:[%s4749_s29 + $0xc0] sm:$0xff] %v816_v24  ;;  %819 = vst [vmem:[%s4749_s29 + $0xc8] sm:$0xff] %v818_v25  ;;  %v822_v27 = vld [vmem:[%s4741_s28 + $0x1b0] sm:$0xff] }
  0x21   : > { %821 = vst [vmem:[%s4749_s29 + $0xd0] sm:$0xff] %v820_v26  ;;  %v824_v28 = vld [vmem:[%s4741_s28 + $0x1c0] sm:$0xff]  ;;  %v826_v29 = vld [vmem:[%s4741_s28 + $0x1d0] sm:$0xff]  ;;  %823 = vst [vmem:[%s4749_s29 + $0xd8] sm:$0xff] %v822_v27 }
  0x22   : > { %825 = vst [vmem:[%s4749_s29 + $0xe0] sm:$0xff] %v824_v28  ;;  %827 = vst [vmem:[%s4749_s29 + $0xe8] sm:$0xff] %v826_v29  ;;  %v828_v30 = vld [vmem:[%s4741_s28 + $0x1e0] sm:$0xff]  ;;  %v830_v31 = vld [vmem:[%s4741_s28 + $0x1f0] sm:$0xff] }
  0x23   : > { %v832_v32 = vld [vmem:[%s4741_s28 + $0x200] sm:$0xff]  ;;  %829 = vst [vmem:[%s4749_s29 + $0xf0] sm:$0xff] %v828_v30  ;;  %831 = vst [vmem:[%s4749_s29 + $0xf8] sm:$0xff] %v830_v31  ;;  %v834_v33 = vld [vmem:[%s4741_s28 + $0x210] sm:$0xff] }
  0x24   : > { %833 = vst [vmem:[%s4749_s29 + $0x100] sm:$0xff] %v832_v32  ;;  %v836_v34 = vld [vmem:[%s4741_s28 + $0x220] sm:$0xff]  ;;  %v838_v35 = vld [vmem:[%s4741_s28 + $0x230] sm:$0xff]  ;;  %835 = vst [vmem:[%s4749_s29 + $0x108] sm:$0xff] %v834_v33 }
  0x25   : > { %837 = vst [vmem:[%s4749_s29 + $0x110] sm:$0xff] %v836_v34  ;;  %839 = vst [vmem:[%s4749_s29 + $0x118] sm:$0xff] %v838_v35  ;;  %v840_v36 = vld [vmem:[%s4741_s28 + $0x240] sm:$0xff]  ;;  %v842_v37 = vld [vmem:[%s4741_s28 + $0x250] sm:$0xff] }
  0x26   : > { %v844_v38 = vld [vmem:[%s4741_s28 + $0x260] sm:$0xff]  ;;  %841 = vst [vmem:[%s4749_s29 + $0x120] sm:$0xff] %v840_v36  ;;  %843 = vst [vmem:[%s4749_s29 + $0x128] sm:$0xff] %v842_v37  ;;  %v846_v39 = vld [vmem:[%s4741_s28 + $0x270] sm:$0xff] }
  0x27   : > { %845 = vst [vmem:[%s4749_s29 + $0x130] sm:$0xff] %v844_v38  ;;  %v848_v40 = vld [vmem:[%s4741_s28 + $0x280] sm:$0xff]  ;;  %v850_v41 = vld [vmem:[%s4741_s28 + $0x290] sm:$0xff]  ;;  %847 = vst [vmem:[%s4749_s29 + $0x138] sm:$0xff] %v846_v39 }
  0x28   : > { %849 = vst [vmem:[%s4749_s29 + $0x140] sm:$0xff] %v848_v40  ;;  %851 = vst [vmem:[%s4749_s29 + $0x148] sm:$0xff] %v850_v41  ;;  %v852_v42 = vld [vmem:[%s4741_s28 + $0x2a0] sm:$0xff]  ;;  %v854_v43 = vld [vmem:[%s4741_s28 + $0x2b0] sm:$0xff] }
  0x29   : > { %v856_v44 = vld [vmem:[%s4741_s28 + $0x2c0] sm:$0xff]  ;;  %853 = vst [vmem:[%s4749_s29 + $0x150] sm:$0xff] %v852_v42  ;;  %855 = vst [vmem:[%s4749_s29 + $0x158] sm:$0xff] %v854_v43  ;;  %v858_v45 = vld [vmem:[%s4741_s28 + $0x2d0] sm:$0xff] }
  0x2a   : > { %857 = vst [vmem:[%s4749_s29 + $0x160] sm:$0xff] %v856_v44  ;;  %v860_v46 = vld [vmem:[%s4741_s28 + $0x2e0] sm:$0xff]  ;;  %v862_v47 = vld [vmem:[%s4741_s28 + $0x2f0] sm:$0xff]  ;;  %859 = vst [vmem:[%s4749_s29 + $0x168] sm:$0xff] %v858_v45 }
  0x2b   : > { %861 = vst [vmem:[%s4749_s29 + $0x170] sm:$0xff] %v860_v46  ;;  %863 = vst [vmem:[%s4749_s29 + $0x178] sm:$0xff] %v862_v47  ;;  %v864_v48 = vld [vmem:[%s4741_s28 + $0x300] sm:$0xff]  ;;  %v866_v49 = vld [vmem:[%s4741_s28 + $0x310] sm:$0xff] }
  0x2c   : > { %v868_v50 = vld [vmem:[%s4741_s28 + $0x320] sm:$0xff]  ;;  %865 = vst [vmem:[%s4749_s29 + $0x180] sm:$0xff] %v864_v48  ;;  %867 = vst [vmem:[%s4749_s29 + $0x188] sm:$0xff] %v866_v49  ;;  %v870_v51 = vld [vmem:[%s4741_s28 + $0x330] sm:$0xff] }
  0x2d   : > { %869 = vst [vmem:[%s4749_s29 + $0x190] sm:$0xff] %v868_v50  ;;  %v872_v52 = vld [vmem:[%s4741_s28 + $0x340] sm:$0xff]  ;;  %v874_v53 = vld [vmem:[%s4741_s28 + $0x350] sm:$0xff]  ;;  %871 = vst [vmem:[%s4749_s29 + $0x198] sm:$0xff] %v870_v51 }
  0x2e   : > { %873 = vst [vmem:[%s4749_s29 + $0x1a0] sm:$0xff] %v872_v52  ;;  %875 = vst [vmem:[%s4749_s29 + $0x1a8] sm:$0xff] %v874_v53  ;;  %v876_v54 = vld [vmem:[%s4741_s28 + $0x360] sm:$0xff]  ;;  %v878_v55 = vld [vmem:[%s4741_s28 + $0x370] sm:$0xff] }
  0x2f   : > { %v880_v56 = vld [vmem:[%s4741_s28 + $0x380] sm:$0xff]  ;;  %877 = vst [vmem:[%s4749_s29 + $0x1b0] sm:$0xff] %v876_v54  ;;  %879 = vst [vmem:[%s4749_s29 + $0x1b8] sm:$0xff] %v878_v55  ;;  %v882_v57 = vld [vmem:[%s4741_s28 + $0x390] sm:$0xff] }
  0x30   : > { %881 = vst [vmem:[%s4749_s29 + $0x1c0] sm:$0xff] %v880_v56  ;;  %v884_v58 = vld [vmem:[%s4741_s28 + $0x3a0] sm:$0xff]  ;;  %v886_v59 = vld [vmem:[%s4741_s28 + $0x3b0] sm:$0xff]  ;;  %883 = vst [vmem:[%s4749_s29 + $0x1c8] sm:$0xff] %v882_v57 }
  0x31   : > { %885 = vst [vmem:[%s4749_s29 + $0x1d0] sm:$0xff] %v884_v58  ;;  %887 = vst [vmem:[%s4749_s29 + $0x1d8] sm:$0xff] %v886_v59  ;;  %v888_v60 = vld [vmem:[%s4741_s28 + $0x3c0] sm:$0xff]  ;;  %v890_v61 = vld [vmem:[%s4741_s28 + $0x3d0] sm:$0xff] }
  0x32   : > { %v892_v62 = vld [vmem:[%s4741_s28 + $0x3e0] sm:$0xff]  ;;  %889 = vst [vmem:[%s4749_s29 + $0x1e0] sm:$0xff] %v888_v60  ;;  %891 = vst [vmem:[%s4749_s29 + $0x1e8] sm:$0xff] %v890_v61  ;;  %v894_v63 = vld [vmem:[%s4741_s28 + $0x3f0] sm:$0xff] }
  0x33   : > { %893 = vst [vmem:[%s4749_s29 + $0x1f0] sm:$0xff] %v892_v62  ;;  %v896_v0 = vld [vmem:[%s4741_s28 + $0x400] sm:$0xff]  ;;  %v898_v1 = vld [vmem:[%s4741_s28 + $0x410] sm:$0xff]  ;;  %895 = vst [vmem:[%s4749_s29 + $0x1f8] sm:$0xff] %v894_v63 }
  0x34   : > { %897 = vst [vmem:[%s4749_s29 + $0x200] sm:$0xff] %v896_v0  ;;  %899 = vst [vmem:[%s4749_s29 + $0x208] sm:$0xff] %v898_v1  ;;  %v900_v2 = vld [vmem:[%s4741_s28 + $0x420] sm:$0xff]  ;;  %v902_v3 = vld [vmem:[%s4741_s28 + $0x430] sm:$0xff] }
  0x35   : > { %v904_v4 = vld [vmem:[%s4741_s28 + $0x440] sm:$0xff]  ;;  %901 = vst [vmem:[%s4749_s29 + $0x210] sm:$0xff] %v900_v2  ;;  %903 = vst [vmem:[%s4749_s29 + $0x218] sm:$0xff] %v902_v3  ;;  %v906_v5 = vld [vmem:[%s4741_s28 + $0x450] sm:$0xff] }
  0x36   : > { %905 = vst [vmem:[%s4749_s29 + $0x220] sm:$0xff] %v904_v4  ;;  %v908_v6 = vld [vmem:[%s4741_s28 + $0x460] sm:$0xff]  ;;  %v910_v7 = vld [vmem:[%s4741_s28 + $0x470] sm:$0xff]  ;;  %907 = vst [vmem:[%s4749_s29 + $0x228] sm:$0xff] %v906_v5 }
  0x37   : > { %909 = vst [vmem:[%s4749_s29 + $0x230] sm:$0xff] %v908_v6  ;;  %911 = vst [vmem:[%s4749_s29 + $0x238] sm:$0xff] %v910_v7  ;;  %v912_v8 = vld [vmem:[%s4741_s28 + $0x480] sm:$0xff]  ;;  %v914_v9 = vld [vmem:[%s4741_s28 + $0x490] sm:$0xff] }
  0x38   : > { %v916_v10 = vld [vmem:[%s4741_s28 + $0x4a0] sm:$0xff]  ;;  %913 = vst [vmem:[%s4749_s29 + $0x240] sm:$0xff] %v912_v8  ;;  %915 = vst [vmem:[%s4749_s29 + $0x248] sm:$0xff] %v914_v9  ;;  %v918_v11 = vld [vmem:[%s4741_s28 + $0x4b0] sm:$0xff] }
  0x39   : > { %917 = vst [vmem:[%s4749_s29 + $0x250] sm:$0xff] %v916_v10  ;;  %v920_v12 = vld [vmem:[%s4741_s28 + $0x4c0] sm:$0xff]  ;;  %v922_v13 = vld [vmem:[%s4741_s28 + $0x4d0] sm:$0xff]  ;;  %919 = vst [vmem:[%s4749_s29 + $0x258] sm:$0xff] %v918_v11 }
  0x3a   : > { %921 = vst [vmem:[%s4749_s29 + $0x260] sm:$0xff] %v920_v12  ;;  %923 = vst [vmem:[%s4749_s29 + $0x268] sm:$0xff] %v922_v13  ;;  %v924_v14 = vld [vmem:[%s4741_s28 + $0x4e0] sm:$0xff]  ;;  %v926_v15 = vld [vmem:[%s4741_s28 + $0x4f0] sm:$0xff] }
  0x3b   : > { %v928_v16 = vld [vmem:[%s4741_s28 + $0x500] sm:$0xff]  ;;  %925 = vst [vmem:[%s4749_s29 + $0x270] sm:$0xff] %v924_v14  ;;  %927 = vst [vmem:[%s4749_s29 + $0x278] sm:$0xff] %v926_v15  ;;  %v930_v17 = vld [vmem:[%s4741_s28 + $0x510] sm:$0xff] }
  0x3c   : > { %929 = vst [vmem:[%s4749_s29 + $0x280] sm:$0xff] %v928_v16  ;;  %v932_v18 = vld [vmem:[%s4741_s28 + $0x520] sm:$0xff]  ;;  %v934_v19 = vld [vmem:[%s4741_s28 + $0x530] sm:$0xff]  ;;  %931 = vst [vmem:[%s4749_s29 + $0x288] sm:$0xff] %v930_v17 }
  0x3d   : > { %933 = vst [vmem:[%s4749_s29 + $0x290] sm:$0xff] %v932_v18  ;;  %935 = vst [vmem:[%s4749_s29 + $0x298] sm:$0xff] %v934_v19  ;;  %v936_v20 = vld [vmem:[%s4741_s28 + $0x540] sm:$0xff]  ;;  %v938_v21 = vld [vmem:[%s4741_s28 + $0x550] sm:$0xff] }
  0x3e   : > { %v940_v22 = vld [vmem:[%s4741_s28 + $0x560] sm:$0xff]  ;;  %937 = vst [vmem:[%s4749_s29 + $0x2a0] sm:$0xff] %v936_v20  ;;  %939 = vst [vmem:[%s4749_s29 + $0x2a8] sm:$0xff] %v938_v21  ;;  %v942_v23 = vld [vmem:[%s4741_s28 + $0x570] sm:$0xff] }
  0x3f   : > { %941 = vst [vmem:[%s4749_s29 + $0x2b0] sm:$0xff] %v940_v22  ;;  %v944_v24 = vld [vmem:[%s4741_s28 + $0x580] sm:$0xff]  ;;  %v946_v25 = vld [vmem:[%s4741_s28 + $0x590] sm:$0xff]  ;;  %943 = vst [vmem:[%s4749_s29 + $0x2b8] sm:$0xff] %v942_v23 }
  0x40   : > { %945 = vst [vmem:[%s4749_s29 + $0x2c0] sm:$0xff] %v944_v24  ;;  %947 = vst [vmem:[%s4749_s29 + $0x2c8] sm:$0xff] %v946_v25  ;;  %v948_v26 = vld [vmem:[%s4741_s28 + $0x5a0] sm:$0xff]  ;;  %v950_v27 = vld [vmem:[%s4741_s28 + $0x5b0] sm:$0xff] }
  0x41   : > { %v952_v28 = vld [vmem:[%s4741_s28 + $0x5c0] sm:$0xff]  ;;  %949 = vst [vmem:[%s4749_s29 + $0x2d0] sm:$0xff] %v948_v26  ;;  %951 = vst [vmem:[%s4749_s29 + $0x2d8] sm:$0xff] %v950_v27  ;;  %v954_v29 = vld [vmem:[%s4741_s28 + $0x5d0] sm:$0xff] }
  0x42   : > { %953 = vst [vmem:[%s4749_s29 + $0x2e0] sm:$0xff] %v952_v28  ;;  %v956_v30 = vld [vmem:[%s4741_s28 + $0x5e0] sm:$0xff]  ;;  %v958_v31 = vld [vmem:[%s4741_s28 + $0x5f0] sm:$0xff]  ;;  %955 = vst [vmem:[%s4749_s29 + $0x2e8] sm:$0xff] %v954_v29 }
  0x43   : > { %957 = vst [vmem:[%s4749_s29 + $0x2f0] sm:$0xff] %v956_v30  ;;  %959 = vst [vmem:[%s4749_s29 + $0x2f8] sm:$0xff] %v958_v31  ;;  %v960_v32 = vld [vmem:[%s4741_s28 + $0x600] sm:$0xff]  ;;  %v962_v33 = vld [vmem:[%s4741_s28 + $0x610] sm:$0xff] }
  0x44   : > { %v964_v34 = vld [vmem:[%s4741_s28 + $0x620] sm:$0xff]  ;;  %961 = vst [vmem:[%s4749_s29 + $0x300] sm:$0xff] %v960_v32  ;;  %963 = vst [vmem:[%s4749_s29 + $0x308] sm:$0xff] %v962_v33  ;;  %v966_v35 = vld [vmem:[%s4741_s28 + $0x630] sm:$0xff] }
  0x45   : > { %965 = vst [vmem:[%s4749_s29 + $0x310] sm:$0xff] %v964_v34  ;;  %v968_v36 = vld [vmem:[%s4741_s28 + $0x640] sm:$0xff]  ;;  %v970_v37 = vld [vmem:[%s4741_s28 + $0x650] sm:$0xff]  ;;  %967 = vst [vmem:[%s4749_s29 + $0x318] sm:$0xff] %v966_v35 }
  0x46   : > { %969 = vst [vmem:[%s4749_s29 + $0x320] sm:$0xff] %v968_v36  ;;  %971 = vst [vmem:[%s4749_s29 + $0x328] sm:$0xff] %v970_v37  ;;  %v972_v38 = vld [vmem:[%s4741_s28 + $0x660] sm:$0xff]  ;;  %v974_v39 = vld [vmem:[%s4741_s28 + $0x670] sm:$0xff] }
  0x47   : > { %v976_v40 = vld [vmem:[%s4741_s28 + $0x680] sm:$0xff]  ;;  %973 = vst [vmem:[%s4749_s29 + $0x330] sm:$0xff] %v972_v38  ;;  %975 = vst [vmem:[%s4749_s29 + $0x338] sm:$0xff] %v974_v39  ;;  %v978_v41 = vld [vmem:[%s4741_s28 + $0x690] sm:$0xff] }
  0x48   : > { %977 = vst [vmem:[%s4749_s29 + $0x340] sm:$0xff] %v976_v40  ;;  %v980_v42 = vld [vmem:[%s4741_s28 + $0x6a0] sm:$0xff]  ;;  %v982_v43 = vld [vmem:[%s4741_s28 + $0x6b0] sm:$0xff]  ;;  %979 = vst [vmem:[%s4749_s29 + $0x348] sm:$0xff] %v978_v41 }
  0x49   : > { %981 = vst [vmem:[%s4749_s29 + $0x350] sm:$0xff] %v980_v42  ;;  %983 = vst [vmem:[%s4749_s29 + $0x358] sm:$0xff] %v982_v43  ;;  %v984_v44 = vld [vmem:[%s4741_s28 + $0x6c0] sm:$0xff]  ;;  %v986_v45 = vld [vmem:[%s4741_s28 + $0x6d0] sm:$0xff] }
  0x4a   : > { %v988_v46 = vld [vmem:[%s4741_s28 + $0x6e0] sm:$0xff]  ;;  %985 = vst [vmem:[%s4749_s29 + $0x360] sm:$0xff] %v984_v44  ;;  %987 = vst [vmem:[%s4749_s29 + $0x368] sm:$0xff] %v986_v45  ;;  %v990_v47 = vld [vmem:[%s4741_s28 + $0x6f0] sm:$0xff] }
  0x4b   : > { %989 = vst [vmem:[%s4749_s29 + $0x370] sm:$0xff] %v988_v46  ;;  %v992_v48 = vld [vmem:[%s4741_s28 + $0x700] sm:$0xff]  ;;  %v994_v49 = vld [vmem:[%s4741_s28 + $0x710] sm:$0xff]  ;;  %991 = vst [vmem:[%s4749_s29 + $0x378] sm:$0xff] %v990_v47 }
  0x4c   : > { %993 = vst [vmem:[%s4749_s29 + $0x380] sm:$0xff] %v992_v48  ;;  %995 = vst [vmem:[%s4749_s29 + $0x388] sm:$0xff] %v994_v49  ;;  %v996_v50 = vld [vmem:[%s4741_s28 + $0x720] sm:$0xff]  ;;  %v998_v51 = vld [vmem:[%s4741_s28 + $0x730] sm:$0xff] }
  0x4d   : > { %v1000_v52 = vld [vmem:[%s4741_s28 + $0x740] sm:$0xff]  ;;  %997 = vst [vmem:[%s4749_s29 + $0x390] sm:$0xff] %v996_v50  ;;  %999 = vst [vmem:[%s4749_s29 + $0x398] sm:$0xff] %v998_v51  ;;  %v1002_v53 = vld [vmem:[%s4741_s28 + $0x750] sm:$0xff] }
  0x4e   : > { %1001 = vst [vmem:[%s4749_s29 + $0x3a0] sm:$0xff] %v1000_v52  ;;  %v1004_v54 = vld [vmem:[%s4741_s28 + $0x760] sm:$0xff]  ;;  %v1006_v55 = vld [vmem:[%s4741_s28 + $0x770] sm:$0xff]  ;;  %1003 = vst [vmem:[%s4749_s29 + $0x3a8] sm:$0xff] %v1002_v53 }
  0x4f   : > { %1005 = vst [vmem:[%s4749_s29 + $0x3b0] sm:$0xff] %v1004_v54  ;;  %1007 = vst [vmem:[%s4749_s29 + $0x3b8] sm:$0xff] %v1006_v55  ;;  %v1008_v56 = vld [vmem:[%s4741_s28 + $0x780] sm:$0xff]  ;;  %v1010_v57 = vld [vmem:[%s4741_s28 + $0x790] sm:$0xff] }
  0x50   : > { %v1012_v58 = vld [vmem:[%s4741_s28 + $0x7a0] sm:$0xff]  ;;  %1009 = vst [vmem:[%s4749_s29 + $0x3c0] sm:$0xff] %v1008_v56  ;;  %1011 = vst [vmem:[%s4749_s29 + $0x3c8] sm:$0xff] %v1010_v57  ;;  %v1014_v59 = vld [vmem:[%s4741_s28 + $0x7b0] sm:$0xff] }
  0x51   : > { %1013 = vst [vmem:[%s4749_s29 + $0x3d0] sm:$0xff] %v1012_v58  ;;  %v1016_v60 = vld [vmem:[%s4741_s28 + $0x7c0] sm:$0xff]  ;;  %v1018_v61 = vld [vmem:[%s4741_s28 + $0x7d0] sm:$0xff]  ;;  %1015 = vst [vmem:[%s4749_s29 + $0x3d8] sm:$0xff] %v1014_v59 }
  0x52   : > { %1017 = vst [vmem:[%s4749_s29 + $0x3e0] sm:$0xff] %v1016_v60  ;;  %1019 = vst [vmem:[%s4749_s29 + $0x3e8] sm:$0xff] %v1018_v61  ;;  %v1020_v62 = vld [vmem:[%s4741_s28 + $0x7e0] sm:$0xff]  ;;  %v1022_v63 = vld [vmem:[%s4741_s28 + $0x7f0] sm:$0xff] }
  0x53   : > { %v1024_v0 = vld [vmem:[%s4741_s28 + $0x800] sm:$0xff]  ;;  %1021 = vst [vmem:[%s4749_s29 + $0x3f0] sm:$0xff] %v1020_v62  ;;  %1023 = vst [vmem:[%s4749_s29 + $0x3f8] sm:$0xff] %v1022_v63  ;;  %v1026_v1 = vld [vmem:[%s4741_s28 + $0x810] sm:$0xff] }
  0x54   : > { %1025 = vst [vmem:[%s4749_s29 + $0x400] sm:$0xff] %v1024_v0  ;;  %v1028_v2 = vld [vmem:[%s4741_s28 + $0x820] sm:$0xff]  ;;  %v1030_v3 = vld [vmem:[%s4741_s28 + $0x830] sm:$0xff]  ;;  %1027 = vst [vmem:[%s4749_s29 + $0x408] sm:$0xff] %v1026_v1 }
  0x55   : > { %1029 = vst [vmem:[%s4749_s29 + $0x410] sm:$0xff] %v1028_v2  ;;  %1031 = vst [vmem:[%s4749_s29 + $0x418] sm:$0xff] %v1030_v3  ;;  %v1032_v4 = vld [vmem:[%s4741_s28 + $0x840] sm:$0xff]  ;;  %v1034_v5 = vld [vmem:[%s4741_s28 + $0x850] sm:$0xff] }
  0x56   : > { %v1036_v6 = vld [vmem:[%s4741_s28 + $0x860] sm:$0xff]  ;;  %1033 = vst [vmem:[%s4749_s29 + $0x420] sm:$0xff] %v1032_v4  ;;  %1035 = vst [vmem:[%s4749_s29 + $0x428] sm:$0xff] %v1034_v5  ;;  %v1038_v7 = vld [vmem:[%s4741_s28 + $0x870] sm:$0xff] }
  0x57   : > { %1037 = vst [vmem:[%s4749_s29 + $0x430] sm:$0xff] %v1036_v6  ;;  %v1040_v8 = vld [vmem:[%s4741_s28 + $0x880] sm:$0xff]  ;;  %v1042_v9 = vld [vmem:[%s4741_s28 + $0x890] sm:$0xff]  ;;  %1039 = vst [vmem:[%s4749_s29 + $0x438] sm:$0xff] %v1038_v7 }
  0x58   : > { %1041 = vst [vmem:[%s4749_s29 + $0x440] sm:$0xff] %v1040_v8  ;;  %1043 = vst [vmem:[%s4749_s29 + $0x448] sm:$0xff] %v1042_v9  ;;  %v1044_v10 = vld [vmem:[%s4741_s28 + $0x8a0] sm:$0xff]  ;;  %v1046_v11 = vld [vmem:[%s4741_s28 + $0x8b0] sm:$0xff] }
  0x59   : > { %v1048_v12 = vld [vmem:[%s4741_s28 + $0x8c0] sm:$0xff]  ;;  %1045 = vst [vmem:[%s4749_s29 + $0x450] sm:$0xff] %v1044_v10  ;;  %1047 = vst [vmem:[%s4749_s29 + $0x458] sm:$0xff] %v1046_v11  ;;  %v1050_v13 = vld [vmem:[%s4741_s28 + $0x8d0] sm:$0xff] }
  0x5a   : > { %1049 = vst [vmem:[%s4749_s29 + $0x460] sm:$0xff] %v1048_v12  ;;  %v1052_v14 = vld [vmem:[%s4741_s28 + $0x8e0] sm:$0xff]  ;;  %v1054_v15 = vld [vmem:[%s4741_s28 + $0x8f0] sm:$0xff]  ;;  %1051 = vst [vmem:[%s4749_s29 + $0x468] sm:$0xff] %v1050_v13 }
  0x5b   : > { %1053 = vst [vmem:[%s4749_s29 + $0x470] sm:$0xff] %v1052_v14  ;;  %1055 = vst [vmem:[%s4749_s29 + $0x478] sm:$0xff] %v1054_v15  ;;  %v1056_v16 = vld [vmem:[%s4741_s28 + $0x900] sm:$0xff]  ;;  %v1058_v17 = vld [vmem:[%s4741_s28 + $0x910] sm:$0xff] }
  0x5c   : > { %v1060_v18 = vld [vmem:[%s4741_s28 + $0x920] sm:$0xff]  ;;  %1057 = vst [vmem:[%s4749_s29 + $0x480] sm:$0xff] %v1056_v16  ;;  %1059 = vst [vmem:[%s4749_s29 + $0x488] sm:$0xff] %v1058_v17  ;;  %v1062_v19 = vld [vmem:[%s4741_s28 + $0x930] sm:$0xff] }
  0x5d   : > { %1061 = vst [vmem:[%s4749_s29 + $0x490] sm:$0xff] %v1060_v18  ;;  %v1064_v20 = vld [vmem:[%s4741_s28 + $0x940] sm:$0xff]  ;;  %v1066_v21 = vld [vmem:[%s4741_s28 + $0x950] sm:$0xff]  ;;  %1063 = vst [vmem:[%s4749_s29 + $0x498] sm:$0xff] %v1062_v19 }
  0x5e   : > { %1065 = vst [vmem:[%s4749_s29 + $0x4a0] sm:$0xff] %v1064_v20  ;;  %1067 = vst [vmem:[%s4749_s29 + $0x4a8] sm:$0xff] %v1066_v21  ;;  %v1068_v22 = vld [vmem:[%s4741_s28 + $0x960] sm:$0xff]  ;;  %v1070_v23 = vld [vmem:[%s4741_s28 + $0x970] sm:$0xff] }
  0x5f   : > { %v1072_v24 = vld [vmem:[%s4741_s28 + $0x980] sm:$0xff]  ;;  %1069 = vst [vmem:[%s4749_s29 + $0x4b0] sm:$0xff] %v1068_v22  ;;  %1071 = vst [vmem:[%s4749_s29 + $0x4b8] sm:$0xff] %v1070_v23  ;;  %v1074_v25 = vld [vmem:[%s4741_s28 + $0x990] sm:$0xff] }
  0x60   : > { %1073 = vst [vmem:[%s4749_s29 + $0x4c0] sm:$0xff] %v1072_v24  ;;  %v1076_v26 = vld [vmem:[%s4741_s28 + $0x9a0] sm:$0xff]  ;;  %v1078_v27 = vld [vmem:[%s4741_s28 + $0x9b0] sm:$0xff]  ;;  %1075 = vst [vmem:[%s4749_s29 + $0x4c8] sm:$0xff] %v1074_v25 }
  0x61   : > { %1077 = vst [vmem:[%s4749_s29 + $0x4d0] sm:$0xff] %v1076_v26  ;;  %1079 = vst [vmem:[%s4749_s29 + $0x4d8] sm:$0xff] %v1078_v27  ;;  %v1080_v28 = vld [vmem:[%s4741_s28 + $0x9c0] sm:$0xff]  ;;  %v1082_v29 = vld [vmem:[%s4741_s28 + $0x9d0] sm:$0xff] }
  0x62   : > { %v1084_v30 = vld [vmem:[%s4741_s28 + $0x9e0] sm:$0xff]  ;;  %1081 = vst [vmem:[%s4749_s29 + $0x4e0] sm:$0xff] %v1080_v28  ;;  %1083 = vst [vmem:[%s4749_s29 + $0x4e8] sm:$0xff] %v1082_v29  ;;  %v1086_v31 = vld [vmem:[%s4741_s28 + $0x9f0] sm:$0xff] }
  0x63   : > { %1085 = vst [vmem:[%s4749_s29 + $0x4f0] sm:$0xff] %v1084_v30  ;;  %v1088_v32 = vld [vmem:[%s4741_s28 + $0xa00] sm:$0xff]  ;;  %v1090_v33 = vld [vmem:[%s4741_s28 + $0xa10] sm:$0xff]  ;;  %1087 = vst [vmem:[%s4749_s29 + $0x4f8] sm:$0xff] %v1086_v31 }
  0x64   : > { %1089 = vst [vmem:[%s4749_s29 + $0x500] sm:$0xff] %v1088_v32  ;;  %1091 = vst [vmem:[%s4749_s29 + $0x508] sm:$0xff] %v1090_v33  ;;  %v1092_v34 = vld [vmem:[%s4741_s28 + $0xa20] sm:$0xff]  ;;  %v1094_v35 = vld [vmem:[%s4741_s28 + $0xa30] sm:$0xff] }
  0x65   : > { %v1096_v36 = vld [vmem:[%s4741_s28 + $0xa40] sm:$0xff]  ;;  %1093 = vst [vmem:[%s4749_s29 + $0x510] sm:$0xff] %v1092_v34  ;;  %1095 = vst [vmem:[%s4749_s29 + $0x518] sm:$0xff] %v1094_v35  ;;  %v1098_v37 = vld [vmem:[%s4741_s28 + $0xa50] sm:$0xff] }
  0x66   : > { %1097 = vst [vmem:[%s4749_s29 + $0x520] sm:$0xff] %v1096_v36  ;;  %v1100_v38 = vld [vmem:[%s4741_s28 + $0xa60] sm:$0xff]  ;;  %v1102_v39 = vld [vmem:[%s4741_s28 + $0xa70] sm:$0xff]  ;;  %1099 = vst [vmem:[%s4749_s29 + $0x528] sm:$0xff] %v1098_v37 }
  0x67   : > { %1101 = vst [vmem:[%s4749_s29 + $0x530] sm:$0xff] %v1100_v38  ;;  %1103 = vst [vmem:[%s4749_s29 + $0x538] sm:$0xff] %v1102_v39  ;;  %v1104_v40 = vld [vmem:[%s4741_s28 + $0xa80] sm:$0xff]  ;;  %v1106_v41 = vld [vmem:[%s4741_s28 + $0xa90] sm:$0xff] }
  0x68   : > { %v1108_v42 = vld [vmem:[%s4741_s28 + $0xaa0] sm:$0xff]  ;;  %1105 = vst [vmem:[%s4749_s29 + $0x540] sm:$0xff] %v1104_v40  ;;  %1107 = vst [vmem:[%s4749_s29 + $0x548] sm:$0xff] %v1106_v41  ;;  %v1110_v43 = vld [vmem:[%s4741_s28 + $0xab0] sm:$0xff] }
  0x69   : > { %1109 = vst [vmem:[%s4749_s29 + $0x550] sm:$0xff] %v1108_v42  ;;  %v1112_v44 = vld [vmem:[%s4741_s28 + $0xac0] sm:$0xff]  ;;  %v1114_v45 = vld [vmem:[%s4741_s28 + $0xad0] sm:$0xff]  ;;  %1111 = vst [vmem:[%s4749_s29 + $0x558] sm:$0xff] %v1110_v43 }
  0x6a   : > { %1113 = vst [vmem:[%s4749_s29 + $0x560] sm:$0xff] %v1112_v44  ;;  %1115 = vst [vmem:[%s4749_s29 + $0x568] sm:$0xff] %v1114_v45  ;;  %v1116_v46 = vld [vmem:[%s4741_s28 + $0xae0] sm:$0xff]  ;;  %v1118_v47 = vld [vmem:[%s4741_s28 + $0xaf0] sm:$0xff] }
  0x6b   : > { %v1120_v48 = vld [vmem:[%s4741_s28 + $0xb00] sm:$0xff]  ;;  %1117 = vst [vmem:[%s4749_s29 + $0x570] sm:$0xff] %v1116_v46  ;;  %1119 = vst [vmem:[%s4749_s29 + $0x578] sm:$0xff] %v1118_v47  ;;  %v1122_v49 = vld [vmem:[%s4741_s28 + $0xb10] sm:$0xff] }
  0x6c   : > { %1121 = vst [vmem:[%s4749_s29 + $0x580] sm:$0xff] %v1120_v48  ;;  %v1124_v50 = vld [vmem:[%s4741_s28 + $0xb20] sm:$0xff]  ;;  %v1126_v51 = vld [vmem:[%s4741_s28 + $0xb30] sm:$0xff]  ;;  %1123 = vst [vmem:[%s4749_s29 + $0x588] sm:$0xff] %v1122_v49 }
  0x6d   : > { %1125 = vst [vmem:[%s4749_s29 + $0x590] sm:$0xff] %v1124_v50  ;;  %1127 = vst [vmem:[%s4749_s29 + $0x598] sm:$0xff] %v1126_v51  ;;  %v1128_v52 = vld [vmem:[%s4741_s28 + $0xb40] sm:$0xff]  ;;  %v1130_v53 = vld [vmem:[%s4741_s28 + $0xb50] sm:$0xff] }
  0x6e   : > { %v1132_v54 = vld [vmem:[%s4741_s28 + $0xb60] sm:$0xff]  ;;  %1129 = vst [vmem:[%s4749_s29 + $0x5a0] sm:$0xff] %v1128_v52  ;;  %1131 = vst [vmem:[%s4749_s29 + $0x5a8] sm:$0xff] %v1130_v53  ;;  %v1134_v55 = vld [vmem:[%s4741_s28 + $0xb70] sm:$0xff] }
  0x6f   : > { %1133 = vst [vmem:[%s4749_s29 + $0x5b0] sm:$0xff] %v1132_v54  ;;  %v1136_v56 = vld [vmem:[%s4741_s28 + $0xb80] sm:$0xff]  ;;  %v1138_v57 = vld [vmem:[%s4741_s28 + $0xb90] sm:$0xff]  ;;  %1135 = vst [vmem:[%s4749_s29 + $0x5b8] sm:$0xff] %v1134_v55 }
  0x70   : > { %1137 = vst [vmem:[%s4749_s29 + $0x5c0] sm:$0xff] %v1136_v56  ;;  %1139 = vst [vmem:[%s4749_s29 + $0x5c8] sm:$0xff] %v1138_v57  ;;  %v1140_v58 = vld [vmem:[%s4741_s28 + $0xba0] sm:$0xff]  ;;  %v1142_v59 = vld [vmem:[%s4741_s28 + $0xbb0] sm:$0xff] }
  0x71   : > { %v1144_v60 = vld [vmem:[%s4741_s28 + $0xbc0] sm:$0xff]  ;;  %1141 = vst [vmem:[%s4749_s29 + $0x5d0] sm:$0xff] %v1140_v58  ;;  %1143 = vst [vmem:[%s4749_s29 + $0x5d8] sm:$0xff] %v1142_v59  ;;  %v1146_v61 = vld [vmem:[%s4741_s28 + $0xbd0] sm:$0xff] }
  0x72   : > { %1145 = vst [vmem:[%s4749_s29 + $0x5e0] sm:$0xff] %v1144_v60  ;;  %v1148_v62 = vld [vmem:[%s4741_s28 + $0xbe0] sm:$0xff]  ;;  %v1150_v63 = vld [vmem:[%s4741_s28 + $0xbf0] sm:$0xff]  ;;  %1147 = vst [vmem:[%s4749_s29 + $0x5e8] sm:$0xff] %v1146_v61 }
  0x73   : > { %1149 = vst [vmem:[%s4749_s29 + $0x5f0] sm:$0xff] %v1148_v62  ;;  %1151 = vst [vmem:[%s4749_s29 + $0x5f8] sm:$0xff] %v1150_v63  ;;  %v1152_v0 = vld [vmem:[%s4741_s28 + $0xc00] sm:$0xff]  ;;  %v1154_v1 = vld [vmem:[%s4741_s28 + $0xc10] sm:$0xff] }
  0x74   : > { %v1156_v2 = vld [vmem:[%s4741_s28 + $0xc20] sm:$0xff]  ;;  %1153 = vst [vmem:[%s4749_s29 + $0x600] sm:$0xff] %v1152_v0  ;;  %1155 = vst [vmem:[%s4749_s29 + $0x608] sm:$0xff] %v1154_v1  ;;  %v1158_v3 = vld [vmem:[%s4741_s28 + $0xc30] sm:$0xff] }
  0x75   : > { %1157 = vst [vmem:[%s4749_s29 + $0x610] sm:$0xff] %v1156_v2  ;;  %v1160_v4 = vld [vmem:[%s4741_s28 + $0xc40] sm:$0xff]  ;;  %v1162_v5 = vld [vmem:[%s4741_s28 + $0xc50] sm:$0xff]  ;;  %1159 = vst [vmem:[%s4749_s29 + $0x618] sm:$0xff] %v1158_v3 }
  0x76   : > { %1161 = vst [vmem:[%s4749_s29 + $0x620] sm:$0xff] %v1160_v4  ;;  %1163 = vst [vmem:[%s4749_s29 + $0x628] sm:$0xff] %v1162_v5  ;;  %v1164_v6 = vld [vmem:[%s4741_s28 + $0xc60] sm:$0xff]  ;;  %v1166_v7 = vld [vmem:[%s4741_s28 + $0xc70] sm:$0xff] }
  0x77   : > { %v1168_v8 = vld [vmem:[%s4741_s28 + $0xc80] sm:$0xff]  ;;  %1165 = vst [vmem:[%s4749_s29 + $0x630] sm:$0xff] %v1164_v6  ;;  %1167 = vst [vmem:[%s4749_s29 + $0x638] sm:$0xff] %v1166_v7  ;;  %v1170_v9 = vld [vmem:[%s4741_s28 + $0xc90] sm:$0xff] }
  0x78   : > { %1169 = vst [vmem:[%s4749_s29 + $0x640] sm:$0xff] %v1168_v8  ;;  %v1172_v10 = vld [vmem:[%s4741_s28 + $0xca0] sm:$0xff]  ;;  %v1174_v11 = vld [vmem:[%s4741_s28 + $0xcb0] sm:$0xff]  ;;  %1171 = vst [vmem:[%s4749_s29 + $0x648] sm:$0xff] %v1170_v9 }
  0x79   : > { %1173 = vst [vmem:[%s4749_s29 + $0x650] sm:$0xff] %v1172_v10  ;;  %1175 = vst [vmem:[%s4749_s29 + $0x658] sm:$0xff] %v1174_v11  ;;  %v1176_v12 = vld [vmem:[%s4741_s28 + $0xcc0] sm:$0xff]  ;;  %v1178_v13 = vld [vmem:[%s4741_s28 + $0xcd0] sm:$0xff] }
  0x7a   : > { %v1180_v14 = vld [vmem:[%s4741_s28 + $0xce0] sm:$0xff]  ;;  %1177 = vst [vmem:[%s4749_s29 + $0x660] sm:$0xff] %v1176_v12  ;;  %1179 = vst [vmem:[%s4749_s29 + $0x668] sm:$0xff] %v1178_v13  ;;  %v1182_v15 = vld [vmem:[%s4741_s28 + $0xcf0] sm:$0xff] }
  0x7b   : > { %1181 = vst [vmem:[%s4749_s29 + $0x670] sm:$0xff] %v1180_v14  ;;  %v1184_v16 = vld [vmem:[%s4741_s28 + $0xd00] sm:$0xff]  ;;  %v1186_v17 = vld [vmem:[%s4741_s28 + $0xd10] sm:$0xff]  ;;  %1183 = vst [vmem:[%s4749_s29 + $0x678] sm:$0xff] %v1182_v15 }
  0x7c   : > { %1185 = vst [vmem:[%s4749_s29 + $0x680] sm:$0xff] %v1184_v16  ;;  %1187 = vst [vmem:[%s4749_s29 + $0x688] sm:$0xff] %v1186_v17  ;;  %v1188_v18 = vld [vmem:[%s4741_s28 + $0xd20] sm:$0xff]  ;;  %v1190_v19 = vld [vmem:[%s4741_s28 + $0xd30] sm:$0xff] }
  0x7d   : > { %v1192_v20 = vld [vmem:[%s4741_s28 + $0xd40] sm:$0xff]  ;;  %1189 = vst [vmem:[%s4749_s29 + $0x690] sm:$0xff] %v1188_v18  ;;  %1191 = vst [vmem:[%s4749_s29 + $0x698] sm:$0xff] %v1190_v19  ;;  %v1194_v21 = vld [vmem:[%s4741_s28 + $0xd50] sm:$0xff] }
  0x7e   : > { %1193 = vst [vmem:[%s4749_s29 + $0x6a0] sm:$0xff] %v1192_v20  ;;  %v1196_v22 = vld [vmem:[%s4741_s28 + $0xd60] sm:$0xff]  ;;  %v1198_v23 = vld [vmem:[%s4741_s28 + $0xd70] sm:$0xff]  ;;  %1195 = vst [vmem:[%s4749_s29 + $0x6a8] sm:$0xff] %v1194_v21 }
  0x7f   : > { %1197 = vst [vmem:[%s4749_s29 + $0x6b0] sm:$0xff] %v1196_v22  ;;  %1199 = vst [vmem:[%s4749_s29 + $0x6b8] sm:$0xff] %v1198_v23  ;;  %v1200_v24 = vld [vmem:[%s4741_s28 + $0xd80] sm:$0xff]  ;;  %v1202_v25 = vld [vmem:[%s4741_s28 + $0xd90] sm:$0xff] }
  0x80   : > { %v1204_v26 = vld [vmem:[%s4741_s28 + $0xda0] sm:$0xff]  ;;  %1201 = vst [vmem:[%s4749_s29 + $0x6c0] sm:$0xff] %v1200_v24  ;;  %1203 = vst [vmem:[%s4749_s29 + $0x6c8] sm:$0xff] %v1202_v25  ;;  %v1206_v27 = vld [vmem:[%s4741_s28 + $0xdb0] sm:$0xff] }
  0x81   : > { %1205 = vst [vmem:[%s4749_s29 + $0x6d0] sm:$0xff] %v1204_v26  ;;  %v1208_v28 = vld [vmem:[%s4741_s28 + $0xdc0] sm:$0xff]  ;;  %v1210_v29 = vld [vmem:[%s4741_s28 + $0xdd0] sm:$0xff]  ;;  %1207 = vst [vmem:[%s4749_s29 + $0x6d8] sm:$0xff] %v1206_v27 }
  0x82   : > { %1209 = vst [vmem:[%s4749_s29 + $0x6e0] sm:$0xff] %v1208_v28  ;;  %1211 = vst [vmem:[%s4749_s29 + $0x6e8] sm:$0xff] %v1210_v29  ;;  %v1212_v30 = vld [vmem:[%s4741_s28 + $0xde0] sm:$0xff]  ;;  %v1214_v31 = vld [vmem:[%s4741_s28 + $0xdf0] sm:$0xff] }
  0x83   : > { %v1216_v32 = vld [vmem:[%s4741_s28 + $0xe00] sm:$0xff]  ;;  %1213 = vst [vmem:[%s4749_s29 + $0x6f0] sm:$0xff] %v1212_v30  ;;  %1215 = vst [vmem:[%s4749_s29 + $0x6f8] sm:$0xff] %v1214_v31  ;;  %v1218_v33 = vld [vmem:[%s4741_s28 + $0xe10] sm:$0xff] }
  0x84   : > { %1217 = vst [vmem:[%s4749_s29 + $0x700] sm:$0xff] %v1216_v32  ;;  %v1220_v34 = vld [vmem:[%s4741_s28 + $0xe20] sm:$0xff]  ;;  %v1222_v35 = vld [vmem:[%s4741_s28 + $0xe30] sm:$0xff]  ;;  %1219 = vst [vmem:[%s4749_s29 + $0x708] sm:$0xff] %v1218_v33 }
  0x85   : > { %1221 = vst [vmem:[%s4749_s29 + $0x710] sm:$0xff] %v1220_v34  ;;  %1223 = vst [vmem:[%s4749_s29 + $0x718] sm:$0xff] %v1222_v35  ;;  %v1224_v36 = vld [vmem:[%s4741_s28 + $0xe40] sm:$0xff]  ;;  %v1226_v37 = vld [vmem:[%s4741_s28 + $0xe50] sm:$0xff] }
  0x86   : > { %v1228_v38 = vld [vmem:[%s4741_s28 + $0xe60] sm:$0xff]  ;;  %1225 = vst [vmem:[%s4749_s29 + $0x720] sm:$0xff] %v1224_v36  ;;  %1227 = vst [vmem:[%s4749_s29 + $0x728] sm:$0xff] %v1226_v37  ;;  %v1230_v39 = vld [vmem:[%s4741_s28 + $0xe70] sm:$0xff] }
  0x87   : > { %1229 = vst [vmem:[%s4749_s29 + $0x730] sm:$0xff] %v1228_v38  ;;  %v1232_v40 = vld [vmem:[%s4741_s28 + $0xe80] sm:$0xff]  ;;  %v1234_v41 = vld [vmem:[%s4741_s28 + $0xe90] sm:$0xff]  ;;  %1231 = vst [vmem:[%s4749_s29 + $0x738] sm:$0xff] %v1230_v39 }
  0x88   : > { %1233 = vst [vmem:[%s4749_s29 + $0x740] sm:$0xff] %v1232_v40  ;;  %1235 = vst [vmem:[%s4749_s29 + $0x748] sm:$0xff] %v1234_v41  ;;  %v1236_v42 = vld [vmem:[%s4741_s28 + $0xea0] sm:$0xff]  ;;  %v1238_v43 = vld [vmem:[%s4741_s28 + $0xeb0] sm:$0xff] }
  0x89   : > { %v1240_v44 = vld [vmem:[%s4741_s28 + $0xec0] sm:$0xff]  ;;  %1237 = vst [vmem:[%s4749_s29 + $0x750] sm:$0xff] %v1236_v42  ;;  %1239 = vst [vmem:[%s4749_s29 + $0x758] sm:$0xff] %v1238_v43  ;;  %v1242_v45 = vld [vmem:[%s4741_s28 + $0xed0] sm:$0xff] }
  0x8a   : > { %1241 = vst [vmem:[%s4749_s29 + $0x760] sm:$0xff] %v1240_v44  ;;  %v1244_v46 = vld [vmem:[%s4741_s28 + $0xee0] sm:$0xff]  ;;  %v1246_v47 = vld [vmem:[%s4741_s28 + $0xef0] sm:$0xff]  ;;  %1243 = vst [vmem:[%s4749_s29 + $0x768] sm:$0xff] %v1242_v45 }
  0x8b   : > { %1245 = vst [vmem:[%s4749_s29 + $0x770] sm:$0xff] %v1244_v46  ;;  %1247 = vst [vmem:[%s4749_s29 + $0x778] sm:$0xff] %v1246_v47  ;;  %v1248_v48 = vld [vmem:[%s4741_s28 + $0xf00] sm:$0xff]  ;;  %v1250_v49 = vld [vmem:[%s4741_s28 + $0xf10] sm:$0xff] }
  0x8c   : > { %v1252_v50 = vld [vmem:[%s4741_s28 + $0xf20] sm:$0xff]  ;;  %1249 = vst [vmem:[%s4749_s29 + $0x780] sm:$0xff] %v1248_v48  ;;  %1251 = vst [vmem:[%s4749_s29 + $0x788] sm:$0xff] %v1250_v49  ;;  %v1254_v51 = vld [vmem:[%s4741_s28 + $0xf30] sm:$0xff] }
  0x8d   : > { %1253 = vst [vmem:[%s4749_s29 + $0x790] sm:$0xff] %v1252_v50  ;;  %v1256_v52 = vld [vmem:[%s4741_s28 + $0xf40] sm:$0xff]  ;;  %v1258_v53 = vld [vmem:[%s4741_s28 + $0xf50] sm:$0xff]  ;;  %1255 = vst [vmem:[%s4749_s29 + $0x798] sm:$0xff] %v1254_v51 }
  0x8e   : > { %1257 = vst [vmem:[%s4749_s29 + $0x7a0] sm:$0xff] %v1256_v52  ;;  %1259 = vst [vmem:[%s4749_s29 + $0x7a8] sm:$0xff] %v1258_v53  ;;  %v1260_v54 = vld [vmem:[%s4741_s28 + $0xf60] sm:$0xff]  ;;  %v1262_v55 = vld [vmem:[%s4741_s28 + $0xf70] sm:$0xff] }
  0x8f   : > { %v1264_v56 = vld [vmem:[%s4741_s28 + $0xf80] sm:$0xff]  ;;  %1261 = vst [vmem:[%s4749_s29 + $0x7b0] sm:$0xff] %v1260_v54  ;;  %1263 = vst [vmem:[%s4749_s29 + $0x7b8] sm:$0xff] %v1262_v55  ;;  %v1266_v57 = vld [vmem:[%s4741_s28 + $0xf90] sm:$0xff] }
  0x90   : > { %1265 = vst [vmem:[%s4749_s29 + $0x7c0] sm:$0xff] %v1264_v56  ;;  %v1268_v58 = vld [vmem:[%s4741_s28 + $0xfa0] sm:$0xff]  ;;  %v1270_v59 = vld [vmem:[%s4741_s28 + $0xfb0] sm:$0xff]  ;;  %1267 = vst [vmem:[%s4749_s29 + $0x7c8] sm:$0xff] %v1266_v57 }
  0x91   : > { %1269 = vst [vmem:[%s4749_s29 + $0x7d0] sm:$0xff] %v1268_v58  ;;  %1271 = vst [vmem:[%s4749_s29 + $0x7d8] sm:$0xff] %v1270_v59  ;;  %v1272_v60 = vld [vmem:[%s4741_s28 + $0xfc0] sm:$0xff]  ;;  %v1274_v61 = vld [vmem:[%s4741_s28 + $0xfd0] sm:$0xff] }
  0x92   : > { %v1276_v62 = vld [vmem:[%s4741_s28 + $0xfe0] sm:$0xff]  ;;  %1273 = vst [vmem:[%s4749_s29 + $0x7e0] sm:$0xff] %v1272_v60  ;;  %1275 = vst [vmem:[%s4749_s29 + $0x7e8] sm:$0xff] %v1274_v61  ;;  %v1278_v63 = vld [vmem:[%s4741_s28 + $0xff0] sm:$0xff] }
  0x93   : > { %1277 = vst [vmem:[%s4749_s29 + $0x7f0] sm:$0xff] %v1276_v62  ;;  %v1280_v0 = vld [vmem:[%s4741_s28 + $0x1000] sm:$0xff]  ;;  %v1282_v1 = vld [vmem:[%s4741_s28 + $0x1010] sm:$0xff]  ;;  %1279 = vst [vmem:[%s4749_s29 + $0x7f8] sm:$0xff] %v1278_v63 }
  0x94   : > { %1281 = vst [vmem:[%s4749_s29 + $0x800] sm:$0xff] %v1280_v0  ;;  %1283 = vst [vmem:[%s4749_s29 + $0x808] sm:$0xff] %v1282_v1  ;;  %v1284_v2 = vld [vmem:[%s4741_s28 + $0x1020] sm:$0xff]  ;;  %v1286_v3 = vld [vmem:[%s4741_s28 + $0x1030] sm:$0xff] }
  0x95   : > { %v1288_v4 = vld [vmem:[%s4741_s28 + $0x1040] sm:$0xff]  ;;  %1285 = vst [vmem:[%s4749_s29 + $0x810] sm:$0xff] %v1284_v2  ;;  %1287 = vst [vmem:[%s4749_s29 + $0x818] sm:$0xff] %v1286_v3  ;;  %v1290_v5 = vld [vmem:[%s4741_s28 + $0x1050] sm:$0xff] }
  0x96   : > { %1289 = vst [vmem:[%s4749_s29 + $0x820] sm:$0xff] %v1288_v4  ;;  %v1292_v6 = vld [vmem:[%s4741_s28 + $0x1060] sm:$0xff]  ;;  %v1294_v7 = vld [vmem:[%s4741_s28 + $0x1070] sm:$0xff]  ;;  %1291 = vst [vmem:[%s4749_s29 + $0x828] sm:$0xff] %v1290_v5 }
  0x97   : > { %1293 = vst [vmem:[%s4749_s29 + $0x830] sm:$0xff] %v1292_v6  ;;  %1295 = vst [vmem:[%s4749_s29 + $0x838] sm:$0xff] %v1294_v7  ;;  %v1296_v8 = vld [vmem:[%s4741_s28 + $0x1080] sm:$0xff]  ;;  %v1298_v9 = vld [vmem:[%s4741_s28 + $0x1090] sm:$0xff] }
  0x98   : > { %v1300_v10 = vld [vmem:[%s4741_s28 + $0x10a0] sm:$0xff]  ;;  %1297 = vst [vmem:[%s4749_s29 + $0x840] sm:$0xff] %v1296_v8  ;;  %1299 = vst [vmem:[%s4749_s29 + $0x848] sm:$0xff] %v1298_v9  ;;  %v1302_v11 = vld [vmem:[%s4741_s28 + $0x10b0] sm:$0xff] }
  0x99   : > { %1301 = vst [vmem:[%s4749_s29 + $0x850] sm:$0xff] %v1300_v10  ;;  %v1304_v12 = vld [vmem:[%s4741_s28 + $0x10c0] sm:$0xff]  ;;  %v1306_v13 = vld [vmem:[%s4741_s28 + $0x10d0] sm:$0xff]  ;;  %1303 = vst [vmem:[%s4749_s29 + $0x858] sm:$0xff] %v1302_v11 }
  0x9a   : > { %1305 = vst [vmem:[%s4749_s29 + $0x860] sm:$0xff] %v1304_v12  ;;  %1307 = vst [vmem:[%s4749_s29 + $0x868] sm:$0xff] %v1306_v13  ;;  %v1308_v14 = vld [vmem:[%s4741_s28 + $0x10e0] sm:$0xff]  ;;  %v1310_v15 = vld [vmem:[%s4741_s28 + $0x10f0] sm:$0xff] }
  0x9b   : > { %v1312_v16 = vld [vmem:[%s4741_s28 + $0x1100] sm:$0xff]  ;;  %1309 = vst [vmem:[%s4749_s29 + $0x870] sm:$0xff] %v1308_v14  ;;  %1311 = vst [vmem:[%s4749_s29 + $0x878] sm:$0xff] %v1310_v15  ;;  %v1314_v17 = vld [vmem:[%s4741_s28 + $0x1110] sm:$0xff] }
  0x9c   : > { %1313 = vst [vmem:[%s4749_s29 + $0x880] sm:$0xff] %v1312_v16  ;;  %v1316_v18 = vld [vmem:[%s4741_s28 + $0x1120] sm:$0xff]  ;;  %v1318_v19 = vld [vmem:[%s4741_s28 + $0x1130] sm:$0xff]  ;;  %1315 = vst [vmem:[%s4749_s29 + $0x888] sm:$0xff] %v1314_v17 }
  0x9d   : > { %1317 = vst [vmem:[%s4749_s29 + $0x890] sm:$0xff] %v1316_v18  ;;  %1319 = vst [vmem:[%s4749_s29 + $0x898] sm:$0xff] %v1318_v19  ;;  %v1320_v20 = vld [vmem:[%s4741_s28 + $0x1140] sm:$0xff]  ;;  %v1322_v21 = vld [vmem:[%s4741_s28 + $0x1150] sm:$0xff] }
  0x9e   : > { %v1324_v22 = vld [vmem:[%s4741_s28 + $0x1160] sm:$0xff]  ;;  %1321 = vst [vmem:[%s4749_s29 + $0x8a0] sm:$0xff] %v1320_v20  ;;  %1323 = vst [vmem:[%s4749_s29 + $0x8a8] sm:$0xff] %v1322_v21  ;;  %v1326_v23 = vld [vmem:[%s4741_s28 + $0x1170] sm:$0xff] }
  0x9f   : > { %1325 = vst [vmem:[%s4749_s29 + $0x8b0] sm:$0xff] %v1324_v22  ;;  %v1328_v24 = vld [vmem:[%s4741_s28 + $0x1180] sm:$0xff]  ;;  %v1330_v25 = vld [vmem:[%s4741_s28 + $0x1190] sm:$0xff]  ;;  %1327 = vst [vmem:[%s4749_s29 + $0x8b8] sm:$0xff] %v1326_v23 }
  0xa0   : > { %1329 = vst [vmem:[%s4749_s29 + $0x8c0] sm:$0xff] %v1328_v24  ;;  %1331 = vst [vmem:[%s4749_s29 + $0x8c8] sm:$0xff] %v1330_v25  ;;  %v1332_v26 = vld [vmem:[%s4741_s28 + $0x11a0] sm:$0xff]  ;;  %v1334_v27 = vld [vmem:[%s4741_s28 + $0x11b0] sm:$0xff] }
  0xa1   : > { %v1336_v28 = vld [vmem:[%s4741_s28 + $0x11c0] sm:$0xff]  ;;  %1333 = vst [vmem:[%s4749_s29 + $0x8d0] sm:$0xff] %v1332_v26  ;;  %1335 = vst [vmem:[%s4749_s29 + $0x8d8] sm:$0xff] %v1334_v27  ;;  %v1338_v29 = vld [vmem:[%s4741_s28 + $0x11d0] sm:$0xff] }
  0xa2   : > { %1337 = vst [vmem:[%s4749_s29 + $0x8e0] sm:$0xff] %v1336_v28  ;;  %v1340_v30 = vld [vmem:[%s4741_s28 + $0x11e0] sm:$0xff]  ;;  %v1342_v31 = vld [vmem:[%s4741_s28 + $0x11f0] sm:$0xff]  ;;  %1339 = vst [vmem:[%s4749_s29 + $0x8e8] sm:$0xff] %v1338_v29 }
  0xa3   : > { %1341 = vst [vmem:[%s4749_s29 + $0x8f0] sm:$0xff] %v1340_v30  ;;  %1343 = vst [vmem:[%s4749_s29 + $0x8f8] sm:$0xff] %v1342_v31 }
  0xa4 PF: > { %p3812_p8 = scmp.ge.s32.totalorder %s4671_s16, 1  ;;  %p1356_p9 = scmp.lt.s32.totalorder %s4671_s16, 3 }
  0xa6   : > { %p1357_p10 = pnand %p3812_p8, %p1356_p9 }
  0xa7   : > { %s1363_s30 = sand.u32 (!%p1357_p10), 1, %s4655_s12   ;;  %s3814_s7 = sshll.u32 (!%p1357_p10), %s4663_s14, 1 }
  0xa8   : > { %1360 = sbr.rel (%p1357_p10) target bundleno = 708 (0x2c4), region = 66  ;;  %p1404_p11 = scmp.lt.s32.totalorder (!%p1357_p10), %s3814_s7, 3 }
  0xa9   : > { %s4133_s4 = smul.u32 (!%p1357_p10), 2304, %s1363_s30  ;;  %s3813_s11 = sshll.u32 (!%p1357_p10), %s1363_s30, 4 }
  0xaa   : > { %s1394_s18 = scalar_lea.vmem (!%p1357_p10), [#allocation3], %s3813_s11 }
  0xab   : > { %s5332_s9 = scalar_lea.vmem (!%p1357_p10), [#allocation2], %s4133_s4 }
  0xad   : > { %v4271_v32 = vld [vmem:[%s5697_s0 + $0x4] ss:$72 sps:$4 sm:$0xff]   ;;  %v4174_v34 = vld [vmem:[%s5332_s9 + $0x74] ss:$8 sps:$4 sm:$0xff]   ;;  %v4176_v35 = vld [vmem:[%s5332_s9 + $0x70] ss:$8 sps:$4 sm:$0xff]  }
  0xae   : > { %v4278_v33 = vld [vmem:[%s5697_s0 + $0xc] ss:$72 sps:$4 sm:$0xff]   ;;  %3290 = vmatprep.mubr.bf16.mxu0 %v4271_v32  ;;  %3258 = vmatprep.subr.bf16.mxu0 %v4174_v34  ;;  %v4179_v37 = vld [vmem:[%s5332_s9 + $0x170] ss:$8 sps:$4 sm:$0xff]   ;;  %v4182_v39 = vld [vmem:[%s5332_s9 + $0x60] ss:$8 sps:$4 sm:$0xff]  }
  0xaf   : > { %3333 = vmatprep.mubr.bf16.mxu1 %v4278_v33  ;;  %v4177_v36 = vld [vmem:[%s5332_s9 + $0x174] ss:$8 sps:$4 sm:$0xff]   ;;  %3259 = vmatpush1.bf16.msra.mxu0 %v4176_v35  ;;  %v4180_v38 = vld [vmem:[%s5332_s9 + $0x64] ss:$8 sps:$4 sm:$0xff]   ;;  %v4185_v41 = vld [vmem:[%s5332_s9 + $0x160] ss:$8 sps:$4 sm:$0xff]  }
  0xb0   : > { %3301 = vmatprep.subr.bf16.mxu1 %v4177_v36  ;;  %v4183_v40 = vld [vmem:[%s5332_s9 + $0x164] ss:$8 sps:$4 sm:$0xff]   ;;  %3260 = vmatprep.subr.bf16.mxu0 %v4180_v38  ;;  %v4186_v42 = vld [vmem:[%s5332_s9 + $0x54] ss:$8 sps:$4 sm:$0xff]   ;;  %v4188_v43 = vld [vmem:[%s5332_s9 + $0x50] ss:$8 sps:$4 sm:$0xff]  }
  0xb1   : > { %3302 = vmatpush1.bf16.msra.mxu1 %v4179_v37  ;;  %v4189_v44 = vld [vmem:[%s5332_s9 + $0x154] ss:$8 sps:$4 sm:$0xff]   ;;  %v4192_v45 = vld [vmem:[%s5332_s9 + $0x44] ss:$8 sps:$4 sm:$0xff]   ;;  %v4191_v46 = vld [vmem:[%s5332_s9 + $0x150] ss:$8 sps:$4 sm:$0xff]  }
  0xb2   : > { %3303 = vmatprep.subr.bf16.mxu1 %v4183_v40  ;;  %v4195_v47 = vld [vmem:[%s5332_s9 + $0x144] ss:$8 sps:$4 sm:$0xff]   ;;  %v4194_v48 = vld [vmem:[%s5332_s9 + $0x40] ss:$8 sps:$4 sm:$0xff]   ;;  %v4198_v49 = vld [vmem:[%s5332_s9 + $0x34] ss:$8 sps:$4 sm:$0xff]  }
  0xb3   : > { %3261 = vmatpush1.bf16.msra.mxu0 %v4182_v39  ;;  %v4197_v50 = vld [vmem:[%s5332_s9 + $0x140] ss:$8 sps:$4 sm:$0xff]   ;;  %v4201_v51 = vld [vmem:[%s5332_s9 + $0x134] ss:$8 sps:$4 sm:$0xff]   ;;  %v4200_v52 = vld [vmem:[%s5332_s9 + $0x30] ss:$8 sps:$4 sm:$0xff]  }
  0xb4   : > { %3262 = vmatprep.subr.bf16.mxu0 %v4186_v42  ;;  %v4204_v53 = vld [vmem:[%s5332_s9 + $0x24] ss:$8 sps:$4 sm:$0xff]   ;;  %v4203_v54 = vld [vmem:[%s5332_s9 + $0x130] ss:$8 sps:$4 sm:$0xff]   ;;  %v4206_v56 = vld [vmem:[%s5332_s9 + $0x20] ss:$8 sps:$4 sm:$0xff]  }
  0xb5   : > { %3304 = vmatpush1.bf16.msra.mxu1 %v4185_v41  ;;  %v4207_v55 = vld [vmem:[%s5332_s9 + $0x124] ss:$8 sps:$4 sm:$0xff]   ;;  %v4210_v57 = vld [vmem:[%s5332_s9 + $0x14] ss:$8 sps:$4 sm:$0xff]   ;;  %v4209_v58 = vld [vmem:[%s5332_s9 + $0x120] ss:$8 sps:$4 sm:$0xff]  }
  0xb6   : > { %3305 = vmatprep.subr.bf16.mxu1 %v4189_v44  ;;  %v4213_v59 = vld [vmem:[%s5332_s9 + $0x114] ss:$8 sps:$4 sm:$0xff]   ;;  %v4212_v60 = vld [vmem:[%s5332_s9 + $0x10] ss:$8 sps:$4 sm:$0xff]   ;;  %v4216_v61 = vld [vmem:[%s5332_s9 + $0x4] ss:$8 sps:$4 sm:$0xff]  }
  0xb7   : > { %3263 = vmatpush1.bf16.msra.mxu0 %v4188_v43  ;;  %v4215_v62 = vld [vmem:[%s5332_s9 + $0x110] ss:$8 sps:$4 sm:$0xff]   ;;  %v4219_v63 = vld [vmem:[%s5332_s9 + $0x104] ss:$8 sps:$4 sm:$0xff]   ;;  %v4218_v0 = vld [vmem:[%s5332_s9] ss:$8 sps:$4 sm:$0xff]  }
  0xb8   : > { %3264 = vmatprep.subr.bf16.mxu0 %v4192_v45  ;;  %v4222_v1 = vld [vmem:[%s5332_s9 + $0xf4] ss:$8 sps:$4 sm:$0xff]   ;;  %v4221_v2 = vld [vmem:[%s5332_s9 + $0x100] ss:$8 sps:$4 sm:$0xff]   ;;  %v4224_v4 = vld [vmem:[%s5332_s9 + $0xf0] ss:$8 sps:$4 sm:$0xff]  }
  0xb9   : > { %3306 = vmatpush1.bf16.msra.mxu1 %v4191_v46  ;;  %v4225_v3 = vld [vmem:[%s5332_s9 + $0x1f4] ss:$8 sps:$4 sm:$0xff]   ;;  %v4228_v5 = vld [vmem:[%s5332_s9 + $0xe4] ss:$8 sps:$4 sm:$0xff]   ;;  %v4227_v6 = vld [vmem:[%s5332_s9 + $0x1f0] ss:$8 sps:$4 sm:$0xff]  }
  0xba   : > { %3307 = vmatprep.subr.bf16.mxu1 %v4195_v47  ;;  %v4231_v7 = vld [vmem:[%s5332_s9 + $0x1e4] ss:$8 sps:$4 sm:$0xff]   ;;  %v4230_v8 = vld [vmem:[%s5332_s9 + $0xe0] ss:$8 sps:$4 sm:$0xff]   ;;  %v4234_v9 = vld [vmem:[%s5332_s9 + $0xd4] ss:$8 sps:$4 sm:$0xff]  }
  0xbb   : > { %3265 = vmatpush1.bf16.msra.mxu0 %v4194_v48  ;;  %v4233_v10 = vld [vmem:[%s5332_s9 + $0x1e0] ss:$8 sps:$4 sm:$0xff]   ;;  %v4237_v11 = vld [vmem:[%s5332_s9 + $0x1d4] ss:$8 sps:$4 sm:$0xff]   ;;  %v4236_v12 = vld [vmem:[%s5332_s9 + $0xd0] ss:$8 sps:$4 sm:$0xff]  }
  0xbc   : > { %3266 = vmatprep.subr.bf16.mxu0 %v4198_v49  ;;  %v4240_v13 = vld [vmem:[%s5332_s9 + $0xc4] ss:$8 sps:$4 sm:$0xff]   ;;  %v4239_v14 = vld [vmem:[%s5332_s9 + $0x1d0] ss:$8 sps:$4 sm:$0xff]   ;;  %v4242_v16 = vld [vmem:[%s5332_s9 + $0xc0] ss:$8 sps:$4 sm:$0xff]  }
  0xbd   : > { %3308 = vmatpush1.bf16.msra.mxu1 %v4197_v50  ;;  %v4243_v15 = vld [vmem:[%s5332_s9 + $0x1c4] ss:$8 sps:$4 sm:$0xff]   ;;  %v4246_v17 = vld [vmem:[%s5332_s9 + $0xb4] ss:$8 sps:$4 sm:$0xff]   ;;  %v4245_v18 = vld [vmem:[%s5332_s9 + $0x1c0] ss:$8 sps:$4 sm:$0xff]  }
  0xbe   : > { %3309 = vmatprep.subr.bf16.mxu1 %v4201_v51  ;;  %v4249_v19 = vld [vmem:[%s5332_s9 + $0x1b4] ss:$8 sps:$4 sm:$0xff]   ;;  %v4248_v20 = vld [vmem:[%s5332_s9 + $0xb0] ss:$8 sps:$4 sm:$0xff]   ;;  %v4252_v21 = vld [vmem:[%s5332_s9 + $0xa4] ss:$8 sps:$4 sm:$0xff]  }
  0xbf   : > { %3267 = vmatpush1.bf16.msra.mxu0 %v4200_v52  ;;  %v4251_v22 = vld [vmem:[%s5332_s9 + $0x1b0] ss:$8 sps:$4 sm:$0xff]   ;;  %v4255_v23 = vld [vmem:[%s5332_s9 + $0x1a4] ss:$8 sps:$4 sm:$0xff]   ;;  %v4254_v24 = vld [vmem:[%s5332_s9 + $0xa0] ss:$8 sps:$4 sm:$0xff]  }
  0xc0   : > { %3268 = vmatprep.subr.bf16.mxu0 %v4204_v53  ;;  %v4258_v25 = vld [vmem:[%s5332_s9 + $0x94] ss:$8 sps:$4 sm:$0xff]   ;;  %v4257_v26 = vld [vmem:[%s5332_s9 + $0x1a0] ss:$8 sps:$4 sm:$0xff]   ;;  %v4260_v28 = vld [vmem:[%s5332_s9 + $0x90] ss:$8 sps:$4 sm:$0xff]  }
  0xc1   : > { %3310 = vmatpush1.bf16.msra.mxu1 %v4203_v54  ;;  %v4261_v27 = vld [vmem:[%s5332_s9 + $0x194] ss:$8 sps:$4 sm:$0xff]   ;;  %v4264_v29 = vld [vmem:[%s5332_s9 + $0x84] ss:$8 sps:$4 sm:$0xff]   ;;  %v4263_v30 = vld [vmem:[%s5332_s9 + $0x190] ss:$8 sps:$4 sm:$0xff]  }
  0xc2   : > { %3311 = vmatprep.subr.bf16.mxu1 %v4207_v55  ;;  %v4267_v31 = vld [vmem:[%s5332_s9 + $0x184] ss:$8 sps:$4 sm:$0xff]   ;;  %v4266_v32 = vld [vmem:[%s5332_s9 + $0x80] ss:$8 sps:$4 sm:$0xff]   ;;  %v4275_v34 = vld [vmem:[%s5332_s9 + $0x274] ss:$8 sps:$4 sm:$0xff]  }
  0xc3   : > { %3269 = vmatpush1.bf16.msra.mxu0 %v4206_v56  ;;  %v4269_v33 = vld [vmem:[%s5697_s0] ss:$72 sps:$4 sm:$0xff]   ;;  %v4281_v37 = vld [vmem:[%s5332_s9 + $0x374] ss:$8 sps:$4 sm:$0xff]   ;;  %v4273_v38 = vld [vmem:[%s5332_s9 + $0x270] ss:$8 sps:$4 sm:$0xff]  }
  0xc4   : > { %3270 = vmatprep.subr.bf16.mxu0 %v4210_v57  ;;  %v4272_v35 = vld [vmem:[%s5332_s9 + $0x180] ss:$8 sps:$4 sm:$0xff]   ;;  %v4374_v39 = vld [vmem:[%s5697_s0 + $0x14] ss:$72 sps:$4 sm:$0xff]   ;;  %v4284_v40 = vld [vmem:[%s5332_s9 + $0x264] ss:$8 sps:$4 sm:$0xff]  }
  0xc5   : > { %3312 = vmatpush1.bf16.msra.mxu1 %v4209_v58  ;;  %v4276_v36 = vld [vmem:[%s5697_s0 + $0x8] ss:$72 sps:$4 sm:$0xff]   ;;  %v4287_v42 = vld [vmem:[%s5332_s9 + $0x364] ss:$8 sps:$4 sm:$0xff]   ;;  %v4290_v44 = vld [vmem:[%s5332_s9 + $0x254] ss:$8 sps:$4 sm:$0xff]  }
  0xc6   : > { %3313 = vmatprep.subr.bf16.mxu1 %v4213_v59  ;;  %v4279_v41 = vld [vmem:[%s5332_s9 + $0x370] ss:$8 sps:$4 sm:$0xff]   ;;  %v4282_v43 = vld [vmem:[%s5332_s9 + $0x260] ss:$8 sps:$4 sm:$0xff]   ;;  %v4293_v46 = vld [vmem:[%s5332_s9 + $0x354] ss:$8 sps:$4 sm:$0xff]  }
  0xc7   : > { %3271 = vmatpush1.bf16.msra.mxu0 %v4212_v60  ;;  %v4285_v45 = vld [vmem:[%s5332_s9 + $0x360] ss:$8 sps:$4 sm:$0xff]   ;;  %v4288_v47 = vld [vmem:[%s5332_s9 + $0x250] ss:$8 sps:$4 sm:$0xff]   ;;  %v4296_v48 = vld [vmem:[%s5332_s9 + $0x244] ss:$8 sps:$4 sm:$0xff]  }
  0xc8   : > { %3272 = vmatprep.subr.bf16.mxu0 %v4216_v61  ;;  %v4291_v49 = vld [vmem:[%s5332_s9 + $0x350] ss:$8 sps:$4 sm:$0xff]   ;;  %v4299_v50 = vld [vmem:[%s5332_s9 + $0x344] ss:$8 sps:$4 sm:$0xff]   ;;  %v4294_v51 = vld [vmem:[%s5332_s9 + $0x240] ss:$8 sps:$4 sm:$0xff]  }
  0xc9   : > { %3314 = vmatpush1.bf16.msra.mxu1 %v4215_v62  ;;  %v4302_v52 = vld [vmem:[%s5332_s9 + $0x234] ss:$8 sps:$4 sm:$0xff]   ;;  %v4297_v53 = vld [vmem:[%s5332_s9 + $0x340] ss:$8 sps:$4 sm:$0xff]   ;;  %v4300_v55 = vld [vmem:[%s5332_s9 + $0x230] ss:$8 sps:$4 sm:$0xff]  }
  0xca   : > { %3315 = vmatprep.subr.bf16.mxu1 %v4219_v63  ;;  %v4305_v54 = vld [vmem:[%s5332_s9 + $0x334] ss:$8 sps:$4 sm:$0xff]   ;;  %v4308_v56 = vld [vmem:[%s5332_s9 + $0x224] ss:$8 sps:$4 sm:$0xff]   ;;  %v4303_v57 = vld [vmem:[%s5332_s9 + $0x330] ss:$8 sps:$4 sm:$0xff]  }
  0xcb   : > { %3273 = vmatpush1.bf16.msra.mxu0 %v4218_v0  ;;  %v4311_v58 = vld [vmem:[%s5332_s9 + $0x324] ss:$8 sps:$4 sm:$0xff]   ;;  %v4306_v59 = vld [vmem:[%s5332_s9 + $0x220] ss:$8 sps:$4 sm:$0xff]   ;;  %v4314_v60 = vld [vmem:[%s5332_s9 + $0x214] ss:$8 sps:$4 sm:$0xff]  }
  0xcc   : > { %3274 = vmatprep.subr.bf16.mxu0 %v4222_v1  ;;  %v4309_v61 = vld [vmem:[%s5332_s9 + $0x320] ss:$8 sps:$4 sm:$0xff]   ;;  %v4317_v62 = vld [vmem:[%s5332_s9 + $0x314] ss:$8 sps:$4 sm:$0xff]   ;;  %v4312_v63 = vld [vmem:[%s5332_s9 + $0x210] ss:$8 sps:$4 sm:$0xff]  }
  0xcd   : > { %3316 = vmatpush1.bf16.msra.mxu1 %v4221_v2  ;;  %v4380_v0 = vld [vmem:[%s5697_s0 + $0x1c] ss:$72 sps:$4 sm:$0xff]   ;;  %v4315_v2 = vld [vmem:[%s5332_s9 + $0x310] ss:$8 sps:$4 sm:$0xff]   ;;  %s5709_s7 = smov (!%p1404_p11, %s3814_s7), 3  ;;  %s4131_s12 = sshll.u32 (%p4728_p6), %s4663_s14, 3 }
  0xce   : > { %3317 = vmatprep.subr.bf16.mxu1 %v4225_v3  ;;  %v4320_v1 = vld [vmem:[%s5332_s9 + $0x204] ss:$8 sps:$4 sm:$0xff]   ;;  %s1406_s10 = scalar_lea.vmem %s5699_s2, %s5709_s7  ;;  %s3675_s20 = scalar_lea.vmem (%p4728_p6), %s5700_s3, %s4131_s12 }
  0xcf   : > { %3275 = vmatpush2.bf16.msra.mxu0 %v4224_v4  ;;  %v4323_v3 = vld [vmem:[%s5332_s9 + $0x304] ss:$8 sps:$4 sm:$0xff]   ;;  %v4318_v4 = vld [vmem:[%s5332_s9 + $0x200] ss:$8 sps:$4 sm:$0xff]  }
  0xd0   : > { %3276 = vmatprep.subr.bf16.mxu0 %v4228_v5  ;;  %v4326_v5 = vld [vmem:[%s5332_s9 + $0x2f4] ss:$8 sps:$4 sm:$0xff]  }
  0xd1   : > { %3318 = vmatpush2.bf16.msra.mxu1 %v4227_v6  ;;  %v4321_v6 = vld [vmem:[%s5332_s9 + $0x300] ss:$8 sps:$4 sm:$0xff]  }
  0xd2   : > { %3319 = vmatprep.subr.bf16.mxu1 %v4231_v7  ;;  %v4329_v7 = vld [vmem:[%s5332_s9 + $0x3f4] ss:$8 sps:$4 sm:$0xff]  }
  0xd3   : > { %3277 = vmatpush2.bf16.msra.mxu0 %v4230_v8  ;;  %v4324_v8 = vld [vmem:[%s5332_s9 + $0x2f0] ss:$8 sps:$4 sm:$0xff]  }
  0xd4   : > { %3278 = vmatprep.subr.bf16.mxu0 %v4234_v9  ;;  %v4332_v9 = vld [vmem:[%s5332_s9 + $0x2e4] ss:$8 sps:$4 sm:$0xff]  }
  0xd5   : > { %3320 = vmatpush2.bf16.msra.mxu1 %v4233_v10  ;;  %v4327_v10 = vld [vmem:[%s5332_s9 + $0x3f0] ss:$8 sps:$4 sm:$0xff]  }
  0xd6   : > { %3321 = vmatprep.subr.bf16.mxu1 %v4237_v11  ;;  %v4335_v11 = vld [vmem:[%s5332_s9 + $0x3e4] ss:$8 sps:$4 sm:$0xff]  }
  0xd7   : > { %3279 = vmatpush2.bf16.msra.mxu0 %v4236_v12  ;;  %v4330_v12 = vld [vmem:[%s5332_s9 + $0x2e0] ss:$8 sps:$4 sm:$0xff]  }
  0xd8   : > { %3280 = vmatprep.subr.bf16.mxu0 %v4240_v13  ;;  %v4338_v13 = vld [vmem:[%s5332_s9 + $0x2d4] ss:$8 sps:$4 sm:$0xff]  }
  0xd9   : > { %3322 = vmatpush2.bf16.msra.mxu1 %v4239_v14  ;;  %v4333_v14 = vld [vmem:[%s5332_s9 + $0x3e0] ss:$8 sps:$4 sm:$0xff]  }
  0xda   : > { %3323 = vmatprep.subr.bf16.mxu1 %v4243_v15  ;;  %v4341_v15 = vld [vmem:[%s5332_s9 + $0x3d4] ss:$8 sps:$4 sm:$0xff]  }
  0xdb   : > { %3281 = vmatpush2.bf16.msra.mxu0 %v4242_v16  ;;  %v4336_v16 = vld [vmem:[%s5332_s9 + $0x2d0] ss:$8 sps:$4 sm:$0xff]  }
  0xdc   : > { %3282 = vmatprep.subr.bf16.mxu0 %v4246_v17  ;;  %v4344_v17 = vld [vmem:[%s5332_s9 + $0x2c4] ss:$8 sps:$4 sm:$0xff]  }
  0xdd   : > { %3324 = vmatpush2.bf16.msra.mxu1 %v4245_v18  ;;  %v4339_v18 = vld [vmem:[%s5332_s9 + $0x3d0] ss:$8 sps:$4 sm:$0xff]  }
  0xde   : > { %3325 = vmatprep.subr.bf16.mxu1 %v4249_v19  ;;  %v4347_v19 = vld [vmem:[%s5332_s9 + $0x3c4] ss:$8 sps:$4 sm:$0xff]  }
  0xdf   : > { %3283 = vmatpush2.bf16.msra.mxu0 %v4248_v20  ;;  %v4342_v20 = vld [vmem:[%s5332_s9 + $0x2c0] ss:$8 sps:$4 sm:$0xff]  }
  0xe0   : > { %3284 = vmatprep.subr.bf16.mxu0 %v4252_v21  ;;  %v4350_v21 = vld [vmem:[%s5332_s9 + $0x2b4] ss:$8 sps:$4 sm:$0xff]  }
  0xe1   : > { %3326 = vmatpush2.bf16.msra.mxu1 %v4251_v22  ;;  %v4345_v22 = vld [vmem:[%s5332_s9 + $0x3c0] ss:$8 sps:$4 sm:$0xff]  }
  0xe2   : > { %3327 = vmatprep.subr.bf16.mxu1 %v4255_v23  ;;  %v4353_v23 = vld [vmem:[%s5332_s9 + $0x3b4] ss:$8 sps:$4 sm:$0xff]  }
  0xe3   : > { %3285 = vmatpush2.bf16.msra.mxu0 %v4254_v24  ;;  %v4348_v24 = vld [vmem:[%s5332_s9 + $0x2b0] ss:$8 sps:$4 sm:$0xff]  }
  0xe4   : > { %3286 = vmatprep.subr.bf16.mxu0 %v4258_v25  ;;  %v4356_v25 = vld [vmem:[%s5332_s9 + $0x2a4] ss:$8 sps:$4 sm:$0xff]  }
  0xe5   : > { %3328 = vmatpush2.bf16.msra.mxu1 %v4257_v26  ;;  %v4351_v26 = vld [vmem:[%s5332_s9 + $0x3b0] ss:$8 sps:$4 sm:$0xff]  }
  0xe6   : > { %3329 = vmatprep.subr.bf16.mxu1 %v4261_v27  ;;  %v4359_v27 = vld [vmem:[%s5332_s9 + $0x3a4] ss:$8 sps:$4 sm:$0xff]  }
  0xe7   : > { %3287 = vmatpush2.bf16.msra.mxu0 %v4260_v28  ;;  %v4354_v28 = vld [vmem:[%s5332_s9 + $0x2a0] ss:$8 sps:$4 sm:$0xff]  }
  0xe8   : > { %3288 = vmatprep.subr.bf16.mxu0 %v4264_v29  ;;  %v4362_v29 = vld [vmem:[%s5332_s9 + $0x294] ss:$8 sps:$4 sm:$0xff]  }
  0xe9   : > { %3330 = vmatpush2.bf16.msra.mxu1 %v4263_v30  ;;  %v4357_v30 = vld [vmem:[%s5332_s9 + $0x3a0] ss:$8 sps:$4 sm:$0xff]  }
  0xea   : > { %3331 = vmatprep.subr.bf16.mxu1 %v4267_v31  ;;  %v4365_v31 = vld [vmem:[%s5332_s9 + $0x394] ss:$8 sps:$4 sm:$0xff]  }
  0xeb   : > { %3289 = vmatpush2.bf16.msra.mxu0 %v4266_v32  ;;  %v4360_v32 = vld [vmem:[%s5332_s9 + $0x290] ss:$8 sps:$4 sm:$0xff]  }
  0xec   : > { %3344 = vmatprep.subr.bf16.mxu0 %v4275_v34  ;;  %v4363_v34 = vld [vmem:[%s5332_s9 + $0x390] ss:$8 sps:$4 sm:$0xff]  }
  0xed   : > { %3332 = vmatpush2.bf16.msra.mxu1 %v4272_v35  ;;  %v4371_v35 = vld [vmem:[%s5332_s9 + $0x384] ss:$8 sps:$4 sm:$0xff]  }
  0xee   : > { %3291 = vmatmul.mubr.bf16.vlgmr.msra.gmra.mxu0 %v4269_v33  ;;  %3387 = vmatprep.subr.bf16.mxu1 %v4281_v37  ;;  %v4368_v33 = vld [vmem:[%s5332_s9 + $0x284] ss:$8 sps:$4 sm:$0xff]   ;;  %v4377_v37 = vld [vmem:[%s5332_s9 + $0x474] ss:$8 sps:$4 sm:$0xff]  }
  0xef   : > { %3345 = vmatpush1.bf16.msra.mxu0 %v4273_v38  ;;  %3376 = vmatprep.mubr.bf16.mxu0 %v4374_v39  ;;  %v4369_v38 = vld [vmem:[%s5332_s9 + $0x380] ss:$8 sps:$4 sm:$0xff]   ;;  %v4372_v39 = vld [vmem:[%s5697_s0 + $0x10] ss:$72 sps:$4 sm:$0xff]  }
  0xf0   : > { %3334 = vmatmul.mubr.bf16.vlgmr.msra.gmra.mxu1 %v4276_v36  ;;  %3346 = vmatprep.subr.bf16.mxu0 %v4284_v40  ;;  %v4366_v36 = vld [vmem:[%s5332_s9 + $0x280] ss:$8 sps:$4 sm:$0xff]   ;;  %v4383_v40 = vld [vmem:[%s5332_s9 + $0x574] ss:$8 sps:$4 sm:$0xff]  }
  0xf1   : > { %3388 = vmatpush1.bf16.msra.mxu1 %v4279_v41  ;;  %3419 = vmatprep.mubr.bf16.mxu1 %v4380_v0  ;;  %v4375_v41 = vld [vmem:[%s5332_s9 + $0x470] ss:$8 sps:$4 sm:$0xff]   ;;  %v4408_v0 = vld [vmem:[%s5332_s9 + $0x420] ss:$8 sps:$4 sm:$0xff]  }
  0xf2   : > { %3389 = vmatprep.subr.bf16.mxu1 %v4287_v42  ;;  %v4378_v42 = vld [vmem:[%s5697_s0 + $0x18] ss:$72 sps:$4 sm:$0xff]  }
  0xf3   : > { %3347 = vmatpush1.bf16.msra.mxu0 %v4282_v43  ;;  %v4386_v43 = vld [vmem:[%s5332_s9 + $0x464] ss:$8 sps:$4 sm:$0xff]  }
  0xf4   : > { %3348 = vmatprep.subr.bf16.mxu0 %v4290_v44  ;;  %v4381_v44 = vld [vmem:[%s5332_s9 + $0x570] ss:$8 sps:$4 sm:$0xff]  }
  0xf5   : > { %3390 = vmatpush1.bf16.msra.mxu1 %v4285_v45  ;;  %v4389_v45 = vld [vmem:[%s5332_s9 + $0x564] ss:$8 sps:$4 sm:$0xff]  }
  0xf6   : > { %3391 = vmatprep.subr.bf16.mxu1 %v4293_v46  ;;  %v4476_v46 = vld [vmem:[%s5697_s0 + $0x24] ss:$72 sps:$4 sm:$0xff]  }
  0xf7   : > { %3349 = vmatpush1.bf16.msra.mxu0 %v4288_v47  ;;  %v4384_v47 = vld [vmem:[%s5332_s9 + $0x460] ss:$8 sps:$4 sm:$0xff]  }
  0xf8   : > { %3350 = vmatprep.subr.bf16.mxu0 %v4296_v48  ;;  %v4387_v48 = vld [vmem:[%s5332_s9 + $0x560] ss:$8 sps:$4 sm:$0xff]  }
  0xf9   : > { %3392 = vmatpush1.bf16.msra.mxu1 %v4291_v49  ;;  %v4392_v49 = vld [vmem:[%s5332_s9 + $0x454] ss:$8 sps:$4 sm:$0xff]  }
  0xfa   : > { %3393 = vmatprep.subr.bf16.mxu1 %v4299_v50  ;;  %v4482_v50 = vld [vmem:[%s5697_s0 + $0x2c] ss:$72 sps:$4 sm:$0xff]  }
  0xfb   : > { %3351 = vmatpush1.bf16.msra.mxu0 %v4294_v51  ;;  %v4395_v51 = vld [vmem:[%s5332_s9 + $0x554] ss:$8 sps:$4 sm:$0xff]  }
  0xfc   : > { %3352 = vmatprep.subr.bf16.mxu0 %v4302_v52  ;;  %v4390_v52 = vld [vmem:[%s5332_s9 + $0x450] ss:$8 sps:$4 sm:$0xff]  }
  0xfd   : > { %3394 = vmatpush1.bf16.msra.mxu1 %v4297_v53  ;;  %v4398_v53 = vld [vmem:[%s5332_s9 + $0x444] ss:$8 sps:$4 sm:$0xff]  }
  0xfe   : > { %3395 = vmatprep.subr.bf16.mxu1 %v4305_v54  ;;  %v4393_v54 = vld [vmem:[%s5332_s9 + $0x550] ss:$8 sps:$4 sm:$0xff]  }
  0xff   : > { %3353 = vmatpush1.bf16.msra.mxu0 %v4300_v55  ;;  %v4401_v55 = vld [vmem:[%s5332_s9 + $0x544] ss:$8 sps:$4 sm:$0xff]  }
 0x100   : > { %3354 = vmatprep.subr.bf16.mxu0 %v4308_v56  ;;  %v4396_v56 = vld [vmem:[%s5332_s9 + $0x440] ss:$8 sps:$4 sm:$0xff]  }
 0x101   : > { %3396 = vmatpush1.bf16.msra.mxu1 %v4303_v57  ;;  %v4404_v57 = vld [vmem:[%s5332_s9 + $0x434] ss:$8 sps:$4 sm:$0xff]  }
 0x102   : > { %3397 = vmatprep.subr.bf16.mxu1 %v4311_v58  ;;  %v4399_v58 = vld [vmem:[%s5332_s9 + $0x540] ss:$8 sps:$4 sm:$0xff]  }
 0x103   : > { %3355 = vmatpush1.bf16.msra.mxu0 %v4306_v59  ;;  %v4407_v59 = vld [vmem:[%s5332_s9 + $0x534] ss:$8 sps:$4 sm:$0xff]  }
 0x104   : > { %3356 = vmatprep.subr.bf16.mxu0 %v4314_v60  ;;  %v4402_v60 = vld [vmem:[%s5332_s9 + $0x430] ss:$8 sps:$4 sm:$0xff]  }
 0x105   : > { %3398 = vmatpush1.bf16.msra.mxu1 %v4309_v61  ;;  %v4410_v61 = vld [vmem:[%s5332_s9 + $0x424] ss:$8 sps:$4 sm:$0xff]  }
 0x106   : > { %3399 = vmatprep.subr.bf16.mxu1 %v4317_v62  ;;  %v4405_v62 = vld [vmem:[%s5332_s9 + $0x530] ss:$8 sps:$4 sm:$0xff]  }
 0x107   : > { %3357 = vmatpush1.bf16.msra.mxu0 %v4312_v63  ;;  %v4413_v63 = vld [vmem:[%s5332_s9 + $0x524] ss:$8 sps:$4 sm:$0xff]  }
 0x108   : > { %3358 = vmatprep.subr.bf16.mxu0 %v4320_v1  ;;  %v4416_v1 = vld [vmem:[%s5332_s9 + $0x414] ss:$8 sps:$4 sm:$0xff]  }
 0x109   : > { %3400 = vmatpush1.bf16.msra.mxu1 %v4315_v2  ;;  %v4411_v2 = vld [vmem:[%s5332_s9 + $0x520] ss:$8 sps:$4 sm:$0xff]  }
 0x10a   : > { %3401 = vmatprep.subr.bf16.mxu1 %v4323_v3  ;;  %v4419_v3 = vld [vmem:[%s5332_s9 + $0x514] ss:$8 sps:$4 sm:$0xff]  }
 0x10b   : > { %3359 = vmatpush1.bf16.msra.mxu0 %v4318_v4  ;;  %v4414_v4 = vld [vmem:[%s5332_s9 + $0x410] ss:$8 sps:$4 sm:$0xff]  }
 0x10c   : > { %3360 = vmatprep.subr.bf16.mxu0 %v4326_v5  ;;  %v4422_v5 = vld [vmem:[%s5332_s9 + $0x404] ss:$8 sps:$4 sm:$0xff]  }
 0x10d   : > { %3402 = vmatpush1.bf16.msra.mxu1 %v4321_v6  ;;  %v4417_v6 = vld [vmem:[%s5332_s9 + $0x510] ss:$8 sps:$4 sm:$0xff]  }
 0x10e   : > { %3403 = vmatprep.subr.bf16.mxu1 %v4329_v7  ;;  %v4425_v7 = vld [vmem:[%s5332_s9 + $0x504] ss:$8 sps:$4 sm:$0xff]  }
 0x10f   : > { %3361 = vmatpush2.bf16.msra.mxu0 %v4324_v8  ;;  %v4420_v8 = vld [vmem:[%s5332_s9 + $0x400] ss:$8 sps:$4 sm:$0xff]  }
 0x110   : > { %3362 = vmatprep.subr.bf16.mxu0 %v4332_v9  ;;  %v4428_v9 = vld [vmem:[%s5332_s9 + $0x4f4] ss:$8 sps:$4 sm:$0xff]  }
 0x111   : > { %3404 = vmatpush2.bf16.msra.mxu1 %v4327_v10  ;;  %v4423_v10 = vld [vmem:[%s5332_s9 + $0x500] ss:$8 sps:$4 sm:$0xff]  }
 0x112   : > { %3405 = vmatprep.subr.bf16.mxu1 %v4335_v11  ;;  %v4431_v11 = vld [vmem:[%s5332_s9 + $0x5f4] ss:$8 sps:$4 sm:$0xff]  }
 0x113   : > { %3363 = vmatpush2.bf16.msra.mxu0 %v4330_v12  ;;  %v4426_v12 = vld [vmem:[%s5332_s9 + $0x4f0] ss:$8 sps:$4 sm:$0xff]  }
 0x114   : > { %3364 = vmatprep.subr.bf16.mxu0 %v4338_v13  ;;  %v4434_v13 = vld [vmem:[%s5332_s9 + $0x4e4] ss:$8 sps:$4 sm:$0xff]  }
 0x115   : > { %3406 = vmatpush2.bf16.msra.mxu1 %v4333_v14  ;;  %v4429_v14 = vld [vmem:[%s5332_s9 + $0x5f0] ss:$8 sps:$4 sm:$0xff]  }
 0x116   : > { %3407 = vmatprep.subr.bf16.mxu1 %v4341_v15  ;;  %v4437_v15 = vld [vmem:[%s5332_s9 + $0x5e4] ss:$8 sps:$4 sm:$0xff]  }
 0x117   : > { %3365 = vmatpush2.bf16.msra.mxu0 %v4336_v16  ;;  %v4432_v16 = vld [vmem:[%s5332_s9 + $0x4e0] ss:$8 sps:$4 sm:$0xff]  }
 0x118   : > { %3366 = vmatprep.subr.bf16.mxu0 %v4344_v17  ;;  %v4440_v17 = vld [vmem:[%s5332_s9 + $0x4d4] ss:$8 sps:$4 sm:$0xff]  }
 0x119   : > { %3408 = vmatpush2.bf16.msra.mxu1 %v4339_v18  ;;  %v4435_v18 = vld [vmem:[%s5332_s9 + $0x5e0] ss:$8 sps:$4 sm:$0xff]  }
 0x11a   : > { %3409 = vmatprep.subr.bf16.mxu1 %v4347_v19  ;;  %v4443_v19 = vld [vmem:[%s5332_s9 + $0x5d4] ss:$8 sps:$4 sm:$0xff]  }
 0x11b   : > { %3367 = vmatpush2.bf16.msra.mxu0 %v4342_v20  ;;  %v4438_v20 = vld [vmem:[%s5332_s9 + $0x4d0] ss:$8 sps:$4 sm:$0xff]  }
 0x11c   : > { %3368 = vmatprep.subr.bf16.mxu0 %v4350_v21  ;;  %v4446_v21 = vld [vmem:[%s5332_s9 + $0x4c4] ss:$8 sps:$4 sm:$0xff]  }
 0x11d   : > { %3410 = vmatpush2.bf16.msra.mxu1 %v4345_v22  ;;  %v4441_v22 = vld [vmem:[%s5332_s9 + $0x5d0] ss:$8 sps:$4 sm:$0xff]  }
 0x11e   : > { %3411 = vmatprep.subr.bf16.mxu1 %v4353_v23  ;;  %v4449_v23 = vld [vmem:[%s5332_s9 + $0x5c4] ss:$8 sps:$4 sm:$0xff]  }
 0x11f   : > { %3369 = vmatpush2.bf16.msra.mxu0 %v4348_v24  ;;  %v4444_v24 = vld [vmem:[%s5332_s9 + $0x4c0] ss:$8 sps:$4 sm:$0xff]  }
 0x120   : > { %3370 = vmatprep.subr.bf16.mxu0 %v4356_v25  ;;  %v4452_v25 = vld [vmem:[%s5332_s9 + $0x4b4] ss:$8 sps:$4 sm:$0xff]  }
 0x121   : > { %3412 = vmatpush2.bf16.msra.mxu1 %v4351_v26  ;;  %v4447_v26 = vld [vmem:[%s5332_s9 + $0x5c0] ss:$8 sps:$4 sm:$0xff]  }
 0x122   : > { %3413 = vmatprep.subr.bf16.mxu1 %v4359_v27  ;;  %v4455_v27 = vld [vmem:[%s5332_s9 + $0x5b4] ss:$8 sps:$4 sm:$0xff]  }
 0x123   : > { %3371 = vmatpush2.bf16.msra.mxu0 %v4354_v28  ;;  %v4450_v28 = vld [vmem:[%s5332_s9 + $0x4b0] ss:$8 sps:$4 sm:$0xff]  }
 0x124   : > { %3372 = vmatprep.subr.bf16.mxu0 %v4362_v29  ;;  %v4458_v29 = vld [vmem:[%s5332_s9 + $0x4a4] ss:$8 sps:$4 sm:$0xff]  }
 0x125   : > { %3414 = vmatpush2.bf16.msra.mxu1 %v4357_v30  ;;  %v4453_v30 = vld [vmem:[%s5332_s9 + $0x5b0] ss:$8 sps:$4 sm:$0xff]  }
 0x126   : > { %3415 = vmatprep.subr.bf16.mxu1 %v4365_v31  ;;  %v4461_v31 = vld [vmem:[%s5332_s9 + $0x5a4] ss:$8 sps:$4 sm:$0xff]  }
 0x127   : > { %3373 = vmatpush2.bf16.msra.mxu0 %v4360_v32  ;;  %v4456_v32 = vld [vmem:[%s5332_s9 + $0x4a0] ss:$8 sps:$4 sm:$0xff]  }
 0x128   : > { %3374 = vmatprep.subr.bf16.mxu0 %v4368_v33  ;;  %v4464_v33 = vld [vmem:[%s5332_s9 + $0x494] ss:$8 sps:$4 sm:$0xff]  }
 0x129   : > { %3416 = vmatpush2.bf16.msra.mxu1 %v4363_v34  ;;  %v4459_v34 = vld [vmem:[%s5332_s9 + $0x5a0] ss:$8 sps:$4 sm:$0xff]  }
 0x12a   : > { %3417 = vmatprep.subr.bf16.mxu1 %v4371_v35  ;;  %v4467_v35 = vld [vmem:[%s5332_s9 + $0x594] ss:$8 sps:$4 sm:$0xff]  }
 0x12b   : > { %3375 = vmatpush2.bf16.msra.mxu0 %v4366_v36  ;;  %v4462_v36 = vld [vmem:[%s5332_s9 + $0x490] ss:$8 sps:$4 sm:$0xff]  }
 0x12c   : > { %3430 = vmatprep.subr.bf16.mxu0 %v4377_v37  ;;  %v4470_v37 = vld [vmem:[%s5332_s9 + $0x484] ss:$8 sps:$4 sm:$0xff]  }
 0x12d   : > { %3418 = vmatpush2.bf16.msra.mxu1 %v4369_v38  ;;  %v4465_v38 = vld [vmem:[%s5332_s9 + $0x590] ss:$8 sps:$4 sm:$0xff]  }
 0x12e   : > { %3377 = vmatmul.mubr.bf16.vlgmr.msra.gmra.mxu0 %v4372_v39  ;;  %3473 = vmatprep.subr.bf16.mxu1 %v4383_v40  ;;  %v4468_v39 = vld [vmem:[%s5332_s9 + $0x480] ss:$8 sps:$4 sm:$0xff]   ;;  %v4473_v40 = vld [vmem:[%s5332_s9 + $0x584] ss:$8 sps:$4 sm:$0xff]  }
 0x12f   : > { %3431 = vmatpush1.bf16.msra.mxu0 %v4375_v41  ;;  %3462 = vmatprep.mubr.bf16.mxu0 %v4476_v46  ;;  %v4471_v41 = vld [vmem:[%s5332_s9 + $0x580] ss:$8 sps:$4 sm:$0xff]   ;;  %v4485_v46 = vld [vmem:[%s5332_s9 + $0x774] ss:$8 sps:$4 sm:$0xff]  }
 0x130   : > { %3420 = vmatmul.mubr.bf16.vlgmr.msra.gmra.mxu1 %v4378_v42  ;;  %3432 = vmatprep.subr.bf16.mxu0 %v4386_v43  ;;  %v4479_v42 = vld [vmem:[%s5332_s9 + $0x674] ss:$8 sps:$4 sm:$0xff]   ;;  %v4474_v43 = vld [vmem:[%s5697_s0 + $0x20] ss:$72 sps:$4 sm:$0xff]  }
 0x131   : > { %3474 = vmatpush1.bf16.msra.mxu1 %v4381_v44  ;;  %3505 = vmatprep.mubr.bf16.mxu1 %v4482_v50  ;;  %v4477_v44 = vld [vmem:[%s5332_s9 + $0x670] ss:$8 sps:$4 sm:$0xff]   ;;  %v4584_v50 = vld [vmem:[%s5697_s0 + $0x3c] ss:$72 sps:$4 sm:$0xff]  }
 0x132   : > { %3475 = vmatprep.subr.bf16.mxu1 %v4389_v45  ;;  %v4480_v45 = vld [vmem:[%s5697_s0 + $0x28] ss:$72 sps:$4 sm:$0xff]  }
 0x133   : > { %3433 = vmatpush1.bf16.msra.mxu0 %v4384_v47  ;;  %v4578_v47 = vld [vmem:[%s5697_s0 + $0x34] ss:$72 sps:$4 sm:$0xff]  }
 0x134   : > { %3434 = vmatprep.subr.bf16.mxu0 %v4392_v49  ;;  %v4483_v49 = vld [vmem:[%s5332_s9 + $0x770] ss:$8 sps:$4 sm:$0xff]  }
 0x135   : > { %3476 = vmatpush1.bf16.msra.mxu1 %v4387_v48  ;;  %v4488_v48 = vld [vmem:[%s5332_s9 + $0x664] ss:$8 sps:$4 sm:$0xff]  }
 0x136   : > { %3477 = vmatprep.subr.bf16.mxu1 %v4395_v51  ;;  %v4491_v51 = vld [vmem:[%s5332_s9 + $0x764] ss:$8 sps:$4 sm:$0xff]  }
 0x137   : > { %3435 = vmatpush1.bf16.msra.mxu0 %v4390_v52  ;;  %v4486_v52 = vld [vmem:[%s5332_s9 + $0x660] ss:$8 sps:$4 sm:$0xff]  }
 0x138   : > { %3436 = vmatprep.subr.bf16.mxu0 %v4398_v53  ;;  %v4494_v53 = vld [vmem:[%s5332_s9 + $0x654] ss:$8 sps:$4 sm:$0xff]  }
 0x139   : > { %3478 = vmatpush1.bf16.msra.mxu1 %v4393_v54  ;;  %v4489_v54 = vld [vmem:[%s5332_s9 + $0x760] ss:$8 sps:$4 sm:$0xff]  }
 0x13a   : > { %3479 = vmatprep.subr.bf16.mxu1 %v4401_v55  ;;  %v4497_v55 = vld [vmem:[%s5332_s9 + $0x754] ss:$8 sps:$4 sm:$0xff]  }
 0x13b   : > { %3437 = vmatpush1.bf16.msra.mxu0 %v4396_v56  ;;  %v4492_v56 = vld [vmem:[%s5332_s9 + $0x650] ss:$8 sps:$4 sm:$0xff]  }
 0x13c   : > { %3438 = vmatprep.subr.bf16.mxu0 %v4404_v57  ;;  %v4500_v57 = vld [vmem:[%s5332_s9 + $0x644] ss:$8 sps:$4 sm:$0xff]  }
 0x13d   : > { %3480 = vmatpush1.bf16.msra.mxu1 %v4399_v58  ;;  %v4495_v58 = vld [vmem:[%s5332_s9 + $0x750] ss:$8 sps:$4 sm:$0xff]  }
 0x13e   : > { %3481 = vmatprep.subr.bf16.mxu1 %v4407_v59  ;;  %v4503_v59 = vld [vmem:[%s5332_s9 + $0x744] ss:$8 sps:$4 sm:$0xff]  }
 0x13f   : > { %3439 = vmatpush1.bf16.msra.mxu0 %v4402_v60  ;;  %v4498_v60 = vld [vmem:[%s5332_s9 + $0x640] ss:$8 sps:$4 sm:$0xff]  }
 0x140   : > { %3440 = vmatprep.subr.bf16.mxu0 %v4410_v61  ;;  %v4506_v61 = vld [vmem:[%s5332_s9 + $0x634] ss:$8 sps:$4 sm:$0xff]  }
 0x141   : > { %3482 = vmatpush1.bf16.msra.mxu1 %v4405_v62  ;;  %v4501_v62 = vld [vmem:[%s5332_s9 + $0x740] ss:$8 sps:$4 sm:$0xff]  }
 0x142   : > { %3483 = vmatprep.subr.bf16.mxu1 %v4413_v63  ;;  %v4509_v63 = vld [vmem:[%s5332_s9 + $0x734] ss:$8 sps:$4 sm:$0xff]  }
 0x143   : > { %3441 = vmatpush1.bf16.msra.mxu0 %v4408_v0  ;;  %v4504_v0 = vld [vmem:[%s5332_s9 + $0x630] ss:$8 sps:$4 sm:$0xff]  }
 0x144   : > { %3442 = vmatprep.subr.bf16.mxu0 %v4416_v1  ;;  %v4512_v1 = vld [vmem:[%s5332_s9 + $0x624] ss:$8 sps:$4 sm:$0xff]  }
 0x145   : > { %3484 = vmatpush1.bf16.msra.mxu1 %v4411_v2  ;;  %v4507_v2 = vld [vmem:[%s5332_s9 + $0x730] ss:$8 sps:$4 sm:$0xff]  }
 0x146   : > { %3485 = vmatprep.subr.bf16.mxu1 %v4419_v3  ;;  %v4515_v3 = vld [vmem:[%s5332_s9 + $0x724] ss:$8 sps:$4 sm:$0xff]  }
 0x147   : > { %3443 = vmatpush1.bf16.msra.mxu0 %v4414_v4  ;;  %v4510_v4 = vld [vmem:[%s5332_s9 + $0x620] ss:$8 sps:$4 sm:$0xff]  }
 0x148   : > { %3444 = vmatprep.subr.bf16.mxu0 %v4422_v5  ;;  %v4518_v5 = vld [vmem:[%s5332_s9 + $0x614] ss:$8 sps:$4 sm:$0xff]  }
 0x149   : > { %3486 = vmatpush1.bf16.msra.mxu1 %v4417_v6  ;;  %v4513_v6 = vld [vmem:[%s5332_s9 + $0x720] ss:$8 sps:$4 sm:$0xff]  }
 0x14a   : > { %3487 = vmatprep.subr.bf16.mxu1 %v4425_v7  ;;  %v4521_v7 = vld [vmem:[%s5332_s9 + $0x714] ss:$8 sps:$4 sm:$0xff]  }
 0x14b   : > { %3445 = vmatpush1.bf16.msra.mxu0 %v4420_v8  ;;  %v4516_v8 = vld [vmem:[%s5332_s9 + $0x610] ss:$8 sps:$4 sm:$0xff]  }
 0x14c   : > { %3446 = vmatprep.subr.bf16.mxu0 %v4428_v9  ;;  %v4524_v9 = vld [vmem:[%s5332_s9 + $0x604] ss:$8 sps:$4 sm:$0xff]  }
 0x14d   : > { %3488 = vmatpush1.bf16.msra.mxu1 %v4423_v10  ;;  %v4519_v10 = vld [vmem:[%s5332_s9 + $0x710] ss:$8 sps:$4 sm:$0xff]  }
 0x14e   : > { %3489 = vmatprep.subr.bf16.mxu1 %v4431_v11  ;;  %v4527_v11 = vld [vmem:[%s5332_s9 + $0x704] ss:$8 sps:$4 sm:$0xff]  }
 0x14f   : > { %3447 = vmatpush2.bf16.msra.mxu0 %v4426_v12  ;;  %v4522_v12 = vld [vmem:[%s5332_s9 + $0x600] ss:$8 sps:$4 sm:$0xff]  }
 0x150   : > { %3448 = vmatprep.subr.bf16.mxu0 %v4434_v13  ;;  %v4530_v13 = vld [vmem:[%s5332_s9 + $0x6f4] ss:$8 sps:$4 sm:$0xff]  }
 0x151   : > { %3490 = vmatpush2.bf16.msra.mxu1 %v4429_v14  ;;  %v4525_v14 = vld [vmem:[%s5332_s9 + $0x700] ss:$8 sps:$4 sm:$0xff]  }
 0x152   : > { %3491 = vmatprep.subr.bf16.mxu1 %v4437_v15  ;;  %v4533_v15 = vld [vmem:[%s5332_s9 + $0x7f4] ss:$8 sps:$4 sm:$0xff]  }
 0x153   : > { %3449 = vmatpush2.bf16.msra.mxu0 %v4432_v16  ;;  %v4528_v16 = vld [vmem:[%s5332_s9 + $0x6f0] ss:$8 sps:$4 sm:$0xff]  }
 0x154   : > { %3450 = vmatprep.subr.bf16.mxu0 %v4440_v17  ;;  %v4536_v17 = vld [vmem:[%s5332_s9 + $0x6e4] ss:$8 sps:$4 sm:$0xff]  }
 0x155   : > { %3492 = vmatpush2.bf16.msra.mxu1 %v4435_v18  ;;  %v4531_v18 = vld [vmem:[%s5332_s9 + $0x7f0] ss:$8 sps:$4 sm:$0xff]  }
 0x156   : > { %3493 = vmatprep.subr.bf16.mxu1 %v4443_v19  ;;  %v4539_v19 = vld [vmem:[%s5332_s9 + $0x7e4] ss:$8 sps:$4 sm:$0xff]  }
 0x157   : > { %3451 = vmatpush2.bf16.msra.mxu0 %v4438_v20  ;;  %v4534_v20 = vld [vmem:[%s5332_s9 + $0x6e0] ss:$8 sps:$4 sm:$0xff]  }
 0x158   : > { %3452 = vmatprep.subr.bf16.mxu0 %v4446_v21  ;;  %v4542_v21 = vld [vmem:[%s5332_s9 + $0x6d4] ss:$8 sps:$4 sm:$0xff]  }
 0x159   : > { %3494 = vmatpush2.bf16.msra.mxu1 %v4441_v22  ;;  %v4537_v22 = vld [vmem:[%s5332_s9 + $0x7e0] ss:$8 sps:$4 sm:$0xff]  }
 0x15a   : > { %3495 = vmatprep.subr.bf16.mxu1 %v4449_v23  ;;  %v4545_v23 = vld [vmem:[%s5332_s9 + $0x7d4] ss:$8 sps:$4 sm:$0xff]  }
 0x15b   : > { %3453 = vmatpush2.bf16.msra.mxu0 %v4444_v24  ;;  %v4540_v24 = vld [vmem:[%s5332_s9 + $0x6d0] ss:$8 sps:$4 sm:$0xff]  }
 0x15c   : > { %3454 = vmatprep.subr.bf16.mxu0 %v4452_v25  ;;  %v4548_v25 = vld [vmem:[%s5332_s9 + $0x6c4] ss:$8 sps:$4 sm:$0xff]  }
 0x15d   : > { %3496 = vmatpush2.bf16.msra.mxu1 %v4447_v26  ;;  %v4543_v26 = vld [vmem:[%s5332_s9 + $0x7d0] ss:$8 sps:$4 sm:$0xff]  }
 0x15e   : > { %3497 = vmatprep.subr.bf16.mxu1 %v4455_v27  ;;  %v4551_v27 = vld [vmem:[%s5332_s9 + $0x7c4] ss:$8 sps:$4 sm:$0xff]  }
 0x15f   : > { %3455 = vmatpush2.bf16.msra.mxu0 %v4450_v28  ;;  %v4546_v28 = vld [vmem:[%s5332_s9 + $0x6c0] ss:$8 sps:$4 sm:$0xff]  }
 0x160   : > { %3456 = vmatprep.subr.bf16.mxu0 %v4458_v29  ;;  %v4554_v29 = vld [vmem:[%s5332_s9 + $0x6b4] ss:$8 sps:$4 sm:$0xff]  }
 0x161   : > { %3498 = vmatpush2.bf16.msra.mxu1 %v4453_v30  ;;  %v4549_v30 = vld [vmem:[%s5332_s9 + $0x7c0] ss:$8 sps:$4 sm:$0xff]  }
 0x162   : > { %3499 = vmatprep.subr.bf16.mxu1 %v4461_v31  ;;  %v4557_v31 = vld [vmem:[%s5332_s9 + $0x7b4] ss:$8 sps:$4 sm:$0xff]  }
 0x163   : > { %3457 = vmatpush2.bf16.msra.mxu0 %v4456_v32  ;;  %v4552_v32 = vld [vmem:[%s5332_s9 + $0x6b0] ss:$8 sps:$4 sm:$0xff]  }
 0x164   : > { %3458 = vmatprep.subr.bf16.mxu0 %v4464_v33  ;;  %v4560_v33 = vld [vmem:[%s5332_s9 + $0x6a4] ss:$8 sps:$4 sm:$0xff]  }
 0x165   : > { %3500 = vmatpush2.bf16.msra.mxu1 %v4459_v34  ;;  %v4555_v34 = vld [vmem:[%s5332_s9 + $0x7b0] ss:$8 sps:$4 sm:$0xff]  }
 0x166   : > { %3501 = vmatprep.subr.bf16.mxu1 %v4467_v35  ;;  %v4563_v35 = vld [vmem:[%s5332_s9 + $0x7a4] ss:$8 sps:$4 sm:$0xff]  }
 0x167   : > { %3459 = vmatpush2.bf16.msra.mxu0 %v4462_v36  ;;  %v4558_v36 = vld [vmem:[%s5332_s9 + $0x6a0] ss:$8 sps:$4 sm:$0xff]  }
 0x168   : > { %3460 = vmatprep.subr.bf16.mxu0 %v4470_v37  ;;  %v4566_v37 = vld [vmem:[%s5332_s9 + $0x694] ss:$8 sps:$4 sm:$0xff]  }
 0x169   : > { %3502 = vmatpush2.bf16.msra.mxu1 %v4465_v38  ;;  %v4561_v38 = vld [vmem:[%s5332_s9 + $0x7a0] ss:$8 sps:$4 sm:$0xff]  }
 0x16a   : > { %3503 = vmatprep.subr.bf16.mxu1 %v4473_v40  ;;  %v4564_v40 = vld [vmem:[%s5332_s9 + $0x690] ss:$8 sps:$4 sm:$0xff]  }
 0x16b   : > { %3461 = vmatpush2.bf16.msra.mxu0 %v4468_v39  ;;  %v4569_v39 = vld [vmem:[%s5332_s9 + $0x794] ss:$8 sps:$4 sm:$0xff]  }
 0x16c   : > { %3516 = vmatprep.subr.bf16.mxu0 %v4479_v42  ;;  %v4567_v42 = vld [vmem:[%s5332_s9 + $0x790] ss:$8 sps:$4 sm:$0xff]  }
 0x16d   : > { %3504 = vmatpush2.bf16.msra.mxu1 %v4471_v41  ;;  %v4572_v41 = vld [vmem:[%s5332_s9 + $0x684] ss:$8 sps:$4 sm:$0xff]  }
 0x16e   : > { %3463 = vmatmul.mubr.bf16.vlgmr.msra.gmra.mxu0 %v4474_v43  ;;  %3559 = vmatprep.subr.bf16.mxu1 %v4485_v46  ;;  %v4575_v43 = vld [vmem:[%s5332_s9 + $0x784] ss:$8 sps:$4 sm:$0xff]   ;;  %v4573_v46 = vld [vmem:[%s5332_s9 + $0x780] ss:$8 sps:$4 sm:$0xff]  }
 0x16f   : > { %3517 = vmatpush1.bf16.msra.mxu0 %v4477_v44  ;;  %3548 = vmatprep.mubr.bf16.mxu0 %v4578_v47  ;;  %v4570_v44 = vld [vmem:[%s5332_s9 + $0x680] ss:$8 sps:$4 sm:$0xff]   ;;  %v4576_v47 = vld [vmem:[%s5697_s0 + $0x30] ss:$72 sps:$4 sm:$0xff]  }
 0x170   : > { %3506 = vmatmul.mubr.bf16.vlgmr.msra.gmra.mxu1 %v4480_v45  ;;  %3518 = vmatprep.subr.bf16.mxu0 %v4488_v48  ;;  %v4581_v45 = vld [vmem:[%s5332_s9 + $0x874] ss:$8 sps:$4 sm:$0xff]   ;;  %v4579_v48 = vld [vmem:[%s5332_s9 + $0x870] ss:$8 sps:$4 sm:$0xff]  }
 0x171   : > { %3560 = vmatpush1.bf16.msra.mxu1 %v4483_v49  ;;  %3591 = vmatprep.mubr.bf16.mxu1 %v4584_v50  ;;  %v4632_v49 = vld [vmem:[%s5697_s0 + $0x44] ss:$72 sps:$4 sm:$0xff]   ;;  %v4582_v50 = vld [vmem:[%s5697_s0 + $0x38] ss:$72 sps:$4 sm:$0xff]  }
 0x172   : > { %3561 = vmatprep.subr.bf16.mxu1 %v4491_v51  ;;  %v4587_v51 = vld [vmem:[%s5332_s9 + $0x864] ss:$8 sps:$4 sm:$0xff]  }
 0x173   : > { %3519 = vmatpush1.bf16.msra.mxu0 %v4486_v52  ;;  %v4585_v52 = vld [vmem:[%s5332_s9 + $0x860] ss:$8 sps:$4 sm:$0xff]  }
 0x174   : > { %3520 = vmatprep.subr.bf16.mxu0 %v4494_v53  ;;  %v4590_v53 = vld [vmem:[%s5332_s9 + $0x854] ss:$8 sps:$4 sm:$0xff]  }
 0x175   : > { %3562 = vmatpush1.bf16.msra.mxu1 %v4489_v54  ;;  %v4588_v54 = vld [vmem:[%s5332_s9 + $0x850] ss:$8 sps:$4 sm:$0xff]  }
 0x176   : > { %3563 = vmatprep.subr.bf16.mxu1 %v4497_v55  ;;  %v4593_v55 = vld [vmem:[%s5332_s9 + $0x844] ss:$8 sps:$4 sm:$0xff]  }
 0x177   : > { %3521 = vmatpush1.bf16.msra.mxu0 %v4492_v56  ;;  %v4591_v56 = vld [vmem:[%s5332_s9 + $0x840] ss:$8 sps:$4 sm:$0xff]  }
 0x178   : > { %3522 = vmatprep.subr.bf16.mxu0 %v4500_v57  ;;  %v4596_v57 = vld [vmem:[%s5332_s9 + $0x834] ss:$8 sps:$4 sm:$0xff]  }
 0x179   : > { %3564 = vmatpush1.bf16.msra.mxu1 %v4495_v58  ;;  %v4594_v58 = vld [vmem:[%s5332_s9 + $0x830] ss:$8 sps:$4 sm:$0xff]  }
 0x17a   : > { %3565 = vmatprep.subr.bf16.mxu1 %v4503_v59  ;;  %v4599_v59 = vld [vmem:[%s5332_s9 + $0x824] ss:$8 sps:$4 sm:$0xff]  }
 0x17b   : > { %3523 = vmatpush1.bf16.msra.mxu0 %v4498_v60  ;;  %v4597_v60 = vld [vmem:[%s5332_s9 + $0x820] ss:$8 sps:$4 sm:$0xff]  }
 0x17c   : > { %3524 = vmatprep.subr.bf16.mxu0 %v4506_v61  ;;  %v4602_v61 = vld [vmem:[%s5332_s9 + $0x814] ss:$8 sps:$4 sm:$0xff]  }
 0x17d   : > { %3566 = vmatpush1.bf16.msra.mxu1 %v4501_v62  ;;  %v4600_v62 = vld [vmem:[%s5332_s9 + $0x810] ss:$8 sps:$4 sm:$0xff]  }
 0x17e   : > { %3567 = vmatprep.subr.bf16.mxu1 %v4509_v63  ;;  %v4605_v63 = vld [vmem:[%s5332_s9 + $0x804] ss:$8 sps:$4 sm:$0xff]  }
 0x17f   : > { %3525 = vmatpush1.bf16.msra.mxu0 %v4504_v0  ;;  %v4603_v0 = vld [vmem:[%s5332_s9 + $0x800] ss:$8 sps:$4 sm:$0xff]  }
 0x180   : > { %3526 = vmatprep.subr.bf16.mxu0 %v4512_v1  ;;  %v4608_v1 = vld [vmem:[%s5332_s9 + $0x8f4] ss:$8 sps:$4 sm:$0xff]  }
 0x181   : > { %3568 = vmatpush1.bf16.msra.mxu1 %v4507_v2  ;;  %v4606_v2 = vld [vmem:[%s5332_s9 + $0x8f0] ss:$8 sps:$4 sm:$0xff]  }
 0x182   : > { %3569 = vmatprep.subr.bf16.mxu1 %v4515_v3  ;;  %v4611_v3 = vld [vmem:[%s5332_s9 + $0x8e4] ss:$8 sps:$4 sm:$0xff]  }
 0x183   : > { %3527 = vmatpush1.bf16.msra.mxu0 %v4510_v4  ;;  %v4609_v4 = vld [vmem:[%s5332_s9 + $0x8e0] ss:$8 sps:$4 sm:$0xff]  }
 0x184   : > { %3528 = vmatprep.subr.bf16.mxu0 %v4518_v5  ;;  %v4614_v5 = vld [vmem:[%s5332_s9 + $0x8d4] ss:$8 sps:$4 sm:$0xff]  }
 0x185   : > { %3570 = vmatpush1.bf16.msra.mxu1 %v4513_v6  ;;  %v4612_v6 = vld [vmem:[%s5332_s9 + $0x8d0] ss:$8 sps:$4 sm:$0xff]  }
 0x186   : > { %3571 = vmatprep.subr.bf16.mxu1 %v4521_v7  ;;  %v4617_v7 = vld [vmem:[%s5332_s9 + $0x8c4] ss:$8 sps:$4 sm:$0xff]  }
 0x187   : > { %3529 = vmatpush1.bf16.msra.mxu0 %v4516_v8  ;;  %v4615_v8 = vld [vmem:[%s5332_s9 + $0x8c0] ss:$8 sps:$4 sm:$0xff]  }
 0x188   : > { %3530 = vmatprep.subr.bf16.mxu0 %v4524_v9  ;;  %v4620_v9 = vld [vmem:[%s5332_s9 + $0x8b4] ss:$8 sps:$4 sm:$0xff]  }
 0x189   : > { %3572 = vmatpush1.bf16.msra.mxu1 %v4519_v10  ;;  %v4618_v10 = vld [vmem:[%s5332_s9 + $0x8b0] ss:$8 sps:$4 sm:$0xff]  }
 0x18a   : > { %3573 = vmatprep.subr.bf16.mxu1 %v4527_v11  ;;  %v4623_v11 = vld [vmem:[%s5332_s9 + $0x8a4] ss:$8 sps:$4 sm:$0xff]  }
 0x18b   : > { %3531 = vmatpush1.bf16.msra.mxu0 %v4522_v12  ;;  %v4621_v12 = vld [vmem:[%s5332_s9 + $0x8a0] ss:$8 sps:$4 sm:$0xff]  }
 0x18c   : > { %3532 = vmatprep.subr.bf16.mxu0 %v4530_v13  ;;  %v4626_v13 = vld [vmem:[%s5332_s9 + $0x894] ss:$8 sps:$4 sm:$0xff]  }
 0x18d   : > { %3574 = vmatpush1.bf16.msra.mxu1 %v4525_v14  ;;  %v4624_v14 = vld [vmem:[%s5332_s9 + $0x890] ss:$8 sps:$4 sm:$0xff]  }
 0x18e   : > { %3575 = vmatprep.subr.bf16.mxu1 %v4533_v15  ;;  %v4629_v15 = vld [vmem:[%s5332_s9 + $0x884] ss:$8 sps:$4 sm:$0xff]  }
 0x18f   : > { %3533 = vmatpush2.bf16.msra.mxu0 %v4528_v16  ;;  %v4627_v16 = vld [vmem:[%s5332_s9 + $0x880] ss:$8 sps:$4 sm:$0xff]  }
 0x190   : > { %3534 = vmatprep.subr.bf16.mxu0 %v4536_v17  ;;  %v4630_v17 = vld [vmem:[%s5697_s0 + $0x40] ss:$72 sps:$4 sm:$0xff]  }
 0x191   : > { %3576 = vmatpush2.bf16.msra.mxu1 %v4531_v18 }
 0x192   : > { %3577 = vmatprep.subr.bf16.mxu1 %v4539_v19 }
 0x193   : > { %3535 = vmatpush2.bf16.msra.mxu0 %v4534_v20 }
 0x194   : > { %3536 = vmatprep.subr.bf16.mxu0 %v4542_v21 }
 0x195   : > { %3578 = vmatpush2.bf16.msra.mxu1 %v4537_v22 }
 0x196   : > { %3579 = vmatprep.subr.bf16.mxu1 %v4545_v23 }
 0x197   : > { %3537 = vmatpush2.bf16.msra.mxu0 %v4540_v24 }
 0x198   : > { %3538 = vmatprep.subr.bf16.mxu0 %v4548_v25 }
 0x199   : > { %3580 = vmatpush2.bf16.msra.mxu1 %v4543_v26 }
 0x19a   : > { %3581 = vmatprep.subr.bf16.mxu1 %v4551_v27  ;;  %v1718_v27 = vlaneseq }
 0x19b   : > { %3539 = vmatpush2.bf16.msra.mxu0 %v4546_v28 }
 0x19c   : > { %3540 = vmatprep.subr.bf16.mxu0 %v4554_v29 }
 0x19d   : > { %3582 = vmatpush2.bf16.msra.mxu1 %v4549_v30  ;;  %v1719_v30 = vshrl.u32 %v1718_v27, 7 }
 0x19e   : > { %3583 = vmatprep.subr.bf16.mxu1 %v4557_v31 }
 0x19f   : > { %3541 = vmatpush2.bf16.msra.mxu0 %v4552_v32 }
 0x1a0   : > { %3542 = vmatprep.subr.bf16.mxu0 %v4560_v33  ;;  %v1720_v33 = vsub.s32 0, %v1719_v30 }
 0x1a1   : > { %3584 = vmatpush2.bf16.msra.mxu1 %v4555_v34  ;;  %v1716_v34 = vld [vmem:[%s1406_s10] sm:$0x3] }
 0x1a2   : > { %3585 = vmatprep.subr.bf16.mxu1 %v4563_v35 }
 0x1a3   : > { %3543 = vmatpush2.bf16.msra.mxu0 %v4558_v36 }
 0x1a4   : > { %3544 = vmatprep.subr.bf16.mxu0 %v4566_v37  ;;  %v1724_v37 = vsub.s32 1, %v1719_v30 }
 0x1a5   : > { %3586 = vmatpush2.bf16.msra.mxu1 %v4561_v38 }
 0x1a6   : > { %3587 = vmatprep.subr.bf16.mxu1 %v4569_v39  ;;  %v1721_v39 = vrot.slane %v1716_v34, %v1720_v33 }
 0x1a7   : > { %3545 = vmatpush2.bf16.msra.mxu0 %v4564_v40 }
 0x1a8   : > { %3546 = vmatprep.subr.bf16.mxu0 %v4572_v41  ;;  %v1725_v41 = vrot.slane %v1716_v34, %v1724_v37 }
 0x1a9   : > { %3588 = vmatpush2.bf16.msra.mxu1 %v4567_v42 }
 0x1aa   : > { %3589 = vmatprep.subr.bf16.mxu1 %v4575_v43 }
 0x1ab   : > { %3547 = vmatpush2.bf16.msra.mxu0 %v4570_v44 }
 0x1ac   : > { %3602 = vmatprep.subr.bf16.mxu0 %v4581_v45 }
 0x1ad   : > { %3590 = vmatpush2.bf16.msra.mxu1 %v4573_v46 }
 0x1ae   : > { %3549 = vmatmul.mubr.bf16.vlgmr.msra.gmra.mxu0 %v4576_v47  ;;  %v3292_v18 = vpop.f32.mrf.mxu0 }
 0x1af   : > { %3603 = vmatpush1.bf16.msra.mxu0 %v4579_v48  ;;  %3634 = vmatprep.mubr.bf16.mxu0 %v4632_v49  ;;  %v3293_v44 = vadd.f32 %v3292_v18, %v1721_v39 }
 0x1b0   : > { %3592 = vmatmul.mubr.bf16.vlgmr.msra.gmra.mxu1 %v4582_v50  ;;  %3604 = vmatprep.subr.bf16.mxu0 %v4587_v51  ;;  %v3294_v19 = vpop.f32.mrf.mxu0  ;;  %v3335_v20 = vpop.f32.mrf.mxu1 }
 0x1b1   : > { %v3295_v45 = vadd.f32 %v3294_v19, %v1725_v41  ;;  %v3336_v48 = vadd.f32 %v3335_v20, %v3293_v44 }
 0x1b2   : > { %v3296_v21 = vpop.f32.mrf.mxu0  ;;  %v3337_v22 = vpop.f32.mrf.mxu1 }
 0x1b3   : > { %3605 = vmatpush1.bf16.msra.mxu0 %v4585_v52  ;;  %v3297_v49 = vadd.f32 %v3296_v21, %v1721_v39  ;;  %v3338_v50 = vadd.f32 %v3337_v22, %v3295_v45 }
 0x1b4   : > { %3606 = vmatprep.subr.bf16.mxu0 %v4590_v53  ;;  %v3298_v23 = vpop.f32.mrf.mxu0  ;;  %v3339_v24 = vpop.f32.mrf.mxu1 }
 0x1b5   : > { %v3299_v51 = vadd.f32 %v3298_v23, %v1725_v41 }
 0x1b6   : > { %v3341_v26 = vpop.f32.mrf.mxu1 }
 0x1b7   : > { %3607 = vmatpush1.bf16.msra.mxu0 %v4588_v54 }
 0x1b8   : > { %3608 = vmatprep.subr.bf16.mxu0 %v4593_v55  ;;  %v3340_v55 = vadd.f32 %v3339_v24, %v3297_v49 }
 0x1bb   : > { %3609 = vmatpush1.bf16.msra.mxu0 %v4591_v56 }
 0x1bc   : > { %3610 = vmatprep.subr.bf16.mxu0 %v4596_v57 }
 0x1bf   : > { %3611 = vmatpush1.bf16.msra.mxu0 %v4594_v58  ;;  %v3342_v58 = vadd.f32 %v3341_v26, %v3299_v51 }
 0x1c0   : > { %3612 = vmatprep.subr.bf16.mxu0 %v4599_v59 }
 0x1c3   : > { %3613 = vmatpush1.bf16.msra.mxu0 %v4597_v60 }
 0x1c4   : > { %3614 = vmatprep.subr.bf16.mxu0 %v4602_v61 }
 0x1c7   : > { %3615 = vmatpush1.bf16.msra.mxu0 %v4600_v62 }
 0x1c8   : > { %3616 = vmatprep.subr.bf16.mxu0 %v4605_v63 }
 0x1cb   : > { %3617 = vmatpush1.bf16.msra.mxu0 %v4603_v0 }
 0x1cc   : > { %3618 = vmatprep.subr.bf16.mxu0 %v4608_v1 }
 0x1cf   : > { %3619 = vmatpush2.bf16.msra.mxu0 %v4606_v2 }
 0x1d0   : > { %3620 = vmatprep.subr.bf16.mxu0 %v4611_v3 }
 0x1d3   : > { %3621 = vmatpush2.bf16.msra.mxu0 %v4609_v4 }
 0x1d4   : > { %3622 = vmatprep.subr.bf16.mxu0 %v4614_v5 }
 0x1d7   : > { %3623 = vmatpush2.bf16.msra.mxu0 %v4612_v6 }
 0x1d8   : > { %3624 = vmatprep.subr.bf16.mxu0 %v4617_v7 }
 0x1db   : > { %3625 = vmatpush2.bf16.msra.mxu0 %v4615_v8 }
 0x1dc   : > { %3626 = vmatprep.subr.bf16.mxu0 %v4620_v9 }
 0x1df   : > { %3627 = vmatpush2.bf16.msra.mxu0 %v4618_v10 }
 0x1e0   : > { %3628 = vmatprep.subr.bf16.mxu0 %v4623_v11 }
 0x1e3   : > { %3629 = vmatpush2.bf16.msra.mxu0 %v4621_v12 }
 0x1e4   : > { %3630 = vmatprep.subr.bf16.mxu0 %v4626_v13 }
 0x1e7   : > { %3631 = vmatpush2.bf16.msra.mxu0 %v4624_v14 }
 0x1e8   : > { %3632 = vmatprep.subr.bf16.mxu0 %v4629_v15 }
 0x1eb   : > { %3633 = vmatpush2.bf16.msra.mxu0 %v4627_v16 }
 0x1ee   : > { %3635 = vmatmul.mubr.bf16.vlgmr.msra.gmra.mxu0 %v4630_v17  ;;  %v3378_v25 = vpop.f32.mrf.mxu0 }
 0x1ef   : > { %v3379_v52 = vadd.f32 %v3378_v25, %v3336_v48 }
 0x1f0   : > { %v3380_v28 = vpop.f32.mrf.mxu0  ;;  %v3421_v29 = vpop.f32.mrf.mxu1 }
 0x1f1   : > { %v3381_v56 = vadd.f32 %v3380_v28, %v3338_v50  ;;  %v3422_v59 = vadd.f32 %v3421_v29, %v3379_v52 }
 0x1f2   : > { %v3382_v31 = vpop.f32.mrf.mxu0  ;;  %v3423_v32 = vpop.f32.mrf.mxu1 }
 0x1f3   : > { %v3383_v60 = vadd.f32 %v3382_v31, %v3340_v55  ;;  %v3424_v62 = vadd.f32 %v3423_v32, %v3381_v56 }
 0x1f4   : > { %v3384_v35 = vpop.f32.mrf.mxu0  ;;  %v3425_v36 = vpop.f32.mrf.mxu1 }
 0x1f5   : > { %v3385_v63 = vadd.f32 %v3384_v35, %v3342_v58  ;;  %v3426_v3 = vadd.f32 %v3425_v36, %v3383_v60 }
 0x1f6   : > { %v3427_v40 = vpop.f32.mrf.mxu1 }
 0x1f7   : > { %v3428_v5 = vadd.f32 %v3427_v40, %v3385_v63 }
 0x22e   : > { %v3464_v38 = vpop.f32.mrf.mxu0 }
 0x22f   : > { %v3465_v0 = vadd.f32 %v3464_v38, %v3422_v59 }
 0x230   : > { %v3466_v42 = vpop.f32.mrf.mxu0  ;;  %v3507_v43 = vpop.f32.mrf.mxu1 }
 0x231   : > { %v3467_v4 = vadd.f32 %v3466_v42, %v3424_v62  ;;  %v3508_v6 = vadd.f32 %v3507_v43, %v3465_v0 }
 0x232   : > { %v3468_v46 = vpop.f32.mrf.mxu0  ;;  %v3509_v47 = vpop.f32.mrf.mxu1 }
 0x233   : > { %v3469_v7 = vadd.f32 %v3468_v46, %v3426_v3  ;;  %v3510_v10 = vadd.f32 %v3509_v47, %v3467_v4 }
 0x234   : > { %v3470_v53 = vpop.f32.mrf.mxu0  ;;  %v3511_v54 = vpop.f32.mrf.mxu1 }
 0x235   : > { %v3471_v11 = vadd.f32 %v3470_v53, %v3428_v5  ;;  %v3512_v13 = vadd.f32 %v3511_v54, %v3469_v7 }
 0x236   : > { %v3513_v61 = vpop.f32.mrf.mxu1 }
 0x237   : > { %v3514_v17 = vadd.f32 %v3513_v61, %v3471_v11 }
 0x26e   : > { %v3550_v57 = vpop.f32.mrf.mxu0 }
 0x26f   : > { %v3551_v12 = vadd.f32 %v3550_v57, %v3508_v6 }
 0x270   : > { %v3552_v1 = vpop.f32.mrf.mxu0  ;;  %v3593_v2 = vpop.f32.mrf.mxu1 }
 0x271   : > { %v3553_v14 = vadd.f32 %v3552_v1, %v3510_v10  ;;  %v3594_v18 = vadd.f32 %v3593_v2, %v3551_v12 }
 0x272   : > { %v3554_v8 = vpop.f32.mrf.mxu0  ;;  %v3595_v9 = vpop.f32.mrf.mxu1 }
 0x273   : > { %v3555_v19 = vadd.f32 %v3554_v8, %v3512_v13  ;;  %v3596_v21 = vadd.f32 %v3595_v9, %v3553_v14 }
 0x274   : > { %v3556_v15 = vpop.f32.mrf.mxu0  ;;  %v3597_v16 = vpop.f32.mrf.mxu1 }
 0x275   : > { %v3557_v22 = vadd.f32 %v3556_v15, %v3514_v17  ;;  %v3598_v26 = vadd.f32 %v3597_v16, %v3555_v19 }
 0x276   : > { %v3599_v24 = vpop.f32.mrf.mxu1 }
 0x277   : > { %v3600_v29 = vadd.f32 %v3599_v24, %v3557_v22 }
 0x2ae   : > { %v3636_v20 = vpop.f32.mrf.mxu0 }
 0x2af   : > { %v3637_v23 = vadd.f32 %v3636_v20, %v3594_v18 }
 0x2b0   : > { %v3638_v25 = vpop.f32.mrf.mxu0 }
 0x2b1   : > { %v3639_v27 = vadd.f32 %v3638_v25, %v3596_v21  ;;  %v3645_v30 = vmax.f32 %v3637_v23, 0.0 }
 0x2b2   : > { %v3640_v28 = vpop.f32.mrf.mxu0 }
 0x2b3   : > { %v3646_v31 = vmax.f32 %v3639_v27, 0.0  ;;  %v3641_v32 = vadd.f32 %v3640_v28, %v3598_v26 }
 0x2b4   : > { %v3642_v33 = vpop.f32.mrf.mxu0 }
 0x2b5   : > { %v4129_v34 = vpack.c.bf16 %v3646_v31, %v3645_v30  ;;  %v3643_v35 = vadd.f32 %v3642_v33, %v3600_v29  ;;  %v3647_v36 = vmax.f32 %v3641_v32, 0.0 }
 0x2b7   : > { %3661 = vst [vmem:[%s1394_s18] sm:$0xff] %v4129_v34  ;;  %v3648_v37 = vmax.f32 %v3643_v35, 0.0  ;;  %3669 = sbr.rel (!%p4728_p6) target bundleno = 708 (0x2c4), region = 74 }
 0x2b9   : > { %v4130_v38 = vpack.c.bf16 %v3648_v37, %v3647_v36 }
 0x2bb   : > { %3662 = vst [vmem:[%s1394_s18 + $0x8] sm:$0xff] %v4130_v38 }
 0x2be   : > { %v3706_v39 = vld [vmem:[%s1394_s18] sm:$0xff] }
 0x2bf   : > { %3707 = vst [vmem:[%s3675_s20] sm:$0xff] %v3706_v39 }
 0x2c2   : > { %v3708_v40 = vld [vmem:[%s1394_s18 + $0x8] sm:$0xff] }
 0x2c3   : > { %3709 = vst [vmem:[%s3675_s20 + $0x10] sm:$0xff] %v3708_v40 }
 0x2c4 PF: > { %s13_s16 = sadd.s32 1, %s4671_s16   ;;  %s5702_s12 = smov %s4659_s13 }
 0x2c5   : > { %p10_p12 = scmp.ge.s32.totalorder %s13_s16, 4   ;;  %s5703_s13 = smov %s4733_s22 }
 0x2c6   : > { %s5704_s14 = smov %s4667_s15  ;;  %s5705_s15 = smov %s5707_s17 }
 0x2c7   :  { %12 = sbr.rel (!%p10_p12) target bundleno = 3 (0x3), region = 149 }

// kernel: autoencoder_forward.10
= control target key start
LH: loop header
LB: loop body
LE: loop exit
PB: predicated region body
PF: predicated region fallthrough
CT: control target
= control target key end

     0   :  { %s2419_s12 = smov 0   ;;  %s2421_s13 = smov 0   ;;  %s2920_s0 = inlined_call_operand.vmem [shape: bf16[32,1152], index: 0, kind: input, shape index: {}]   ;;  %s2921_s1 = inlined_call_operand.vmem [shape: bf16[1152,256], index: 1, kind: input, shape index: {}]   ;;  %s2922_s2 = inlined_call_operand.vmem [shape: f32[1,256], index: 2, kind: input, shape index: {}]   ;;  %s2923_s3 = inlined_call_operand.vmem [shape: bf16[32,256], index: 3, kind: output, shape index: {}]  }
   0x1   :  { %s2423_s14 = smov 0   ;;  %s2425_s15 = smov 0  }
   0x2   :  { %s2427_s16 = smov 0  }
   0x3 LB: > { %s22_s17 = sadd.s32 1, %s2393_s15  ;;  %s1955_s18 = sadd.s32 4294967295, %s2397_s16   ;;  %s2397_s16 = sphi %s2427_s16, %s13_s16   ;;  %s2393_s15 = sphi %s2425_s15, %s2928_s15   ;;  %s2389_s14 = sphi %s2423_s14, %s2927_s14   ;;  %s2385_s13 = sphi %s2421_s13, %s2926_s13   ;;  %s2381_s12 = sphi %s2419_s12, %s2925_s12  }
   0x4   : > { %p23_p0 = scmp.ge.s32.totalorder %s22_s17, 2  ;;  %p65_p1 = scmp.ne.s32.totalorder %s2385_s13, %s2381_s12 }
   0x5   : > { %p66_p2 = scmp.eq.s32.totalorder %s2397_s16, 0  ;;  %p123_p4 = scmp.eq.s32.totalorder %s1955_s18, 1 }
   0x6   : > { %s2930_s17 = smov (%p23_p0, %s22_s17), 0  ;;  %s58_s20 = sadd.s32 1, %s2385_s13 }
   0x7   : > { %p67_p3 = por %p66_p2, %p65_p1  ;;  %s55_s19 = ssub.s32 %s2393_s15, %s2930_s17 }
   0x8   : > { %p56_p5 = scmp.eq.s32.totalorder %s55_s19, 0  ;;  %p2454_p6 = por %p123_p4, %p65_p1 }
   0x9   : > { %p1959_p7 = scmp.ge.s32.totalorder %s2397_s16, 2 }
   0xa   : > { %s2459_s22 = scalar_select %p56_p5, %s2385_s13, %s58_s20  }
   0xb   : > { %155 = sbr.rel (%p1959_p7) target bundleno = 116 (0x74), region = 20 }
  0x10   : > { %158 = sbr.rel (!%p67_p3) target bundleno = 116 (0x74), region = 24  ;;  %s160_s23 = sand.u32 (%p67_p3), 1, %s2385_s13  }
  0x11   : > { %s1960_s24 = sshll.u32 (%p67_p3), %s2393_s15, 2  ;;  %s2219_s25 = smul.u32 (%p67_p3), 576, %s160_s23 }
  0x12   : > { %s2467_s28 = scalar_lea.vmem (%p67_p3), %s2921_s1, %s1960_s24 }
  0x13   : > { %v181_v0 = vld [vmem:[%s2467_s28] sm:$0xf] (%p67_p3)  ;;  %v183_v1 = vld [vmem:[%s2467_s28 + $0x8] sm:$0xf] (%p67_p3)  ;;  %v185_v2 = vld [vmem:[%s2467_s28 + $0x10] sm:$0xf] (%p67_p3) }
  0x14   : > { %v187_v3 = vld [vmem:[%s2467_s28 + $0x18] sm:$0xf] (%p67_p3)  ;;  %v189_v4 = vld [vmem:[%s2467_s28 + $0x20] sm:$0xf] (%p67_p3)  ;;  %s2474_s29 = scalar_lea.vmem (%p67_p3), [#allocation2], %s2219_s25 }
  0x15   : > { %182 = vst [vmem:[%s2474_s29] sm:$0xf] %v181_v0  ;;  %184 = vst [vmem:[%s2474_s29 + $0x4] sm:$0xf] %v183_v1  ;;  %v191_v5 = vld [vmem:[%s2467_s28 + $0x28] sm:$0xf] }
  0x16   : > { %186 = vst [vmem:[%s2474_s29 + $0x8] sm:$0xf] %v185_v2  ;;  %188 = vst [vmem:[%s2474_s29 + $0xc] sm:$0xf] %v187_v3  ;;  %v193_v6 = vld [vmem:[%s2467_s28 + $0x30] sm:$0xf] }
  0x17   : > { %190 = vst [vmem:[%s2474_s29 + $0x10] sm:$0xf] %v189_v4  ;;  %v195_v7 = vld [vmem:[%s2467_s28 + $0x38] sm:$0xf]  ;;  %192 = vst [vmem:[%s2474_s29 + $0x14] sm:$0xf] %v191_v5 }
  0x18   : > { %194 = vst [vmem:[%s2474_s29 + $0x18] sm:$0xf] %v193_v6  ;;  %196 = vst [vmem:[%s2474_s29 + $0x1c] sm:$0xf] %v195_v7  ;;  %v197_v8 = vld [vmem:[%s2467_s28 + $0x40] sm:$0xf] }
  0x19   : > { %v199_v9 = vld [vmem:[%s2467_s28 + $0x48] sm:$0xf]  ;;  %v201_v10 = vld [vmem:[%s2467_s28 + $0x50] sm:$0xf]  ;;  %198 = vst [vmem:[%s2474_s29 + $0x20] sm:$0xf] %v197_v8 }
  0x1a   : > { %200 = vst [vmem:[%s2474_s29 + $0x24] sm:$0xf] %v199_v9  ;;  %202 = vst [vmem:[%s2474_s29 + $0x28] sm:$0xf] %v201_v10  ;;  %v203_v11 = vld [vmem:[%s2467_s28 + $0x58] sm:$0xf] }
  0x1b   : > { %v205_v12 = vld [vmem:[%s2467_s28 + $0x60] sm:$0xf]  ;;  %v207_v13 = vld [vmem:[%s2467_s28 + $0x68] sm:$0xf]  ;;  %204 = vst [vmem:[%s2474_s29 + $0x2c] sm:$0xf] %v203_v11 }
  0x1c   : > { %206 = vst [vmem:[%s2474_s29 + $0x30] sm:$0xf] %v205_v12  ;;  %208 = vst [vmem:[%s2474_s29 + $0x34] sm:$0xf] %v207_v13  ;;  %v209_v14 = vld [vmem:[%s2467_s28 + $0x70] sm:$0xf] }
  0x1d   : > { %v211_v15 = vld [vmem:[%s2467_s28 + $0x78] sm:$0xf]  ;;  %v213_v16 = vld [vmem:[%s2467_s28 + $0x80] sm:$0xf]  ;;  %210 = vst [vmem:[%s2474_s29 + $0x38] sm:$0xf] %v209_v14 }
  0x1e   : > { %212 = vst [vmem:[%s2474_s29 + $0x3c] sm:$0xf] %v211_v15  ;;  %214 = vst [vmem:[%s2474_s29 + $0x40] sm:$0xf] %v213_v16  ;;  %v215_v17 = vld [vmem:[%s2467_s28 + $0x88] sm:$0xf] }
  0x1f   : > { %v217_v18 = vld [vmem:[%s2467_s28 + $0x90] sm:$0xf]  ;;  %v219_v19 = vld [vmem:[%s2467_s28 + $0x98] sm:$0xf]  ;;  %216 = vst [vmem:[%s2474_s29 + $0x44] sm:$0xf] %v215_v17 }
  0x20   : > { %218 = vst [vmem:[%s2474_s29 + $0x48] sm:$0xf] %v217_v18  ;;  %220 = vst [vmem:[%s2474_s29 + $0x4c] sm:$0xf] %v219_v19  ;;  %v221_v20 = vld [vmem:[%s2467_s28 + $0xa0] sm:$0xf] }
  0x21   : > { %v223_v21 = vld [vmem:[%s2467_s28 + $0xa8] sm:$0xf]  ;;  %v225_v22 = vld [vmem:[%s2467_s28 + $0xb0] sm:$0xf]  ;;  %222 = vst [vmem:[%s2474_s29 + $0x50] sm:$0xf] %v221_v20 }
  0x22   : > { %224 = vst [vmem:[%s2474_s29 + $0x54] sm:$0xf] %v223_v21  ;;  %226 = vst [vmem:[%s2474_s29 + $0x58] sm:$0xf] %v225_v22  ;;  %v227_v23 = vld [vmem:[%s2467_s28 + $0xb8] sm:$0xf] }
  0x23   : > { %v229_v24 = vld [vmem:[%s2467_s28 + $0xc0] sm:$0xf]  ;;  %v231_v25 = vld [vmem:[%s2467_s28 + $0xc8] sm:$0xf]  ;;  %228 = vst [vmem:[%s2474_s29 + $0x5c] sm:$0xf] %v227_v23 }
  0x24   : > { %230 = vst [vmem:[%s2474_s29 + $0x60] sm:$0xf] %v229_v24  ;;  %232 = vst [vmem:[%s2474_s29 + $0x64] sm:$0xf] %v231_v25  ;;  %v233_v26 = vld [vmem:[%s2467_s28 + $0xd0] sm:$0xf] }
  0x25   : > { %v235_v27 = vld [vmem:[%s2467_s28 + $0xd8] sm:$0xf]  ;;  %v237_v28 = vld [vmem:[%s2467_s28 + $0xe0] sm:$0xf]  ;;  %234 = vst [vmem:[%s2474_s29 + $0x68] sm:$0xf] %v233_v26 }
  0x26   : > { %236 = vst [vmem:[%s2474_s29 + $0x6c] sm:$0xf] %v235_v27  ;;  %238 = vst [vmem:[%s2474_s29 + $0x70] sm:$0xf] %v237_v28  ;;  %v239_v29 = vld [vmem:[%s2467_s28 + $0xe8] sm:$0xf] }
  0x27   : > { %v241_v30 = vld [vmem:[%s2467_s28 + $0xf0] sm:$0xf]  ;;  %v243_v31 = vld [vmem:[%s2467_s28 + $0xf8] sm:$0xf]  ;;  %240 = vst [vmem:[%s2474_s29 + $0x74] sm:$0xf] %v239_v29 }
  0x28   : > { %242 = vst [vmem:[%s2474_s29 + $0x78] sm:$0xf] %v241_v30  ;;  %244 = vst [vmem:[%s2474_s29 + $0x7c] sm:$0xf] %v243_v31  ;;  %v245_v32 = vld [vmem:[%s2467_s28 + $0x100] sm:$0xf] }
  0x29   : > { %v247_v33 = vld [vmem:[%s2467_s28 + $0x108] sm:$0xf]  ;;  %v249_v34 = vld [vmem:[%s2467_s28 + $0x110] sm:$0xf]  ;;  %246 = vst [vmem:[%s2474_s29 + $0x80] sm:$0xf] %v245_v32 }
  0x2a   : > { %248 = vst [vmem:[%s2474_s29 + $0x84] sm:$0xf] %v247_v33  ;;  %250 = vst [vmem:[%s2474_s29 + $0x88] sm:$0xf] %v249_v34  ;;  %v251_v35 = vld [vmem:[%s2467_s28 + $0x118] sm:$0xf] }
  0x2b   : > { %v253_v36 = vld [vmem:[%s2467_s28 + $0x120] sm:$0xf]  ;;  %v255_v37 = vld [vmem:[%s2467_s28 + $0x128] sm:$0xf]  ;;  %252 = vst [vmem:[%s2474_s29 + $0x8c] sm:$0xf] %v251_v35 }
  0x2c   : > { %254 = vst [vmem:[%s2474_s29 + $0x90] sm:$0xf] %v253_v36  ;;  %256 = vst [vmem:[%s2474_s29 + $0x94] sm:$0xf] %v255_v37  ;;  %v257_v38 = vld [vmem:[%s2467_s28 + $0x130] sm:$0xf] }
  0x2d   : > { %v259_v39 = vld [vmem:[%s2467_s28 + $0x138] sm:$0xf]  ;;  %v261_v40 = vld [vmem:[%s2467_s28 + $0x140] sm:$0xf]  ;;  %258 = vst [vmem:[%s2474_s29 + $0x98] sm:$0xf] %v257_v38 }
  0x2e   : > { %260 = vst [vmem:[%s2474_s29 + $0x9c] sm:$0xf] %v259_v39  ;;  %262 = vst [vmem:[%s2474_s29 + $0xa0] sm:$0xf] %v261_v40  ;;  %v263_v41 = vld [vmem:[%s2467_s28 + $0x148] sm:$0xf] }
  0x2f   : > { %v265_v42 = vld [vmem:[%s2467_s28 + $0x150] sm:$0xf]  ;;  %v267_v43 = vld [vmem:[%s2467_s28 + $0x158] sm:$0xf]  ;;  %264 = vst [vmem:[%s2474_s29 + $0xa4] sm:$0xf] %v263_v41 }
  0x30   : > { %266 = vst [vmem:[%s2474_s29 + $0xa8] sm:$0xf] %v265_v42  ;;  %268 = vst [vmem:[%s2474_s29 + $0xac] sm:$0xf] %v267_v43  ;;  %v269_v44 = vld [vmem:[%s2467_s28 + $0x160] sm:$0xf] }
  0x31   : > { %v271_v45 = vld [vmem:[%s2467_s28 + $0x168] sm:$0xf]  ;;  %v273_v46 = vld [vmem:[%s2467_s28 + $0x170] sm:$0xf]  ;;  %270 = vst [vmem:[%s2474_s29 + $0xb0] sm:$0xf] %v269_v44 }
  0x32   : > { %272 = vst [vmem:[%s2474_s29 + $0xb4] sm:$0xf] %v271_v45  ;;  %274 = vst [vmem:[%s2474_s29 + $0xb8] sm:$0xf] %v273_v46  ;;  %v275_v47 = vld [vmem:[%s2467_s28 + $0x178] sm:$0xf] }
  0x33   : > { %v277_v48 = vld [vmem:[%s2467_s28 + $0x180] sm:$0xf]  ;;  %v279_v49 = vld [vmem:[%s2467_s28 + $0x188] sm:$0xf]  ;;  %276 = vst [vmem:[%s2474_s29 + $0xbc] sm:$0xf] %v275_v47 }
  0x34   : > { %278 = vst [vmem:[%s2474_s29 + $0xc0] sm:$0xf] %v277_v48  ;;  %280 = vst [vmem:[%s2474_s29 + $0xc4] sm:$0xf] %v279_v49  ;;  %v281_v50 = vld [vmem:[%s2467_s28 + $0x190] sm:$0xf] }
  0x35   : > { %v283_v51 = vld [vmem:[%s2467_s28 + $0x198] sm:$0xf]  ;;  %v285_v52 = vld [vmem:[%s2467_s28 + $0x1a0] sm:$0xf]  ;;  %282 = vst [vmem:[%s2474_s29 + $0xc8] sm:$0xf] %v281_v50 }
  0x36   : > { %284 = vst [vmem:[%s2474_s29 + $0xcc] sm:$0xf] %v283_v51  ;;  %286 = vst [vmem:[%s2474_s29 + $0xd0] sm:$0xf] %v285_v52  ;;  %v287_v53 = vld [vmem:[%s2467_s28 + $0x1a8] sm:$0xf] }
  0x37   : > { %v289_v54 = vld [vmem:[%s2467_s28 + $0x1b0] sm:$0xf]  ;;  %v291_v55 = vld [vmem:[%s2467_s28 + $0x1b8] sm:$0xf]  ;;  %288 = vst [vmem:[%s2474_s29 + $0xd4] sm:$0xf] %v287_v53 }
  0x38   : > { %290 = vst [vmem:[%s2474_s29 + $0xd8] sm:$0xf] %v289_v54  ;;  %292 = vst [vmem:[%s2474_s29 + $0xdc] sm:$0xf] %v291_v55  ;;  %v293_v56 = vld [vmem:[%s2467_s28 + $0x1c0] sm:$0xf] }
  0x39   : > { %v295_v57 = vld [vmem:[%s2467_s28 + $0x1c8] sm:$0xf]  ;;  %v297_v58 = vld [vmem:[%s2467_s28 + $0x1d0] sm:$0xf]  ;;  %294 = vst [vmem:[%s2474_s29 + $0xe0] sm:$0xf] %v293_v56 }
  0x3a   : > { %296 = vst [vmem:[%s2474_s29 + $0xe4] sm:$0xf] %v295_v57  ;;  %298 = vst [vmem:[%s2474_s29 + $0xe8] sm:$0xf] %v297_v58  ;;  %v299_v59 = vld [vmem:[%s2467_s28 + $0x1d8] sm:$0xf] }
  0x3b   : > { %v301_v60 = vld [vmem:[%s2467_s28 + $0x1e0] sm:$0xf]  ;;  %v303_v61 = vld [vmem:[%s2467_s28 + $0x1e8] sm:$0xf]  ;;  %300 = vst [vmem:[%s2474_s29 + $0xec] sm:$0xf] %v299_v59 }
  0x3c   : > { %302 = vst [vmem:[%s2474_s29 + $0xf0] sm:$0xf] %v301_v60  ;;  %304 = vst [vmem:[%s2474_s29 + $0xf4] sm:$0xf] %v303_v61  ;;  %v305_v62 = vld [vmem:[%s2467_s28 + $0x1f0] sm:$0xf] }
  0x3d   : > { %v307_v63 = vld [vmem:[%s2467_s28 + $0x1f8] sm:$0xf]  ;;  %v309_v0 = vld [vmem:[%s2467_s28 + $0x200] sm:$0xf]  ;;  %306 = vst [vmem:[%s2474_s29 + $0xf8] sm:$0xf] %v305_v62 }
  0x3e   : > { %308 = vst [vmem:[%s2474_s29 + $0xfc] sm:$0xf] %v307_v63  ;;  %310 = vst [vmem:[%s2474_s29 + $0x100] sm:$0xf] %v309_v0  ;;  %v311_v1 = vld [vmem:[%s2467_s28 + $0x208] sm:$0xf] }
  0x3f   : > { %v313_v2 = vld [vmem:[%s2467_s28 + $0x210] sm:$0xf]  ;;  %v315_v3 = vld [vmem:[%s2467_s28 + $0x218] sm:$0xf]  ;;  %312 = vst [vmem:[%s2474_s29 + $0x104] sm:$0xf] %v311_v1 }
  0x40   : > { %314 = vst [vmem:[%s2474_s29 + $0x108] sm:$0xf] %v313_v2  ;;  %316 = vst [vmem:[%s2474_s29 + $0x10c] sm:$0xf] %v315_v3  ;;  %v317_v4 = vld [vmem:[%s2467_s28 + $0x220] sm:$0xf] }
  0x41   : > { %v319_v5 = vld [vmem:[%s2467_s28 + $0x228] sm:$0xf]  ;;  %v321_v6 = vld [vmem:[%s2467_s28 + $0x230] sm:$0xf]  ;;  %318 = vst [vmem:[%s2474_s29 + $0x110] sm:$0xf] %v317_v4 }
  0x42   : > { %320 = vst [vmem:[%s2474_s29 + $0x114] sm:$0xf] %v319_v5  ;;  %322 = vst [vmem:[%s2474_s29 + $0x118] sm:$0xf] %v321_v6  ;;  %v323_v7 = vld [vmem:[%s2467_s28 + $0x238] sm:$0xf] }
  0x43   : > { %v325_v8 = vld [vmem:[%s2467_s28 + $0x240] sm:$0xf]  ;;  %v327_v9 = vld [vmem:[%s2467_s28 + $0x248] sm:$0xf]  ;;  %324 = vst [vmem:[%s2474_s29 + $0x11c] sm:$0xf] %v323_v7 }
  0x44   : > { %326 = vst [vmem:[%s2474_s29 + $0x120] sm:$0xf] %v325_v8  ;;  %328 = vst [vmem:[%s2474_s29 + $0x124] sm:$0xf] %v327_v9  ;;  %v329_v10 = vld [vmem:[%s2467_s28 + $0x250] sm:$0xf] }
  0x45   : > { %v331_v11 = vld [vmem:[%s2467_s28 + $0x258] sm:$0xf]  ;;  %v333_v12 = vld [vmem:[%s2467_s28 + $0x260] sm:$0xf]  ;;  %330 = vst [vmem:[%s2474_s29 + $0x128] sm:$0xf] %v329_v10 }
  0x46   : > { %332 = vst [vmem:[%s2474_s29 + $0x12c] sm:$0xf] %v331_v11  ;;  %334 = vst [vmem:[%s2474_s29 + $0x130] sm:$0xf] %v333_v12  ;;  %v335_v13 = vld [vmem:[%s2467_s28 + $0x268] sm:$0xf] }
  0x47   : > { %v337_v14 = vld [vmem:[%s2467_s28 + $0x270] sm:$0xf]  ;;  %v339_v15 = vld [vmem:[%s2467_s28 + $0x278] sm:$0xf]  ;;  %336 = vst [vmem:[%s2474_s29 + $0x134] sm:$0xf] %v335_v13 }
  0x48   : > { %338 = vst [vmem:[%s2474_s29 + $0x138] sm:$0xf] %v337_v14  ;;  %340 = vst [vmem:[%s2474_s29 + $0x13c] sm:$0xf] %v339_v15  ;;  %v341_v16 = vld [vmem:[%s2467_s28 + $0x280] sm:$0xf] }
  0x49   : > { %v343_v17 = vld [vmem:[%s2467_s28 + $0x288] sm:$0xf]  ;;  %v345_v18 = vld [vmem:[%s2467_s28 + $0x290] sm:$0xf]  ;;  %342 = vst [vmem:[%s2474_s29 + $0x140] sm:$0xf] %v341_v16 }
  0x4a   : > { %344 = vst [vmem:[%s2474_s29 + $0x144] sm:$0xf] %v343_v17  ;;  %346 = vst [vmem:[%s2474_s29 + $0x148] sm:$0xf] %v345_v18  ;;  %v347_v19 = vld [vmem:[%s2467_s28 + $0x298] sm:$0xf] }
  0x4b   : > { %v349_v20 = vld [vmem:[%s2467_s28 + $0x2a0] sm:$0xf]  ;;  %v351_v21 = vld [vmem:[%s2467_s28 + $0x2a8] sm:$0xf]  ;;  %348 = vst [vmem:[%s2474_s29 + $0x14c] sm:$0xf] %v347_v19 }
  0x4c   : > { %350 = vst [vmem:[%s2474_s29 + $0x150] sm:$0xf] %v349_v20  ;;  %352 = vst [vmem:[%s2474_s29 + $0x154] sm:$0xf] %v351_v21  ;;  %v353_v22 = vld [vmem:[%s2467_s28 + $0x2b0] sm:$0xf] }
  0x4d   : > { %v355_v23 = vld [vmem:[%s2467_s28 + $0x2b8] sm:$0xf]  ;;  %v357_v24 = vld [vmem:[%s2467_s28 + $0x2c0] sm:$0xf]  ;;  %354 = vst [vmem:[%s2474_s29 + $0x158] sm:$0xf] %v353_v22 }
  0x4e   : > { %356 = vst [vmem:[%s2474_s29 + $0x15c] sm:$0xf] %v355_v23  ;;  %358 = vst [vmem:[%s2474_s29 + $0x160] sm:$0xf] %v357_v24  ;;  %v359_v25 = vld [vmem:[%s2467_s28 + $0x2c8] sm:$0xf] }
  0x4f   : > { %v361_v26 = vld [vmem:[%s2467_s28 + $0x2d0] sm:$0xf]  ;;  %v363_v27 = vld [vmem:[%s2467_s28 + $0x2d8] sm:$0xf]  ;;  %360 = vst [vmem:[%s2474_s29 + $0x164] sm:$0xf] %v359_v25 }
  0x50   : > { %362 = vst [vmem:[%s2474_s29 + $0x168] sm:$0xf] %v361_v26  ;;  %364 = vst [vmem:[%s2474_s29 + $0x16c] sm:$0xf] %v363_v27  ;;  %v365_v28 = vld [vmem:[%s2467_s28 + $0x2e0] sm:$0xf] }
  0x51   : > { %v367_v29 = vld [vmem:[%s2467_s28 + $0x2e8] sm:$0xf]  ;;  %v369_v30 = vld [vmem:[%s2467_s28 + $0x2f0] sm:$0xf]  ;;  %366 = vst [vmem:[%s2474_s29 + $0x170] sm:$0xf] %v365_v28 }
  0x52   : > { %368 = vst [vmem:[%s2474_s29 + $0x174] sm:$0xf] %v367_v29  ;;  %370 = vst [vmem:[%s2474_s29 + $0x178] sm:$0xf] %v369_v30  ;;  %v371_v31 = vld [vmem:[%s2467_s28 + $0x2f8] sm:$0xf] }
  0x53   : > { %v373_v32 = vld [vmem:[%s2467_s28 + $0x300] sm:$0xf]  ;;  %v375_v33 = vld [vmem:[%s2467_s28 + $0x308] sm:$0xf]  ;;  %372 = vst [vmem:[%s2474_s29 + $0x17c] sm:$0xf] %v371_v31 }
  0x54   : > { %374 = vst [vmem:[%s2474_s29 + $0x180] sm:$0xf] %v373_v32  ;;  %376 = vst [vmem:[%s2474_s29 + $0x184] sm:$0xf] %v375_v33  ;;  %v377_v34 = vld [vmem:[%s2467_s28 + $0x310] sm:$0xf] }
  0x55   : > { %v379_v35 = vld [vmem:[%s2467_s28 + $0x318] sm:$0xf]  ;;  %v381_v36 = vld [vmem:[%s2467_s28 + $0x320] sm:$0xf]  ;;  %378 = vst [vmem:[%s2474_s29 + $0x188] sm:$0xf] %v377_v34 }
  0x56   : > { %380 = vst [vmem:[%s2474_s29 + $0x18c] sm:$0xf] %v379_v35  ;;  %382 = vst [vmem:[%s2474_s29 + $0x190] sm:$0xf] %v381_v36  ;;  %v383_v37 = vld [vmem:[%s2467_s28 + $0x328] sm:$0xf] }
  0x57   : > { %v385_v38 = vld [vmem:[%s2467_s28 + $0x330] sm:$0xf]  ;;  %v387_v39 = vld [vmem:[%s2467_s28 + $0x338] sm:$0xf]  ;;  %384 = vst [vmem:[%s2474_s29 + $0x194] sm:$0xf] %v383_v37 }
  0x58   : > { %386 = vst [vmem:[%s2474_s29 + $0x198] sm:$0xf] %v385_v38  ;;  %388 = vst [vmem:[%s2474_s29 + $0x19c] sm:$0xf] %v387_v39  ;;  %v389_v40 = vld [vmem:[%s2467_s28 + $0x340] sm:$0xf] }
  0x59   : > { %v391_v41 = vld [vmem:[%s2467_s28 + $0x348] sm:$0xf]  ;;  %v393_v42 = vld [vmem:[%s2467_s28 + $0x350] sm:$0xf]  ;;  %390 = vst [vmem:[%s2474_s29 + $0x1a0] sm:$0xf] %v389_v40 }
  0x5a   : > { %392 = vst [vmem:[%s2474_s29 + $0x1a4] sm:$0xf] %v391_v41  ;;  %394 = vst [vmem:[%s2474_s29 + $0x1a8] sm:$0xf] %v393_v42  ;;  %v395_v43 = vld [vmem:[%s2467_s28 + $0x358] sm:$0xf] }
  0x5b   : > { %v397_v44 = vld [vmem:[%s2467_s28 + $0x360] sm:$0xf]  ;;  %v399_v45 = vld [vmem:[%s2467_s28 + $0x368] sm:$0xf]  ;;  %396 = vst [vmem:[%s2474_s29 + $0x1ac] sm:$0xf] %v395_v43 }
  0x5c   : > { %398 = vst [vmem:[%s2474_s29 + $0x1b0] sm:$0xf] %v397_v44  ;;  %400 = vst [vmem:[%s2474_s29 + $0x1b4] sm:$0xf] %v399_v45  ;;  %v401_v46 = vld [vmem:[%s2467_s28 + $0x370] sm:$0xf] }
  0x5d   : > { %v403_v47 = vld [vmem:[%s2467_s28 + $0x378] sm:$0xf]  ;;  %v405_v48 = vld [vmem:[%s2467_s28 + $0x380] sm:$0xf]  ;;  %402 = vst [vmem:[%s2474_s29 + $0x1b8] sm:$0xf] %v401_v46 }
  0x5e   : > { %404 = vst [vmem:[%s2474_s29 + $0x1bc] sm:$0xf] %v403_v47  ;;  %406 = vst [vmem:[%s2474_s29 + $0x1c0] sm:$0xf] %v405_v48  ;;  %v407_v49 = vld [vmem:[%s2467_s28 + $0x388] sm:$0xf] }
  0x5f   : > { %v409_v50 = vld [vmem:[%s2467_s28 + $0x390] sm:$0xf]  ;;  %v411_v51 = vld [vmem:[%s2467_s28 + $0x398] sm:$0xf]  ;;  %408 = vst [vmem:[%s2474_s29 + $0x1c4] sm:$0xf] %v407_v49 }
  0x60   : > { %410 = vst [vmem:[%s2474_s29 + $0x1c8] sm:$0xf] %v409_v50  ;;  %412 = vst [vmem:[%s2474_s29 + $0x1cc] sm:$0xf] %v411_v51  ;;  %v413_v52 = vld [vmem:[%s2467_s28 + $0x3a0] sm:$0xf] }
  0x61   : > { %v415_v53 = vld [vmem:[%s2467_s28 + $0x3a8] sm:$0xf]  ;;  %v417_v54 = vld [vmem:[%s2467_s28 + $0x3b0] sm:$0xf]  ;;  %414 = vst [vmem:[%s2474_s29 + $0x1d0] sm:$0xf] %v413_v52 }
  0x62   : > { %416 = vst [vmem:[%s2474_s29 + $0x1d4] sm:$0xf] %v415_v53  ;;  %418 = vst [vmem:[%s2474_s29 + $0x1d8] sm:$0xf] %v417_v54  ;;  %v419_v55 = vld [vmem:[%s2467_s28 + $0x3b8] sm:$0xf] }
  0x63   : > { %v421_v56 = vld [vmem:[%s2467_s28 + $0x3c0] sm:$0xf]  ;;  %v423_v57 = vld [vmem:[%s2467_s28 + $0x3c8] sm:$0xf]  ;;  %420 = vst [vmem:[%s2474_s29 + $0x1dc] sm:$0xf] %v419_v55 }
  0x64   : > { %422 = vst [vmem:[%s2474_s29 + $0x1e0] sm:$0xf] %v421_v56  ;;  %424 = vst [vmem:[%s2474_s29 + $0x1e4] sm:$0xf] %v423_v57  ;;  %v425_v58 = vld [vmem:[%s2467_s28 + $0x3d0] sm:$0xf] }
  0x65   : > { %v427_v59 = vld [vmem:[%s2467_s28 + $0x3d8] sm:$0xf]  ;;  %v429_v60 = vld [vmem:[%s2467_s28 + $0x3e0] sm:$0xf]  ;;  %426 = vst [vmem:[%s2474_s29 + $0x1e8] sm:$0xf] %v425_v58 }
  0x66   : > { %428 = vst [vmem:[%s2474_s29 + $0x1ec] sm:$0xf] %v427_v59  ;;  %430 = vst [vmem:[%s2474_s29 + $0x1f0] sm:$0xf] %v429_v60  ;;  %v431_v61 = vld [vmem:[%s2467_s28 + $0x3e8] sm:$0xf] }
  0x67   : > { %v433_v62 = vld [vmem:[%s2467_s28 + $0x3f0] sm:$0xf]  ;;  %v435_v63 = vld [vmem:[%s2467_s28 + $0x3f8] sm:$0xf]  ;;  %432 = vst [vmem:[%s2474_s29 + $0x1f4] sm:$0xf] %v431_v61 }
  0x68   : > { %434 = vst [vmem:[%s2474_s29 + $0x1f8] sm:$0xf] %v433_v62  ;;  %436 = vst [vmem:[%s2474_s29 + $0x1fc] sm:$0xf] %v435_v63  ;;  %v437_v0 = vld [vmem:[%s2467_s28 + $0x400] sm:$0xf] }
  0x69   : > { %v439_v1 = vld [vmem:[%s2467_s28 + $0x408] sm:$0xf]  ;;  %v441_v2 = vld [vmem:[%s2467_s28 + $0x410] sm:$0xf]  ;;  %438 = vst [vmem:[%s2474_s29 + $0x200] sm:$0xf] %v437_v0 }
  0x6a   : > { %440 = vst [vmem:[%s2474_s29 + $0x204] sm:$0xf] %v439_v1  ;;  %442 = vst [vmem:[%s2474_s29 + $0x208] sm:$0xf] %v441_v2  ;;  %v443_v3 = vld [vmem:[%s2467_s28 + $0x418] sm:$0xf] }
  0x6b   : > { %v445_v4 = vld [vmem:[%s2467_s28 + $0x420] sm:$0xf]  ;;  %v447_v5 = vld [vmem:[%s2467_s28 + $0x428] sm:$0xf]  ;;  %444 = vst [vmem:[%s2474_s29 + $0x20c] sm:$0xf] %v443_v3 }
  0x6c   : > { %446 = vst [vmem:[%s2474_s29 + $0x210] sm:$0xf] %v445_v4  ;;  %448 = vst [vmem:[%s2474_s29 + $0x214] sm:$0xf] %v447_v5  ;;  %v449_v6 = vld [vmem:[%s2467_s28 + $0x430] sm:$0xf] }
  0x6d   : > { %v451_v7 = vld [vmem:[%s2467_s28 + $0x438] sm:$0xf]  ;;  %v453_v8 = vld [vmem:[%s2467_s28 + $0x440] sm:$0xf]  ;;  %450 = vst [vmem:[%s2474_s29 + $0x218] sm:$0xf] %v449_v6 }
  0x6e   : > { %452 = vst [vmem:[%s2474_s29 + $0x21c] sm:$0xf] %v451_v7  ;;  %454 = vst [vmem:[%s2474_s29 + $0x220] sm:$0xf] %v453_v8  ;;  %v455_v9 = vld [vmem:[%s2467_s28 + $0x448] sm:$0xf] }
  0x6f   : > { %v457_v10 = vld [vmem:[%s2467_s28 + $0x450] sm:$0xf]  ;;  %v459_v11 = vld [vmem:[%s2467_s28 + $0x458] sm:$0xf]  ;;  %456 = vst [vmem:[%s2474_s29 + $0x224] sm:$0xf] %v455_v9 }
  0x70   : > { %458 = vst [vmem:[%s2474_s29 + $0x228] sm:$0xf] %v457_v10  ;;  %460 = vst [vmem:[%s2474_s29 + $0x22c] sm:$0xf] %v459_v11  ;;  %v461_v12 = vld [vmem:[%s2467_s28 + $0x460] sm:$0xf] }
  0x71   : > { %v463_v13 = vld [vmem:[%s2467_s28 + $0x468] sm:$0xf]  ;;  %v465_v14 = vld [vmem:[%s2467_s28 + $0x470] sm:$0xf]  ;;  %462 = vst [vmem:[%s2474_s29 + $0x230] sm:$0xf] %v461_v12 }
  0x72   : > { %464 = vst [vmem:[%s2474_s29 + $0x234] sm:$0xf] %v463_v13  ;;  %466 = vst [vmem:[%s2474_s29 + $0x238] sm:$0xf] %v465_v14  ;;  %v467_v15 = vld [vmem:[%s2467_s28 + $0x478] sm:$0xf] }
  0x73   : > { %468 = vst [vmem:[%s2474_s29 + $0x23c] sm:$0xf] %v467_v15 }
  0x74 PF: > { %p1961_p8 = scmp.ge.s32.totalorder %s2397_s16, 1  ;;  %p785_p9 = scmp.lt.s32.totalorder %s2397_s16, 3 }
  0x76   : > { %p786_p10 = pnand %p1961_p8, %p785_p9 }
  0x77   : > { %s792_s30 = sand.u32 (!%p786_p10), 1, %s2381_s12   ;;  %p830_p11 = scmp.lt.s32.totalorder (!%p786_p10), %s2389_s14, 1 }
  0x78   : > { %789 = sbr.rel (%p786_p10) target bundleno = 437 (0x1b5), region = 69  ;;  %s1962_s11 = sshll.u32 (!%p786_p10), %s792_s30, 4 }
  0x79   : > { %s2220_s4 = smul.u32 (!%p786_p10), 576, %s792_s30  ;;  %s822_s18 = scalar_lea.vmem (!%p786_p10), [#allocation3], %s1962_s11 }
  0x7b   : > { %s2770_s9 = scalar_lea.vmem (!%p786_p10), [#allocation2], %s2220_s4 }
  0x7d   : > { %v2294_v16 = vld [vmem:[%s2920_s0 + $0x4] ss:$36 sps:$4 sm:$0xff]   ;;  %v2299_v17 = vld [vmem:[%s2920_s0 + $0xc] ss:$36 sps:$4 sm:$0xff]   ;;  %v2261_v18 = vld [vmem:[%s2770_s9 + $0x78] sm:$0xff]   ;;  %s2059_s19 = sshll.u32 (%p2454_p6), %s2389_s14, 2 }
  0x7e   : > { %1562 = vmatprep.mubr.bf16.mxu0 %v2294_v16  ;;  %1611 = vmatprep.mubr.bf16.mxu1 %v2299_v17  ;;  %v2262_v19 = vld [vmem:[%s2770_s9 + $0x38] sm:$0xff]   ;;  %v2265_v22 = vld [vmem:[%s2770_s9 + $0x70] sm:$0xff]   ;;  %v2269_v26 = vld [vmem:[%s2770_s9 + $0x68] sm:$0xff]   ;;  %s1810_s20 = scalar_lea.vmem (%p2454_p6), %s2923_s3, %s2059_s19 }
  0x7f   : > { %2077 = vmatprep.subr.bf16.mxu0 %v2261_v18  ;;  %v2263_v20 = vld [vmem:[%s2770_s9 + $0xf8] sm:$0xff]   ;;  %v2266_v23 = vld [vmem:[%s2770_s9 + $0x30] sm:$0xff]   ;;  %v2270_v27 = vld [vmem:[%s2770_s9 + $0x28] sm:$0xff]  }
  0x80   : > { %2078 = vmatpush3.bf16.msra.mxu0 %v2262_v19  ;;  %v2264_v21 = vld [vmem:[%s2770_s9 + $0xb8] sm:$0xff]   ;;  %2105 = vmatprep.subr.bf16.mxu1 %v2263_v20  ;;  %v2267_v24 = vld [vmem:[%s2770_s9 + $0xf0] sm:$0xff]   ;;  %v2271_v28 = vld [vmem:[%s2770_s9 + $0xe8] sm:$0xff]  }
  0x81   : > { %2106 = vmatpush3.bf16.msra.mxu1 %v2264_v21  ;;  %2079 = vmatprep.subr.bf16.mxu0 %v2265_v22  ;;  %v2268_v25 = vld [vmem:[%s2770_s9 + $0xb0] sm:$0xff]   ;;  %v2272_v29 = vld [vmem:[%s2770_s9 + $0xa8] sm:$0xff]   ;;  %v2273_v30 = vld [vmem:[%s2770_s9 + $0x60] sm:$0xff]  }
  0x82   : > { %2107 = vmatprep.subr.bf16.mxu1 %v2267_v24  ;;  %v2274_v31 = vld [vmem:[%s2770_s9 + $0x20] sm:$0xff]   ;;  %v2277_v34 = vld [vmem:[%s2770_s9 + $0x58] sm:$0xff]   ;;  %v2281_v38 = vld [vmem:[%s2770_s9 + $0x50] sm:$0xff]  }
  0x83   : > { %v2275_v32 = vld [vmem:[%s2770_s9 + $0xe0] sm:$0xff]   ;;  %v2278_v35 = vld [vmem:[%s2770_s9 + $0x18] sm:$0xff]   ;;  %v2282_v39 = vld [vmem:[%s2770_s9 + $0x10] sm:$0xff]  }
  0x84   : > { %2080 = vmatpush3.bf16.msra.mxu0 %v2266_v23  ;;  %v2276_v33 = vld [vmem:[%s2770_s9 + $0xa0] sm:$0xff]   ;;  %v2279_v36 = vld [vmem:[%s2770_s9 + $0xd8] sm:$0xff]   ;;  %v2283_v40 = vld [vmem:[%s2770_s9 + $0xd0] sm:$0xff]  }
  0x85   : > { %2108 = vmatpush3.bf16.msra.mxu1 %v2268_v25  ;;  %2081 = vmatprep.subr.bf16.mxu0 %v2269_v26  ;;  %v2280_v37 = vld [vmem:[%s2770_s9 + $0x98] sm:$0xff]   ;;  %v2284_v41 = vld [vmem:[%s2770_s9 + $0x90] sm:$0xff]   ;;  %v2285_v42 = vld [vmem:[%s2770_s9 + $0x48] sm:$0xff]  }
  0x86   : > { %2109 = vmatprep.subr.bf16.mxu1 %v2271_v28  ;;  %v2286_v43 = vld [vmem:[%s2770_s9 + $0x8] sm:$0xff]   ;;  %v2289_v46 = vld [vmem:[%s2770_s9 + $0x40] sm:$0xff]   ;;  %v2296_v53 = vld [vmem:[%s2770_s9 + $0x178] sm:$0xff]  }
  0x87   : > { %v2287_v44 = vld [vmem:[%s2770_s9 + $0xc8] sm:$0xff]   ;;  %v2292_v47 = vld [vmem:[%s2920_s0] ss:$36 sps:$4 sm:$0xff]   ;;  %v2300_v54 = vld [vmem:[%s2770_s9 + $0x138] sm:$0xff]  }
  0x88   : > { %2082 = vmatpush3.bf16.msra.mxu0 %v2270_v27  ;;  %v2288_v45 = vld [vmem:[%s2770_s9 + $0x88] sm:$0xff]   ;;  %v2290_v48 = vld [vmem:[%s2770_s9] sm:$0xff]   ;;  %v2301_v55 = vld [vmem:[%s2770_s9 + $0x1f8] sm:$0xff]  }
  0x89   : > { %2110 = vmatpush3.bf16.msra.mxu1 %v2272_v29  ;;  %2083 = vmatprep.subr.bf16.mxu0 %v2273_v30  ;;  %v2317_v49 = vld [vmem:[%s2920_s0 + $0x4c] ss:$36 sps:$4 sm:$0xff]   ;;  %v2291_v50 = vld [vmem:[%s2770_s9 + $0xc0] sm:$0xff]   ;;  %v2302_v56 = vld [vmem:[%s2770_s9 + $0x1b8] sm:$0xff]  }
  0x8a   : > { %2111 = vmatprep.subr.bf16.mxu1 %v2275_v32  ;;  %v2297_v51 = vld [vmem:[%s2920_s0 + $0x8] ss:$36 sps:$4 sm:$0xff]   ;;  %v2295_v52 = vld [vmem:[%s2770_s9 + $0x80] sm:$0xff]   ;;  %v2303_v57 = vld [vmem:[%s2770_s9 + $0x170] sm:$0xff]  }
  0x8b   : > { %v2320_v58 = vld [vmem:[%s2920_s0 + $0x48] ss:$36 sps:$4 sm:$0xff]   ;;  %v2304_v59 = vld [vmem:[%s2770_s9 + $0x130] sm:$0xff]   ;;  %v2311_v2 = vld [vmem:[%s2770_s9 + $0x160] sm:$0xff]  }
  0x8c   : > { %2084 = vmatpush3.bf16.msra.mxu0 %v2274_v31  ;;  %v2305_v60 = vld [vmem:[%s2770_s9 + $0x1f0] sm:$0xff]   ;;  %v2307_v62 = vld [vmem:[%s2770_s9 + $0x168] sm:$0xff]   ;;  %v2312_v3 = vld [vmem:[%s2770_s9 + $0x120] sm:$0xff]  }
  0x8d   : > { %2112 = vmatpush3.bf16.msra.mxu1 %v2276_v33  ;;  %2085 = vmatprep.subr.bf16.mxu0 %v2277_v34  ;;  %v2306_v61 = vld [vmem:[%s2770_s9 + $0x1b0] sm:$0xff]   ;;  %v2308_v63 = vld [vmem:[%s2770_s9 + $0x128] sm:$0xff]   ;;  %v2313_v4 = vld [vmem:[%s2770_s9 + $0x1e0] sm:$0xff]  }
  0x8e   : > { %2113 = vmatprep.subr.bf16.mxu1 %v2279_v36  ;;  %v2309_v0 = vld [vmem:[%s2770_s9 + $0x1e8] sm:$0xff]   ;;  %v2314_v5 = vld [vmem:[%s2770_s9 + $0x1a0] sm:$0xff]   ;;  %v2315_v6 = vld [vmem:[%s2770_s9 + $0x158] sm:$0xff]  }
  0x8f   : > { %v2310_v1 = vld [vmem:[%s2770_s9 + $0x1a8] sm:$0xff]   ;;  %v2316_v7 = vld [vmem:[%s2770_s9 + $0x118] sm:$0xff]   ;;  %v2324_v11 = vld [vmem:[%s2770_s9 + $0x150] sm:$0xff]  }
  0x90   : > { %2086 = vmatpush3.bf16.msra.mxu0 %v2278_v35  ;;  %v2319_v8 = vld [vmem:[%s2770_s9 + $0x1d8] sm:$0xff]   ;;  %v2325_v12 = vld [vmem:[%s2920_s0 + $0x50] ss:$36 sps:$4 sm:$0xff]   ;;  %v2329_v16 = vld [vmem:[%s2770_s9 + $0x148] sm:$0xff]  }
  0x91   : > { %2114 = vmatpush3.bf16.msra.mxu1 %v2280_v37  ;;  %2087 = vmatprep.subr.bf16.mxu0 %v2281_v38  ;;  %v2321_v9 = vld [vmem:[%s2770_s9 + $0x198] sm:$0xff]   ;;  %v2326_v13 = vld [vmem:[%s2770_s9 + $0x110] sm:$0xff]   ;;  %v2330_v17 = vld [vmem:[%s2770_s9 + $0x108] sm:$0xff]  }
  0x92   : > { %2115 = vmatprep.subr.bf16.mxu1 %v2283_v40  ;;  %v2322_v10 = vld [vmem:[%s2920_s0 + $0x54] ss:$36 sps:$4 sm:$0xff]   ;;  %v2331_v18 = vld [vmem:[%s2770_s9 + $0x1c8] sm:$0xff]   ;;  %v2333_v20 = vld [vmem:[%s2770_s9 + $0x140] sm:$0xff]  }
  0x93   : > { %v2327_v14 = vld [vmem:[%s2770_s9 + $0x1d0] sm:$0xff]   ;;  %v2332_v19 = vld [vmem:[%s2770_s9 + $0x188] sm:$0xff]   ;;  %v2334_v21 = vld [vmem:[%s2770_s9 + $0x100] sm:$0xff]  }
  0x94   : > { %2088 = vmatpush3.bf16.msra.mxu0 %v2282_v39  ;;  %v2328_v15 = vld [vmem:[%s2770_s9 + $0x190] sm:$0xff]   ;;  %v2335_v22 = vld [vmem:[%s2770_s9 + $0x1c0] sm:$0xff]   ;;  %v2340_v26 = vld [vmem:[%s2770_s9 + $0x238] sm:$0xff]  }
  0x95   : > { %2116 = vmatpush3.bf16.msra.mxu1 %v2284_v41  ;;  %2089 = vmatprep.subr.bf16.mxu0 %v2285_v42  ;;  %v2336_v23 = vld [vmem:[%s2920_s0 + $0x10] ss:$36 sps:$4 sm:$0xff]   ;;  %v2339_v25 = vld [vmem:[%s2770_s9 + $0x180] sm:$0xff]   ;;  %v2341_v27 = vld [vmem:[%s2920_s0 + $0x18] ss:$36 sps:$4 sm:$0xff]  }
  0x96   : > { %2117 = vmatprep.subr.bf16.mxu1 %v2287_v44  ;;  %v2338_v24 = vld [vmem:[%s2920_s0 + $0x14] ss:$36 sps:$4 sm:$0xff]   ;;  %v2343_v28 = vld [vmem:[%s2920_s0 + $0x1c] ss:$36 sps:$4 sm:$0xff]   ;;  %v2348_v32 = vld [vmem:[%s2770_s9 + $0x228] sm:$0xff]  }
  0x97   : > { %v2344_v29 = vld [vmem:[%s2770_s9 + $0x230] sm:$0xff]   ;;  %v2345_v30 = vld [vmem:[%s2920_s0 + $0x5c] ss:$36 sps:$4 sm:$0xff]   ;;  %v2349_v33 = vld [vmem:[%s2920_s0 + $0x64] ss:$36 sps:$4 sm:$0xff]  }
  0x98   : > { %2090 = vmatpush3.bf16.msra.mxu0 %v2286_v43  ;;  %v2347_v31 = vld [vmem:[%s2920_s0 + $0x58] ss:$36 sps:$4 sm:$0xff]   ;;  %v2351_v34 = vld [vmem:[%s2920_s0 + $0x60] ss:$36 sps:$4 sm:$0xff]   ;;  %v2354_v38 = vld [vmem:[%s2770_s9 + $0x210] sm:$0xff]  }
  0x99   : > { %2118 = vmatpush3.bf16.msra.mxu1 %v2288_v45  ;;  %2091 = vmatprep.subr.bf16.mxu0 %v2289_v46  ;;  %v2352_v35 = vld [vmem:[%s2770_s9 + $0x220] sm:$0xff]   ;;  %v2353_v36 = vld [vmem:[%s2770_s9 + $0x218] sm:$0xff]   ;;  %v2355_v39 = vld [vmem:[%s2770_s9 + $0x208] sm:$0xff]  }
  0x9a   : > { %2119 = vmatprep.subr.bf16.mxu1 %v2291_v50  ;;  %v2357_v37 = vld [vmem:[%s2920_s0 + $0x20] ss:$36 sps:$4 sm:$0xff]   ;;  %v2358_v41 = vld [vmem:[%s2920_s0 + $0x68] ss:$36 sps:$4 sm:$0xff]  }
  0x9b   : > { %v2356_v40 = vld [vmem:[%s2770_s9 + $0x200] sm:$0xff]   ;;  %s831_s9 = scalar_select %p830_p11, %s2389_s14, 1 }
  0x9c   : > { %2092 = vmatpush3.bf16.msra.mxu0 %v2290_v48 }
  0x9d   : > { %2120 = vmatpush3.bf16.msra.mxu1 %v2295_v52  ;;  %2133 = vmatprep.subr.bf16.mxu0 %v2296_v53  ;;  %s832_s10 = scalar_lea.vmem %s2922_s2, %s831_s9 }
  0x9e   : > { %2161 = vmatprep.subr.bf16.mxu1 %v2301_v55 }
  0x9f   : > { %1563 = vmatmul.mubr.bf16.vlgmr.msra.gmra.mxu0 %v2292_v47 }
  0xa0   : > { %2134 = vmatpush3.bf16.msra.mxu0 %v2300_v54  ;;  %1570 = vmatprep.mubr.bf16.mxu0 %v2317_v49 }
  0xa1   : > { %1612 = vmatmul.mubr.bf16.vlgmr.msra.gmra.mxu1 %v2297_v51  ;;  %2135 = vmatprep.subr.bf16.mxu0 %v2303_v57 }
  0xa2   : > { %2162 = vmatpush3.bf16.msra.mxu1 %v2302_v56  ;;  %1619 = vmatprep.mubr.bf16.mxu1 %v2322_v10 }
  0xa3   : > { %2163 = vmatprep.subr.bf16.mxu1 %v2305_v60 }
  0xa4   : > { %2136 = vmatpush3.bf16.msra.mxu0 %v2304_v59 }
  0xa5   : > { %2137 = vmatprep.subr.bf16.mxu0 %v2307_v62 }
  0xa6   : > { %2164 = vmatpush3.bf16.msra.mxu1 %v2306_v61 }
  0xa7   : > { %1571 = vmatmul.mubr.bf16.gmra.mxu0 %v2320_v58  ;;  %2165 = vmatprep.subr.bf16.mxu1 %v2309_v0 }
  0xa8   : > { %2138 = vmatpush3.bf16.msra.mxu0 %v2308_v63  ;;  %1660 = vmatprep.mubr.bf16.mxu0 %v2338_v24 }
  0xa9   : > { %2139 = vmatprep.subr.bf16.mxu0 %v2311_v2  ;;  %1620 = vmatmul.mubr.bf16.gmra.mxu1 %v2325_v12 }
  0xaa   : > { %2166 = vmatpush3.bf16.msra.mxu1 %v2310_v1  ;;  %1709 = vmatprep.mubr.bf16.mxu1 %v2343_v28 }
  0xab   : > { %2167 = vmatprep.subr.bf16.mxu1 %v2313_v4 }
  0xac   : > { %2140 = vmatpush3.bf16.msra.mxu0 %v2312_v3 }
  0xad   : > { %2141 = vmatprep.subr.bf16.mxu0 %v2315_v6 }
  0xae   : > { %2168 = vmatpush3.bf16.msra.mxu1 %v2314_v5 }
  0xaf   : > { %2169 = vmatprep.subr.bf16.mxu1 %v2319_v8 }
  0xb0   : > { %2142 = vmatpush3.bf16.msra.mxu0 %v2316_v7 }
  0xb1   : > { %2143 = vmatprep.subr.bf16.mxu0 %v2324_v11 }
  0xb2   : > { %2170 = vmatpush3.bf16.msra.mxu1 %v2321_v9  ;;  %v1963_v9 = vld [vmem:[%s832_s10] ss:$0 sm:$0xff] }
  0xb3   : > { %2171 = vmatprep.subr.bf16.mxu1 %v2327_v14 }
  0xb4   : > { %2144 = vmatpush3.bf16.msra.mxu0 %v2326_v13 }
  0xb5   : > { %2145 = vmatprep.subr.bf16.mxu0 %v2329_v16 }
  0xb6   : > { %2172 = vmatpush3.bf16.msra.mxu1 %v2328_v15 }
  0xb7   : > { %2173 = vmatprep.subr.bf16.mxu1 %v2331_v18 }
  0xb8   : > { %2146 = vmatpush3.bf16.msra.mxu0 %v2330_v17 }
  0xb9   : > { %2147 = vmatprep.subr.bf16.mxu0 %v2333_v20 }
  0xba   : > { %2174 = vmatpush3.bf16.msra.mxu1 %v2332_v19 }
  0xbb   : > { %2175 = vmatprep.subr.bf16.mxu1 %v2335_v22 }
  0xbc   : > { %2148 = vmatpush3.bf16.msra.mxu0 %v2334_v21 }
  0xbd   : > { %2199 = vmatprep.subr.bf16.mxu0 %v2340_v26 }
  0xbe   : > { %2176 = vmatpush3.bf16.msra.mxu1 %v2339_v25 }
  0xbf   : > { %1661 = vmatmul.mubr.bf16.vlgmr.msra.gmra.mxu0 %v2336_v23 }
  0xc0   : > { %2200 = vmatpush3.bf16.msra.mxu0 %v2340_v26  ;;  %1668 = vmatprep.mubr.bf16.mxu0 %v2345_v30 }
  0xc1   : > { %1710 = vmatmul.mubr.bf16.vlgmr.msra.gmra.mxu1 %v2341_v27  ;;  %2201 = vmatprep.subr.bf16.mxu0 %v2344_v29 }
  0xc2   : > { %1717 = vmatprep.mubr.bf16.mxu1 %v2349_v33 }
  0xc4   : > { %2202 = vmatpush3.bf16.msra.mxu0 %v2344_v29 }
  0xc5   : > { %2203 = vmatprep.subr.bf16.mxu0 %v2348_v32 }
  0xc7   : > { %1669 = vmatmul.mubr.bf16.gmra.mxu0 %v2347_v31 }
  0xc8   : > { %2204 = vmatpush3.bf16.msra.mxu0 %v2348_v32  ;;  %2215 = vmatprep.mubr.bf16.mxu0 %v2357_v37 }
  0xc9   : > { %1718 = vmatmul.mubr.bf16.gmra.mxu1 %v2351_v34  ;;  %2205 = vmatprep.subr.bf16.mxu0 %v2352_v35 }
  0xcc   : > { %2206 = vmatpush3.bf16.msra.mxu0 %v2352_v35 }
  0xcd   : > { %2207 = vmatprep.subr.bf16.mxu0 %v2353_v36 }
  0xd0   : > { %2208 = vmatpush3.bf16.msra.mxu0 %v2353_v36 }
  0xd1   : > { %2209 = vmatprep.subr.bf16.mxu0 %v2354_v38 }
  0xd4   : > { %2210 = vmatpush3.bf16.msra.mxu0 %v2354_v38 }
  0xd5   : > { %2211 = vmatprep.subr.bf16.mxu0 %v2355_v39 }
  0xd8   : > { %2212 = vmatpush3.bf16.msra.mxu0 %v2355_v39 }
  0xd9   : > { %2213 = vmatprep.subr.bf16.mxu0 %v2356_v40 }
  0xdc   : > { %2214 = vmatpush3.bf16.msra.mxu0 %v2356_v40 }
  0xdf   : > { %2216 = vmatmul.mubr.bf16.vlgmr.msra.gmra.mxu0 %v2358_v41 }
 0x15f   : > { %v2093_v42 = vpop.f32.mrf.mxu0 }
 0x161   : > { %v2121_v43 = vpop.f32.mrf.mxu1  ;;  %v2094_v44 = vpop.f32.mrf.mxu0 }
 0x162   : > { %v2095_v6 = vadd.f32 %v2094_v44, %v2093_v42 }
 0x163   : > { %v2122_v45 = vpop.f32.mrf.mxu1  ;;  %v2096_v46 = vpop.f32.mrf.mxu0 }
 0x164   : > { %v1565_v14 = vadd.f32 %v2095_v6, %v1963_v9  ;;  %v2123_v15 = vadd.f32 %v2122_v45, %v2121_v43 }
 0x165   : > { %v2124_v47 = vpop.f32.mrf.mxu1  ;;  %v2097_v48 = vpop.f32.mrf.mxu0 }
 0x166   : > { %v2098_v11 = vadd.f32 %v2097_v48, %v2096_v46  ;;  %v1614_v26 = vadd.f32 %v2123_v15, %v1565_v14 }
 0x167   : > { %v2099_v49 = vpop.f32.mrf.mxu0  ;;  %v2125_v50 = vpop.f32.mrf.mxu1 }
 0x168   : > { %v1568_v21 = vadd.f32 %v2098_v11, %v1963_v9  ;;  %v2126_v22 = vadd.f32 %v2125_v50, %v2124_v47 }
 0x169   : > { %v2127_v51 = vpop.f32.mrf.mxu1  ;;  %v2100_v52 = vpop.f32.mrf.mxu0 }
 0x16a   : > { %v2101_v5 = vadd.f32 %v2100_v52, %v2099_v49  ;;  %v1617_v32 = vadd.f32 %v2126_v22, %v1568_v21 }
 0x16b   : > { %v2128_v53 = vpop.f32.mrf.mxu1  ;;  %v2102_v54 = vpop.f32.mrf.mxu0 }
 0x16c   : > { %v1573_v12 = vadd.f32 %v2101_v5, %v1963_v9  ;;  %v2129_v13 = vadd.f32 %v2128_v53, %v2127_v51 }
 0x16d   : > { %v2130_v55 = vpop.f32.mrf.mxu1  ;;  %v2103_v56 = vpop.f32.mrf.mxu0 }
 0x16e   : > { %v2104_v10 = vadd.f32 %v2103_v56, %v2102_v54  ;;  %v1622_v23 = vadd.f32 %v2129_v13, %v1573_v12 }
 0x16f   : > { %v2131_v58 = vpop.f32.mrf.mxu1 }
 0x170   : > { %v1576_v18 = vadd.f32 %v2104_v10, %v1963_v9  ;;  %v2132_v19 = vadd.f32 %v2131_v58, %v2130_v55 }
 0x172   : > { %v1625_v28 = vadd.f32 %v2132_v19, %v1576_v18 }
 0x17f   : > { %v2149_v57 = vpop.f32.mrf.mxu0 }
 0x181   : > { %v2150_v59 = vpop.f32.mrf.mxu0  ;;  %v2177_v60 = vpop.f32.mrf.mxu1 }
 0x182   : > { %v2151_v24 = vadd.f32 %v2150_v59, %v2149_v57 }
 0x183   : > { %v2152_v61 = vpop.f32.mrf.mxu0  ;;  %v2178_v62 = vpop.f32.mrf.mxu1 }
 0x184   : > { %v1663_v33 = vadd.f32 %v2151_v24, %v1614_v26  ;;  %v2179_v34 = vadd.f32 %v2178_v62, %v2177_v60 }
 0x185   : > { %v2153_v63 = vpop.f32.mrf.mxu0  ;;  %v2180_v0 = vpop.f32.mrf.mxu1 }
 0x186   : > { %v2154_v29 = vadd.f32 %v2153_v63, %v2152_v61  ;;  %v1712_v43 = vadd.f32 %v2179_v34, %v1663_v33 }
 0x187   : > { %v2155_v1 = vpop.f32.mrf.mxu0  ;;  %v2181_v2 = vpop.f32.mrf.mxu1 }
 0x188   : > { %v1666_v38 = vadd.f32 %v2154_v29, %v1617_v32  ;;  %v2182_v39 = vadd.f32 %v2181_v2, %v2180_v0 }
 0x189   : > { %v2156_v3 = vpop.f32.mrf.mxu0  ;;  %v2183_v4 = vpop.f32.mrf.mxu1 }
 0x18a   : > { %v2157_v20 = vadd.f32 %v2156_v3, %v2155_v1  ;;  %v1715_v48 = vadd.f32 %v2182_v39, %v1666_v38 }
 0x18b   : > { %v2158_v7 = vpop.f32.mrf.mxu0  ;;  %v2184_v8 = vpop.f32.mrf.mxu1 }
 0x18c   : > { %v1671_v30 = vadd.f32 %v2157_v20, %v1622_v23  ;;  %v2185_v31 = vadd.f32 %v2184_v8, %v2183_v4 }
 0x18d   : > { %v2159_v16 = vpop.f32.mrf.mxu0  ;;  %v2186_v17 = vpop.f32.mrf.mxu1 }
 0x18e   : > { %v2160_v25 = vadd.f32 %v2159_v16, %v2158_v7  ;;  %v1720_v40 = vadd.f32 %v2185_v31, %v1671_v30 }
 0x18f   : > { %v2187_v27 = vpop.f32.mrf.mxu1 }
 0x190   : > { %v1674_v35 = vadd.f32 %v2160_v25, %v1625_v28  ;;  %v2188_v36 = vadd.f32 %v2187_v27, %v2186_v17 }
 0x192   : > { %v1723_v44 = vadd.f32 %v2188_v36, %v1674_v35 }
 0x19f   : > { %v2217_v37 = vpop.f32.mrf.mxu0 }
 0x1a0   : > { %v1769_v42 = vadd.f32 %v2217_v37, %v1720_v40 }
 0x1a1   : > { %v1760_v41 = vpop.f32.mrf.mxu0 }
 0x1a2   : > { %v1761_v46 = vadd.f32 %v1760_v41, %v1712_v43  ;;  %v1777_v50 = vmax.f32 %v1769_v42, 0.0 }
 0x1a3   : > { %v2218_v45 = vpop.f32.mrf.mxu0 }
 0x1a4   : > { %v1772_v47 = vadd.f32 %v2218_v45, %v1723_v44  ;;  %v1775_v53 = vmax.f32 %v1761_v46, 0.0 }
 0x1a5   : > { %v1763_v49 = vpop.f32.mrf.mxu0 }
 0x1a6   : > { %v1778_v51 = vmax.f32 %v1772_v47, 0.0  ;;  %v1764_v52 = vadd.f32 %v1763_v49, %v1715_v48 }
 0x1a8   : > { %v2074_v54 = vpack.c.bf16 %v1778_v51, %v1777_v50  ;;  %v1776_v55 = vmax.f32 %v1764_v52, 0.0  ;;  %1805 = sbr.rel (!%p2454_p6) target bundleno = 437 (0x1b5), region = 77 }
 0x1aa   : > { %2076 = vst [vmem:[%s822_s18 + $0x8] sm:$0xff] %v2074_v54   ;;  %v2069_v56 = vpack.c.bf16 %v1776_v55, %v1775_v53 }
 0x1ac   : > { %2070 = vst [vmem:[%s822_s18] sm:$0xff] %v2069_v56  }
 0x1b1   : > { %v1831_v59 = vld [vmem:[%s822_s18 + $0x8] sm:$0xf]  ;;  %v1833_v60 = vld [vmem:[%s822_s18 + $0xc] sm:$0xf] }
 0x1b2   : > { %1832 = vst [vmem:[%s1810_s20 + $0x10] sm:$0xf] %v1831_v59  ;;  %1834 = vst [vmem:[%s1810_s20 + $0x18] sm:$0xf] %v1833_v60 }
 0x1b3   : > { %v1827_v57 = vld [vmem:[%s822_s18] sm:$0xf]  ;;  %v1829_v58 = vld [vmem:[%s822_s18 + $0x4] sm:$0xf] }
 0x1b4   : > { %1828 = vst [vmem:[%s1810_s20] sm:$0xf] %v1827_v57  ;;  %1830 = vst [vmem:[%s1810_s20 + $0x8] sm:$0xf] %v1829_v58 }
 0x1b5 PF: > { %s13_s16 = sadd.s32 1, %s2397_s16   ;;  %s2925_s12 = smov %s2385_s13 }
 0x1b6   : > { %p10_p12 = scmp.ge.s32.totalorder %s13_s16, 4   ;;  %s2926_s13 = smov %s2459_s22 }
 0x1b7   : > { %s2927_s14 = smov %s2393_s15  ;;  %s2928_s15 = smov %s2930_s17 }
 0x1b8   :  { %12 = sbr.rel (!%p10_p12) target bundleno = 3 (0x3), region = 155 }

// kernel: autoencoder_forward.11
= control target key start
LH: loop header
LB: loop body
LE: loop exit
PB: predicated region body
PF: predicated region fallthrough
CT: control target
= control target key end

     0   :  { %s1444_s12 = smov 0   ;;  %s1446_s13 = smov 0   ;;  %s1629_s0 = inlined_call_operand.vmem [shape: bf16[128,640], index: 0, kind: input, shape index: {}]   ;;  %s1630_s1 = inlined_call_operand.vmem [shape: bf16[640,128], index: 1, kind: input, shape index: {}]   ;;  %s1631_s2 = inlined_call_operand.vmem [shape: f32[1,128], index: 2, kind: input, shape index: {}]   ;;  %s1632_s3 = inlined_call_operand.vmem [shape: f32[128,128], index: 3, kind: output, shape index: {}]  }
   0x1   :  { %s1448_s14 = smov 0  }
   0x2 LB: > { %s25_s15 = sadd.s32 1, %s1418_s13  ;;  %p1067_p0 = scmp.ge.s32.totalorder %s1422_s14, 1  ;;  %s1422_s14 = sphi %s1448_s14, %s13_s14   ;;  %s1418_s13 = sphi %s1446_s13, %s1634_s13   ;;  %s1414_s12 = sphi %s1444_s12, %s1633_s12  }
   0x3   : > { %p27_p1 = scmp.ge.s32.totalorder %s25_s15, 2  ;;  %p170_p2 = scmp.lt.s32.totalorder %s1422_s14, 3 }
   0x5   : > { %s1636_s15 = smov (%p27_p1, %s25_s15), 0  ;;  %p171_p3 = pnand %p1067_p0, %p170_p2 }
   0x6   : > { %s1068_s23 = sshll.u32 (!%p171_p3), %s1414_s12, 3 }
   0x7   : > { %174 = sbr.rel (%p171_p3) target bundleno = 322 (0x142), region = 32  ;;  %p206_p4 = scmp.lt.s32.totalorder (!%p171_p3), %s1068_s23, 15 }
   0xc   : > { %v1300_v0 = vld [vmem:[%s1630_s1 + $0x78] sm:$0xff]   ;;  %v1304_v4 = vld [vmem:[%s1630_s1 + $0x70] sm:$0xff]   ;;  %v1308_v8 = vld [vmem:[%s1630_s1 + $0x68] sm:$0xff]   ;;  %s1638_s23 = smov (!%p206_p4, %s1068_s23), 15 }
   0xd   : > { %v1301_v1 = vld [vmem:[%s1630_s1 + $0xf8] sm:$0xff]   ;;  %1143 = vmatprep.subr.bf16.mxu0 %v1300_v0  ;;  %v1305_v5 = vld [vmem:[%s1630_s1 + $0xf0] sm:$0xff]   ;;  %v1309_v9 = vld [vmem:[%s1630_s1 + $0xe8] sm:$0xff]   ;;  %s1275_s22 = smul.u32 20, %s1638_s23 }
   0xe   : > { %v1302_v2 = vld [vmem:[%s1630_s1 + $0x38] sm:$0xff]   ;;  %1183 = vmatprep.subr.bf16.mxu1 %v1301_v1  ;;  %v1306_v6 = vld [vmem:[%s1630_s1 + $0x30] sm:$0xff]   ;;  %v1310_v10 = vld [vmem:[%s1630_s1 + $0x28] sm:$0xff]  }
   0xf   : > { %v1303_v3 = vld [vmem:[%s1630_s1 + $0xb8] sm:$0xff]   ;;  %1144 = vmatpush3.bf16.msra.mxu0 %v1302_v2  ;;  %v1307_v7 = vld [vmem:[%s1630_s1 + $0xb0] sm:$0xff]   ;;  %v1311_v11 = vld [vmem:[%s1630_s1 + $0xa8] sm:$0xff]   ;;  %s1561_s6 = scalar_lea.vmem %s1629_s0, %s1275_s22 }
  0x10   : > { %1184 = vmatpush3.bf16.msra.mxu1 %v1303_v3  ;;  %1145 = vmatprep.subr.bf16.mxu0 %v1304_v4  ;;  %v1312_v12 = vld [vmem:[%s1630_s1 + $0x60] sm:$0xff]   ;;  %v1316_v16 = vld [vmem:[%s1630_s1 + $0x58] sm:$0xff]   ;;  %v1320_v20 = vld [vmem:[%s1630_s1 + $0x50] sm:$0xff]  }
  0x11   : > { %1185 = vmatprep.subr.bf16.mxu1 %v1305_v5  ;;  %v1313_v13 = vld [vmem:[%s1630_s1 + $0xe0] sm:$0xff]   ;;  %v1317_v17 = vld [vmem:[%s1630_s1 + $0xd8] sm:$0xff]   ;;  %v1321_v21 = vld [vmem:[%s1630_s1 + $0xd0] sm:$0xff]  }
  0x12   : > { %v1314_v14 = vld [vmem:[%s1630_s1 + $0x20] sm:$0xff]   ;;  %v1318_v18 = vld [vmem:[%s1630_s1 + $0x18] sm:$0xff]   ;;  %v1322_v22 = vld [vmem:[%s1630_s1 + $0x10] sm:$0xff]  }
  0x13   : > { %1146 = vmatpush3.bf16.msra.mxu0 %v1306_v6  ;;  %v1315_v15 = vld [vmem:[%s1630_s1 + $0xa0] sm:$0xff]   ;;  %v1319_v19 = vld [vmem:[%s1630_s1 + $0x98] sm:$0xff]   ;;  %v1323_v23 = vld [vmem:[%s1630_s1 + $0x90] sm:$0xff]  }
  0x14   : > { %1186 = vmatpush3.bf16.msra.mxu1 %v1307_v7  ;;  %1147 = vmatprep.subr.bf16.mxu0 %v1308_v8  ;;  %v1324_v24 = vld [vmem:[%s1630_s1 + $0x48] sm:$0xff]   ;;  %v1328_v28 = vld [vmem:[%s1630_s1 + $0x40] sm:$0xff]   ;;  %v1338_v36 = vld [vmem:[%s1630_s1 + $0x138] sm:$0xff]  }
  0x15   : > { %1187 = vmatprep.subr.bf16.mxu1 %v1309_v9  ;;  %v1325_v25 = vld [vmem:[%s1630_s1 + $0xc8] sm:$0xff]   ;;  %v1329_v29 = vld [vmem:[%s1630_s1 + $0xc0] sm:$0xff]   ;;  %v1339_v37 = vld [vmem:[%s1630_s1 + $0x130] sm:$0xff]  }
  0x16   : > { %v1326_v26 = vld [vmem:[%s1630_s1 + $0x8] sm:$0xff]   ;;  %v1330_v30 = vld [vmem:[%s1630_s1] sm:$0xff]   ;;  %v1350_v45 = vld [vmem:[%s1561_s6 + $0x5c] ss:$20 sps:$4 sm:$0xff]  }
  0x17   : > { %1148 = vmatpush3.bf16.msra.mxu0 %v1310_v10  ;;  %v1327_v27 = vld [vmem:[%s1630_s1 + $0x88] sm:$0xff]   ;;  %v1331_v31 = vld [vmem:[%s1630_s1 + $0x80] sm:$0xff]   ;;  %v1354_v46 = vld [vmem:[%s1630_s1 + $0x118] sm:$0xff]  }
  0x18   : > { %1188 = vmatpush3.bf16.msra.mxu1 %v1311_v11  ;;  %1149 = vmatprep.subr.bf16.mxu0 %v1312_v12  ;;  %v1332_v32 = vld [vmem:[%s1561_s6] ss:$20 sps:$4 sm:$0xff]   ;;  %v1334_v33 = vld [vmem:[%s1561_s6 + $0x4] ss:$20 sps:$4 sm:$0xff]   ;;  %v1335_v34 = vld [vmem:[%s1561_s6 + $0x8] ss:$20 sps:$4 sm:$0xff]  }
  0x19   : > { %1189 = vmatprep.subr.bf16.mxu1 %v1313_v13  ;;  %v1337_v35 = vld [vmem:[%s1561_s6 + $0xc] ss:$20 sps:$4 sm:$0xff]   ;;  %716 = vmatprep.mubr.bf16.mxu0 %v1334_v33  ;;  %v1342_v39 = vld [vmem:[%s1561_s6 + $0x34] ss:$20 sps:$4 sm:$0xff]   ;;  %v1345_v42 = vld [vmem:[%s1561_s6 + $0x30] ss:$20 sps:$4 sm:$0xff]  }
  0x1a   : > { %781 = vmatprep.mubr.bf16.mxu1 %v1337_v35  ;;  %v1340_v38 = vld [vmem:[%s1561_s6 + $0x2c] ss:$20 sps:$4 sm:$0xff]   ;;  %v1344_v40 = vld [vmem:[%s1561_s6 + $0x28] ss:$20 sps:$4 sm:$0xff]   ;;  %v1352_v47 = vld [vmem:[%s1561_s6 + $0x50] ss:$20 sps:$4 sm:$0xff]  }
  0x1b   : > { %1150 = vmatpush3.bf16.msra.mxu0 %v1314_v14  ;;  %v1346_v41 = vld [vmem:[%s1630_s1 + $0x128] sm:$0xff]   ;;  %v1347_v44 = vld [vmem:[%s1630_s1 + $0x120] sm:$0xff]   ;;  %v1356_v49 = vld [vmem:[%s1561_s6 + $0x7c] ss:$20 sps:$4 sm:$0xff]  }
  0x1c   : > { %1190 = vmatpush3.bf16.msra.mxu1 %v1315_v15  ;;  %1151 = vmatprep.subr.bf16.mxu0 %v1316_v16  ;;  %v1348_v43 = vld [vmem:[%s1561_s6 + $0x54] ss:$20 sps:$4 sm:$0xff]   ;;  %v1353_v48 = vld [vmem:[%s1561_s6 + $0x58] ss:$20 sps:$4 sm:$0xff]   ;;  %v1364_v55 = vld [vmem:[%s1561_s6 + $0x10] ss:$20 sps:$4 sm:$0xff]  }
  0x1d   : > { %1191 = vmatprep.subr.bf16.mxu1 %v1317_v17  ;;  %v1358_v50 = vld [vmem:[%s1561_s6 + $0x84] ss:$20 sps:$4 sm:$0xff]   ;;  %v1355_v51 = vld [vmem:[%s1630_s1 + $0x110] sm:$0xff]   ;;  %v1362_v52 = vld [vmem:[%s1630_s1 + $0x108] sm:$0xff]  }
  0x1e   : > { %v1360_v53 = vld [vmem:[%s1561_s6 + $0x78] ss:$20 sps:$4 sm:$0xff]   ;;  %v1361_v54 = vld [vmem:[%s1561_s6 + $0x80] ss:$20 sps:$4 sm:$0xff]   ;;  %v1367_v59 = vld [vmem:[%s1561_s6 + $0x88] ss:$20 sps:$4 sm:$0xff]  }
  0x1f   : > { %1152 = vmatpush3.bf16.msra.mxu0 %v1318_v18  ;;  %v1365_v56 = vld [vmem:[%s1561_s6 + $0x60] ss:$20 sps:$4 sm:$0xff]   ;;  %v1366_v58 = vld [vmem:[%s1561_s6 + $0x38] ss:$20 sps:$4 sm:$0xff]   ;;  %s1071_s6 = sshll.u32 %s1638_s23, 3 }
  0x20   : > { %1192 = vmatpush3.bf16.msra.mxu1 %v1319_v19  ;;  %1153 = vmatprep.subr.bf16.mxu0 %v1320_v20  ;;  %v1363_v57 = vld [vmem:[%s1630_s1 + $0x100] sm:$0xff]   ;;  %s226_s9 = scalar_lea.vmem %s1632_s3, %s1071_s6 }
  0x21   : > { %1193 = vmatprep.subr.bf16.mxu1 %v1321_v21 }
  0x23   : > { %1154 = vmatpush3.bf16.msra.mxu0 %v1322_v22 }
  0x24   : > { %1194 = vmatpush3.bf16.msra.mxu1 %v1323_v23  ;;  %1155 = vmatprep.subr.bf16.mxu0 %v1324_v24 }
  0x25   : > { %1195 = vmatprep.subr.bf16.mxu1 %v1325_v25  ;;  %v1072_v25 = vld [vmem:[%s1631_s2] ss:$0 sm:$0xff] }
  0x27   : > { %1156 = vmatpush3.bf16.msra.mxu0 %v1326_v26 }
  0x28   : > { %1196 = vmatpush3.bf16.msra.mxu1 %v1327_v27  ;;  %1157 = vmatprep.subr.bf16.mxu0 %v1328_v28 }
  0x29   : > { %1197 = vmatprep.subr.bf16.mxu1 %v1329_v29 }
  0x2b   : > { %1158 = vmatpush3.bf16.msra.mxu0 %v1330_v30 }
  0x2c   : > { %1198 = vmatpush3.bf16.msra.mxu1 %v1331_v31  ;;  %1235 = vmatprep.subr.bf16.mxu0 %v1338_v36 }
  0x2d   : > { %1259 = vmatprep.subr.bf16.mxu1 %v1338_v36 }
  0x2e   : > { %717 = vmatmul.mubr.bf16.vlgmr.msra.gmra.mxu0 %v1332_v32 }
  0x2f   : > { %782 = vmatmul.mubr.bf16.vlgmr.msra.gmra.mxu1 %v1335_v34  ;;  %1236 = vmatpush3.bf16.msra.mxu0 %v1338_v36 }
  0x30   : > { %1267 = vmatpush3.bf16.msra.mxu1 %v1338_v36  ;;  %1237 = vmatprep.subr.bf16.mxu0 %v1339_v37 }
  0x31   : > { %1260 = vmatprep.subr.bf16.mxu1 %v1339_v37  ;;  %724 = vmatprep.mubr.bf16.mxu0 %v1340_v38 }
  0x32   : > { %789 = vmatprep.mubr.bf16.mxu1 %v1342_v39 }
  0x33   : > { %1238 = vmatpush3.bf16.msra.mxu0 %v1339_v37 }
  0x34   : > { %1268 = vmatpush3.bf16.msra.mxu1 %v1339_v37  ;;  %1239 = vmatprep.subr.bf16.mxu0 %v1346_v41 }
  0x35   : > { %1261 = vmatprep.subr.bf16.mxu1 %v1346_v41 }
  0x36   : > { %725 = vmatmul.mubr.bf16.gmra.mxu0 %v1344_v40 }
  0x37   : > { %790 = vmatmul.mubr.bf16.gmra.mxu1 %v1345_v42  ;;  %732 = vmatprep.mubr.bf16.mxu0 %v1348_v43 }
  0x38   : > { %1240 = vmatpush3.bf16.msra.mxu0 %v1346_v41  ;;  %797 = vmatprep.mubr.bf16.mxu1 %v1350_v45 }
  0x39   : > { %1269 = vmatpush3.bf16.msra.mxu1 %v1346_v41  ;;  %1241 = vmatprep.subr.bf16.mxu0 %v1347_v44 }
  0x3a   : > { %1262 = vmatprep.subr.bf16.mxu1 %v1347_v44 }
  0x3c   : > { %1242 = vmatpush3.bf16.msra.mxu0 %v1347_v44 }
  0x3d   : > { %1270 = vmatpush3.bf16.msra.mxu1 %v1347_v44  ;;  %1243 = vmatprep.subr.bf16.mxu0 %v1354_v46 }
  0x3e   : > { %733 = vmatmul.mubr.bf16.gmra.mxu0 %v1352_v47  ;;  %1263 = vmatprep.subr.bf16.mxu1 %v1354_v46 }
  0x3f   : > { %798 = vmatmul.mubr.bf16.gmra.mxu1 %v1353_v48  ;;  %740 = vmatprep.mubr.bf16.mxu0 %v1356_v49 }
  0x40   : > { %1244 = vmatpush3.bf16.msra.mxu0 %v1354_v46  ;;  %805 = vmatprep.mubr.bf16.mxu1 %v1358_v50 }
  0x41   : > { %1271 = vmatpush3.bf16.msra.mxu1 %v1354_v46  ;;  %1245 = vmatprep.subr.bf16.mxu0 %v1355_v51 }
  0x42   : > { %1264 = vmatprep.subr.bf16.mxu1 %v1355_v51 }
  0x44   : > { %1246 = vmatpush3.bf16.msra.mxu0 %v1355_v51 }
  0x45   : > { %1272 = vmatpush3.bf16.msra.mxu1 %v1355_v51  ;;  %1247 = vmatprep.subr.bf16.mxu0 %v1362_v52 }
  0x46   : > { %741 = vmatmul.mubr.bf16.gmra.mxu0 %v1360_v53  ;;  %1265 = vmatprep.subr.bf16.mxu1 %v1362_v52 }
  0x47   : > { %806 = vmatmul.mubr.bf16.gmra.mxu1 %v1361_v54  ;;  %1251 = vmatprep.mubr.bf16.mxu0 %v1364_v55 }
  0x48   : > { %1248 = vmatpush3.bf16.msra.mxu0 %v1362_v52  ;;  %1255 = vmatprep.mubr.bf16.mxu1 %v1365_v56 }
  0x49   : > { %1273 = vmatpush3.bf16.msra.mxu1 %v1362_v52  ;;  %1249 = vmatprep.subr.bf16.mxu0 %v1363_v57 }
  0x4a   : > { %1266 = vmatprep.subr.bf16.mxu1 %v1363_v57 }
  0x4c   : > { %1250 = vmatpush3.bf16.msra.mxu0 %v1363_v57 }
  0x4d   : > { %1274 = vmatpush3.bf16.msra.mxu1 %v1363_v57 }
  0x4f   : > { %1252 = vmatmul.mubr.bf16.vlgmr.msra.gmra.mxu0 %v1366_v58 }
  0x50   : > { %1256 = vmatmul.mubr.bf16.vlgmr.msra.gmra.mxu1 %v1367_v59 }
  0xee   : > { %v1159_v60 = vpop.f32.mrf.mxu0 }
  0xef   : > { %v1199_v61 = vpop.f32.mrf.mxu1 }
  0xf0   : > { %v1160_v62 = vpop.f32.mrf.mxu0 }
  0xf1   : > { %v1200_v63 = vpop.f32.mrf.mxu1  ;;  %v1161_v23 = vadd.f32 %v1160_v62, %v1159_v60 }
  0xf2   : > { %v1162_v0 = vpop.f32.mrf.mxu0  ;;  %v1201_v44 = vadd.f32 %v1200_v63, %v1199_v61 }
  0xf3   : > { %v1202_v1 = vpop.f32.mrf.mxu1  ;;  %v719_v35 = vadd.f32 %v1161_v23, %v1072_v25 }
  0xf4   : > { %v1163_v2 = vpop.f32.mrf.mxu0 }
  0xf5   : > { %v1203_v3 = vpop.f32.mrf.mxu1  ;;  %v1164_v36 = vadd.f32 %v1163_v2, %v1162_v0  ;;  %v784_v55 = vadd.f32 %v1201_v44, %v719_v35 }
  0xf6   : > { %v1165_v4 = vpop.f32.mrf.mxu0  ;;  %v1204_v62 = vadd.f32 %v1203_v3, %v1202_v1 }
  0xf7   : > { %v1205_v5 = vpop.f32.mrf.mxu1  ;;  %v722_v51 = vadd.f32 %v1164_v36, %v1072_v25 }
  0xf8   : > { %v1166_v6 = vpop.f32.mrf.mxu0 }
  0xf9   : > { %v1206_v7 = vpop.f32.mrf.mxu1  ;;  %v1167_v20 = vadd.f32 %v1166_v6, %v1165_v4 }
  0xfa   : > { %v1168_v8 = vpop.f32.mrf.mxu0  ;;  %v1207_v37 = vadd.f32 %v1206_v7, %v1205_v5 }
  0xfb   : > { %v1208_v9 = vpop.f32.mrf.mxu1  ;;  %v727_v29 = vadd.f32 %v1167_v20, %v1072_v25 }
  0xfc   : > { %v1169_v10 = vpop.f32.mrf.mxu0 }
  0xfd   : > { %v1209_v11 = vpop.f32.mrf.mxu1  ;;  %v1170_v30 = vadd.f32 %v1169_v10, %v1168_v8  ;;  %v792_v46 = vadd.f32 %v1207_v37, %v727_v29 }
  0xfe   : > { %v1171_v12 = vpop.f32.mrf.mxu0  ;;  %v1210_v52 = vadd.f32 %v1209_v11, %v1208_v9 }
  0xff   : > { %v1211_v13 = vpop.f32.mrf.mxu1  ;;  %v730_v45 = vadd.f32 %v1170_v30, %v1072_v25 }
 0x100   : > { %v1172_v14 = vpop.f32.mrf.mxu0 }
 0x101   : > { %v1212_v15 = vpop.f32.mrf.mxu1  ;;  %v1173_v26 = vadd.f32 %v1172_v14, %v1171_v12  ;;  %v795_v63 = vadd.f32 %v1210_v52, %v730_v45  ;;  %v787_v12 = vadd.f32 %v1204_v62, %v722_v51 }
 0x102   : > { %v1174_v16 = vpop.f32.mrf.mxu0  ;;  %v1213_v47 = vadd.f32 %v1212_v15, %v1211_v13 }
 0x103   : > { %v1214_v17 = vpop.f32.mrf.mxu1  ;;  %v735_v39 = vadd.f32 %v1173_v26, %v1072_v25 }
 0x104   : > { %v1175_v18 = vpop.f32.mrf.mxu0 }
 0x105   : > { %v1215_v19 = vpop.f32.mrf.mxu1  ;;  %v1176_v40 = vadd.f32 %v1175_v18, %v1174_v16  ;;  %v800_v59 = vadd.f32 %v1213_v47, %v735_v39 }
 0x106   : > { %v1177_v21 = vpop.f32.mrf.mxu0  ;;  %v1216_v4 = vadd.f32 %v1215_v19, %v1214_v17 }
 0x107   : > { %v1217_v22 = vpop.f32.mrf.mxu1  ;;  %v738_v56 = vadd.f32 %v1176_v40, %v1072_v25 }
 0x108   : > { %v1178_v24 = vpop.f32.mrf.mxu0 }
 0x109   : > { %v1179_v27 = vadd.f32 %v1178_v24, %v1177_v21  ;;  %v1218_v28 = vpop.f32.mrf.mxu1  ;;  %v803_v18 = vadd.f32 %v1216_v4, %v738_v56 }
 0x10a   : > { %v1180_v31 = vpop.f32.mrf.mxu0  ;;  %v1219_v33 = vadd.f32 %v1218_v28, %v1217_v22 }
 0x10b   : > { %v743_v32 = vadd.f32 %v1179_v27, %v1072_v25  ;;  %v1220_v34 = vpop.f32.mrf.mxu1 }
 0x10c   : > { %v1181_v38 = vpop.f32.mrf.mxu0 }
 0x10d   : > { %v1182_v41 = vadd.f32 %v1181_v38, %v1180_v31  ;;  %v1221_v42 = vpop.f32.mrf.mxu1  ;;  %v808_v43 = vadd.f32 %v1219_v33, %v743_v32 }
 0x10e   : > { %v1222_v49 = vadd.f32 %v1221_v42, %v1220_v34 }
 0x10f   : > { %v746_v48 = vadd.f32 %v1182_v41, %v1072_v25  ;;  %v1253_v50 = vpop.f32.mrf.mxu0 }
 0x110   : > { %v857_v53 = vadd.f32 %v1253_v50, %v792_v46  ;;  %v1257_v54 = vpop.f32.mrf.mxu1 }
 0x111   : > { %v873_v57 = vadd.f32 %v1257_v54, %v808_v43  ;;  %v848_v58 = vpop.f32.mrf.mxu0  ;;  %v811_v60 = vadd.f32 %v1222_v49, %v746_v48 }
 0x112   : > { %v1135_v0 = vclamps-f32 %v857_v53, 30.0  ;;  %v849_v2 = vadd.f32 %v848_v58, %v784_v55  ;;  %v864_v61 = vpop.f32.mrf.mxu1 }
 0x113   : > { %v1139_v5 = vclamps-f32 %v873_v57, 30.0  ;;  %v865_v6 = vadd.f32 %v864_v61, %v800_v59  ;;  %v1254_v7 = vpop.f32.mrf.mxu0 }
 0x114   : > { %v897_v8 = vsub.f32 0.0, %v1135_v0  ;;  %v1133_v10 = vclamps-f32 %v849_v2, 30.0  ;;  %v860_v9 = vadd.f32 %v1254_v7, %v795_v63  ;;  %v1258_v11 = vpop.f32.mrf.mxu1 }
 0x115   : > { %v901_v13 = vsub.f32 0.0, %v1139_v5  ;;  %v1137_v14 = vclamps-f32 %v865_v6, 30.0  ;;  %v876_v15 = vadd.f32 %v1258_v11, %v811_v60  ;;  %v851_v16 = vpop.f32.mrf.mxu0 }
 0x116   : > { %v907_v20 = vmul.f32 1.442695, %v897_v8  ;;  %v895_v1 = vsub.f32 0.0, %v1133_v10  ;;  %v1136_v3 = vclamps-f32 %v860_v9, 30.0  ;;  %v852_v21 = vadd.f32 %v851_v16, %v787_v12  ;;  %v867_v22 = vpop.f32.mrf.mxu1 }
 0x117   : > { %v915_v23 = vmul.f32 1.442695, %v901_v13  ;;  %v899_v17 = vsub.f32 0.0, %v1137_v14  ;;  %v1140_v19 = vclamps-f32 %v876_v15, 30.0  ;;  %v868_v24 = vadd.f32 %v867_v22, %v803_v18 }
 0x118   : > { %1368 = vpow2.f32 %v907_v20  ;;  %v903_v25 = vmul.f32 1.442695, %v895_v1  ;;  %v898_v26 = vsub.f32 0.0, %v1136_v3  ;;  %v1134_v27 = vclamps-f32 %v852_v21, 30.0 }
 0x119   : > { %1370 = vpow2.f32 %v915_v23  ;;  %v911_v28 = vmul.f32 1.442695, %v899_v17  ;;  %v902_v29 = vsub.f32 0.0, %v1140_v19  ;;  %v1138_v30 = vclamps-f32 %v868_v24, 30.0 }
 0x11a   : > { %1372 = vpow2.f32 %v903_v25  ;;  %v909_v31 = vmul.f32 1.442695, %v898_v26  ;;  %v896_v32 = vsub.f32 0.0, %v1134_v27 }
 0x11b   : > { %1374 = vpow2.f32 %v911_v28  ;;  %v917_v33 = vmul.f32 1.442695, %v902_v29  ;;  %v900_v34 = vsub.f32 0.0, %v1138_v30 }
 0x11c   : > { %1376 = vpow2.f32 %v909_v31  ;;  %v905_v35 = vmul.f32 1.442695, %v896_v32 }
 0x11d   : > { %1378 = vpow2.f32 %v917_v33  ;;  %v913_v36 = vmul.f32 1.442695, %v900_v34 }
 0x11e   : > { %1380 = vpow2.f32 %v905_v35 }
 0x11f   : > { %1382 = vpow2.f32 %v913_v36 }
 0x125   : > { %v1369_v37 = vpop.eup %1368 }
 0x126   : > { %v1371_v38 = vpop.eup %1370  ;;  %v921_v39 = vadd.f32 1.0, %v1369_v37 }
 0x127   : > { %v1373_v40 = vpop.eup %1372  ;;  %v925_v41 = vadd.f32 1.0, %v1371_v38 }
 0x128   : > { %v1375_v42 = vpop.eup %1374  ;;  %1384 = vrcp.f32 %v921_v39  ;;  %v919_v43 = vadd.f32 1.0, %v1373_v40 }
 0x129   : > { %v1377_v44 = vpop.eup %1376  ;;  %1386 = vrcp.f32 %v925_v41  ;;  %v923_v45 = vadd.f32 1.0, %v1375_v42 }
 0x12a   : > { %v1379_v46 = vpop.eup %1378  ;;  %1388 = vrcp.f32 %v919_v43  ;;  %v922_v47 = vadd.f32 1.0, %v1377_v44 }
 0x12b   : > { %v1381_v48 = vpop.eup %1380  ;;  %1390 = vrcp.f32 %v923_v45  ;;  %v926_v49 = vadd.f32 1.0, %v1379_v46 }
 0x12c   : > { %v1383_v50 = vpop.eup %1382  ;;  %1392 = vrcp.f32 %v922_v47  ;;  %v920_v51 = vadd.f32 1.0, %v1381_v48 }
 0x12d   : > { %1394 = vrcp.f32 %v926_v49  ;;  %v924_v52 = vadd.f32 1.0, %v1383_v50 }
 0x12e   : > { %1396 = vrcp.f32 %v920_v51 }
 0x12f   : > { %1398 = vrcp.f32 %v924_v52 }
 0x135   : > { %v1385_v53 = vpop.eup %1384 }
 0x136   : > { %v1387_v54 = vpop.eup %1386  ;;  %v937_v55 = vmax.f32 %v1385_v53, 0.0 }
 0x137   : > { %v1389_v56 = vpop.eup %1388  ;;  %v941_v57 = vmax.f32 %v1387_v54, 0.0 }
 0x138   : > { %v1391_v58 = vpop.eup %1390  ;;  %v945_v59 = vmin.f32 %v937_v55, 1.0  ;;  %v935_v60 = vmax.f32 %v1389_v56, 0.0 }
 0x139   : > { %v1393_v62 = vpop.eup %1392  ;;  %v949_v0 = vmin.f32 %v941_v57, 1.0  ;;  %v939_v2 = vmax.f32 %v1391_v58, 0.0 }
 0x13a   : > { %v1395_v61 = vpop.eup %1394  ;;  %953 = vst [vmem:[%s226_s9 + $0x10] sm:$0xff] %v945_v59  ;;  %v943_v63 = vmin.f32 %v935_v60, 1.0  ;;  %v938_v4 = vmax.f32 %v1393_v62, 0.0 }
 0x13b   : > { %v1397_v5 = vpop.eup %1396  ;;  %957 = vst [vmem:[%s226_s9 + $0x30] sm:$0xff] %v949_v0  ;;  %v947_v6 = vmin.f32 %v939_v2, 1.0  ;;  %v942_v7 = vmax.f32 %v1395_v61, 0.0 }
 0x13c   : > { %v1399_v8 = vpop.eup %1398  ;;  %951 = vst [vmem:[%s226_s9] sm:$0xff] %v943_v63  ;;  %v946_v10 = vmin.f32 %v938_v4, 1.0  ;;  %v936_v9 = vmax.f32 %v1397_v5, 0.0 }
 0x13d   : > { %955 = vst [vmem:[%s226_s9 + $0x20] sm:$0xff] %v947_v6  ;;  %v950_v11 = vmin.f32 %v942_v7, 1.0  ;;  %v940_v12 = vmax.f32 %v1399_v8, 0.0 }
 0x13e   : > { %954 = vst [vmem:[%s226_s9 + $0x18] sm:$0xff] %v946_v10  ;;  %v944_v13 = vmin.f32 %v936_v9, 1.0 }
 0x13f   : > { %958 = vst [vmem:[%s226_s9 + $0x38] sm:$0xff] %v950_v11  ;;  %v948_v14 = vmin.f32 %v940_v12, 1.0 }
 0x140   : > { %952 = vst [vmem:[%s226_s9 + $0x8] sm:$0xff] %v944_v13 }
 0x141   : > { %956 = vst [vmem:[%s226_s9 + $0x28] sm:$0xff] %v948_v14 }
 0x142 PF: > { %s13_s14 = sadd.s32 1, %s1422_s14   ;;  %s1633_s12 = smov %s1418_s13 }
 0x143   : > { %p10_p5 = scmp.ge.s32.totalorder %s13_s14, 4   ;;  %s1634_s13 = smov %s1636_s15 }
 0x145   :  { %12 = sbr.rel (!%p10_p5) target bundleno = 2 (0x2), region = 68 }

</bundles_post_ra>
